<compile_context>
chip_gen: v5e
topology: v5e:2x2
jax: 0.10.0
libtpu: 0.0.40
codegen_flags: <defaults>
</compile_context>

<pallas_src>
import math

import numpy as np

import jax
import jax.numpy as jnp
from jax.experimental import pallas as pl
from jax.experimental.pallas import tpu as pltpu


def _bilinear_coeffs(out_size, in_size):
    """Static (idx0, idx1, frac) per output index, PyTorch bilinear align_corners=False."""
    scale = in_size / out_size
    i0s, i1s, fracs = [], [], []
    for i in range(out_size):
        src = max((i + 0.5) * scale - 0.5, 0.0)
        i0 = min(int(math.floor(src)), in_size - 1)
        i1 = min(i0 + 1, in_size - 1)
        i0s.append(i0)
        i1s.append(i1)
        fracs.append(float(src - math.floor(src)))
    return i0s, i1s, fracs


def _static_operands(N, H, W, h_s, w_s, c1, cb, c2):
    """Static interpolation / placement / spread matrices (numpy, shape-only)."""
    C0 = c1 + cb
    ry0, ry1, rfy = _bilinear_coeffs(H, h_s)
    cx0, cx1, cfx = _bilinear_coeffs(W, w_s)

    # Row (height) interpolation, block-diagonal over the batch: (N*H, N*h_s).
    Ry = np.zeros((H, h_s), np.float32)
    for i in range(H):
        Ry[i, ry0[i]] += 1.0 - rfy[i]
        Ry[i, ry1[i]] += rfy[i]
    RyN = np.kron(np.eye(N, dtype=np.float32), Ry)

    # Column (width) interpolation + placement of upsampled-x channels into the
    # concat+halo lane layout: lane (w_out+1)*C0 + c  <-  sum_w_in Cx[w_out,w_in]*rows[w_in,c].
    Ucol = np.zeros((w_s * c1, (W + 2) * C0), np.float32)
    for w_out in range(W):
        for (wi, wt) in ((cx0[w_out], 1.0 - cfx[w_out]), (cx1[w_out], cfx[w_out])):
            for c in range(c1):
                Ucol[wi * c1 + c, (w_out + 1) * C0 + c] += wt

    # Placement of the down tensor into channels [c1, c1+cb) of the same layout.
    Dplace = np.zeros((W * cb, (W + 2) * C0), np.float32)
    for w in range(W):
        for c in range(cb):
            Dplace[w * cb + c, (w + 1) * C0 + c1 + c] = 1.0

    # "Spread": per-(n,h) sum over width, replicated back to every (w, c) lane.
    spread = np.kron(np.ones((W, W), np.float32), np.eye(c2, dtype=np.float32))  # (W*c2, W*c2)

    return (jnp.asarray(RyN), jnp.asarray(Ucol), jnp.asarray(Dplace), jnp.asarray(spread))


def _band_weights(w_hwio, W):
    """Fold the kx shift + channel mixing of a 3x3 HWIO conv weight into banded matrices.

    Returns (3, (W+2)*Cin, W*Cout): out[ky, w_in*Cin+ci, w*Cout+co] = w[ky, w_in-w, ci, co]
    for w_in - w in {0,1,2}, else 0.  (Pre-expanded once per call in the wrapper; for a real
    model this would be cached per weight set.)
    """
    _, _, cin, cout = w_hwio.shape
    S = np.zeros((3, W + 2, W), np.float32)
    for kx in range(3):
        S[kx, np.arange(W) + kx, np.arange(W)] = 1.0
    out = jnp.einsum('xaw,yxio->yaiwo', jnp.asarray(S), w_hwio.astype(jnp.float32))
    return out.reshape(3, (W + 2) * cin, W * cout)


def _make_kernel(N, H, W, c1, cb, c2, eps):
    C0 = c1 + cb
    L0 = (W + 2) * C0      # lane width of the block-0 (concat) halo buffer rows
    L2 = (W + 2) * c2      # lane width of the block-1/2 halo buffer rows
    LO = W * c2            # lane width of each conv-block output row
    NH = N * H
    M = N * H * W
    inv_m = 1.0 / float(M)

    def kernel(x2d_ref, down2d_ref, ryn_ref, ucol_ref, dplace_ref,
               w0_ref, w1_ref, w2_ref, gamma_ref, beta_ref, spread_ref,
               o_ref, buf0_ref, buf12_ref):
        f32 = jnp.float32

        # ---- zero only the halo ring (review item): top/bottom rows of both buffers and the
        #      left/right lane strips of buf12's interior rows (buf0's lane strips come out of
        #      the placement matmul as exact zeros, so the full-buffer zero pass is gone).
        zrow0 = jnp.zeros((N, 1, L0), f32)
        buf0_ref[:, 0:1, :] = zrow0
        buf0_ref[:, H + 1:H + 2, :] = zrow0
        zrow2 = jnp.zeros((N, 1, L2), f32)
        buf12_ref[:, 0:1, :] = zrow2
        buf12_ref[:, H + 1:H + 2, :] = zrow2
        zcol = jnp.zeros((N, H, c2), f32)
        buf12_ref[:, 1:H + 1, 0:c2] = zcol
        buf12_ref[:, 1:H + 1, (W + 1) * c2:(W + 2) * c2] = zcol

        # ---- bilinear upsample (align_corners=False) + channel concat as 3 dense MXU matmuls.
        rows = jnp.dot(ryn_ref[...], x2d_ref[...], preferred_element_type=f32)       # (NH, w_s*c1)
        interior = (jnp.dot(rows, ucol_ref[...], preferred_element_type=f32)
                    + jnp.dot(down2d_ref[...], dplace_ref[...],
                              preferred_element_type=f32))                           # (NH, L0)
        buf0_ref[:, 1:H + 1, :] = interior.reshape(N, H, L0)

        def conv_bn_relu(src_ref, wb_ref, lin, blk):
            # 3x3 conv (pad=1, no bias) = 3 banded matmuls (one per ky), K = (W+2)*Cin.
            acc = jnp.dot(src_ref[:, 0:H, :].reshape(NH, lin), wb_ref[0],
                          preferred_element_type=f32)
            for ky in (1, 2):
                acc = acc + jnp.dot(src_ref[:, ky:ky + H, :].reshape(NH, lin), wb_ref[ky],
                                    preferred_element_type=f32)                       # (NH, LO)
            # BatchNorm (training-mode batch stats, biased var, two-pass) + ReLU.
            # Per-channel stats are lane-expanded via the 0/1 spread matrix.
            mean_l = jnp.sum(jnp.dot(acc, spread_ref[...], preferred_element_type=f32),
                             axis=0, keepdims=True) * inv_m                           # (1, LO)
            cent = acc - mean_l
            var_l = jnp.sum(jnp.dot(cent * cent, spread_ref[...], preferred_element_type=f32),
                            axis=0, keepdims=True) * inv_m                            # (1, LO)
            scale_l = gamma_ref[blk:blk + 1, :] * jax.lax.rsqrt(var_l + eps)
            return jnp.maximum(cent * scale_l + beta_ref[blk:blk + 1, :], 0.0)        # (NH, LO)

        # Block 0 reads the concat buffer; blocks 1/2 read/write the c2-wide buffer interior.
        y = conv_bn_relu(buf0_ref, w0_ref, L0, 0)
        buf12_ref[:, 1:H + 1, c2:(W + 1) * c2] = y.reshape(N, H, LO)
        y = conv_bn_relu(buf12_ref, w1_ref, L2, 1)
        buf12_ref[:, 1:H + 1, c2:(W + 1) * c2] = y.reshape(N, H, LO)
        y = conv_bn_relu(buf12_ref, w2_ref, L2, 2)
        o_ref[...] = y                                                                # (NH, W*c2)

    return kernel


def stack_decoder_forward(params, x_nchw, down_nchw, eps=1e-4):
    """StackDecoder.forward.  Inputs/outputs are NCHW (PyTorch convention)."""
    x = jnp.transpose(x_nchw, (0, 2, 3, 1)).astype(jnp.float32)        # -> NHWC
    down = jnp.transpose(down_nchw, (0, 2, 3, 1)).astype(jnp.float32)  # -> NHWC
    N, h_s, w_s, c1 = x.shape
    _, H, W, cb = down.shape
    c2 = params["w0"].shape[-1]
    C0 = c1 + cb
    L0, L2, LO = (W + 2) * C0, (W + 2) * c2, W * c2

    RyN, Ucol, Dplace, spread = _static_operands(N, H, W, h_s, w_s, c1, cb, c2)
    W0b = _band_weights(params["w0"], W)    # (3, (W+2)*(c1+cb), W*c2)
    W1b = _band_weights(params["w1"], W)    # (3, (W+2)*c2,      W*c2)
    W2b = _band_weights(params["w2"], W)
    # gamma/beta pre-tiled to the (w, c) lane layout (static expansion, wrapper-side).
    gammas = jnp.stack([jnp.tile(params[f"gamma{i}"].astype(jnp.float32), W) for i in range(3)])
    betas = jnp.stack([jnp.tile(params[f"beta{i}"].astype(jnp.float32), W) for i in range(3)])

    # Lane-dense 2-D views of the activations (pure reshapes).
    x2d = x.reshape(N * h_s, w_s * c1)
    down2d = down.reshape(N * H, W * cb)

    kernel = _make_kernel(N, H, W, c1, cb, c2, eps)

    def full(shape):
        return pl.BlockSpec(shape, lambda i: (0,) * len(shape))

    out2d = pl.pallas_call(
        kernel,
        out_shape=jax.ShapeDtypeStruct((N * H, LO), jnp.float32),
        grid=(1,),
        in_specs=[
            full((N * h_s, w_s * c1)),     # x (row-major NHWC reshape)
            full((N * H, W * cb)),         # down
            full(tuple(RyN.shape)),        # row-interp (block-diag over batch)
            full(tuple(Ucol.shape)),       # col-interp + concat placement for upsampled x
            full(tuple(Dplace.shape)),     # concat placement for down
            full(tuple(W0b.shape)),        # banded conv weights, block 0
            full(tuple(W1b.shape)),        # banded conv weights, block 1
            full(tuple(W2b.shape)),        # banded conv weights, block 2
            full(tuple(gammas.shape)),     # BN gamma, lane-tiled (3, W*c2)
            full(tuple(betas.shape)),      # BN beta,  lane-tiled (3, W*c2)
            full(tuple(spread.shape)),     # per-channel lane-spread matrix
        ],
        out_specs=full((N * H, LO)),
        scratch_shapes=[
            pltpu.VMEM((N, H + 2, L0), jnp.float32),   # halo'd concat input (block 0)
            pltpu.VMEM((N, H + 2, L2), jnp.float32),   # halo'd block-0/1 outputs (blocks 1/2)
        ],
        compiler_params=pltpu.CompilerParams(dimension_semantics=("arbitrary",)),
    )(x2d, down2d, RyN, Ucol, Dplace, W0b, W1b, W2b, gammas, betas, spread)

    out = out2d.reshape(N, H, W, c2)
    return jnp.transpose(out, (0, 3, 1, 2))  # back to NCHW


# ------------------------------ pure-JAX reference ------------------------------

def _bilinear_upsample_ref(x, out_h, out_w):
    """F.interpolate(mode='bilinear', align_corners=False) reference, NHWC."""
    n, h, w, c = x.shape
    ys = jnp.clip((jnp.arange(out_h, dtype=jnp.float32) + 0.5) * (h / out_h) - 0.5, 0.0, None)
    xs = jnp.clip((jnp.arange(out_w, dtype=jnp.float32) + 0.5) * (w / out_w) - 0.5, 0.0, None)
    y0 = jnp.minimum(jnp.floor(ys).astype(jnp.int32), h - 1)
    x0 = jnp.minimum(jnp.floor(xs).astype(jnp.int32), w - 1)
    y1 = jnp.minimum(y0 + 1, h - 1)
    x1 = jnp.minimum(x0 + 1, w - 1)
    wy = (ys - y0.astype(jnp.float32))[None, :, None, None]
    wx = (xs - x0.astype(jnp.float32))[None, None, :, None]
    rows0 = jnp.take(x, y0, axis=1)
    rows1 = jnp.take(x, y1, axis=1)
    p00 = jnp.take(rows0, x0, axis=2)
    p01 = jnp.take(rows0, x1, axis=2)
    p10 = jnp.take(rows1, x0, axis=2)
    p11 = jnp.take(rows1, x1, axis=2)
    top = p00 * (1.0 - wx) + p01 * wx
    bot = p10 * (1.0 - wx) + p11 * wx
    return top * (1.0 - wy) + bot * wy


def _reference_forward(params, x_nchw, down_nchw, eps=1e-4):
    x = jnp.transpose(x_nchw, (0, 2, 3, 1)).astype(jnp.float32)
    down = jnp.transpose(down_nchw, (0, 2, 3, 1)).astype(jnp.float32)
    H, W = down.shape[1], down.shape[2]
    y = jnp.concatenate([_bilinear_upsample_ref(x, H, W), down], axis=-1)
    for i in range(3):
        y = jax.lax.conv_general_dilated(
            y, params[f"w{i}"], window_strides=(1, 1), padding=((1, 1), (1, 1)),
            dimension_numbers=("NHWC", "HWIO", "NHWC"))
        mean = jnp.mean(y, axis=(0, 1, 2))
        var = jnp.mean(jnp.square(y - mean), axis=(0, 1, 2))
        y = (y - mean) / jnp.sqrt(var + eps) * params[f"gamma{i}"] + params[f"beta{i}"]
        y = jnp.maximum(y, 0.0)
    return jnp.transpose(y, (0, 3, 1, 2))


# ------------------------------------ main ---------------------------------------

if __name__ == "__main__":
    # StackDecoder(big_channel=8, channel1=8, channel2=16)
    big_channel, channel1, channel2 = 8, 8, 16
    N = 2
    h_small, w_small = 8, 8      # x spatial size (to be upsampled)
    H, W = 16, 16                # down_tensor spatial size

    key = jax.random.PRNGKey(0)
    k = jax.random.split(key, 11)

    x = jax.random.normal(k[0], (N, channel1, h_small, w_small), dtype=jnp.float32)
    down = jax.random.normal(k[1], (N, big_channel, H, W), dtype=jnp.float32)

    cin0 = channel1 + big_channel
    params = {
        # conv weights stored as (3, 3, Cin, Cout) = HWIO (same math as OIHW torch weights)
        "w0": 0.1 * jax.random.normal(k[2], (3, 3, cin0, channel2), dtype=jnp.float32),
        "w1": 0.1 * jax.random.normal(k[3], (3, 3, channel2, channel2), dtype=jnp.float32),
        "w2": 0.1 * jax.random.normal(k[4], (3, 3, channel2, channel2), dtype=jnp.float32),
        "gamma0": 1.0 + 0.1 * jax.random.normal(k[5], (channel2,), dtype=jnp.float32),
        "gamma1": 1.0 + 0.1 * jax.random.normal(k[6], (channel2,), dtype=jnp.float32),
        "gamma2": 1.0 + 0.1 * jax.random.normal(k[7], (channel2,), dtype=jnp.float32),
        "beta0": 0.1 * jax.random.normal(k[8], (channel2,), dtype=jnp.float32),
        "beta1": 0.1 * jax.random.normal(k[9], (channel2,), dtype=jnp.float32),
        "beta2": 0.1 * jax.random.normal(k[10], (channel2,), dtype=jnp.float32),
    }

    out = jax.jit(stack_decoder_forward)(params, x, down)
    out = jax.block_until_ready(out)
    assert out.shape == (N, channel2, H, W), out.shape

    ref = jax.block_until_ready(_reference_forward(params, x, down))
    max_err = float(jnp.max(jnp.abs(out - ref)))
    assert jnp.allclose(out, ref, rtol=2e-3, atol=2e-3), f"mismatch, max_err={max_err}"

    print("KERNEL_OK")
</pallas_src>

<mosaic_0001>
module attributes {stable_mosaic.version = 11 : i64} {
  func.func @kernel(%arg0: i32, %arg1: memref<16x64xf32, #tpu.memory_space<vmem>>, %arg2: memref<32x128xf32, #tpu.memory_space<vmem>>, %arg3: memref<32x16xf32, #tpu.memory_space<vmem>>, %arg4: memref<64x288xf32, #tpu.memory_space<vmem>>, %arg5: memref<128x288xf32, #tpu.memory_space<vmem>>, %arg6: memref<3x288x256xf32, #tpu.memory_space<vmem>>, %arg7: memref<3x288x256xf32, #tpu.memory_space<vmem>>, %arg8: memref<3x288x256xf32, #tpu.memory_space<vmem>>, %arg9: memref<3x256xf32, #tpu.memory_space<vmem>>, %arg10: memref<3x256xf32, #tpu.memory_space<vmem>>, %arg11: memref<256x256xf32, #tpu.memory_space<vmem>>, %arg12: memref<32x256xf32, #tpu.memory_space<vmem>>, %arg13: memref<2x18x288xf32, #tpu.memory_space<vmem>>, %arg14: memref<2x18x288xf32, #tpu.memory_space<vmem>>) attributes {dimension_semantics = [#tpu.dimension_semantics<arbitrary>], iteration_bounds = array<i64: 1>, scalar_prefetch = 0 : i64, scratch_operands = 2 : i64, tpu.core_type = #tpu.core_type<tc>, window_params = [{pipeline_mode = #tpu.pipeline_mode<synchronous>, transform_indices = @transform_0, window_bounds = array<i64: 16, 64>}, {pipeline_mode = #tpu.pipeline_mode<synchronous>, transform_indices = @transform_1, window_bounds = array<i64: 32, 128>}, {pipeline_mode = #tpu.pipeline_mode<synchronous>, transform_indices = @transform_2, window_bounds = array<i64: 32, 16>}, {pipeline_mode = #tpu.pipeline_mode<synchronous>, transform_indices = @transform_3, window_bounds = array<i64: 64, 288>}, {pipeline_mode = #tpu.pipeline_mode<synchronous>, transform_indices = @transform_4, window_bounds = array<i64: 128, 288>}, {pipeline_mode = #tpu.pipeline_mode<synchronous>, transform_indices = @transform_5, window_bounds = array<i64: 3, 288, 256>}, {pipeline_mode = #tpu.pipeline_mode<synchronous>, transform_indices = @transform_6, window_bounds = array<i64: 3, 288, 256>}, {pipeline_mode = #tpu.pipeline_mode<synchronous>, transform_indices = @transform_7, window_bounds = array<i64: 3, 288, 256>}, {pipeline_mode = #tpu.pipeline_mode<synchronous>, transform_indices = @transform_8, window_bounds = array<i64: 3, 256>}, {pipeline_mode = #tpu.pipeline_mode<synchronous>, transform_indices = @transform_9, window_bounds = array<i64: 3, 256>}, {pipeline_mode = #tpu.pipeline_mode<synchronous>, transform_indices = @transform_10, window_bounds = array<i64: 256, 256>}, {pipeline_mode = #tpu.pipeline_mode<synchronous>, transform_indices = @transform_11, window_bounds = array<i64: 32, 256>}]} {
    %cst = arith.constant 0.000000e+00 : f32
    %0 = vector.broadcast %cst : f32 to vector<2x1x288xf32>
    %c0 = arith.constant 0 : index
    %c0_0 = arith.constant 0 : index
    %c0_1 = arith.constant 0 : index
    %1 = vector.load %arg13[%c0, %c0_0, %c0_1] : memref<2x18x288xf32, #tpu.memory_space<vmem>>, vector<2x1x288xf32>
    tpu.vector_store %arg13[%c0, %c0_0, %c0_1], %0 {strides = array<i32>} : memref<2x18x288xf32, #tpu.memory_space<vmem>>, vector<2x1x288xf32>,
    %c0_2 = arith.constant 0 : index
    %c17 = arith.constant 17 : index
    %c0_3 = arith.constant 0 : index
    %2 = vector.load %arg13[%c0_2, %c17, %c0_3] : memref<2x18x288xf32, #tpu.memory_space<vmem>>, vector<2x1x288xf32>
    tpu.vector_store %arg13[%c0_2, %c17, %c0_3], %0 {strides = array<i32>} : memref<2x18x288xf32, #tpu.memory_space<vmem>>, vector<2x1x288xf32>,
    %cst_4 = arith.constant 0.000000e+00 : f32
    %3 = vector.broadcast %cst_4 : f32 to vector<2x1x288xf32>
    %c0_5 = arith.constant 0 : index
    %c0_6 = arith.constant 0 : index
    %c0_7 = arith.constant 0 : index
    %4 = vector.load %arg14[%c0_5, %c0_6, %c0_7] : memref<2x18x288xf32, #tpu.memory_space<vmem>>, vector<2x1x288xf32>
    tpu.vector_store %arg14[%c0_5, %c0_6, %c0_7], %3 {strides = array<i32>} : memref<2x18x288xf32, #tpu.memory_space<vmem>>, vector<2x1x288xf32>,
    %c0_8 = arith.constant 0 : index
    %c17_9 = arith.constant 17 : index
    %c0_10 = arith.constant 0 : index
    %5 = vector.load %arg14[%c0_8, %c17_9, %c0_10] : memref<2x18x288xf32, #tpu.memory_space<vmem>>, vector<2x1x288xf32>
    tpu.vector_store %arg14[%c0_8, %c17_9, %c0_10], %3 {strides = array<i32>} : memref<2x18x288xf32, #tpu.memory_space<vmem>>, vector<2x1x288xf32>,
    %cst_11 = arith.constant 0.000000e+00 : f32
    %6 = vector.broadcast %cst_11 : f32 to vector<2x16x16xf32>
    %c0_12 = arith.constant 0 : index
    %c1 = arith.constant 1 : index
    %c0_13 = arith.constant 0 : index
    %7 = vector.load %arg14[%c0_12, %c1, %c0_13] : memref<2x18x288xf32, #tpu.memory_space<vmem>>, vector<2x16x16xf32>
    tpu.vector_store %arg14[%c0_12, %c1, %c0_13], %6 {strides = array<i32>} : memref<2x18x288xf32, #tpu.memory_space<vmem>>, vector<2x16x16xf32>,
    %c0_14 = arith.constant 0 : index
    %c1_15 = arith.constant 1 : index
    %c272 = arith.constant 272 : index
    %8 = vector.load %arg14[%c0_14, %c1_15, %c272] : memref<2x18x288xf32, #tpu.memory_space<vmem>>, vector<2x16x16xf32>
    tpu.vector_store %arg14[%c0_14, %c1_15, %c272], %6 {strides = array<i32>} : memref<2x18x288xf32, #tpu.memory_space<vmem>>, vector<2x16x16xf32>,
    %c0_16 = arith.constant 0 : index
    %c0_17 = arith.constant 0 : index
    %9 = vector.load %arg3[%c0_16, %c0_17] : memref<32x16xf32, #tpu.memory_space<vmem>>, vector<32x16xf32>
    %c0_18 = arith.constant 0 : index
    %c0_19 = arith.constant 0 : index
    %10 = vector.load %arg1[%c0_18, %c0_19] : memref<16x64xf32, #tpu.memory_space<vmem>>, vector<16x64xf32>
    %cst_20 = arith.constant dense<0.000000e+00> : vector<32x64xf32>
    %11 = tpu.matmul %9, %10, %cst_20 {dimension_numbers = #tpu.dot_dimension_numbers<[1], [0], [0], [1], [0, 0, 1, 1], [], []>} : vector<32x16xf32>, vector<16x64xf32>, vector<32x64xf32> -> vector<32x64xf32>
    %c0_21 = arith.constant 0 : index
    %c0_22 = arith.constant 0 : index
    %12 = vector.load %arg4[%c0_21, %c0_22] : memref<64x288xf32, #tpu.memory_space<vmem>>, vector<64x288xf32>
    %cst_23 = arith.constant dense<0.000000e+00> : vector<32x288xf32>
    %13 = tpu.matmul %11, %12, %cst_23 {dimension_numbers = #tpu.dot_dimension_numbers<[1], [0], [0], [1], [0, 0, 1, 1], [], []>} : vector<32x64xf32>, vector<64x288xf32>, vector<32x288xf32> -> vector<32x288xf32>
    %c0_24 = arith.constant 0 : index
    %c0_25 = arith.constant 0 : index
    %14 = vector.load %arg2[%c0_24, %c0_25] : memref<32x128xf32, #tpu.memory_space<vmem>>, vector<32x128xf32>
    %c0_26 = arith.constant 0 : index
    %c0_27 = arith.constant 0 : index
    %15 = vector.load %arg5[%c0_26, %c0_27] : memref<128x288xf32, #tpu.memory_space<vmem>>, vector<128x288xf32>
    %cst_28 = arith.constant dense<0.000000e+00> : vector<32x288xf32>
    %16 = tpu.matmul %14, %15, %cst_28 {dimension_numbers = #tpu.dot_dimension_numbers<[1], [0], [0], [1], [0, 0, 1, 1], [], []>} : vector<32x128xf32>, vector<128x288xf32>, vector<32x288xf32> -> vector<32x288xf32>
    %17 = arith.addf %13, %16 : vector<32x288xf32>
    %18 = vector.shape_cast %17 : vector<32x288xf32> to vector<2x16x288xf32>
    %c0_29 = arith.constant 0 : index
    %c1_30 = arith.constant 1 : index
    %c0_31 = arith.constant 0 : index
    %19 = vector.load %arg13[%c0_29, %c1_30, %c0_31] : memref<2x18x288xf32, #tpu.memory_space<vmem>>, vector<2x16x288xf32>
    tpu.vector_store %arg13[%c0_29, %c1_30, %c0_31], %18 {strides = array<i32>} : memref<2x18x288xf32, #tpu.memory_space<vmem>>, vector<2x16x288xf32>,
    %c0_32 = arith.constant 0 : index
    %c0_33 = arith.constant 0 : index
    %c0_34 = arith.constant 0 : index
    %20 = vector.load %arg13[%c0_32, %c0_33, %c0_34] : memref<2x18x288xf32, #tpu.memory_space<vmem>>, vector<2x16x288xf32>
    %21 = vector.shape_cast %20 : vector<2x16x288xf32> to vector<32x288xf32>
    %c0_35 = arith.constant 0 : index
    %c0_36 = arith.constant 0 : index
    %c0_37 = arith.constant 0 : index
    %22 = vector.load %arg6[%c0_35, %c0_36, %c0_37] : memref<3x288x256xf32, #tpu.memory_space<vmem>>, vector<1x288x256xf32>
    %23 = vector.shape_cast %22 : vector<1x288x256xf32> to vector<288x256xf32>
    %cst_38 = arith.constant dense<0.000000e+00> : vector<32x256xf32>
    %24 = tpu.matmul %21, %23, %cst_38 {dimension_numbers = #tpu.dot_dimension_numbers<[1], [0], [0], [1], [0, 0, 1, 1], [], []>} : vector<32x288xf32>, vector<288x256xf32>, vector<32x256xf32> -> vector<32x256xf32>
    %c0_39 = arith.constant 0 : index
    %c1_40 = arith.constant 1 : index
    %c0_41 = arith.constant 0 : index
    %25 = vector.load %arg13[%c0_39, %c1_40, %c0_41] : memref<2x18x288xf32, #tpu.memory_space<vmem>>, vector<2x16x288xf32>
    %26 = vector.shape_cast %25 : vector<2x16x288xf32> to vector<32x288xf32>
    %c1_42 = arith.constant 1 : index
    %c0_43 = arith.constant 0 : index
    %c0_44 = arith.constant 0 : index
    %27 = vector.load %arg6[%c1_42, %c0_43, %c0_44] : memref<3x288x256xf32, #tpu.memory_space<vmem>>, vector<1x288x256xf32>
    %28 = vector.shape_cast %27 : vector<1x288x256xf32> to vector<288x256xf32>
    %cst_45 = arith.constant dense<0.000000e+00> : vector<32x256xf32>
    %29 = tpu.matmul %26, %28, %cst_45 {dimension_numbers = #tpu.dot_dimension_numbers<[1], [0], [0], [1], [0, 0, 1, 1], [], []>} : vector<32x288xf32>, vector<288x256xf32>, vector<32x256xf32> -> vector<32x256xf32>
    %30 = arith.addf %24, %29 : vector<32x256xf32>
    %c0_46 = arith.constant 0 : index
    %c2 = arith.constant 2 : index
    %c0_47 = arith.constant 0 : index
    %31 = vector.load %arg13[%c0_46, %c2, %c0_47] : memref<2x18x288xf32, #tpu.memory_space<vmem>>, vector<2x16x288xf32>
    %32 = vector.shape_cast %31 : vector<2x16x288xf32> to vector<32x288xf32>
    %c2_48 = arith.constant 2 : index
    %c0_49 = arith.constant 0 : index
    %c0_50 = arith.constant 0 : index
    %33 = vector.load %arg6[%c2_48, %c0_49, %c0_50] : memref<3x288x256xf32, #tpu.memory_space<vmem>>, vector<1x288x256xf32>
    %34 = vector.shape_cast %33 : vector<1x288x256xf32> to vector<288x256xf32>
    %cst_51 = arith.constant dense<0.000000e+00> : vector<32x256xf32>
    %35 = tpu.matmul %32, %34, %cst_51 {dimension_numbers = #tpu.dot_dimension_numbers<[1], [0], [0], [1], [0, 0, 1, 1], [], []>} : vector<32x288xf32>, vector<288x256xf32>, vector<32x256xf32> -> vector<32x256xf32>
    %36 = arith.addf %30, %35 : vector<32x256xf32>
    %c0_52 = arith.constant 0 : index
    %c0_53 = arith.constant 0 : index
    %37 = vector.load %arg11[%c0_52, %c0_53] : memref<256x256xf32, #tpu.memory_space<vmem>>, vector<256x256xf32>
    %cst_54 = arith.constant dense<0.000000e+00> : vector<32x256xf32>
    %38 = tpu.matmul %36, %37, %cst_54 {dimension_numbers = #tpu.dot_dimension_numbers<[1], [0], [0], [1], [0, 0, 1, 1], [], []>} : vector<32x256xf32>, vector<256x256xf32>, vector<32x256xf32> -> vector<32x256xf32>
    %cst_55 = arith.constant dense<0.000000e+00> : vector<256xf32>
    %39 = vector.multi_reduction <add>, %38, %cst_55 [0] : vector<32x256xf32> to vector<256xf32>
    %40 = vector.shape_cast %39 : vector<256xf32> to vector<1x256xf32>
    %cst_56 = arith.constant 0.001953125 : f32
    %41 = vector.broadcast %cst_56 : f32 to vector<1x256xf32>
    %42 = arith.mulf %40, %41 : vector<1x256xf32>
    %43 = vector.broadcast %42 : vector<1x256xf32> to vector<32x256xf32>
    %44 = arith.subf %36, %43 : vector<32x256xf32>
    %45 = arith.mulf %44, %44 : vector<32x256xf32>
    %c0_57 = arith.constant 0 : index
    %c0_58 = arith.constant 0 : index
    %46 = vector.load %arg11[%c0_57, %c0_58] : memref<256x256xf32, #tpu.memory_space<vmem>>, vector<256x256xf32>
    %cst_59 = arith.constant dense<0.000000e+00> : vector<32x256xf32>
    %47 = tpu.matmul %45, %46, %cst_59 {dimension_numbers = #tpu.dot_dimension_numbers<[1], [0], [0], [1], [0, 0, 1, 1], [], []>} : vector<32x256xf32>, vector<256x256xf32>, vector<32x256xf32> -> vector<32x256xf32>
    %cst_60 = arith.constant dense<0.000000e+00> : vector<256xf32>
    %48 = vector.multi_reduction <add>, %47, %cst_60 [0] : vector<32x256xf32> to vector<256xf32>
    %49 = vector.shape_cast %48 : vector<256xf32> to vector<1x256xf32>
    %cst_61 = arith.constant 0.001953125 : f32
    %50 = vector.broadcast %cst_61 : f32 to vector<1x256xf32>
    %51 = arith.mulf %49, %50 : vector<1x256xf32>
    %c0_62 = arith.constant 0 : index
    %c0_63 = arith.constant 0 : index
    %52 = vector.load %arg9[%c0_62, %c0_63] : memref<3x256xf32, #tpu.memory_space<vmem>>, vector<1x256xf32>
    %cst_64 = arith.constant 9.99999974E-5 : f32
    %53 = vector.broadcast %cst_64 : f32 to vector<1x256xf32>
    %54 = arith.addf %51, %53 : vector<1x256xf32>
    %55 = math.rsqrt %54 : vector<1x256xf32>
    %56 = arith.mulf %52, %55 : vector<1x256xf32>
    %57 = vector.broadcast %56 : vector<1x256xf32> to vector<32x256xf32>
    %58 = arith.mulf %44, %57 : vector<32x256xf32>
    %c0_65 = arith.constant 0 : index
    %c0_66 = arith.constant 0 : index
    %59 = vector.load %arg10[%c0_65, %c0_66] : memref<3x256xf32, #tpu.memory_space<vmem>>, vector<1x256xf32>
    %60 = vector.broadcast %59 : vector<1x256xf32> to vector<32x256xf32>
    %61 = arith.addf %58, %60 : vector<32x256xf32>
    %cst_67 = arith.constant 0.000000e+00 : f32
    %62 = vector.broadcast %cst_67 : f32 to vector<32x256xf32>
    %63 = arith.maximumf %61, %62 : vector<32x256xf32>
    %64 = vector.shape_cast %63 : vector<32x256xf32> to vector<2x16x256xf32>
    %c0_68 = arith.constant 0 : index
    %c1_69 = arith.constant 1 : index
    %c16 = arith.constant 16 : index
    %65 = vector.load %arg14[%c0_68, %c1_69, %c16] : memref<2x18x288xf32, #tpu.memory_space<vmem>>, vector<2x16x256xf32>
    tpu.vector_store %arg14[%c0_68, %c1_69, %c16], %64 {strides = array<i32>} : memref<2x18x288xf32, #tpu.memory_space<vmem>>, vector<2x16x256xf32>,
    %c0_70 = arith.constant 0 : index
    %c0_71 = arith.constant 0 : index
    %c0_72 = arith.constant 0 : index
    %66 = vector.load %arg14[%c0_70, %c0_71, %c0_72] : memref<2x18x288xf32, #tpu.memory_space<vmem>>, vector<2x16x288xf32>
    %67 = vector.shape_cast %66 : vector<2x16x288xf32> to vector<32x288xf32>
    %c0_73 = arith.constant 0 : index
    %c0_74 = arith.constant 0 : index
    %c0_75 = arith.constant 0 : index
    %68 = vector.load %arg7[%c0_73, %c0_74, %c0_75] : memref<3x288x256xf32, #tpu.memory_space<vmem>>, vector<1x288x256xf32>
    %69 = vector.shape_cast %68 : vector<1x288x256xf32> to vector<288x256xf32>
    %cst_76 = arith.constant dense<0.000000e+00> : vector<32x256xf32>
    %70 = tpu.matmul %67, %69, %cst_76 {dimension_numbers = #tpu.dot_dimension_numbers<[1], [0], [0], [1], [0, 0, 1, 1], [], []>} : vector<32x288xf32>, vector<288x256xf32>, vector<32x256xf32> -> vector<32x256xf32>
    %c0_77 = arith.constant 0 : index
    %c1_78 = arith.constant 1 : index
    %c0_79 = arith.constant 0 : index
    %71 = vector.load %arg14[%c0_77, %c1_78, %c0_79] : memref<2x18x288xf32, #tpu.memory_space<vmem>>, vector<2x16x288xf32>
    %72 = vector.shape_cast %71 : vector<2x16x288xf32> to vector<32x288xf32>
    %c1_80 = arith.constant 1 : index
    %c0_81 = arith.constant 0 : index
    %c0_82 = arith.constant 0 : index
    %73 = vector.load %arg7[%c1_80, %c0_81, %c0_82] : memref<3x288x256xf32, #tpu.memory_space<vmem>>, vector<1x288x256xf32>
    %74 = vector.shape_cast %73 : vector<1x288x256xf32> to vector<288x256xf32>
    %cst_83 = arith.constant dense<0.000000e+00> : vector<32x256xf32>
    %75 = tpu.matmul %72, %74, %cst_83 {dimension_numbers = #tpu.dot_dimension_numbers<[1], [0], [0], [1], [0, 0, 1, 1], [], []>} : vector<32x288xf32>, vector<288x256xf32>, vector<32x256xf32> -> vector<32x256xf32>
    %76 = arith.addf %70, %75 : vector<32x256xf32>
    %c0_84 = arith.constant 0 : index
    %c2_85 = arith.constant 2 : index
    %c0_86 = arith.constant 0 : index
    %77 = vector.load %arg14[%c0_84, %c2_85, %c0_86] : memref<2x18x288xf32, #tpu.memory_space<vmem>>, vector<2x16x288xf32>
    %78 = vector.shape_cast %77 : vector<2x16x288xf32> to vector<32x288xf32>
    %c2_87 = arith.constant 2 : index
    %c0_88 = arith.constant 0 : index
    %c0_89 = arith.constant 0 : index
    %79 = vector.load %arg7[%c2_87, %c0_88, %c0_89] : memref<3x288x256xf32, #tpu.memory_space<vmem>>, vector<1x288x256xf32>
    %80 = vector.shape_cast %79 : vector<1x288x256xf32> to vector<288x256xf32>
    %cst_90 = arith.constant dense<0.000000e+00> : vector<32x256xf32>
    %81 = tpu.matmul %78, %80, %cst_90 {dimension_numbers = #tpu.dot_dimension_numbers<[1], [0], [0], [1], [0, 0, 1, 1], [], []>} : vector<32x288xf32>, vector<288x256xf32>, vector<32x256xf32> -> vector<32x256xf32>
    %82 = arith.addf %76, %81 : vector<32x256xf32>
    %c0_91 = arith.constant 0 : index
    %c0_92 = arith.constant 0 : index
    %83 = vector.load %arg11[%c0_91, %c0_92] : memref<256x256xf32, #tpu.memory_space<vmem>>, vector<256x256xf32>
    %cst_93 = arith.constant dense<0.000000e+00> : vector<32x256xf32>
    %84 = tpu.matmul %82, %83, %cst_93 {dimension_numbers = #tpu.dot_dimension_numbers<[1], [0], [0], [1], [0, 0, 1, 1], [], []>} : vector<32x256xf32>, vector<256x256xf32>, vector<32x256xf32> -> vector<32x256xf32>
    %cst_94 = arith.constant dense<0.000000e+00> : vector<256xf32>
    %85 = vector.multi_reduction <add>, %84, %cst_94 [0] : vector<32x256xf32> to vector<256xf32>
    %86 = vector.shape_cast %85 : vector<256xf32> to vector<1x256xf32>
    %cst_95 = arith.constant 0.001953125 : f32
    %87 = vector.broadcast %cst_95 : f32 to vector<1x256xf32>
    %88 = arith.mulf %86, %87 : vector<1x256xf32>
    %89 = vector.broadcast %88 : vector<1x256xf32> to vector<32x256xf32>
    %90 = arith.subf %82, %89 : vector<32x256xf32>
    %91 = arith.mulf %90, %90 : vector<32x256xf32>
    %c0_96 = arith.constant 0 : index
    %c0_97 = arith.constant 0 : index
    %92 = vector.load %arg11[%c0_96, %c0_97] : memref<256x256xf32, #tpu.memory_space<vmem>>, vector<256x256xf32>
    %cst_98 = arith.constant dense<0.000000e+00> : vector<32x256xf32>
    %93 = tpu.matmul %91, %92, %cst_98 {dimension_numbers = #tpu.dot_dimension_numbers<[1], [0], [0], [1], [0, 0, 1, 1], [], []>} : vector<32x256xf32>, vector<256x256xf32>, vector<32x256xf32> -> vector<32x256xf32>
    %cst_99 = arith.constant dense<0.000000e+00> : vector<256xf32>
    %94 = vector.multi_reduction <add>, %93, %cst_99 [0] : vector<32x256xf32> to vector<256xf32>
    %95 = vector.shape_cast %94 : vector<256xf32> to vector<1x256xf32>
    %cst_100 = arith.constant 0.001953125 : f32
    %96 = vector.broadcast %cst_100 : f32 to vector<1x256xf32>
    %97 = arith.mulf %95, %96 : vector<1x256xf32>
    %c1_101 = arith.constant 1 : index
    %c0_102 = arith.constant 0 : index
    %98 = vector.load %arg9[%c1_101, %c0_102] : memref<3x256xf32, #tpu.memory_space<vmem>>, vector<1x256xf32>
    %cst_103 = arith.constant 9.99999974E-5 : f32
    %99 = vector.broadcast %cst_103 : f32 to vector<1x256xf32>
    %100 = arith.addf %97, %99 : vector<1x256xf32>
    %101 = math.rsqrt %100 : vector<1x256xf32>
    %102 = arith.mulf %98, %101 : vector<1x256xf32>
    %103 = vector.broadcast %102 : vector<1x256xf32> to vector<32x256xf32>
    %104 = arith.mulf %90, %103 : vector<32x256xf32>
    %c1_104 = arith.constant 1 : index
    %c0_105 = arith.constant 0 : index
    %105 = vector.load %arg10[%c1_104, %c0_105] : memref<3x256xf32, #tpu.memory_space<vmem>>, vector<1x256xf32>
    %106 = vector.broadcast %105 : vector<1x256xf32> to vector<32x256xf32>
    %107 = arith.addf %104, %106 : vector<32x256xf32>
    %cst_106 = arith.constant 0.000000e+00 : f32
    %108 = vector.broadcast %cst_106 : f32 to vector<32x256xf32>
    %109 = arith.maximumf %107, %108 : vector<32x256xf32>
    %110 = vector.shape_cast %109 : vector<32x256xf32> to vector<2x16x256xf32>
    %c0_107 = arith.constant 0 : index
    %c1_108 = arith.constant 1 : index
    %c16_109 = arith.constant 16 : index
    %111 = vector.load %arg14[%c0_107, %c1_108, %c16_109] : memref<2x18x288xf32, #tpu.memory_space<vmem>>, vector<2x16x256xf32>
    tpu.vector_store %arg14[%c0_107, %c1_108, %c16_109], %110 {strides = array<i32>} : memref<2x18x288xf32, #tpu.memory_space<vmem>>, vector<2x16x256xf32>,
    %c0_110 = arith.constant 0 : index
    %c0_111 = arith.constant 0 : index
    %c0_112 = arith.constant 0 : index
    %112 = vector.load %arg14[%c0_110, %c0_111, %c0_112] : memref<2x18x288xf32, #tpu.memory_space<vmem>>, vector<2x16x288xf32>
    %113 = vector.shape_cast %112 : vector<2x16x288xf32> to vector<32x288xf32>
    %c0_113 = arith.constant 0 : index
    %c0_114 = arith.constant 0 : index
    %c0_115 = arith.constant 0 : index
    %114 = vector.load %arg8[%c0_113, %c0_114, %c0_115] : memref<3x288x256xf32, #tpu.memory_space<vmem>>, vector<1x288x256xf32>
    %115 = vector.shape_cast %114 : vector<1x288x256xf32> to vector<288x256xf32>
    %cst_116 = arith.constant dense<0.000000e+00> : vector<32x256xf32>
    %116 = tpu.matmul %113, %115, %cst_116 {dimension_numbers = #tpu.dot_dimension_numbers<[1], [0], [0], [1], [0, 0, 1, 1], [], []>} : vector<32x288xf32>, vector<288x256xf32>, vector<32x256xf32> -> vector<32x256xf32>
    %c0_117 = arith.constant 0 : index
    %c1_118 = arith.constant 1 : index
    %c0_119 = arith.constant 0 : index
    %117 = vector.load %arg14[%c0_117, %c1_118, %c0_119] : memref<2x18x288xf32, #tpu.memory_space<vmem>>, vector<2x16x288xf32>
    %118 = vector.shape_cast %117 : vector<2x16x288xf32> to vector<32x288xf32>
    %c1_120 = arith.constant 1 : index
    %c0_121 = arith.constant 0 : index
    %c0_122 = arith.constant 0 : index
    %119 = vector.load %arg8[%c1_120, %c0_121, %c0_122] : memref<3x288x256xf32, #tpu.memory_space<vmem>>, vector<1x288x256xf32>
    %120 = vector.shape_cast %119 : vector<1x288x256xf32> to vector<288x256xf32>
    %cst_123 = arith.constant dense<0.000000e+00> : vector<32x256xf32>
    %121 = tpu.matmul %118, %120, %cst_123 {dimension_numbers = #tpu.dot_dimension_numbers<[1], [0], [0], [1], [0, 0, 1, 1], [], []>} : vector<32x288xf32>, vector<288x256xf32>, vector<32x256xf32> -> vector<32x256xf32>
    %122 = arith.addf %116, %121 : vector<32x256xf32>
    %c0_124 = arith.constant 0 : index
    %c2_125 = arith.constant 2 : index
    %c0_126 = arith.constant 0 : index
    %123 = vector.load %arg14[%c0_124, %c2_125, %c0_126] : memref<2x18x288xf32, #tpu.memory_space<vmem>>, vector<2x16x288xf32>
    %124 = vector.shape_cast %123 : vector<2x16x288xf32> to vector<32x288xf32>
    %c2_127 = arith.constant 2 : index
    %c0_128 = arith.constant 0 : index
    %c0_129 = arith.constant 0 : index
    %125 = vector.load %arg8[%c2_127, %c0_128, %c0_129] : memref<3x288x256xf32, #tpu.memory_space<vmem>>, vector<1x288x256xf32>
    %126 = vector.shape_cast %125 : vector<1x288x256xf32> to vector<288x256xf32>
    %cst_130 = arith.constant dense<0.000000e+00> : vector<32x256xf32>
    %127 = tpu.matmul %124, %126, %cst_130 {dimension_numbers = #tpu.dot_dimension_numbers<[1], [0], [0], [1], [0, 0, 1, 1], [], []>} : vector<32x288xf32>, vector<288x256xf32>, vector<32x256xf32> -> vector<32x256xf32>
    %128 = arith.addf %122, %127 : vector<32x256xf32>
    %c0_131 = arith.constant 0 : index
    %c0_132 = arith.constant 0 : index
    %129 = vector.load %arg11[%c0_131, %c0_132] : memref<256x256xf32, #tpu.memory_space<vmem>>, vector<256x256xf32>
    %cst_133 = arith.constant dense<0.000000e+00> : vector<32x256xf32>
    %130 = tpu.matmul %128, %129, %cst_133 {dimension_numbers = #tpu.dot_dimension_numbers<[1], [0], [0], [1], [0, 0, 1, 1], [], []>} : vector<32x256xf32>, vector<256x256xf32>, vector<32x256xf32> -> vector<32x256xf32>
    %cst_134 = arith.constant dense<0.000000e+00> : vector<256xf32>
    %131 = vector.multi_reduction <add>, %130, %cst_134 [0] : vector<32x256xf32> to vector<256xf32>
    %132 = vector.shape_cast %131 : vector<256xf32> to vector<1x256xf32>
    %cst_135 = arith.constant 0.001953125 : f32
    %133 = vector.broadcast %cst_135 : f32 to vector<1x256xf32>
    %134 = arith.mulf %132, %133 : vector<1x256xf32>
    %135 = vector.broadcast %134 : vector<1x256xf32> to vector<32x256xf32>
    %136 = arith.subf %128, %135 : vector<32x256xf32>
    %137 = arith.mulf %136, %136 : vector<32x256xf32>
    %c0_136 = arith.constant 0 : index
    %c0_137 = arith.constant 0 : index
    %138 = vector.load %arg11[%c0_136, %c0_137] : memref<256x256xf32, #tpu.memory_space<vmem>>, vector<256x256xf32>
    %cst_138 = arith.constant dense<0.000000e+00> : vector<32x256xf32>
    %139 = tpu.matmul %137, %138, %cst_138 {dimension_numbers = #tpu.dot_dimension_numbers<[1], [0], [0], [1], [0, 0, 1, 1], [], []>} : vector<32x256xf32>, vector<256x256xf32>, vector<32x256xf32> -> vector<32x256xf32>
    %cst_139 = arith.constant dense<0.000000e+00> : vector<256xf32>
    %140 = vector.multi_reduction <add>, %139, %cst_139 [0] : vector<32x256xf32> to vector<256xf32>
    %141 = vector.shape_cast %140 : vector<256xf32> to vector<1x256xf32>
    %cst_140 = arith.constant 0.001953125 : f32
    %142 = vector.broadcast %cst_140 : f32 to vector<1x256xf32>
    %143 = arith.mulf %141, %142 : vector<1x256xf32>
    %c2_141 = arith.constant 2 : index
    %c0_142 = arith.constant 0 : index
    %144 = vector.load %arg9[%c2_141, %c0_142] : memref<3x256xf32, #tpu.memory_space<vmem>>, vector<1x256xf32>
    %cst_143 = arith.constant 9.99999974E-5 : f32
    %145 = vector.broadcast %cst_143 : f32 to vector<1x256xf32>
    %146 = arith.addf %143, %145 : vector<1x256xf32>
    %147 = math.rsqrt %146 : vector<1x256xf32>
    %148 = arith.mulf %144, %147 : vector<1x256xf32>
    %149 = vector.broadcast %148 : vector<1x256xf32> to vector<32x256xf32>
    %150 = arith.mulf %136, %149 : vector<32x256xf32>
    %c2_144 = arith.constant 2 : index
    %c0_145 = arith.constant 0 : index
    %151 = vector.load %arg10[%c2_144, %c0_145] : memref<3x256xf32, #tpu.memory_space<vmem>>, vector<1x256xf32>
    %152 = vector.broadcast %151 : vector<1x256xf32> to vector<32x256xf32>
    %153 = arith.addf %150, %152 : vector<32x256xf32>
    %cst_146 = arith.constant 0.000000e+00 : f32
    %154 = vector.broadcast %cst_146 : f32 to vector<32x256xf32>
    %155 = arith.maximumf %153, %154 : vector<32x256xf32>
    %c0_147 = arith.constant 0 : index
    %c0_148 = arith.constant 0 : index
    %156 = vector.load %arg12[%c0_147, %c0_148] : memref<32x256xf32, #tpu.memory_space<vmem>>, vector<32x256xf32>
    tpu.vector_store %arg12[%c0_147, %c0_148], %155 {strides = array<i32>} : memref<32x256xf32, #tpu.memory_space<vmem>>, vector<32x256xf32>,
    return
  }
  func.func @transform_0(%arg0: i32) -> (i32, i32) {
    %c0_i32 = arith.constant 0 : i32
    %c0_i32_0 = arith.constant 0 : i32
    %c0_i32_1 = arith.constant 0 : i32
    return %c0_i32, %c0_i32_0 : i32, i32
  }
  func.func @transform_1(%arg0: i32) -> (i32, i32) {
    %c0_i32 = arith.constant 0 : i32
    %c0_i32_0 = arith.constant 0 : i32
    %c0_i32_1 = arith.constant 0 : i32
    return %c0_i32, %c0_i32_0 : i32, i32
  }
  func.func @transform_2(%arg0: i32) -> (i32, i32) {
    %c0_i32 = arith.constant 0 : i32
    %c0_i32_0 = arith.constant 0 : i32
    %c0_i32_1 = arith.constant 0 : i32
    return %c0_i32, %c0_i32_0 : i32, i32
  }
  func.func @transform_3(%arg0: i32) -> (i32, i32) {
    %c0_i32 = arith.constant 0 : i32
    %c0_i32_0 = arith.constant 0 : i32
    %c0_i32_1 = arith.constant 0 : i32
    return %c0_i32, %c0_i32_0 : i32, i32
  }
  func.func @transform_4(%arg0: i32) -> (i32, i32) {
    %c0_i32 = arith.constant 0 : i32
    %c0_i32_0 = arith.constant 0 : i32
    %c0_i32_1 = arith.constant 0 : i32
    return %c0_i32, %c0_i32_0 : i32, i32
  }
  func.func @transform_5(%arg0: i32) -> (i32, i32, i32) {
    %c0_i32 = arith.constant 0 : i32
    %c0_i32_0 = arith.constant 0 : i32
    %c0_i32_1 = arith.constant 0 : i32
    %c0_i32_2 = arith.constant 0 : i32
    return %c0_i32, %c0_i32_0, %c0_i32_1 : i32, i32, i32
  }
  func.func @transform_6(%arg0: i32) -> (i32, i32, i32) {
    %c0_i32 = arith.constant 0 : i32
    %c0_i32_0 = arith.constant 0 : i32
    %c0_i32_1 = arith.constant 0 : i32
    %c0_i32_2 = arith.constant 0 : i32
    return %c0_i32, %c0_i32_0, %c0_i32_1 : i32, i32, i32
  }
  func.func @transform_7(%arg0: i32) -> (i32, i32, i32) {
    %c0_i32 = arith.constant 0 : i32
    %c0_i32_0 = arith.constant 0 : i32
    %c0_i32_1 = arith.constant 0 : i32
    %c0_i32_2 = arith.constant 0 : i32
    return %c0_i32, %c0_i32_0, %c0_i32_1 : i32, i32, i32
  }
  func.func @transform_8(%arg0: i32) -> (i32, i32) {
    %c0_i32 = arith.constant 0 : i32
    %c0_i32_0 = arith.constant 0 : i32
    %c0_i32_1 = arith.constant 0 : i32
    return %c0_i32, %c0_i32_0 : i32, i32
  }
  func.func @transform_9(%arg0: i32) -> (i32, i32) {
    %c0_i32 = arith.constant 0 : i32
    %c0_i32_0 = arith.constant 0 : i32
    %c0_i32_1 = arith.constant 0 : i32
    return %c0_i32, %c0_i32_0 : i32, i32
  }
  func.func @transform_10(%arg0: i32) -> (i32, i32) {
    %c0_i32 = arith.constant 0 : i32
    %c0_i32_0 = arith.constant 0 : i32
    %c0_i32_1 = arith.constant 0 : i32
    return %c0_i32, %c0_i32_0 : i32, i32
  }
  func.func @transform_11(%arg0: i32) -> (i32, i32) {
    %c0_i32 = arith.constant 0 : i32
    %c0_i32_0 = arith.constant 0 : i32
    %c0_i32_1 = arith.constant 0 : i32
    return %c0_i32, %c0_i32_0 : i32, i32
  }
}

</mosaic_0001>

<bundles_post_ra>
// kernel: tile.42
= control target key start
LH: loop header
LB: loop body
LE: loop exit
PB: predicated region body
PF: predicated region fallthrough
CT: control target
= control target key end

     0   :  { %s7_s6 = smov 3  ;;  %s21_s9 = smov 3  ;;  %vm4_vm0 = vcmask 130048   ;;  %vm11_vm1 = vcmask 1048448   ;;  %vm18_vm2 = vcmask 917248   ;;  %vm25_vm3 = vcmask 786048   ;;  %s129_s0 = inlined_call_operand.vmem [shape: f32[16,16], index: 0, kind: input, shape index: {}]   ;;  %s130_s1 = inlined_call_operand.vmem [shape: f32[1,256], index: 1, kind: output, shape index: {}]  }
   0x1   :  { %v67_v0 = vld [vmem:[%s129_s0 + $0x7] ss:$8 sm:%s7_s6]   ;;  %s82_s10 = smov 112   ;;  %v69_v1 = vld [vmem:[%s129_s0 + $0x5] ss:$8 sm:%s21_s9]   ;;  %s83_s13 = smov 80  }
   0x2   :  { %9 = vrot.lane.b32.xlu0 %v67_v0, %s82_s10  ;;  %23 = vrot.lane.b32.xlu1 %v69_v1, %s83_s13  ;;  %s14_s14 = smov 3  ;;  %s28_s15 = smov 3  ;;  %vm32_vm4 = vcmask 654848   ;;  %vm39_vm5 = vcmask 523648   ;;  %vm46_vm6 = vcmask 392448   ;;  %vm53_vm7 = vcmask 261248  }
   0x3   :  { %s35_s16 = smov 3  ;;  %v68_v3 = vld [vmem:[%s129_s0 + $0x6] ss:$8 sm:%s14_s14]   ;;  %s84_s21 = smov 48   ;;  %v70_v4 = vld [vmem:[%s129_s0 + $0x4] ss:$8 sm:%s28_s15]  }
   0x4   :  { %v71_v2 = vld [vmem:[%s129_s0 + $0x3] ss:$8 sm:%s35_s16]   ;;  %s42_s24 = smov 3  ;;  %s85_s25 = smov 96  }
   0x5   :  { %37 = vrot.lane.b32.xlu2 %v71_v2, %s84_s21  ;;  %s86_s26 = smov 64   ;;  %s49_s27 = smov 3  ;;  %v72_v5 = vld [vmem:[%s129_s0 + $0x2] ss:$8 sm:%s42_s24]  }
   0x6   :  { %v73_v6 = vld [vmem:[%s129_s0 + $0x1] ss:$8 sm:%s49_s27]   ;;  %s87_s3 = smov 32   ;;  %s88_s4 = smov 16  }
   0x7   :  { %s2_s5 = smov 3 }
   0x8   :  { %v3_v7 = vld [vmem:[%s129_s0] ss:$8 sm:%s2_s5]  }
   0x9   :  { %5 = vst.msk [vmem:[#allocation0] ss:$8 sm:$0x3] %vm4_vm0, %v3_v7  }
   0xa   :  { %16 = vrot.lane.b32.xlu0 %v68_v3, %s85_s25  ;;  %30 = vrot.lane.b32.xlu1 %v70_v4, %s86_s26 }
   0xd   :  { %44 = vrot.lane.b32.xlu2 %v72_v5, %s87_s3 }
  0x12   :  { %51 = vrot.lane.b32.xlu0 %v73_v6, %s88_s4 }
  0x5f   :  { %v38_v8 = vpop.permute.xlu2 %37  }
  0x67   :  { %v45_v9 = vpop.permute.xlu2 %44  }
  0x74   :  { %v10_v10 = vpop.permute.xlu0 %9   ;;  %v24_v11 = vpop.permute.xlu1 %23  }
  0x75   :  { %12 = vst.msk [vmem:[#allocation0] ss:$8 sm:$0x3] %vm11_vm1, %v10_v10  }
  0x7c   :  { %v17_v12 = vpop.permute.xlu0 %16   ;;  %v31_v13 = vpop.permute.xlu1 %30  }
  0x7d   :  { %19 = vst.msk [vmem:[#allocation0] ss:$8 sm:$0x3] %vm18_vm2, %v17_v12  }
  0x7e   :  { %26 = vst.msk [vmem:[#allocation0] ss:$8 sm:$0x3] %vm25_vm3, %v24_v11  }
  0x7f   :  { %33 = vst.msk [vmem:[#allocation0] ss:$8 sm:$0x3] %vm32_vm4, %v31_v13  }
  0x80   :  { %40 = vst.msk [vmem:[#allocation0] ss:$8 sm:$0x3] %vm39_vm5, %v38_v8  }
  0x81   :  { %47 = vst.msk [vmem:[#allocation0] ss:$8 sm:$0x3] %vm46_vm6, %v45_v9  }
  0x84   :  { %v52_v14 = vpop.permute.xlu0 %51  }
  0x85   :  { %54 = vst.msk [vmem:[#allocation0] ss:$8 sm:$0x3] %vm53_vm7, %v52_v14  }
  0x8c   :  { %v57_v15 = vld [vmem:[#allocation0] sm:$0x1]  ;;  %v62_v16 = vld [vmem:[#allocation0 + $0x8] sm:$0x1] }
  0x8d   :  { %60 = vst [vmem:[%s130_s1] sm:$0x1] %v57_v15 }
  0x8e   :  { %74 = vst [vmem:[%s130_s1 + $0x1] sm:$0x1] %v62_v16 }

// kernel: tile.33
= control target key start
LH: loop header
LB: loop body
LE: loop exit
PB: predicated region body
PF: predicated region fallthrough
CT: control target
= control target key end

     0   :  { %s28_s0 = inlined_call_operand.vmem [shape: f32[16], index: 0, kind: input, shape index: {}]   ;;  %s29_s1 = inlined_call_operand.vmem [shape: f32[16,16], index: 1, kind: output, shape index: {}]  }
   0x1   :  { %v4_v0 = vld [vmem:[%s28_s0] ss:$0 sm:$0xff] }
   0x2   :  { %5 = vst [vmem:[%s29_s1] sm:$0xff] %v4_v0 }
   0x3   :  { %8 = vst [vmem:[%s29_s1 + $0x8] sm:$0xff] %v4_v0 }

// kernel: stack_decoder_forward.1
= control target key start
LH: loop header
LB: loop body
LE: loop exit
PB: predicated region body
PF: predicated region fallthrough
CT: control target
= control target key end

     0   :  { %vm66_vm0 = vcmask 130048   ;;  %vm292_vm1 = vcmask 523264   ;;  %vm443_vm3 = vcmask 261121   ;;  %vm404_vm4 = vcmask 1040384   ;;  %s5190_s20 = smov 16   ;;  %s10091_s0 = inlined_call_operand.vmem [shape: f32[16,64], index: 0, kind: input, shape index: {}]   ;;  %s10092_s2 = inlined_call_operand.vmem [shape: f32[32,16], index: 2, kind: input, shape index: {}]   ;;  %s10093_s4 = inlined_call_operand.vmem [shape: f32[128,288], index: 4, kind: input, shape index: {}]   ;;  %s10094_s3 = inlined_call_operand.vmem [shape: f32[64,288], index: 3, kind: input, shape index: {}]   ;;  %s10095_s1 = inlined_call_operand.vmem [shape: f32[32,128], index: 1, kind: input, shape index: {}]   ;;  %s10096_s5 = inlined_call_operand.vmem [shape: f32[3,288,256], index: 5, kind: input, shape index: {}]   ;;  %s10097_s10 = inlined_call_operand.vmem [shape: f32[256,256], index: 10, kind: input, shape index: {}]   ;;  %s10098_s8 = inlined_call_operand.vmem [shape: f32[3,256], index: 8, kind: input, shape index: {}]   ;;  %s10099_s9 = inlined_call_operand.vmem [shape: f32[3,256], index: 9, kind: input, shape index: {}]   ;;  %s10100_s6 = inlined_call_operand.vmem [shape: f32[3,288,256], index: 6, kind: input, shape index: {}]   ;;  %s10101_s7 = inlined_call_operand.vmem [shape: f32[3,288,256], index: 7, kind: input, shape index: {}]   ;;  %s10102_s11 = inlined_call_operand.vmem [shape: f32[32,256], index: 11, kind: output, shape index: {}]  }
   0x1   :  { %v87_v0 = vld [vmem:[%s10091_s0 + $0x8] sm:$0xff]  ;;  %v86_v1 = vld [vmem:[%s10091_s0] sm:$0xff]  ;;  %v203_v4 = vld [vmem:[%s10093_s4 + $0x170] sm:$0xff]  ;;  %vm576_vm5 = vcmask 1046528   ;;  %vm451_vm6 = vcmask 253952   ;;  %vm447_vm7 = vcmask 261120  }
   0x2   :  { %114 = vmatpush.msra.mxu0 %v87_v0  ;;  %v82_v2 = vld [vmem:[%s10092_s2] sm:$0xff]  ;;  %v202_v3 = vld [vmem:[%s10093_s4 + $0x168] sm:$0xff]  ;;  %v199_v5 = vld [vmem:[%s10093_s4 + $0x150] sm:$0xff]  ;;  %234 = vmatpush.msra.mxu2 %v203_v4  ;;  %vm1078_vm8 = vcmask 1045504   ;;  %vm68_vm15 = vcmask 122880  }
   0x3   :  { %205 = vmatpush.msra.mxu1 %v202_v3  ;;  %v200_v6 = vld [vmem:[%s10093_s4 + $0x158] sm:$0xff]  ;;  %v197_v8 = vld [vmem:[%s10093_s4 + $0x140] sm:$0xff]  ;;  %v194_v10 = vld [vmem:[%s10093_s4 + $0x128] sm:$0xff] }
   0x4   :  { %115 = vmatpush.msra.mxu0 %v86_v1  ;;  %v196_v7 = vld [vmem:[%s10093_s4 + $0x138] sm:$0xff]  ;;  %235 = vmatpush.msra.mxu2 %v200_v6  ;;  %v193_v9 = vld [vmem:[%s10093_s4 + $0x120] sm:$0xff]  ;;  %v190_v11 = vld [vmem:[%s10093_s4 + $0x108] sm:$0xff] }
   0x5   :  { %4651 = vmatmul.msk.f32.vlgmr.msra.gmra.mxu0 %vm66_vm0, %v82_v2  ;;  %206 = vmatpush.msra.mxu1 %v199_v5  ;;  %v83_v12 = vld [vmem:[%s10092_s2 + $0x8] sm:$0xff]  ;;  %v191_v13 = vld [vmem:[%s10093_s4 + $0x110] sm:$0xff]  ;;  %v188_v15 = vld [vmem:[%s10093_s4 + $0xf8] sm:$0xff] }
   0x6   :  { %236 = vmatpush.msra.mxu2 %v197_v8  ;;  %v187_v14 = vld [vmem:[%s10093_s4 + $0xf0] sm:$0xff]  ;;  %v184_v16 = vld [vmem:[%s10093_s4 + $0xd8] sm:$0xff]  ;;  %v185_v17 = vld [vmem:[%s10093_s4 + $0xe0] sm:$0xff] }
   0x7   :  { %207 = vmatpush.msra.mxu1 %v196_v7  ;;  %v150_v18 = vld [vmem:[%s10094_s3 + $0xa8] sm:$0xff]  ;;  %v204_v19 = vld [vmem:[%s10093_s4 + $0x178] sm:$0xff]  ;;  %v181_v20 = vld [vmem:[%s10093_s4 + $0xc0] sm:$0xff] }
   0x8   :  { %237 = vmatpush.msra.mxu2 %v194_v10  ;;  %313 = vmatpush.msrb.mxu0 %v150_v18  ;;  %v201_v21 = vld [vmem:[%s10093_s4 + $0x160] sm:$0xff]  ;;  %v147_v22 = vld [vmem:[%s10094_s3 + $0x90] sm:$0xff]  ;;  %v182_v23 = vld [vmem:[%s10093_s4 + $0xc8] sm:$0xff] }
   0x9   :  { %208 = vmatpush.msra.mxu1 %v193_v9  ;;  %263 = vmatpush.msra.mxu3 %v204_v19  ;;  %v144_v24 = vld [vmem:[%s10094_s3 + $0x78] sm:$0xff]  ;;  %v178_v25 = vld [vmem:[%s10093_s4 + $0xa8] sm:$0xff]  ;;  %v84_v27 = vld [vmem:[%s10092_s2 + $0x10] sm:$0xff] }
   0xa   :  { %238 = vmatpush.msra.mxu2 %v191_v13  ;;  %314 = vmatpush.msrb.mxu0 %v147_v22  ;;  %v198_v26 = vld [vmem:[%s10093_s4 + $0x148] sm:$0xff]  ;;  %v179_v28 = vld [vmem:[%s10093_s4 + $0xb0] sm:$0xff]  ;;  %v176_v31 = vld [vmem:[%s10093_s4 + $0x98] sm:$0xff] }
   0xb   :  { %209 = vmatpush.msra.mxu1 %v190_v11  ;;  %264 = vmatpush.msra.mxu3 %v201_v21  ;;  %v175_v29 = vld [vmem:[%s10093_s4 + $0x90] sm:$0xff]  ;;  %v141_v32 = vld [vmem:[%s10094_s3 + $0x60] sm:$0xff]  ;;  %v172_v33 = vld [vmem:[%s10093_s4 + $0x78] sm:$0xff] }
   0xc   :  { %239 = vmatpush.msra.mxu2 %v188_v15  ;;  %v195_v30 = vld [vmem:[%s10093_s4 + $0x130] sm:$0xff]  ;;  %315 = vmatpush.msrb.mxu0 %v144_v24  ;;  %v192_v34 = vld [vmem:[%s10093_s4 + $0x118] sm:$0xff]  ;;  %v173_v35 = vld [vmem:[%s10093_s4 + $0x80] sm:$0xff] }
   0xd   :  { %4652 = vmatmul.msk.f32.gmra.mxu0 %vm66_vm0, %v83_v12  ;;  %210 = vmatpush.msra.mxu1 %v187_v14  ;;  %v138_v36 = vld [vmem:[%s10094_s3 + $0x48] sm:$0xff]  ;;  %v169_v37 = vld [vmem:[%s10093_s4 + $0x60] sm:$0xff]  ;;  %v135_v40 = vld [vmem:[%s10094_s3 + $0x30] sm:$0xff] }
   0xe   :  { %240 = vmatpush.msra.mxu2 %v185_v17  ;;  %265 = vmatpush.msra.mxu3 %v198_v26  ;;  %v189_v38 = vld [vmem:[%s10093_s4 + $0x100] sm:$0xff]  ;;  %v170_v39 = vld [vmem:[%s10093_s4 + $0x68] sm:$0xff]  ;;  %v85_v43 = vld [vmem:[%s10092_s2 + $0x18] sm:$0xff] }
   0xf   :  { %211 = vmatpush.msra.mxu1 %v184_v16  ;;  %316 = vmatpush.msrb.mxu0 %v141_v32  ;;  %v166_v41 = vld [vmem:[%s10093_s4 + $0x48] sm:$0xff]  ;;  %v167_v44 = vld [vmem:[%s10093_s4 + $0x50] sm:$0xff]  ;;  %v164_v47 = vld [vmem:[%s10093_s4 + $0x38] sm:$0xff] }
  0x10   :  { %241 = vmatpush.msra.mxu2 %v182_v23  ;;  %266 = vmatpush.msra.mxu3 %v195_v30  ;;  %v186_v42 = vld [vmem:[%s10093_s4 + $0xe8] sm:$0xff]  ;;  %v163_v45 = vld [vmem:[%s10093_s4 + $0x30] sm:$0xff]  ;;  %v132_v48 = vld [vmem:[%s10094_s3 + $0x18] sm:$0xff] }
  0x11   :  { %212 = vmatpush.msra.mxu1 %v181_v20  ;;  %317 = vmatpush.msrb.mxu0 %v138_v36  ;;  %v183_v46 = vld [vmem:[%s10093_s4 + $0xd0] sm:$0xff]  ;;  %v160_v49 = vld [vmem:[%s10093_s4 + $0x18] sm:$0xff]  ;;  %v161_v51 = vld [vmem:[%s10093_s4 + $0x20] sm:$0xff] }
  0x12   :  { %242 = vmatpush.msra.mxu2 %v179_v28  ;;  %267 = vmatpush.msra.mxu3 %v192_v34  ;;  %v180_v50 = vld [vmem:[%s10093_s4 + $0xb8] sm:$0xff]  ;;  %v129_v52 = vld [vmem:[%s10094_s3] sm:$0xff]  ;;  %v158_v55 = vld [vmem:[%s10093_s4 + $0x8] sm:$0xff] }
  0x13   :  { %213 = vmatpush.msra.mxu1 %v178_v25  ;;  %318 = vmatpush.msrb.mxu0 %v135_v40  ;;  %v157_v53 = vld [vmem:[%s10093_s4] sm:$0xff]  ;;  %v151_v57 = vld [vmem:[%s10094_s3 + $0xb0] sm:$0xff]  ;;  %v152_v58 = vld [vmem:[%s10094_s3 + $0xb8] sm:$0xff] }
  0x14   :  { %243 = vmatpush.msra.mxu2 %v176_v31  ;;  %268 = vmatpush.msra.mxu3 %v189_v38  ;;  %v177_v54 = vld [vmem:[%s10093_s4 + $0xa0] sm:$0xff]  ;;  %v174_v59 = vld [vmem:[%s10093_s4 + $0x88] sm:$0xff]  ;;  %v148_v60 = vld [vmem:[%s10094_s3 + $0x98] sm:$0xff] }
  0x15   :  { %4653 = vmatmul.msk.f32.gmra.mxu0 %vm66_vm0, %v84_v27  ;;  %214 = vmatpush.msra.mxu1 %v175_v29  ;;  %v153_v56 = vld [vmem:[%s10095_s1] sm:$0xff]  ;;  %v171_v62 = vld [vmem:[%s10093_s4 + $0x70] sm:$0xff]  ;;  %v146_v0 = vld [vmem:[%s10094_s3 + $0x88] sm:$0xff] }
  0x16   :  { %244 = vmatpush.msra.mxu2 %v173_v35  ;;  %269 = vmatpush.msra.mxu3 %v186_v42  ;;  %v149_v61 = vld [vmem:[%s10094_s3 + $0xa0] sm:$0xff]  ;;  %v168_v1 = vld [vmem:[%s10093_s4 + $0x58] sm:$0xff]  ;;  %v142_v2 = vld [vmem:[%s10094_s3 + $0x68] sm:$0xff] }
  0x17   :  { %215 = vmatpush.msra.mxu1 %v172_v33  ;;  %319 = vmatpush.msrb.mxu0 %v132_v48  ;;  %v145_v63 = vld [vmem:[%s10094_s3 + $0x80] sm:$0xff]  ;;  %v154_v3 = vld [vmem:[%s10095_s1 + $0x8] sm:$0xff]  ;;  %v143_v4 = vld [vmem:[%s10094_s3 + $0x70] sm:$0xff] }
  0x18   :  { %245 = vmatpush.msra.mxu2 %v170_v39  ;;  %270 = vmatpush.msra.mxu3 %v183_v46  ;;  %v139_v5 = vld [vmem:[%s10094_s3 + $0x50] sm:$0xff]  ;;  %v140_v6 = vld [vmem:[%s10094_s3 + $0x58] sm:$0xff]  ;;  %v165_v7 = vld [vmem:[%s10093_s4 + $0x40] sm:$0xff] }
  0x19   :  { %216 = vmatpush.msra.mxu1 %v169_v37  ;;  %320 = vmatpush.msrb.mxu0 %v129_v52  ;;  %v136_v8 = vld [vmem:[%s10094_s3 + $0x38] sm:$0xff]  ;;  %v137_v9 = vld [vmem:[%s10094_s3 + $0x40] sm:$0xff]  ;;  %v162_v10 = vld [vmem:[%s10093_s4 + $0x28] sm:$0xff]  ;;  %v38_v52 = vlaneseq }
  0x1a   :  { %246 = vmatpush.msra.mxu2 %v167_v44  ;;  %271 = vmatpush.msra.mxu3 %v180_v50  ;;  %v133_v11 = vld [vmem:[%s10094_s3 + $0x20] sm:$0xff]  ;;  %v134_v12 = vld [vmem:[%s10094_s3 + $0x28] sm:$0xff]  ;;  %v155_v13 = vld [vmem:[%s10095_s1 + $0x10] sm:$0xff] }
  0x1b   :  { %217 = vmatpush.msra.mxu1 %v166_v41  ;;  %v156_v14 = vld [vmem:[%s10095_s1 + $0x18] sm:$0xff]  ;;  %v159_v15 = vld [vmem:[%s10093_s4 + $0x10] sm:$0xff]  ;;  %v130_v16 = vld [vmem:[%s10094_s3 + $0x8] sm:$0xff]  ;;  %vm5609_vm2 = vcmp.lt.s32.totalorder %v38_v52, 288 }
  0x1c   :  { %247 = vmatpush.msra.mxu2 %v164_v47  ;;  %272 = vmatpush.msra.mxu3 %v177_v54  ;;  %v131_v17 = vld [vmem:[%s10094_s3 + $0x10] sm:$0xff]  ;;  %v4698_v23 = vld [vmem:[%s10096_s5 + $0x338] sm:$0xff]  ;;  %v4695_v24 = vld [vmem:[%s10096_s5 + $0x320] sm:$0xff] }
  0x1d   :  { %4654 = vmatmul.msk.f32.gmra.mxu0 %vm66_vm0, %v85_v43  ;;  %218 = vmatpush.msra.mxu1 %v163_v45  ;;  %v4697_v21 = vld [vmem:[%s10096_s5 + $0x330] sm:$0xff]  ;;  %v4727_v26 = vld [vmem:[%s10096_s5 + $0x420] sm:$0xff]  ;;  %v4696_v27 = vld [vmem:[%s10096_s5 + $0x328] sm:$0xff] }
  0x1e   :  { %248 = vmatpush.msra.mxu2 %v161_v51  ;;  %273 = vmatpush.msra.mxu3 %v174_v59  ;;  %v4729_v22 = vld [vmem:[%s10096_s5 + $0x430] sm:$0xff]  ;;  %v4694_v30 = vld [vmem:[%s10096_s5 + $0x318] sm:$0xff]  ;;  %v4691_v31 = vld [vmem:[%s10096_s5 + $0x300] sm:$0xff] }
  0x1f   :  { %219 = vmatpush.msra.mxu1 %v160_v49  ;;  %725 = vmatpush.msra.mxu0 %v4729_v22  ;;  %v4693_v28 = vld [vmem:[%s10096_s5 + $0x310] sm:$0xff]  ;;  %v4723_v33 = vld [vmem:[%s10096_s5 + $0x400] sm:$0xff]  ;;  %v4692_v34 = vld [vmem:[%s10096_s5 + $0x308] sm:$0xff] }
  0x20   :  { %249 = vmatpush.msra.mxu2 %v158_v55  ;;  %274 = vmatpush.msra.mxu3 %v171_v62  ;;  %v4725_v29 = vld [vmem:[%s10096_s5 + $0x410] sm:$0xff]  ;;  %v4690_v37 = vld [vmem:[%s10096_s5 + $0x2f8] sm:$0xff]  ;;  %v4687_v38 = vld [vmem:[%s10096_s5 + $0x2e0] sm:$0xff] }
  0x21   :  { %220 = vmatpush.msra.mxu1 %v157_v53  ;;  %250 = vmatmul.f32.vlgmr.msra.gmra.mxu2 %v153_v56  ;;  %v4689_v35 = vld [vmem:[%s10096_s5 + $0x2f0] sm:$0xff]  ;;  %v4719_v39 = vld [vmem:[%s10096_s5 + $0x3e0] sm:$0xff]  ;;  %v4688_v40 = vld [vmem:[%s10096_s5 + $0x2e8] sm:$0xff] }
  0x22   :  { %221 = vmatmul.f32.vlgmr.msra.gmra.mxu1 %v153_v56  ;;  %371 = vmatpush.msrb.mxu2 %v152_v58  ;;  %v4721_v36 = vld [vmem:[%s10096_s5 + $0x3f0] sm:$0xff]  ;;  %v4686_v43 = vld [vmem:[%s10096_s5 + $0x2d8] sm:$0xff]  ;;  %v4683_v45 = vld [vmem:[%s10096_s5 + $0x2c0] sm:$0xff] }
  0x23   :  { %342 = vmatpush.msrb.mxu1 %v151_v57  ;;  %275 = vmatpush.msra.mxu3 %v168_v1  ;;  %v4685_v41 = vld [vmem:[%s10096_s5 + $0x2d0] sm:$0xff]  ;;  %v4715_v47 = vld [vmem:[%s10096_s5 + $0x3c0] sm:$0xff]  ;;  %v4684_v48 = vld [vmem:[%s10096_s5 + $0x2c8] sm:$0xff] }
  0x24   :  { %372 = vmatpush.msrb.mxu2 %v149_v61  ;;  %726 = vmatpush.msra.mxu0 %v4727_v26  ;;  %v4717_v42 = vld [vmem:[%s10096_s5 + $0x3d0] sm:$0xff]  ;;  %v4682_v51 = vld [vmem:[%s10096_s5 + $0x2b8] sm:$0xff]  ;;  %v4679_v53 = vld [vmem:[%s10096_s5 + $0x2a0] sm:$0xff] }
  0x25   :  { %343 = vmatpush.msrb.mxu1 %v148_v60  ;;  %276 = vmatpush.msra.mxu3 %v165_v7  ;;  %v4681_v49 = vld [vmem:[%s10096_s5 + $0x2b0] sm:$0xff]  ;;  %v4711_v54 = vld [vmem:[%s10096_s5 + $0x3a0] sm:$0xff]  ;;  %v4680_v55 = vld [vmem:[%s10096_s5 + $0x2a8] sm:$0xff]  ;;  %v10103_v60 = vmov 0.0  }
  0x26   :  { %373 = vmatpush.msrb.mxu2 %v146_v0  ;;  %727 = vmatpush.msra.mxu0 %v4725_v29  ;;  %v4713_v50 = vld [vmem:[%s10096_s5 + $0x3b0] sm:$0xff]  ;;  %v4678_v59 = vld [vmem:[%s10096_s5 + $0x298] sm:$0xff]  ;;  %42 = vst.msk [vmem:[#allocation2] ss:$8 sm:$0x7] %vm5609_vm2, %v10103_v60  ;;  %v4675_v62 = vld [vmem:[%s10096_s5 + $0x280] sm:$0xff] }
  0x27   :  { %344 = vmatpush.msrb.mxu1 %v145_v63  ;;  %277 = vmatpush.msra.mxu3 %v162_v10  ;;  %v4677_v57 = vld [vmem:[%s10096_s5 + $0x290] sm:$0xff]  ;;  %45 = vst.msk [vmem:[#allocation2 + $0x48] ss:$8 sm:$0x7] %vm5609_vm2, %v10103_v60  ;;  %v4707_v63 = vld [vmem:[%s10096_s5 + $0x380] sm:$0xff]  ;;  %v4676_v0 = vld [vmem:[%s10096_s5 + $0x288] sm:$0xff] }
  0x28   :  { %374 = vmatpush.msrb.mxu2 %v143_v4  ;;  %728 = vmatpush.msra.mxu0 %v4723_v33  ;;  %v4709_v58 = vld [vmem:[%s10096_s5 + $0x390] sm:$0xff]  ;;  %67 = vst.msk [vmem:[#allocation3 + $0x18] sm:$0xff] %vm66_vm0, %v10103_v60  ;;  %v4674_v4 = vld [vmem:[%s10096_s5 + $0x278] sm:$0xff]  ;;  %v4672_v7 = vld [vmem:[%s10096_s5 + $0x268] sm:$0xff] }
  0x29   :  { %345 = vmatpush.msrb.mxu1 %v142_v2  ;;  %253 = vmatmul.f32.gmra.mxu2 %v154_v3  ;;  %48 = vst.msk [vmem:[#allocation2 + $0x31] ss:$8 sm:$0x7] %vm5609_vm2, %v10103_v60  ;;  %v4673_v2 = vld [vmem:[%s10096_s5 + $0x270] sm:$0xff]  ;;  %v4670_v10 = vld [vmem:[%s10096_s5 + $0x258] sm:$0xff]  ;;  %v4712_v52 = vld [vmem:[%s10096_s5 + $0x3a8] sm:$0xff] }
  0x2a   :  { %224 = vmatmul.f32.gmra.mxu1 %v154_v3  ;;  %375 = vmatpush.msrb.mxu2 %v140_v6  ;;  %71 = vst.msk [vmem:[#allocation3 + $0x60] sm:$0xff] %vm66_vm0, %v10103_v60  ;;  %v4703_v6 = vld [vmem:[%s10096_s5 + $0x360] sm:$0xff]  ;;  %v4737_v22 = vld [vmem:[%s10096_s5 + $0x470] sm:$0xff]  ;;  %v4722_v26 = vld [vmem:[%s10096_s5 + $0x3f8] sm:$0xff] }
  0x2b   :  { %346 = vmatpush.msrb.mxu1 %v139_v5  ;;  %278 = vmatpush.msra.mxu3 %v159_v15  ;;  %51 = vst.msk [vmem:[#allocation2 + $0x79] ss:$8 sm:$0x7] %vm5609_vm2, %v10103_v60  ;;  %v4671_v5 = vld [vmem:[%s10096_s5 + $0x260] sm:$0xff]  ;;  %v4730_v15 = vld [vmem:[%s10096_s5 + $0x438] sm:$0xff]  ;;  %v4733_v29 = vld [vmem:[%s10096_s5 + $0x450] sm:$0xff] }
  0x2c   :  { %376 = vmatpush.msrb.mxu2 %v137_v9  ;;  %279 = vmatmul.f32.vlgmr.msra.gmra.mxu3 %v153_v56  ;;  %53 = vst.msk [vmem:[#allocation3] ss:$8 sm:$0x7] %vm5609_vm2, %v10103_v60  ;;  %v4701_v9 = vld [vmem:[%s10096_s5 + $0x350] sm:$0xff] }
  0x2d   :  { %347 = vmatpush.msrb.mxu1 %v136_v8  ;;  %696 = vmatpush.msrb.mxu3 %v4697_v21  ;;  %56 = vst.msk [vmem:[#allocation3 + $0x48] ss:$8 sm:$0x7] %vm5609_vm2, %v10103_v60  ;;  %v4669_v8 = vld [vmem:[%s10096_s5 + $0x250] sm:$0xff] }
  0x2e   :  { %377 = vmatpush.msrb.mxu2 %v134_v12  ;;  %729 = vmatpush.msra.mxu0 %v4721_v36  ;;  %59 = vst.msk [vmem:[#allocation3 + $0x31] ss:$8 sm:$0x7] %vm5609_vm2, %v10103_v60  ;;  %v4699_v12 = vld [vmem:[%s10096_s5 + $0x340] sm:$0xff]  ;;  %v532_v21 = vld [vmem:[%s10096_s5 + $0x1d0] sm:$0xff] }
  0x2f   :  { %348 = vmatpush.msrb.mxu1 %v133_v11  ;;  %697 = vmatpush.msrb.mxu3 %v4695_v24  ;;  %62 = vst.msk [vmem:[#allocation3 + $0x79] ss:$8 sm:$0x7] %vm5609_vm2, %v10103_v60  ;;  %v4667_v11 = vld [vmem:[%s10096_s5 + $0x240] sm:$0xff]  ;;  %v6616_v60 = vld [vmem:[%s10097_s10 + $0x38] sm:$0xff]  ;;  %vm64_vm2 = vcmask 130049  }
  0x30   :  { %378 = vmatpush.msrb.mxu2 %v131_v17  ;;  %730 = vmatpush.msra.mxu0 %v4719_v39  ;;  %v530_v24 = vld [vmem:[%s10096_s5 + $0x1c0] sm:$0xff] }
  0x31   :  { %256 = vmatmul.f32.gmra.mxu2 %v155_v13  ;;  %349 = vmatpush.msrb.mxu1 %v130_v16  ;;  %v536_v16 = vld [vmem:[%s10096_s5 + $0x1f0] sm:$0xff]  ;;  %v4731_v36 = vld [vmem:[%s10096_s5 + $0x440] sm:$0xff] }
  0x32   :  { %227 = vmatmul.f32.gmra.mxu1 %v155_v13  ;;  %783 = vmatpush.msra.mxu2 %v4698_v23  ;;  %v4724_v23 = vld [vmem:[%s10096_s5 + $0x408] sm:$0xff] }
  0x33   :  { %698 = vmatpush.msrb.mxu3 %v4693_v28  ;;  %731 = vmatpush.msra.mxu0 %v4717_v42  ;;  %v4716_v42 = vld [vmem:[%s10096_s5 + $0x3c8] sm:$0xff] }
  0x34   :  { %282 = vmatmul.f32.gmra.mxu3 %v154_v3  ;;  %784 = vmatpush.msra.mxu2 %v4696_v27  ;;  %v4705_v3 = vld [vmem:[%s10096_s5 + $0x370] sm:$0xff] }
  0x35   :  { %699 = vmatpush.msrb.mxu3 %v4691_v31  ;;  %732 = vmatpush.msra.mxu0 %v4715_v47  ;;  %v528_v27 = vld [vmem:[%s10096_s5 + $0x1b0] sm:$0xff]  ;;  %v526_v31 = vld [vmem:[%s10096_s5 + $0x1a0] sm:$0xff]  ;;  %v4714_v47 = vld [vmem:[%s10096_s5 + $0x3b8] sm:$0xff] }
  0x36   :  { %785 = vmatpush.msra.mxu2 %v4694_v30  ;;  %766 = vmatpush.msra.mxu1 %v4737_v22  ;;  %v4720_v30 = vld [vmem:[%s10096_s5 + $0x3e8] sm:$0xff] }
  0x37   :  { %700 = vmatpush.msrb.mxu3 %v4689_v35  ;;  %733 = vmatpush.msra.mxu0 %v4713_v50  ;;  %v500_v50 = vld [vmem:[%s10096_s5 + $0xd0] sm:$0xff] }
  0x38   :  { %786 = vmatpush.msra.mxu2 %v4692_v34 }
  0x39   :  { %259 = vmatmul.f32.gmra.mxu2 %v156_v14  ;;  %701 = vmatpush.msrb.mxu3 %v4687_v38  ;;  %v524_v38 = vld [vmem:[%s10096_s5 + $0x190] sm:$0xff] }
  0x3a   :  { %230 = vmatmul.f32.gmra.mxu1 %v156_v14  ;;  %787 = vmatpush.msra.mxu2 %v4690_v37  ;;  %v4718_v37 = vld [vmem:[%s10096_s5 + $0x3d8] sm:$0xff] }
  0x3b   :  { %702 = vmatpush.msrb.mxu3 %v4685_v41  ;;  %734 = vmatpush.msra.mxu0 %v4711_v54  ;;  %v504_v41 = vld [vmem:[%s10096_s5 + $0xf0] sm:$0xff] }
  0x3c   :  { %285 = vmatmul.f32.gmra.mxu3 %v155_v13  ;;  %788 = vmatpush.msra.mxu2 %v4688_v40  ;;  %v4668_v13 = vld [vmem:[%s10096_s5 + $0x248] sm:$0xff] }
  0x3d   :  { %703 = vmatpush.msrb.mxu3 %v4683_v45  ;;  %735 = vmatpush.msra.mxu0 %v4709_v58  ;;  %v496_v58 = vld [vmem:[%s10096_s5 + $0xb0] sm:$0xff] }
  0x3e   :  { %789 = vmatpush.msra.mxu2 %v4686_v43  ;;  %v522_v43 = vld [vmem:[%s10096_s5 + $0x180] sm:$0xff] }
  0x3f   :  { %704 = vmatpush.msrb.mxu3 %v4681_v49  ;;  %736 = vmatpush.msra.mxu0 %v4707_v63  ;;  %v4738_v49 = vld [vmem:[%s10096_s5 + $0x478] sm:$0xff] }
  0x40   :  { %790 = vmatpush.msra.mxu2 %v4684_v48  ;;  %v520_v48 = vld [vmem:[%s10096_s5 + $0x170] sm:$0xff] }
  0x41   :  { %705 = vmatpush.msrb.mxu3 %v4679_v53  ;;  %737 = vmatpush.msra.mxu0 %v4705_v3  ;;  %v518_v53 = vld [vmem:[%s10096_s5 + $0x160] sm:$0xff]  ;;  %v4710_v3 = vld [vmem:[%s10096_s5 + $0x398] sm:$0xff] }
  0x42   :  { %791 = vmatpush.msra.mxu2 %v4682_v51  ;;  %v498_v51 = vld [vmem:[%s10096_s5 + $0xc0] sm:$0xff] }
  0x43   :  { %706 = vmatpush.msrb.mxu3 %v4677_v57  ;;  %738 = vmatpush.msra.mxu0 %v4703_v6 }
  0x44   :  { %288 = vmatmul.f32.gmra.mxu3 %v156_v14  ;;  %792 = vmatpush.msra.mxu2 %v4680_v55 }
  0x45   :  { %707 = vmatpush.msrb.mxu3 %v4675_v62  ;;  %739 = vmatpush.msra.mxu0 %v4701_v9 }
  0x46   :  { %793 = vmatpush.msra.mxu2 %v4678_v59  ;;  %v4736_v59 = vld [vmem:[%s10096_s5 + $0x468] sm:$0xff] }
  0x47   :  { %708 = vmatpush.msrb.mxu3 %v4673_v2  ;;  %740 = vmatpush.msra.mxu0 %v4699_v12  ;;  %v494_v2 = vld [vmem:[%s10096_s5 + $0xa0] sm:$0xff] }
  0x48   :  { %794 = vmatpush.msra.mxu2 %v4676_v0 }
  0x49   :  { %709 = vmatpush.msrb.mxu3 %v4671_v5  ;;  %v514_v5 = vld [vmem:[%s10096_s5 + $0x140] sm:$0xff] }
  0x4a   :  { %795 = vmatpush.msra.mxu2 %v4674_v4 }
  0x4b   :  { %710 = vmatpush.msrb.mxu3 %v4669_v8  ;;  %v492_v8 = vld [vmem:[%s10096_s5 + $0x90] sm:$0xff] }
  0x4c   :  { %796 = vmatpush.msra.mxu2 %v4672_v7 }
  0x4d   :  { %711 = vmatpush.msrb.mxu3 %v4667_v11  ;;  %v512_v11 = vld [vmem:[%s10096_s5 + $0x130] sm:$0xff] }
  0x4e   :  { %797 = vmatpush.msra.mxu2 %v4670_v10  ;;  %v4706_v10 = vld [vmem:[%s10096_s5 + $0x378] sm:$0xff] }
  0x4f   :  { %812 = vmatpush.msra.mxu3 %v4730_v15 }
  0x50   :  { %798 = vmatpush.msra.mxu2 %v4668_v13 }
  0x82   :  { %v117_v18 = vpop.f32.mrf.mxu0 }
  0x83   :  { %4655 = vmatmul.msk.f32.vlgmr.msrb.gmra.mxu0 %vm292_vm1, %v117_v18  ;;  %4659 = vmatmul.msk.f32.vlgmr.msrb.gmra.mxu1 %vm292_vm1, %v117_v18 }
  0x84   :  { %4663 = vmatmul.msk.f32.vlgmr.msrb.gmra.mxu2 %vm292_vm1, %v117_v18  ;;  %v4728_v18 = vld [vmem:[%s10096_s5 + $0x428] sm:$0xff]  ;;  %853 = vmatpush.msrb.mxu0 %v4738_v49 }
  0x85   :  { %909 = vmatpush.msrb.mxu2 %v536_v16  ;;  %813 = vmatpush.msra.mxu3 %v4728_v18  ;;  %v503_v49 = vld [vmem:[%s10096_s5 + $0xe8] sm:$0xff] }
  0x86   :  { %854 = vmatpush.msrb.mxu0 %v4736_v59 }
  0x8a   :  { %v120_v19 = vpop.f32.mrf.mxu0 }
  0x8b   :  { %4656 = vmatmul.msk.f32.gmra.mxu0 %vm292_vm1, %v120_v19  ;;  %4660 = vmatmul.msk.f32.gmra.mxu1 %vm292_vm1, %v120_v19 }
  0x8c   :  { %4664 = vmatmul.msk.f32.gmra.mxu2 %vm292_vm1, %v120_v19  ;;  %v534_v19 = vld [vmem:[%s10096_s5 + $0x1e0] sm:$0xff] }
  0x8d   :  { %910 = vmatpush.msrb.mxu2 %v534_v19 }
  0x8f   :  { %911 = vmatpush.msrb.mxu2 %v532_v21  ;;  %v4704_v21 = vld [vmem:[%s10096_s5 + $0x368] sm:$0xff] }
  0x91   :  { %912 = vmatpush.msrb.mxu2 %v530_v24 }
  0x92   :  { %v123_v20 = vpop.f32.mrf.mxu0 }
  0x93   :  { %4657 = vmatmul.msk.f32.gmra.mxu0 %vm292_vm1, %v123_v20  ;;  %4661 = vmatmul.msk.f32.gmra.mxu1 %vm292_vm1, %v123_v20 }
  0x94   :  { %4665 = vmatmul.msk.f32.gmra.mxu2 %vm292_vm1, %v123_v20  ;;  %v4726_v20 = vld [vmem:[%s10096_s5 + $0x418] sm:$0xff] }
  0x95   :  { %814 = vmatpush.msra.mxu3 %v4726_v20  ;;  %913 = vmatpush.msrb.mxu2 %v528_v27 }
  0x97   :  { %815 = vmatpush.msra.mxu3 %v4724_v23  ;;  %914 = vmatpush.msrb.mxu2 %v526_v31  ;;  %v490_v23 = vld [vmem:[%s10096_s5 + $0x80] sm:$0xff] }
  0x98   :  { %v510_v31 = vld [vmem:[%s10096_s5 + $0x120] sm:$0xff] }
  0x99   :  { %816 = vmatpush.msra.mxu3 %v4722_v26  ;;  %915 = vmatpush.msrb.mxu2 %v524_v38 }
  0x9a   :  { %v126_v25 = vpop.f32.mrf.mxu0 }
  0x9b   :  { %4658 = vmatmul.msk.f32.gmra.mxu0 %vm292_vm1, %v126_v25  ;;  %4662 = vmatmul.msk.f32.gmra.mxu1 %vm292_vm1, %v126_v25 }
  0x9c   :  { %4666 = vmatmul.msk.f32.gmra.mxu2 %vm292_vm1, %v126_v25  ;;  %v4735_v25 = vld [vmem:[%s10096_s5 + $0x460] sm:$0xff]  ;;  %817 = vmatpush.msra.mxu3 %v4720_v30  ;;  %v4734_v30 = vld [vmem:[%s10096_s5 + $0x458] sm:$0xff]  ;;  %vm77_vm1 = vcmask 254080  }
  0x9d   :  { %767 = vmatpush.msra.mxu1 %v4735_v25  ;;  %916 = vmatpush.msrb.mxu2 %v522_v43 }
  0x9e   :  { %818 = vmatpush.msra.mxu3 %v4718_v37  ;;  %855 = vmatpush.msrb.mxu0 %v4734_v30  ;;  %v474_v30 = vld [vmem:[%s10096_s5] sm:$0xff] }
  0x9f   :  { %v5543_v32 = vpop.f32.mrf.mxu1  ;;  %768 = vmatpush.msra.mxu1 %v4733_v29  ;;  %917 = vmatpush.msrb.mxu2 %v520_v48  ;;  %v484_v48 = vld [vmem:[%s10096_s5 + $0x50] sm:$0xff] }
  0xa0   :  { %819 = vmatpush.msra.mxu3 %v4716_v42  ;;  %v4700_v42 = vld [vmem:[%s10096_s5 + $0x348] sm:$0xff] }
  0xa1   :  { %769 = vmatpush.msra.mxu1 %v4731_v36  ;;  %918 = vmatpush.msrb.mxu2 %v518_v53  ;;  %v4702_v36 = vld [vmem:[%s10096_s5 + $0x358] sm:$0xff]  ;;  %v482_v53 = vld [vmem:[%s10096_s5 + $0x40] sm:$0xff] }
  0xa2   :  { %820 = vmatpush.msra.mxu3 %v4714_v47 }
  0xa3   :  { %880 = vmatpush.msrb.mxu1 %v504_v41  ;;  %v486_v41 = vld [vmem:[%s10096_s5 + $0x60] sm:$0xff] }
  0xa4   :  { %v5578_v44 = vpop.f32.mrf.mxu2  ;;  %821 = vmatpush.msra.mxu3 %v4712_v52 }
  0xa6   :  { %822 = vmatpush.msra.mxu3 %v4710_v3 }
  0xa7   :  { %v5583_v46 = vpop.f32.mrf.mxu1 }
  0xac   :  { %v5625_v61 = vpop.f32.mrf.mxu2 }
  0xaf   :  { %v5644_v1 = vpop.f32.mrf.mxu1  ;;  %v280_v33 = vpop.f32.mrf.mxu3 }
  0xb4   :  { %v5699_v14 = vpop.f32.mrf.mxu2 }
  0xb7   :  { %v5707_v17 = vpop.f32.mrf.mxu1  ;;  %v283_v0 = vpop.f32.mrf.mxu3 }
  0xbc   :  { %v5739_v28 = vpop.f32.mrf.mxu2 }
 0x100   :  { %v322_v34 = vpop.f32.mrf.mxu0  ;;  %v351_v35 = vpop.f32.mrf.mxu1 }
 0x101   :  { %v323_v39 = vadd.f32 %v322_v34, %v5543_v32  ;;  %v5761_v40 = vadd.f32 %v351_v35, %v5578_v44  ;;  %v502_v44 = vld [vmem:[%s10096_s5 + $0xe0] sm:$0xff]  ;;  %v488_v35 = vld [vmem:[%s10096_s5 + $0x70] sm:$0xff] }
 0x102   :  { %881 = vmatpush.msrb.mxu1 %v502_v44  ;;  %v505_v44 = vld [vmem:[%s10096_s5 + $0xf8] sm:$0xff] }
 0x103   :  { %v405_v45 = vrot.slane %v323_v39, 7  ;;  %v406_v32 = vrot.slane %v5761_v40, 7  ;;  %v286_v40 = vpop.f32.mrf.mxu3 }
 0x104   :  { %882 = vmatpush.msrb.mxu1 %v500_v50 }
 0x105   :  { %441 = vst [vmem:[#allocation2] sm:$0xfe] %v405_v45 }
 0x106   :  { %442 = vst [vmem:[#allocation2 + $0x8] sm:$0xfe] %v406_v32  ;;  %883 = vmatpush.msrb.mxu1 %v498_v51 }
 0x107   :  { %v380_v54 = vpop.f32.mrf.mxu2 }
 0x108   :  { %v5797_v55 = vadd.f32 %v380_v54, %v280_v33  ;;  %v325_v56 = vpop.f32.mrf.mxu0  ;;  %v354_v57 = vpop.f32.mrf.mxu1  ;;  %884 = vmatpush.msrb.mxu1 %v496_v58  ;;  %v544_v58 = vld [vmem:[%s10096_s5 + $0x230] sm:$0xff] }
 0x109   :  { %v326_v62 = vadd.f32 %v325_v56, %v5583_v46  ;;  %v355_v63 = vadd.f32 %v354_v57, %v5625_v61  ;;  %v516_v46 = vld [vmem:[%s10096_s5 + $0x150] sm:$0xff]  ;;  %v4708_v61 = vld [vmem:[%s10096_s5 + $0x388] sm:$0xff] }
 0x10a   :  { %v407_v4 = vrot.slane %v5797_v55, 7  ;;  %919 = vmatpush.msrb.mxu2 %v516_v46  ;;  %823 = vmatpush.msra.mxu3 %v4708_v61  ;;  %v478_v46 = vld [vmem:[%s10096_s5 + $0x20] sm:$0xff]  ;;  %v499_v61 = vld [vmem:[%s10096_s5 + $0xc8] sm:$0xff] }
 0x10b   :  { %v408_v6 = vrot.slane %v326_v62, 7  ;;  %v410_v7 = vrot.slane %v355_v63, 7  ;;  %885 = vmatpush.msrb.mxu1 %v494_v2  ;;  %v501_v2 = vld [vmem:[%s10096_s5 + $0xd8] sm:$0xff] }
 0x10c   :  { %444 = vst.msk [vmem:[#allocation2 + $0x10] sm:$0xfe] %vm443_vm3, %v407_v4  ;;  %v546_v9 = vld [vmem:[#allocation2] sm:$0xfe]  ;;  %920 = vmatpush.msrb.mxu2 %v514_v5  ;;  %824 = vmatpush.msra.mxu3 %v4706_v10  ;;  %v289_v10 = vpop.f32.mrf.mxu3 }
 0x10d   :  { %v5836_v12 = vsel %vm404_vm4, %v405_v45, %v408_v6  ;;  %449 = vst [vmem:[#allocation2 + $0x30] sm:$0x1] %v408_v6  ;;  %v5839_v13 = vsel %vm404_vm4, %v406_v32, %v410_v7  ;;  %v577_v15 = vrot.slane %v546_v9, 1  ;;  %v547_v16 = vld [vmem:[#allocation2 + $0x8] sm:$0xfe]  ;;  %886 = vmatpush.msrb.mxu1 %v492_v8  ;;  %v506_v32 = vld [vmem:[%s10096_s5 + $0x100] sm:$0xff] }
 0x10e   :  { %v578_v18 = vrot.slane %v5836_v12, 1  ;;  %v580_v19 = vrot.slane %v547_v16, 1  ;;  %v581_v20 = vrot.slane %v5839_v13, 1  ;;  %921 = vmatpush.msrb.mxu2 %v512_v11  ;;  %450 = vst [vmem:[#allocation2 + $0x38] sm:$0x1] %v410_v7  ;;  %825 = vmatpush.msra.mxu3 %v4704_v21  ;;  %v476_v7 = vld [vmem:[%s10096_s5 + $0x10] sm:$0xff] }
 0x10f   :  { %v383_v22 = vpop.f32.mrf.mxu2  ;;  %887 = vmatpush.msrb.mxu1 %v490_v23  ;;  %v497_v16 = vld [vmem:[%s10096_s5 + $0xb8] sm:$0xff] }
 0x110   :  { %v384_v24 = vadd.f32 %v383_v22, %v283_v0  ;;  %v328_v25 = vpop.f32.mrf.mxu0  ;;  %v357_v26 = vpop.f32.mrf.mxu1  ;;  %v579_v27 = vsel %vm576_vm5, %v577_v15, %v578_v18  ;;  %v5853_v29 = vsel %vm576_vm5, %v580_v19, %v581_v20  ;;  %922 = vmatpush.msrb.mxu2 %v510_v31  ;;  %826 = vmatpush.msra.mxu3 %v4702_v36  ;;  %v480_v0 = vld [vmem:[%s10096_s5 + $0x30] sm:$0xff]  ;;  %v542_v31 = vld [vmem:[%s10096_s5 + $0x220] sm:$0xff] }
 0x111   :  { %v5862_v33 = vadd.f32 %v328_v25, %v5644_v1  ;;  %v5865_v34 = vadd.f32 %v357_v26, %v5699_v14  ;;  %712 = vmatmul.f32.vlgmr.msrb.gmra.mxu3 %v579_v27  ;;  %741 = vmatmul.f32.vlgmr.msra.gmra.mxu0 %v5853_v29  ;;  %v508_v1 = vld [vmem:[%s10096_s5 + $0x110] sm:$0xff]  ;;  %v4732_v14 = vld [vmem:[%s10096_s5 + $0x448] sm:$0xff] }
 0x112   :  { %v412_v37 = vrot.slane %v384_v24, 7  ;;  %799 = vmatmul.f32.vlgmr.msra.gmra.mxu2 %v579_v27  ;;  %888 = vmatpush.msrb.mxu1 %v488_v35  ;;  %v495_v35 = vld [vmem:[%s10096_s5 + $0xa8] sm:$0xff] }
 0x113   :  { %v414_v38 = vrot.slane %v5862_v33, 7  ;;  %v415_v39 = vrot.slane %v5865_v34, 7  ;;  %923 = vmatpush.msrb.mxu2 %v508_v1  ;;  %856 = vmatpush.msrb.mxu0 %v4732_v14  ;;  %v548_v63 = vld [vmem:[#allocation2 + $0x10] sm:$0xfe]  ;;  %v537_v34 = vld [vmem:[%s10096_s5 + $0x1f8] sm:$0xff]  ;;  %v535_v1 = vld [vmem:[%s10096_s5 + $0x1e8] sm:$0xff] }
 0x114   :  { %v413_v43 = vsel %vm404_vm4, %v407_v4, %v412_v37  ;;  %452 = vst.msk [vmem:[#allocation2 + $0x40] sm:$0x1] %vm451_vm6, %v412_v37  ;;  %v549_v45 = vld [vmem:[#allocation2 + $0x30] sm:$0x1]  ;;  %889 = vmatpush.msrb.mxu1 %v486_v41  ;;  %827 = vmatpush.msra.mxu3 %v4700_v42  ;;  %v583_v6 = vrot.slane %v548_v63, 1  ;;  %v493_v14 = vld [vmem:[%s10096_s5 + $0x98] sm:$0xff] }
 0x115   :  { %448 = vst.msk [vmem:[#allocation2 + $0x28] sm:$0xff] %vm447_vm7, %v413_v43  ;;  %v586_v47 = vrot.slane %v549_v45, 1  ;;  %v550_v52 = vld [vmem:[#allocation2 + $0x38] sm:$0x1]  ;;  %924 = vmatpush.msrb.mxu2 %v506_v32  ;;  %967 = vmatpush.msra.mxu0 %v505_v44  ;;  %v491_v41 = vld [vmem:[%s10096_s5 + $0x88] sm:$0xff] }
 0x116   :  { %453 = vst [vmem:[#allocation2 + $0x48] sm:$0xfe] %v414_v38  ;;  %v588_v57 = vrot.slane %v550_v52, 1  ;;  %890 = vmatpush.msrb.mxu1 %v484_v48  ;;  %950 = vmatpush.msrb.mxu3 %v544_v58  ;;  %v533_v42 = vld [vmem:[%s10096_s5 + $0x1d8] sm:$0xff]  ;;  %v540_v48 = vld [vmem:[%s10096_s5 + $0x210] sm:$0xff]  ;;  %v543_v63 = vld [vmem:[%s10096_s5 + $0x228] sm:$0xff] }
 0x117   :  { %454 = vst [vmem:[#allocation2 + $0x50] sm:$0xfe] %v415_v39  ;;  %v386_v50 = vpop.f32.mrf.mxu2  ;;  %v587_v51 = vsel %vm576_vm5, %v578_v18, %v586_v47  ;;  %968 = vmatpush.msra.mxu0 %v503_v49  ;;  %v531_v47 = vld [vmem:[%s10096_s5 + $0x1c8] sm:$0xff]  ;;  %v489_v49 = vld [vmem:[%s10096_s5 + $0x78] sm:$0xff] }
 0x118   :  { %v5909_v54 = vadd.f32 %v386_v50, %v286_v40  ;;  %v331_v55 = vpop.f32.mrf.mxu0  ;;  %v360_v56 = vpop.f32.mrf.mxu1  ;;  %v5926_v4 = vsel %vm576_vm5, %v581_v20, %v588_v57  ;;  %891 = vmatpush.msrb.mxu1 %v482_v53  ;;  %951 = vmatpush.msrb.mxu3 %v542_v31  ;;  %v529_v52 = vld [vmem:[%s10096_s5 + $0x1b8] sm:$0xff]  ;;  %v487_v53 = vld [vmem:[%s10096_s5 + $0x68] sm:$0xff]  ;;  %v4781_v31 = vld [vmem:[%s10096_s5 + $0x550] sm:$0xff] }
 0x119   :  { %v332_v59 = vadd.f32 %v331_v55, %v5707_v17  ;;  %v361_v62 = vadd.f32 %v360_v56, %v5739_v28  ;;  %715 = vmatmul.f32.gmra.mxu3 %v587_v51  ;;  %744 = vmatmul.f32.gmra.mxu0 %v5926_v4  ;;  %v527_v55 = vld [vmem:[%s10096_s5 + $0x1a8] sm:$0xff]  ;;  %v545_v56 = vld [vmem:[%s10096_s5 + $0x238] sm:$0xff] }
 0x11a   :  { %v416_v3 = vrot.slane %v5909_v54, 7  ;;  %802 = vmatmul.f32.gmra.mxu2 %v587_v51  ;;  %892 = vmatpush.msrb.mxu1 %v480_v0 }
 0x11b   :  { %v417_v17 = vrot.slane %v332_v59, 7  ;;  %v419_v28 = vrot.slane %v361_v62, 7  ;;  %969 = vmatpush.msra.mxu0 %v501_v2  ;;  %v551_v26 = vld [vmem:[#allocation2 + $0x40] sm:$0x1]  ;;  %952 = vmatpush.msrb.mxu3 %v540_v48  ;;  %v485_v59 = vld [vmem:[%s10096_s5 + $0x58] sm:$0xff]  ;;  %v483_v2 = vld [vmem:[%s10096_s5 + $0x48] sm:$0xff] }
 0x11c   :  { %455 = vst.msk [vmem:[#allocation2 + $0x58] sm:$0xfe] %vm443_vm3, %v416_v3  ;;  %v5936_v5 = vld [vmem:[#allocation2 + $0x28] sm:$0xff]  ;;  %893 = vmatpush.msrb.mxu1 %v478_v46  ;;  %v590_v37 = vrot.slane %v551_v26, 1  ;;  %1037 = vmatpush.msra.mxu2 %v545_v56  ;;  %v525_v62 = vld [vmem:[%s10096_s5 + $0x198] sm:$0xff]  ;;  %v538_v46 = vld [vmem:[%s10096_s5 + $0x200] sm:$0xff] }
 0x11d   :  { %v5942_v8 = vsel %vm404_vm4, %v414_v38, %v417_v17  ;;  %459 = vst [vmem:[#allocation2 + $0x78] sm:$0x1] %v417_v17  ;;  %v5945_v9 = vsel %vm404_vm4, %v415_v39, %v419_v28  ;;  %v584_v11 = vrot.slane %v5936_v5, 1  ;;  %v552_v15 = vld [vmem:[#allocation2 + $0x48] sm:$0xfe]  ;;  %970 = vmatpush.msra.mxu0 %v499_v61  ;;  %v481_v61 = vld [vmem:[%s10096_s5 + $0x38] sm:$0xff]  ;;  %953 = vmatpush.msrb.mxu3 %v538_v46 }
 0x11e   :  { %v592_v18 = vrot.slane %v552_v15, 1  ;;  %v593_v19 = vrot.slane %v5942_v8, 1  ;;  %v553_v20 = vld [vmem:[#allocation2 + $0x50] sm:$0xfe]  ;;  %v596_v21 = vrot.slane %v5945_v9, 1  ;;  %894 = vmatpush.msrb.mxu1 %v476_v7  ;;  %1038 = vmatpush.msra.mxu2 %v543_v63  ;;  %v523_v17 = vld [vmem:[%s10096_s5 + $0x188] sm:$0xff] }
 0x11f   :  { %v389_v22 = vpop.f32.mrf.mxu2  ;;  %v5954_v23 = vsel %vm576_vm5, %v583_v6, %v584_v11  ;;  %v595_v24 = vrot.slane %v553_v20, 1  ;;  %460 = vst [vmem:[#allocation2 + $0x80] sm:$0x1] %v419_v28  ;;  %971 = vmatpush.msra.mxu0 %v497_v16  ;;  %v5991_v43 = vsel %vm576_vm5, %v584_v11, %v590_v37  ;;  %v6045_v28 = vld [vmem:[#allocation2 + $0x8] sm:$0xff]  ;;  %v521_v6 = vld [vmem:[%s10096_s5 + $0x178] sm:$0xff]  ;;  %v4785_v16 = vld [vmem:[%s10096_s5 + $0x570] sm:$0xff] }
 0x120   :  { %v390_v25 = vadd.f32 %v389_v22, %v289_v10  ;;  %4739 = vmatmul.msk.f32.vlgmr.msra.gmra.mxu1 %vm447_vm7, %v5954_v23  ;;  %v594_v27 = vsel %vm576_vm5, %v592_v18, %v593_v19  ;;  %v479_v10 = vld [vmem:[%s10096_s5 + $0x28] sm:$0xff]  ;;  %v477_v18 = vld [vmem:[%s10096_s5 + $0x18] sm:$0xff]  ;;  %v4815_v26 = vld [vmem:[%s10096_s5 + $0x660] sm:$0xff]  ;;  %vm73_vm3 = vcmask 261249  }
 0x121   :  { %718 = vmatmul.f32.gmra.mxu3 %v594_v27  ;;  %v5966_v33 = vsel %vm576_vm5, %v595_v24, %v596_v21  ;;  %895 = vmatpush.msrb.mxu1 %v474_v30  ;;  %v519_v11 = vld [vmem:[%s10096_s5 + $0x168] sm:$0xff]  ;;  %v4786_v24 = vld [vmem:[%s10096_s5 + $0x578] sm:$0xff]  ;;  %v4779_v37 = vld [vmem:[%s10096_s5 + $0x540] sm:$0xff] }
 0x122   :  { %v421_v36 = vrot.slane %v390_v25, 7  ;;  %805 = vmatmul.f32.gmra.mxu2 %v594_v27  ;;  %747 = vmatmul.f32.gmra.mxu0 %v5966_v33  ;;  %v539_v15 = vld [vmem:[%s10096_s5 + $0x208] sm:$0xff]  ;;  %v513_v25 = vld [vmem:[%s10096_s5 + $0x138] sm:$0xff]  ;;  %v4771_v48 = vld [vmem:[%s10096_s5 + $0x500] sm:$0xff] }
 0x123   :  { %996 = vmatpush.msra.mxu1 %v537_v34  ;;  %972 = vmatpush.msra.mxu0 %v495_v35  ;;  %v554_v50 = vld [vmem:[#allocation2 + $0x58] sm:$0xfe]  ;;  %v515_v22 = vld [vmem:[%s10096_s5 + $0x148] sm:$0xff]  ;;  %v4813_v34 = vld [vmem:[%s10096_s5 + $0x650] sm:$0xff] }
 0x124   :  { %v422_v38 = vsel %vm404_vm4, %v416_v3, %v421_v36  ;;  %461 = vst.msk [vmem:[#allocation2 + $0x88] sm:$0x1] %vm451_vm6, %v421_v36  ;;  %v555_v39 = vld [vmem:[#allocation2 + $0x78] sm:$0x1]  ;;  %v598_v57 = vrot.slane %v554_v50, 1  ;;  %v4784_v27 = vld [vmem:[%s10096_s5 + $0x568] sm:$0xff] }
 0x125   :  { %458 = vst.msk [vmem:[#allocation2 + $0x70] sm:$0xff] %vm447_vm7, %v422_v38  ;;  %v601_v40 = vrot.slane %v555_v39, 1  ;;  %997 = vmatpush.msra.mxu1 %v535_v1  ;;  %973 = vmatpush.msra.mxu0 %v493_v14  ;;  %v511_v30 = vld [vmem:[%s10096_s5 + $0x128] sm:$0xff]  ;;  %v509_v35 = vld [vmem:[%s10096_s5 + $0x118] sm:$0xff]  ;;  %v6125_v36 = vld [vmem:[#allocation2] sm:$0xff]  ;;  %vm1872_vm6 = vcmask 1040512  }
 0x126   :  { %v556_v32 = vld [vmem:[#allocation2 + $0x80] sm:$0x1]  ;;  %v507_v1 = vld [vmem:[%s10096_s5 + $0x108] sm:$0xff]  ;;  %v6135_v14 = vld [vmem:[#allocation2 + $0x50] sm:$0xff] }
 0x127   :  { %v602_v45 = vsel %vm576_vm5, %v593_v19, %v601_v40  ;;  %v603_v44 = vrot.slane %v556_v32, 1  ;;  %974 = vmatpush.msra.mxu0 %v491_v41  ;;  %998 = vmatpush.msra.mxu1 %v533_v42  ;;  %v517_v19 = vld [vmem:[%s10096_s5 + $0x158] sm:$0xff]  ;;  %v4811_v39 = vld [vmem:[%s10096_s5 + $0x640] sm:$0xff]  ;;  %v4777_v40 = vld [vmem:[%s10096_s5 + $0x530] sm:$0xff] }
 0x128   :  { %4740 = vmatmul.msk.f32.gmra.mxu1 %vm447_vm7, %v5991_v43  ;;  %v4782_v38 = vld [vmem:[%s10096_s5 + $0x558] sm:$0xff]  ;;  %v4809_v41 = vld [vmem:[%s10096_s5 + $0x630] sm:$0xff]  ;;  %v4775_v42 = vld [vmem:[%s10096_s5 + $0x520] sm:$0xff] }
 0x129   :  { %721 = vmatmul.f32.gmra.mxu3 %v602_v45  ;;  %v6006_v51 = vsel %vm576_vm5, %v596_v21, %v603_v44  ;;  %999 = vmatpush.msra.mxu1 %v531_v47  ;;  %v475_v21 = vld [vmem:[%s10096_s5 + $0x8] sm:$0xff]  ;;  %v4773_v32 = vld [vmem:[%s10096_s5 + $0x510] sm:$0xff]  ;;  %v4803_v50 = vld [vmem:[%s10096_s5 + $0x600] sm:$0xff] }
 0x12a   :  { %808 = vmatmul.f32.gmra.mxu2 %v602_v45  ;;  %750 = vmatmul.f32.gmra.mxu0 %v6006_v51  ;;  %v4807_v45 = vld [vmem:[%s10096_s5 + $0x620] sm:$0xff]  ;;  %v4776_v44 = vld [vmem:[%s10096_s5 + $0x528] sm:$0xff]  ;;  %v4805_v47 = vld [vmem:[%s10096_s5 + $0x610] sm:$0xff] }
 0x12b   :  { %975 = vmatpush.msra.mxu0 %v489_v49  ;;  %1000 = vmatpush.msra.mxu1 %v529_v52  ;;  %v557_v3 = vld [vmem:[#allocation2 + $0x88] sm:$0x1]  ;;  %v4774_v49 = vld [vmem:[%s10096_s5 + $0x518] sm:$0xff]  ;;  %v4765_v63 = vld [vmem:[%s10096_s5 + $0x4d0] sm:$0xff] }
 0x12c   :  { %v6015_v54 = vld [vmem:[#allocation2 + $0x70] sm:$0xff]  ;;  %v605_v7 = vrot.slane %v557_v3, 1  ;;  %v4772_v52 = vld [vmem:[%s10096_s5 + $0x508] sm:$0xff]  ;;  %v4763_v3 = vld [vmem:[%s10096_s5 + $0x4c0] sm:$0xff] }
 0x12d   :  { %v599_v58 = vrot.slane %v6015_v54, 1  ;;  %976 = vmatpush.msra.mxu0 %v487_v53  ;;  %1001 = vmatpush.msra.mxu1 %v527_v55  ;;  %v4801_v53 = vld [vmem:[%s10096_s5 + $0x5f0] sm:$0xff]  ;;  %v4770_v55 = vld [vmem:[%s10096_s5 + $0x4f8] sm:$0xff]  ;;  %v6199_v56 = vld [vmem:[#allocation2 + $0x48] sm:$0xff] }
 0x12e   :  { %v4795_v46 = vld [vmem:[%s10096_s5 + $0x5c0] sm:$0xff] }
 0x12f   :  { %v6034_v0 = vsel %vm576_vm5, %v598_v57, %v599_v58  ;;  %977 = vmatpush.msra.mxu0 %v485_v59  ;;  %1002 = vmatpush.msra.mxu1 %v525_v62  ;;  %v6081_v20 = vsel %vm576_vm5, %v599_v58, %v605_v7  ;;  %v4767_v57 = vld [vmem:[%s10096_s5 + $0x4e0] sm:$0xff]  ;;  %v464_v58 = vld [vmem:[#allocation2 + $0x10] sm:$0xff]  ;;  %v4768_v59 = vld [vmem:[%s10096_s5 + $0x4e8] sm:$0xff] }
 0x130   :  { %4741 = vmatmul.msk.f32.gmra.mxu1 %vm447_vm7, %v6034_v0  ;;  %v4799_v62 = vld [vmem:[%s10096_s5 + $0x5e0] sm:$0xff]  ;;  %v4793_v7 = vld [vmem:[%s10096_s5 + $0x5b0] sm:$0xff] }
 0x131   :  { %828 = vmatmul.f32.vlgmr.msra.gmra.mxu3 %v5853_v29  ;;  %978 = vmatpush.msra.mxu0 %v483_v2  ;;  %v541_v29 = vld [vmem:[%s10096_s5 + $0x218] sm:$0xff]  ;;  %v4797_v2 = vld [vmem:[%s10096_s5 + $0x5d0] sm:$0xff] }
 0x132   :  { %925 = vmatmul.f32.vlgmr.msrb.gmra.mxu2 %v6045_v28  ;;  %4743 = vmatmul.msk.f32.vlgmr.msrb.gmra.mxu0 %vm447_vm7, %v5954_v23  ;;  %v4817_v23 = vld [vmem:[%s10096_s5 + $0x670] sm:$0xff] }
 0x133   :  { %1003 = vmatpush.msra.mxu1 %v523_v17  ;;  %979 = vmatpush.msra.mxu0 %v481_v61  ;;  %v4764_v17 = vld [vmem:[%s10096_s5 + $0x4c8] sm:$0xff]  ;;  %v4762_v61 = vld [vmem:[%s10096_s5 + $0x4b8] sm:$0xff] }
 0x134   :  { %1039 = vmatpush.msra.mxu2 %v541_v29  ;;  %1198 = vmatpush.msra.mxu3 %v4785_v16  ;;  %v4760_v29 = vld [vmem:[%s10096_s5 + $0x4a8] sm:$0xff]  ;;  %v4791_v16 = vld [vmem:[%s10096_s5 + $0x5a0] sm:$0xff] }
 0x135   :  { %1004 = vmatpush.msra.mxu1 %v521_v6  ;;  %980 = vmatpush.msra.mxu0 %v479_v10  ;;  %v4761_v6 = vld [vmem:[%s10096_s5 + $0x4b0] sm:$0xff]  ;;  %v4759_v10 = vld [vmem:[%s10096_s5 + $0x4a0] sm:$0xff] }
 0x136   :  { %1040 = vmatpush.msra.mxu2 %v539_v15  ;;  %v4825_v15 = vld [vmem:[%s10096_s5 + $0x6b0] sm:$0xff] }
 0x137   :  { %1005 = vmatpush.msra.mxu1 %v519_v11  ;;  %981 = vmatpush.msra.mxu0 %v477_v18  ;;  %v4758_v11 = vld [vmem:[%s10096_s5 + $0x498] sm:$0xff]  ;;  %v4757_v18 = vld [vmem:[%s10096_s5 + $0x490] sm:$0xff] }
 0x138   :  { %4742 = vmatmul.msk.f32.gmra.mxu1 %vm447_vm7, %v6081_v20  ;;  %1285 = vmatpush.msrb.mxu2 %v4786_v24  ;;  %v470_v24 = vld [vmem:[#allocation2 + $0x58] sm:$0xff] }
 0x139   :  { %831 = vmatmul.f32.gmra.mxu3 %v5926_v4  ;;  %1006 = vmatpush.msra.mxu1 %v517_v19  ;;  %v4783_v4 = vld [vmem:[%s10096_s5 + $0x560] sm:$0xff]  ;;  %v4756_v19 = vld [vmem:[%s10096_s5 + $0x488] sm:$0xff] }
 0x13a   :  { %928 = vmatmul.f32.gmra.mxu2 %v5839_v13  ;;  %982 = vmatpush.msra.mxu0 %v475_v21  ;;  %v4789_v21 = vld [vmem:[%s10096_s5 + $0x590] sm:$0xff] }
 0x13b   :  { %4744 = vmatmul.msk.f32.gmra.mxu0 %vm447_vm7, %v5991_v43  ;;  %1007 = vmatpush.msra.mxu1 %v515_v22  ;;  %v4778_v43 = vld [vmem:[%s10096_s5 + $0x538] sm:$0xff]  ;;  %v4821_v22 = vld [vmem:[%s10096_s5 + $0x690] sm:$0xff] }
 0x13c   :  { %1227 = vmatpush.msrb.mxu0 %v4817_v23  ;;  %1199 = vmatpush.msra.mxu3 %v4783_v4  ;;  %v4755_v23 = vld [vmem:[%s10096_s5 + $0x480] sm:$0xff] }
 0x13d   :  { %1008 = vmatpush.msra.mxu1 %v513_v25  ;;  %1286 = vmatpush.msrb.mxu2 %v4784_v27  ;;  %v4818_v25 = vld [vmem:[%s10096_s5 + $0x678] sm:$0xff]  ;;  %v4787_v4 = vld [vmem:[%s10096_s5 + $0x580] sm:$0xff] }
 0x13e   :  { %1228 = vmatpush.msrb.mxu0 %v4815_v26  ;;  %1200 = vmatpush.msra.mxu3 %v4781_v31  ;;  %v4819_v26 = vld [vmem:[%s10096_s5 + $0x680] sm:$0xff]  ;;  %v4826_v27 = vld [vmem:[%s10096_s5 + $0x6b8] sm:$0xff]  ;;  %v4812_v31 = vld [vmem:[%s10096_s5 + $0x648] sm:$0xff] }
 0x13f   :  { %1009 = vmatpush.msra.mxu1 %v511_v30  ;;  %1287 = vmatpush.msrb.mxu2 %v4782_v38  ;;  %v4814_v30 = vld [vmem:[%s10096_s5 + $0x658] sm:$0xff] }
 0x140   :  { %896 = vmatmul.f32.vlgmr.msrb.gmra.mxu1 %v6125_v36  ;;  %1229 = vmatpush.msrb.mxu0 %v4813_v34  ;;  %v4824_v34 = vld [vmem:[%s10096_s5 + $0x6a8] sm:$0xff] }
 0x141   :  { %834 = vmatmul.f32.gmra.mxu3 %v5966_v33  ;;  %1010 = vmatpush.msra.mxu1 %v509_v35  ;;  %v4780_v33 = vld [vmem:[%s10096_s5 + $0x548] sm:$0xff]  ;;  %v1054_v35 = vld [vmem:[#allocation2] sm:$0xfc] }
 0x142   :  { %931 = vmatmul.f32.gmra.mxu2 %v6135_v14  ;;  %1201 = vmatpush.msra.mxu3 %v4779_v37  ;;  %v1055_v37 = vld [vmem:[#allocation2 + $0x8] sm:$0xfc]  ;;  %v1079_v38 = vrot.slane %v1054_v35, 2 }
 0x143   :  { %4745 = vmatmul.msk.f32.gmra.mxu0 %vm447_vm7, %v6034_v0  ;;  %1011 = vmatpush.msra.mxu1 %v507_v1  ;;  %v4766_v0 = vld [vmem:[%s10096_s5 + $0x4d8] sm:$0xff]  ;;  %v4808_v1 = vld [vmem:[%s10096_s5 + $0x628] sm:$0xff] }
 0x144   :  { %1230 = vmatpush.msrb.mxu0 %v4811_v39  ;;  %1202 = vmatpush.msra.mxu3 %v4777_v40  ;;  %v1080_v39 = vrot.slane %v5836_v12, 2  ;;  %v4806_v40 = vld [vmem:[%s10096_s5 + $0x618] sm:$0xff] }
 0x145   :  { %1288 = vmatpush.msrb.mxu2 %v4780_v33  ;;  %1268 = vmatpush.msrb.mxu1 %v4825_v15  ;;  %v1082_v33 = vrot.slane %v1055_v37, 2 }
 0x146   :  { %1231 = vmatpush.msrb.mxu0 %v4809_v41  ;;  %1203 = vmatpush.msra.mxu3 %v4775_v42  ;;  %v1083_v41 = vrot.slane %v5839_v13, 2  ;;  %v4804_v42 = vld [vmem:[%s10096_s5 + $0x608] sm:$0xff] }
 0x147   :  { %1289 = vmatpush.msrb.mxu2 %v4778_v43  ;;  %v1081_v43 = vsel %vm1078_vm8, %v1079_v38, %v1080_v39 }
 0x148   :  { %899 = vmatmul.f32.gmra.mxu1 %v5836_v12  ;;  %1232 = vmatpush.msrb.mxu0 %v4807_v45  ;;  %v1057_v45 = vld [vmem:[#allocation2 + $0x30] sm:$0x3] }
 0x149   :  { %837 = vmatmul.f32.gmra.mxu3 %v6006_v51  ;;  %1290 = vmatpush.msrb.mxu2 %v4776_v44  ;;  %v4769_v51 = vld [vmem:[%s10096_s5 + $0x4f0] sm:$0xff]  ;;  %v4800_v44 = vld [vmem:[%s10096_s5 + $0x5e8] sm:$0xff] }
 0x14a   :  { %934 = vmatmul.f32.gmra.mxu2 %v5945_v9  ;;  %1204 = vmatpush.msra.mxu3 %v4773_v32  ;;  %v6337_v32 = vsel %vm1078_vm8, %v1082_v33, %v1083_v41 }
 0x14b   :  { %4746 = vmatmul.msk.f32.gmra.mxu0 %vm447_vm7, %v6081_v20  ;;  %1291 = vmatpush.msrb.mxu2 %v4774_v49  ;;  %v4823_v20 = vld [vmem:[%s10096_s5 + $0x6a0] sm:$0xff] }
 0x14c   :  { %1233 = vmatpush.msrb.mxu0 %v4805_v47  ;;  %1205 = vmatpush.msra.mxu3 %v4771_v48  ;;  %v1088_v47 = vrot.slane %v1057_v45, 2  ;;  %v4798_v48 = vld [vmem:[%s10096_s5 + $0x5d8] sm:$0xff] }
 0x14d   :  { %1292 = vmatpush.msrb.mxu2 %v4772_v52  ;;  %1269 = vmatpush.msrb.mxu1 %v4823_v20  ;;  %v4820_v52 = vld [vmem:[%s10096_s5 + $0x688] sm:$0xff] }
 0x14e   :  { %1234 = vmatpush.msrb.mxu0 %v4803_v50  ;;  %1206 = vmatpush.msra.mxu3 %v4769_v51  ;;  %v4796_v50 = vld [vmem:[%s10096_s5 + $0x5c8] sm:$0xff]  ;;  %v1089_v51 = vsel %vm1078_vm8, %v1080_v39, %v1088_v47 }
 0x14f   :  { %1293 = vmatpush.msrb.mxu2 %v4770_v55  ;;  %1270 = vmatpush.msrb.mxu1 %v4821_v22  ;;  %v4794_v55 = vld [vmem:[%s10096_s5 + $0x5b8] sm:$0xff] }
 0x150   :  { %902 = vmatmul.f32.gmra.mxu1 %v6199_v56  ;;  %1235 = vmatpush.msrb.mxu0 %v4801_v53  ;;  %v1060_v53 = vld [vmem:[#allocation2 + $0x48] sm:$0xfc] }
 0x151   :  { %4747 = vmatmul.msk.f32.vlgmr.msrb.gmra.mxu3 %vm447_vm7, %v464_v58  ;;  %1294 = vmatpush.msrb.mxu2 %v4768_v59  ;;  %v1061_v59 = vld [vmem:[#allocation2 + $0x50] sm:$0xfc] }
 0x152   :  { %4751 = vmatmul.msk.f32.vlgmr.msra.gmra.mxu2 %vm447_vm7, %v464_v58  ;;  %1207 = vmatpush.msra.mxu3 %v4767_v57  ;;  %v1086_v58 = vrot.slane %v5936_v5, 2 }
 0x153   :  { %983 = vmatmul.f32.vlgmr.msra.gmra.mxu0 %v6125_v36  ;;  %1295 = vmatpush.msrb.mxu2 %v4766_v0  ;;  %v4810_v36 = vld [vmem:[%s10096_s5 + $0x638] sm:$0xff]  ;;  %v1095_v0 = vrot.slane %v5942_v8, 2 }
 0x154   :  { %1236 = vmatpush.msrb.mxu0 %v4799_v62  ;;  %1208 = vmatpush.msra.mxu3 %v4765_v63  ;;  %v4792_v62 = vld [vmem:[%s10096_s5 + $0x5a8] sm:$0xff]  ;;  %v1094_v63 = vrot.slane %v1060_v53, 2 }
 0x155   :  { %1296 = vmatpush.msrb.mxu2 %v4764_v17  ;;  %1271 = vmatpush.msrb.mxu1 %v4819_v26  ;;  %v1097_v17 = vrot.slane %v1061_v59, 2  ;;  %v6462_v53 = vld [vmem:[%s10097_s10 + $0xe8] sm:$0xff] }
 0x156   :  { %1237 = vmatpush.msrb.mxu0 %v4797_v2  ;;  %1209 = vmatpush.msra.mxu3 %v4763_v3  ;;  %v4790_v3 = vld [vmem:[%s10096_s5 + $0x598] sm:$0xff]  ;;  %v6486_v59 = vld [vmem:[%s10097_s10 + $0xc8] sm:$0xff] }
 0x157   :  { %1297 = vmatpush.msrb.mxu2 %v4762_v61  ;;  %v4788_v61 = vld [vmem:[%s10096_s5 + $0x588] sm:$0xff] }
 0x158   :  { %905 = vmatmul.f32.gmra.mxu1 %v5942_v8  ;;  %1238 = vmatpush.msrb.mxu0 %v4795_v46  ;;  %v1098_v46 = vrot.slane %v5945_v9, 2 }
 0x159   :  { %4748 = vmatmul.msk.f32.gmra.mxu3 %vm447_vm7, %v5936_v5  ;;  %1298 = vmatpush.msrb.mxu2 %v4760_v29  ;;  %v1063_v29 = vld [vmem:[#allocation2 + $0x78] sm:$0x3] }
 0x15a   :  { %4752 = vmatmul.msk.f32.gmra.mxu2 %vm447_vm7, %v5936_v5  ;;  %1210 = vmatpush.msra.mxu3 %v4761_v6  ;;  %v1059_v6 = vld [vmem:[#allocation2 + $0x40] sm:$0x3] }
 0x15b   :  { %986 = vmatmul.f32.gmra.mxu0 %v5836_v12  ;;  %1299 = vmatpush.msrb.mxu2 %v4758_v11  ;;  %v4822_v12 = vld [vmem:[%s10096_s5 + $0x698] sm:$0xff]  ;;  %v1103_v11 = vrot.slane %v1063_v29, 2  ;;  %v6542_v29 = vld [vmem:[%s10097_s10 + $0x88] sm:$0xff] }
 0x15c   :  { %1239 = vmatpush.msrb.mxu0 %v4793_v7  ;;  %1211 = vmatpush.msra.mxu3 %v4759_v10  ;;  %v1099_v7 = vsel %vm1078_vm8, %v1097_v17, %v1098_v46  ;;  %v1064_v10 = vld [vmem:[#allocation2 + $0x80] sm:$0x3]  ;;  %v6516_v17 = vld [vmem:[%s10097_s10 + $0xa8] sm:$0xff] }
 0x15d   :  { %1300 = vmatpush.msrb.mxu2 %v4756_v19  ;;  %v1105_v15 = vrot.slane %v1064_v10, 2  ;;  %v1062_v19 = vld [vmem:[#allocation2 + $0x58] sm:$0xfc]  ;;  %v6555_v10 = vld [vmem:[%s10097_s10 + $0x70] sm:$0xff] }
 0x15e   :  { %1240 = vmatpush.msrb.mxu0 %v4791_v16  ;;  %1212 = vmatpush.msra.mxu3 %v4757_v18  ;;  %v1104_v18 = vsel %vm1078_vm8, %v1095_v0, %v1103_v11  ;;  %v1100_v22 = vrot.slane %v1062_v19, 2  ;;  %v6560_v11 = vld [vmem:[%s10097_s10 + $0x78] sm:$0xff] }
 0x15f   :  { %v1106_v20 = vsel %vm1078_vm8, %v1098_v46, %v1105_v15  ;;  %v6565_v15 = vld [vmem:[%s10097_s10 + $0x60] sm:$0xff]  ;;  %v6582_v19 = vld [vmem:[%s10097_s10 + $0x58] sm:$0xff] }
 0x160   :  { %1012 = vmatmul.f32.vlgmr.msra.gmra.mxu1 %v6045_v28  ;;  %1241 = vmatpush.msrb.mxu0 %v4789_v21  ;;  %v4816_v28 = vld [vmem:[%s10096_s5 + $0x668] sm:$0xff]  ;;  %v1101_v21 = vrot.slane %v6015_v54, 2 }
 0x161   :  { %4749 = vmatmul.msk.f32.gmra.mxu3 %vm447_vm7, %v470_v24 }
 0x162   :  { %4753 = vmatmul.msk.f32.gmra.mxu2 %vm447_vm7, %v470_v24  ;;  %1213 = vmatpush.msra.mxu3 %v4755_v23  ;;  %v1102_v24 = vsel %vm1078_vm8, %v1100_v22, %v1101_v21  ;;  %v6593_v22 = vld [vmem:[%s10097_s10 + $0x40] sm:$0xff] }
 0x163   :  { %989 = vmatmul.f32.gmra.mxu0 %v6199_v56  ;;  %v1056_v56 = vld [vmem:[#allocation2 + $0x10] sm:$0xfc] }
 0x164   :  { %1314 = vmatpush.msrb.mxu3 %v4818_v25  ;;  %1242 = vmatpush.msrb.mxu0 %v4787_v4  ;;  %v1085_v2 = vrot.slane %v1056_v56, 2  ;;  %v1065_v25 = vld [vmem:[#allocation2 + $0x88] sm:$0x3]  ;;  %v6472_v56 = vld [vmem:[%s10097_s10 + $0xd8] sm:$0xff] }
 0x165   :  { %v1107_v4 = vrot.slane %v1065_v25, 2 }
 0x166   :  { %1315 = vmatpush.msrb.mxu3 %v4816_v28  ;;  %1355 = vmatpush.msra.mxu0 %v4826_v27  ;;  %v1087_v5 = vsel %vm1078_vm8, %v1085_v2, %v1086_v58  ;;  %v6504_v2 = vld [vmem:[%s10097_s10 + $0xb8] sm:$0xff] }
 0x168   :  { %1316 = vmatpush.msrb.mxu3 %v4814_v30  ;;  %1015 = vmatmul.f32.gmra.mxu1 %v5839_v13  ;;  %v4802_v13 = vld [vmem:[%s10096_s5 + $0x5f8] sm:$0xff] }
 0x169   :  { %4750 = vmatmul.msk.f32.gmra.mxu3 %vm447_vm7, %v6015_v54  ;;  %1356 = vmatpush.msra.mxu0 %v4824_v34 }
 0x16a   :  { %4754 = vmatmul.msk.f32.gmra.mxu2 %vm447_vm7, %v6015_v54  ;;  %1317 = vmatpush.msrb.mxu3 %v4812_v31  ;;  %v1108_v54 = vsel %vm1078_vm8, %v1101_v21, %v1107_v4 }
 0x16b   :  { %992 = vmatmul.f32.gmra.mxu0 %v5942_v8  ;;  %v1096_v8 = vsel %vm1078_vm8, %v1094_v63, %v1095_v0  ;;  %v6499_v0 = vld [vmem:[%s10097_s10 + $0xb0] sm:$0xff] }
 0x16c   :  { %1318 = vmatpush.msrb.mxu3 %v4810_v36  ;;  %1357 = vmatpush.msra.mxu0 %v4822_v12 }
 0x16e   :  { %1319 = vmatpush.msrb.mxu3 %v4808_v1  ;;  %1358 = vmatpush.msra.mxu0 %v4820_v52  ;;  %v6455_v52 = vld [vmem:[%s10097_s10 + $0xe0] sm:$0xff] }
 0x170   :  { %1018 = vmatmul.f32.gmra.mxu1 %v6135_v14  ;;  %1320 = vmatpush.msrb.mxu3 %v4806_v40  ;;  %v1058_v14 = vld [vmem:[#allocation2 + $0x38] sm:$0x3] }
 0x171   :  { %1214 = vmatmul.f32.vlgmr.msra.gmra.mxu3 %v1081_v43  ;;  %v1090_v49 = vrot.slane %v1058_v14, 2 }
 0x172   :  { %1301 = vmatmul.f32.vlgmr.msrb.gmra.mxu2 %v1081_v43  ;;  %1321 = vmatpush.msrb.mxu3 %v4804_v42 }
 0x173   :  { %1243 = vmatmul.f32.vlgmr.msrb.gmra.mxu0 %v6337_v32  ;;  %v1091_v57 = vsel %vm1078_vm8, %v1083_v41, %v1090_v49 }
 0x174   :  { %1322 = vmatpush.msrb.mxu3 %v4802_v13 }
 0x176   :  { %1323 = vmatpush.msrb.mxu3 %v4800_v44 }
 0x178   :  { %1021 = vmatmul.f32.gmra.mxu1 %v5945_v9  ;;  %1324 = vmatpush.msrb.mxu3 %v4798_v48  ;;  %v1092_v9 = vrot.slane %v1059_v6, 2 }
 0x179   :  { %1217 = vmatmul.f32.gmra.mxu3 %v1089_v51 }
 0x17a   :  { %1304 = vmatmul.f32.gmra.mxu2 %v1089_v51  ;;  %1325 = vmatpush.msrb.mxu3 %v4796_v50  ;;  %v1093_v16 = vsel %vm1078_vm8, %v1086_v58, %v1092_v9  ;;  %v6445_v50 = vld [vmem:[%s10097_s10 + $0xf0] sm:$0xff]  ;;  %v6450_v51 = vld [vmem:[%s10097_s10 + $0xf8] sm:$0xff]  ;;  %v6481_v58 = vld [vmem:[%s10097_s10 + $0xc0] sm:$0xff] }
 0x17b   :  { %1246 = vmatmul.f32.gmra.mxu0 %v1091_v57  ;;  %1444 = vmatpush.msra.mxu1 %v6445_v50 }
 0x17c   :  { %1326 = vmatpush.msrb.mxu3 %v4794_v55  ;;  %v6467_v55 = vld [vmem:[%s10097_s10 + $0xd0] sm:$0xff] }
 0x17d   :  { %1445 = vmatpush.msra.mxu1 %v6455_v52 }
 0x17e   :  { %1327 = vmatpush.msrb.mxu3 %v4792_v62 }
 0x17f   :  { %1446 = vmatpush.msra.mxu1 %v6467_v55 }
 0x180   :  { %4827 = vmatmul.msk.f32.vlgmr.msrb.gmra.mxu1 %vm447_vm7, %v1087_v5  ;;  %1328 = vmatpush.msrb.mxu3 %v4790_v3  ;;  %v6509_v3 = vld [vmem:[%s10097_s10 + $0xa0] sm:$0xff] }
 0x181   :  { %1220 = vmatmul.f32.gmra.mxu3 %v1096_v8  ;;  %1447 = vmatpush.msra.mxu1 %v6481_v58 }
 0x182   :  { %1307 = vmatmul.f32.gmra.mxu2 %v1096_v8  ;;  %1329 = vmatpush.msrb.mxu3 %v4788_v61  ;;  %v6528_v61 = vld [vmem:[%s10097_s10 + $0x98] sm:$0xff]  ;;  %v6537_v8 = vld [vmem:[%s10097_s10 + $0x80] sm:$0xff] }
 0x183   :  { %1249 = vmatmul.f32.gmra.mxu0 %v1099_v7  ;;  %1448 = vmatpush.msra.mxu1 %v6499_v0 }
 0x184   :  { %1502 = vmatpush.msra.mxu3 %v6450_v51 }
 0x185   :  { %1449 = vmatpush.msra.mxu1 %v6509_v3 }
 0x186   :  { %1503 = vmatpush.msra.mxu3 %v6462_v53 }
 0x188   :  { %4828 = vmatmul.msk.f32.gmra.mxu1 %vm447_vm7, %v1093_v16  ;;  %1504 = vmatpush.msra.mxu3 %v6472_v56 }
 0x189   :  { %1223 = vmatmul.f32.gmra.mxu3 %v1104_v18 }
 0x18a   :  { %1310 = vmatmul.f32.gmra.mxu2 %v1104_v18  ;;  %1505 = vmatpush.msra.mxu3 %v6486_v59  ;;  %v6577_v18 = vld [vmem:[%s10097_s10 + $0x50] sm:$0xff] }
 0x18b   :  { %1252 = vmatmul.f32.gmra.mxu0 %v1106_v20 }
 0x18c   :  { %1506 = vmatpush.msra.mxu3 %v6504_v2 }
 0x18e   :  { %v6379_v23 = vpop.f32.mrf.mxu0  ;;  %1507 = vmatpush.msra.mxu3 %v6516_v17 }
 0x190   :  { %4829 = vmatmul.msk.f32.gmra.mxu1 %vm447_vm7, %v1102_v24  ;;  %1508 = vmatpush.msra.mxu3 %v6528_v61 }
 0x191   :  { %1330 = vmatmul.f32.vlgmr.msrb.gmra.mxu3 %v6337_v32 }
 0x192   :  { %1509 = vmatpush.msra.mxu3 %v6542_v29 }
 0x193   :  { %4831 = vmatmul.msk.f32.vlgmr.msra.gmra.mxu0 %vm447_vm7, %v1087_v5  ;;  %v6523_v5 = vld [vmem:[%s10097_s10 + $0x90] sm:$0xff] }
 0x194   :  { %v6385_v26 = vpop.f32.mrf.mxu3  ;;  %1450 = vmatpush.msra.mxu1 %v6523_v5  ;;  %1510 = vmatpush.msra.mxu3 %v6560_v11 }
 0x195   :  { %v6387_v28 = vpop.f32.mrf.mxu2 }
 0x196   :  { %v6391_v27 = vpop.f32.mrf.mxu0  ;;  %1451 = vmatpush.msra.mxu1 %v6537_v8 }
 0x198   :  { %4830 = vmatmul.msk.f32.gmra.mxu1 %vm447_vm7, %v1108_v54 }
 0x199   :  { %1333 = vmatmul.f32.gmra.mxu3 %v1091_v57  ;;  %1452 = vmatpush.msra.mxu1 %v6555_v10 }
 0x19b   :  { %4832 = vmatmul.msk.f32.gmra.mxu0 %vm447_vm7, %v1093_v16  ;;  %v6572_v16 = vld [vmem:[%s10097_s10 + $0x68] sm:$0xff]  ;;  %1453 = vmatpush.msra.mxu1 %v6565_v15 }
 0x19c   :  { %v6394_v30 = vpop.f32.mrf.mxu3  ;;  %1511 = vmatpush.msra.mxu3 %v6572_v16 }
 0x19d   :  { %v6396_v31 = vpop.f32.mrf.mxu1  ;;  %v6398_v34 = vpop.f32.mrf.mxu2  ;;  %1454 = vmatpush.msra.mxu1 %v6577_v18 }
 0x19e   :  { %10114 = vst [vmem:[#allocation4_spill] sm:$0xff] %v6398_v34  ;;  %1512 = vmatpush.msra.mxu3 %v6582_v19  ;;  %v6680_v34 = vld [vmem:[%s10097_s10 + $0x1e8] sm:$0xff] }
 0x19f   :  { %v6400_v35 = vpop.f32.mrf.mxu0  ;;  %1455 = vmatpush.msra.mxu1 %v6593_v22 }
 0x1a1   :  { %1336 = vmatmul.f32.gmra.mxu3 %v1099_v7 }
 0x1a3   :  { %4833 = vmatmul.msk.f32.gmra.mxu0 %vm447_vm7, %v1102_v24  ;;  %v6598_v24 = vld [vmem:[%s10097_s10 + $0x48] sm:$0xff] }
 0x1a4   :  { %v6403_v36 = vpop.f32.mrf.mxu3  ;;  %1513 = vmatpush.msra.mxu3 %v6598_v24 }
 0x1a5   :  { %v6405_v37 = vpop.f32.mrf.mxu1  ;;  %v6409_v38 = vpop.f32.mrf.mxu2 }
 0x1a6   :  { %10115 = vst [vmem:[#allocation5_spill] sm:$0xff] %v6409_v38  ;;  %1514 = vmatpush.msra.mxu3 %v6616_v60  ;;  %v6652_v38 = vld [vmem:[%s10097_s10] sm:$0xff] }
 0x1a7   :  { %v6407_v1 = vpop.f32.mrf.mxu0 }
 0x1a9   :  { %1339 = vmatmul.f32.gmra.mxu3 %v1106_v20 }
 0x1ab   :  { %4834 = vmatmul.msk.f32.gmra.mxu0 %vm447_vm7, %v1108_v54  ;;  %v6611_v54 = vld [vmem:[%s10097_s10 + $0x30] sm:$0xff] }
 0x1ac   :  { %v6412_v39 = vpop.f32.mrf.mxu3  ;;  %1456 = vmatpush.msra.mxu1 %v6611_v54 }
 0x1ad   :  { %v6414_v40 = vpop.f32.mrf.mxu1  ;;  %v6418_v41 = vpop.f32.mrf.mxu2 }
 0x1ae   :  { %10117 = vst [vmem:[#allocation7_spill] sm:$0xff] %v6418_v41  ;;  %v6633_v41 = vld [vmem:[%s10097_s10 + $0x10] sm:$0xff] }
 0x1af   :  { %v6416_v33 = vpop.f32.mrf.mxu0 }
 0x1b0   :  { %10116 = vst [vmem:[#allocation6_spill] sm:$0xff] %v6416_v33  ;;  %v6715_v33 = vld [vmem:[%s10097_s10 + $0x1b0] sm:$0xff] }
 0x1b4   :  { %v6420_v42 = vpop.f32.mrf.mxu3 }
 0x1b5   :  { %v6422_v43 = vpop.f32.mrf.mxu1  ;;  %v6430_v32 = vpop.f32.mrf.mxu2 }
 0x1b8   :  { %v6424_v12 = vpop.f32.mrf.mxu0 }
 0x1b9   :  { %10118 = vst [vmem:[#allocation8_spill] sm:$0xff] %v6424_v12  ;;  %v6663_v12 = vld [vmem:[%s10097_s10 + $0x1f8] sm:$0xff] }
 0x1ba   :  { %1531 = vmatpush.msrb.mxu0 %v6663_v12 }
 0x1bc   :  { %v6426_v45 = vpop.f32.mrf.mxu3  ;;  %1532 = vmatpush.msrb.mxu0 %v6680_v34 }
 0x1bd   :  { %10119 = vst [vmem:[#allocation9_spill] sm:$0xff] %v6426_v45  ;;  %v6428_v13 = vpop.f32.mrf.mxu1  ;;  %v6438_v48 = vpop.f32.mrf.mxu2  ;;  %v6675_v45 = vld [vmem:[%s10097_s10 + $0x1e0] sm:$0xff] }
 0x1c0   :  { %v6432_v14 = vpop.f32.mrf.mxu0 }
 0x1c1   :  { %10120 = vst [vmem:[#allocation10_spill] sm:$0xff] %v6432_v14  ;;  %v6643_v14 = vld [vmem:[%s10097_s10 + $0x1f0] sm:$0xff] }
 0x1c2   :  { %1473 = vmatpush.msra.mxu2 %v6643_v14 }
 0x1c4   :  { %v6434_v44 = vpop.f32.mrf.mxu3  ;;  %1474 = vmatpush.msra.mxu2 %v6675_v45 }
 0x1c5   :  { %10121 = vst [vmem:[#allocation11_spill] sm:$0xff] %v6434_v44  ;;  %v6436_v47 = vpop.f32.mrf.mxu1  ;;  %v6518_v46 = vpop.f32.mrf.mxu2 }
 0x1c8   :  { %v6440_v49 = vpop.f32.mrf.mxu0 }
 0x1c9   :  { %10122 = vst [vmem:[#allocation12_spill] sm:$0xff] %v6440_v49  ;;  %v6621_v49 = vld [vmem:[%s10097_s10 + $0x20] sm:$0xff] }
 0x1ca   :  { %1457 = vmatpush.msra.mxu1 %v6621_v49 }
 0x1cc   :  { %v6476_v57 = vpop.f32.mrf.mxu3  ;;  %1458 = vmatpush.msra.mxu1 %v6633_v41 }
 0x1cd   :  { %10123 = vst [vmem:[#allocation13_spill] sm:$0xff] %v6476_v57  ;;  %v6488_v62 = vpop.f32.mrf.mxu1  ;;  %v6586_v20 = vpop.f32.mrf.mxu2  ;;  %v6628_v57 = vld [vmem:[%s10097_s10 + $0x28] sm:$0xff] }
 0x1ce   :  { %10127 = vst [vmem:[#allocation17_spill] sm:$0xff] %v6586_v20  ;;  %1515 = vmatpush.msra.mxu3 %v6628_v57  ;;  %1459 = vmatpush.msra.mxu1 %v6652_v38 }
 0x1d0   :  { %v6494_v63 = vpop.f32.mrf.mxu0  ;;  %1596 = vmatpush.msrb.mxu1 %v6445_v50  ;;  %v6726_v50 = vld [vmem:[%s10097_s10 + $0x1b8] sm:$0xff] }
 0x1d1   :  { %10124 = vst [vmem:[#allocation14_spill] sm:$0xff] %v6494_v63  ;;  %v6696_v63 = vld [vmem:[%s10097_s10 + $0x1d8] sm:$0xff] }
 0x1d2   :  { %1533 = vmatpush.msrb.mxu0 %v6696_v63  ;;  %1597 = vmatpush.msrb.mxu1 %v6455_v52  ;;  %v6737_v52 = vld [vmem:[%s10097_s10 + $0x1a0] sm:$0xff] }
 0x1d3   :  { %10136 = vst [vmem:[#allocation26_spill] sm:$0xff] %v6737_v52 }
 0x1d4   :  { %v6532_v6 = vpop.f32.mrf.mxu3  ;;  %1598 = vmatpush.msrb.mxu1 %v6467_v55 }
 0x1d5   :  { %v6544_v7 = vpop.f32.mrf.mxu1 }
 0x1d6   :  { %10125 = vst [vmem:[#allocation15_spill] sm:$0xff] %v6544_v7  ;;  %v6701_v7 = vld [vmem:[%s10097_s10 + $0x1c0] sm:$0xff]  ;;  %1599 = vmatpush.msrb.mxu1 %v6481_v58 }
 0x1d7   :  { %v6763_v58 = vld [vmem:[%s10097_s10 + $0x180] sm:$0xff] }
 0x1d8   :  { %v6550_v9 = vpop.f32.mrf.mxu0  ;;  %1600 = vmatpush.msrb.mxu1 %v6499_v0  ;;  %v6788_v0 = vld [vmem:[%s10097_s10 + $0x178] sm:$0xff] }
 0x1d9   :  { %10126 = vst [vmem:[#allocation16_spill] sm:$0xff] %v6550_v9  ;;  %v6657_v9 = vld [vmem:[%s10097_s10 + $0x8] sm:$0xff] }
 0x1da   :  { %1601 = vmatpush.msrb.mxu1 %v6509_v3 }
 0x1dc   :  { %v6588_v21 = vpop.f32.mrf.mxu3  ;;  %1602 = vmatpush.msrb.mxu1 %v6523_v5  ;;  %v6815_v5 = vld [vmem:[%s10097_s10 + $0x150] sm:$0xff] }
 0x1dd   :  { %v6600_v25 = vpop.f32.mrf.mxu1  ;;  %10140 = vst [vmem:[#allocation30_spill] sm:$0xff] %v6815_v5 }
 0x1de   :  { %10128 = vst [vmem:[#allocation18_spill] sm:$0xff] %v6600_v25  ;;  %v6669_v25 = vpop.f32.mrf.mxu2  ;;  %1603 = vmatpush.msrb.mxu1 %v6537_v8  ;;  %v6825_v8 = vld [vmem:[%s10097_s10 + $0x140] sm:$0xff] }
 0x1df   :  { %10132 = vst [vmem:[#allocation22_spill] sm:$0xff] %v6669_v25  ;;  %v6691_v25 = vld [vmem:[%s10097_s10 + $0x1d0] sm:$0xff] }
 0x1e0   :  { %v6606_v4 = vpop.f32.mrf.mxu0  ;;  %1475 = vmatpush.msra.mxu2 %v6691_v25  ;;  %1604 = vmatpush.msrb.mxu1 %v6555_v10  ;;  %v746_v10 = vadd.f32 %v6391_v27, %v6394_v30 }
 0x1e1   :  { %10129 = vst [vmem:[#allocation19_spill] sm:$0xff] %v6606_v4  ;;  %v6638_v4 = vld [vmem:[%s10097_s10 + $0x18] sm:$0xff] }
 0x1e2   :  { %1516 = vmatpush.msra.mxu3 %v6638_v4  ;;  %1476 = vmatpush.msra.mxu2 %v6701_v7  ;;  %v775_v27 = vadd.f32 %v6405_v37, %v746_v10  ;;  %v6881_v37 = vld [vmem:[%s10097_s10 + $0x110] sm:$0xff]  ;;  %v10152_v10 = vld [vmem:[#allocation17_spill] sm:$0xff] }
 0x1e3   :  { %1605 = vmatpush.msrb.mxu1 %v6565_v15  ;;  %v6863_v15 = vld [vmem:[%s10097_s10 + $0x128] sm:$0xff] }
 0x1e4   :  { %v6647_v44 = vpop.f32.mrf.mxu3  ;;  %1517 = vmatpush.msra.mxu3 %v6657_v9  ;;  %1477 = vmatpush.msra.mxu2 %v6715_v33 }
 0x1e5   :  { %10130 = vst [vmem:[#allocation20_spill] sm:$0xff] %v6647_v44  ;;  %v6665_v20 = vpop.f32.mrf.mxu1  ;;  %1606 = vmatpush.msrb.mxu1 %v6577_v18  ;;  %v6900_v18 = vld [vmem:[%s10097_s10 + $0x108] sm:$0xff] }
 0x1e6   :  { %10131 = vst [vmem:[#allocation21_spill] sm:$0xff] %v6665_v20  ;;  %1654 = vmatpush.msrb.mxu3 %v6450_v51  ;;  %1478 = vmatpush.msra.mxu2 %v6737_v52 }
 0x1e7   :  { %1607 = vmatpush.msrb.mxu1 %v6593_v22 }
 0x1e8   :  { %v6684_v20 = vpop.f32.mrf.mxu0  ;;  %1655 = vmatpush.msrb.mxu3 %v6462_v53  ;;  %v6742_v53 = vld [vmem:[%s10097_s10 + $0x1a8] sm:$0xff] }
 0x1e9   :  { %10133 = vst [vmem:[#allocation23_spill] sm:$0xff] %v6684_v20  ;;  %v6706_v20 = vld [vmem:[%s10097_s10 + $0x1c8] sm:$0xff]  ;;  %1608 = vmatpush.msrb.mxu1 %v6611_v54 }
 0x1ea   :  { %1534 = vmatpush.msrb.mxu0 %v6706_v20  ;;  %1656 = vmatpush.msrb.mxu3 %v6472_v56  ;;  %10137 = vst [vmem:[#allocation27_spill] sm:$0xff] %v6742_v53  ;;  %v6746_v56 = vpop.f32.mrf.mxu2 }
 0x1eb   :  { %10138 = vst [vmem:[#allocation28_spill] sm:$0xff] %v6746_v56  ;;  %v6777_v56 = vld [vmem:[%s10097_s10 + $0x170] sm:$0xff]  ;;  %1609 = vmatpush.msrb.mxu1 %v6621_v49 }
 0x1ec   :  { %v6719_v44 = vpop.f32.mrf.mxu3  ;;  %1535 = vmatpush.msrb.mxu0 %v6726_v50  ;;  %1657 = vmatpush.msrb.mxu3 %v6486_v59  ;;  %v6768_v59 = vld [vmem:[%s10097_s10 + $0x188] sm:$0xff] }
 0x1ed   :  { %10134 = vst [vmem:[#allocation24_spill] sm:$0xff] %v6719_v44  ;;  %v6728_v51 = vpop.f32.mrf.mxu1  ;;  %v6758_v44 = vld [vmem:[%s10097_s10 + $0x198] sm:$0xff]  ;;  %1610 = vmatpush.msrb.mxu1 %v6633_v41  ;;  %v752_v41 = vadd.f32 %v6407_v1, %v6412_v39 }
 0x1ee   :  { %10135 = vst [vmem:[#allocation25_spill] sm:$0xff] %v6728_v51  ;;  %1536 = vmatpush.msrb.mxu0 %v6742_v53  ;;  %v6753_v51 = vld [vmem:[%s10097_s10 + $0x190] sm:$0xff]  ;;  %1658 = vmatpush.msrb.mxu3 %v6504_v2  ;;  %v743_v53 = vadd.f32 %v6379_v23, %v6385_v26  ;;  %v6800_v23 = vld [vmem:[%s10097_s10 + $0x160] sm:$0xff]  ;;  %v6805_v26 = vld [vmem:[%s10097_s10 + $0x168] sm:$0xff] }
 0x1ef   :  { %1479 = vmatpush.msra.mxu2 %v6753_v51  ;;  %1611 = vmatpush.msrb.mxu1 %v6652_v38  ;;  %v781_v38 = vadd.f32 %v6422_v43, %v752_v41  ;;  %v10145_v1 = vld [vmem:[#allocation15_spill] sm:$0xff] }
 0x1f0   :  { %v1244_v55 = vpop.f32.mrf.mxu0  ;;  %1537 = vmatpush.msrb.mxu0 %v6758_v44  ;;  %1659 = vmatpush.msrb.mxu3 %v6516_v17  ;;  %v772_v3 = vadd.f32 %v6396_v31, %v743_v53  ;;  %v6841_v53 = vld [vmem:[%s10097_s10 + $0x130] sm:$0xff] }
 0x1f1   :  { %1480 = vmatpush.msra.mxu2 %v6763_v58  ;;  %v907_v39 = vadd.f32 %v10145_v1, %v781_v38  ;;  %v10148_v43 = vld [vmem:[#allocation27_spill] sm:$0xff]  ;;  %v10163_v38 = vld [vmem:[#allocation10_spill] sm:$0xff] }
 0x1f2   :  { %1538 = vmatpush.msrb.mxu0 %v6768_v59  ;;  %1660 = vmatpush.msrb.mxu3 %v6528_v61  ;;  %v898_v31 = vadd.f32 %v6428_v13, %v772_v3  ;;  %v6820_v61 = vld [vmem:[%s10097_s10 + $0x158] sm:$0xff]  ;;  %v6830_v13 = vld [vmem:[%s10097_s10 + $0x148] sm:$0xff] }
 0x1f3   :  { %1481 = vmatpush.msra.mxu2 %v6777_v56  ;;  %10141 = vst [vmem:[#allocation31_spill] sm:$0xff] %v6820_v61  ;;  %v6846_v3 = vld [vmem:[%s10097_s10 + $0x138] sm:$0xff] }
 0x1f4   :  { %v1215_v52 = vpop.f32.mrf.mxu3  ;;  %1539 = vmatpush.msrb.mxu0 %v6788_v0  ;;  %1661 = vmatpush.msrb.mxu3 %v6542_v29  ;;  %v6834_v29 = vpop.f32.mrf.mxu2 }
 0x1f5   :  { %v6790_v2 = vpop.f32.mrf.mxu1  ;;  %1482 = vmatpush.msra.mxu2 %v6800_v23  ;;  %10142 = vst [vmem:[#allocation32_spill] sm:$0xff] %v6834_v29 }
 0x1f6   :  { %10139 = vst [vmem:[#allocation29_spill] sm:$0xff] %v6790_v2  ;;  %1540 = vmatpush.msrb.mxu0 %v6805_v26  ;;  %1662 = vmatpush.msrb.mxu3 %v6560_v11  ;;  %v927_v11 = vadd.f32 %v6430_v32, %v898_v31  ;;  %v1245_v2 = vadd.f32 %v1244_v55, %v1215_v52 }
 0x1f7   :  { %1483 = vmatpush.msra.mxu2 %v6815_v5  ;;  %v6858_v5 = vld [vmem:[%s10097_s10 + $0x120] sm:$0xff] }
 0x1f8   :  { %v1247_v17 = vpop.f32.mrf.mxu0  ;;  %1541 = vmatpush.msrb.mxu0 %v6820_v61  ;;  %1663 = vmatpush.msrb.mxu3 %v6572_v16  ;;  %v956_v30 = vadd.f32 %v6532_v6, %v927_v11  ;;  %v901_v16 = vadd.f32 %v6436_v47, %v775_v27  ;;  %v6886_v6 = vld [vmem:[%s10097_s10 + $0x118] sm:$0xff]  ;;  %v6895_v47 = vld [vmem:[%s10097_s10 + $0x100] sm:$0xff]  ;;  %v936_v11 = vadd.f32 %v10152_v10, %v907_v39  ;;  %v10167_v39 = vld [vmem:[#allocation25_spill] sm:$0xff] }
 0x1f9   :  { %1484 = vmatpush.msra.mxu2 %v6825_v8 }
 0x1fa   :  { %1542 = vmatpush.msrb.mxu0 %v6830_v13  ;;  %1664 = vmatpush.msrb.mxu3 %v6582_v19  ;;  %v930_v22 = vadd.f32 %v6438_v48, %v901_v16 }
 0x1fb   :  { %1485 = vmatpush.msra.mxu2 %v6841_v53 }
 0x1fc   :  { %v1218_v29 = vpop.f32.mrf.mxu3  ;;  %1543 = vmatpush.msrb.mxu0 %v6846_v3  ;;  %1665 = vmatpush.msrb.mxu3 %v6598_v24  ;;  %v6907_v24 = vpop.f32.mrf.mxu2 }
 0x1fd   :  { %v1273_v61 = vpop.f32.mrf.mxu1  ;;  %1486 = vmatpush.msra.mxu2 %v6858_v5  ;;  %v1248_v54 = vadd.f32 %v1247_v17, %v1218_v29  ;;  %v10150_v17 = vld [vmem:[#allocation9_spill] sm:$0xff]  ;;  %v10151_v29 = vld [vmem:[#allocation18_spill] sm:$0xff] }
 0x1fe   :  { %v1274_v32 = vadd.f32 %v1273_v61, %v1245_v2  ;;  %1544 = vmatpush.msrb.mxu0 %v6863_v15  ;;  %1666 = vmatpush.msrb.mxu3 %v6616_v60  ;;  %v749_v60 = vadd.f32 %v6400_v35, %v6403_v36  ;;  %v959_v61 = vadd.f32 %v6588_v21, %v930_v22 }
 0x1ff   :  { %1487 = vmatpush.msra.mxu2 %v6881_v37 }
 0x200   :  { %v6874_v52 = vadd.f32 %v1274_v32, %v956_v30  ;;  %v1250_v19 = vpop.f32.mrf.mxu0  ;;  %1545 = vmatpush.msrb.mxu0 %v6886_v6  ;;  %1667 = vmatpush.msrb.mxu3 %v6628_v57  ;;  %v778_v31 = vadd.f32 %v6414_v40, %v749_v60  ;;  %v830_v40 = vadd.f32 %v6420_v42, %v6387_v28  ;;  %v10143_v57 = vld [vmem:[#allocation20_spill] sm:$0xff] }
 0x201   :  { %1488 = vmatpush.msra.mxu2 %v6895_v47 }
 0x202   :  { %1460 = vmatmul.f32.vlgmr.msra.gmra.mxu1 %v6874_v52  ;;  %1518 = vmatmul.f32.vlgmr.msra.gmra.mxu3 %v6874_v52  ;;  %v904_v36 = vadd.f32 %v6488_v62, %v778_v31 }
 0x203   :  { %1546 = vmatpush.msrb.mxu0 %v6900_v18  ;;  %1625 = vmatpush.msrb.mxu2 %v6643_v14 }
 0x204   :  { %v1221_v55 = vpop.f32.mrf.mxu3  ;;  %1668 = vmatpush.msrb.mxu3 %v6638_v4  ;;  %v1302_v42 = vpop.f32.mrf.mxu2  ;;  %v10149_v4 = vld [vmem:[#allocation4_spill] sm:$0xff] }
 0x205   :  { %v1276_v2 = vpop.f32.mrf.mxu1  ;;  %1683 = vmatpush.msra.mxu0 %v6663_v12  ;;  %1626 = vmatpush.msrb.mxu2 %v6675_v45  ;;  %v1251_v12 = vadd.f32 %v1250_v19, %v1221_v55  ;;  %v10153_v19 = vld [vmem:[#allocation24_spill] sm:$0xff] }
 0x206   :  { %v1277_v35 = vadd.f32 %v1276_v2, %v1248_v54  ;;  %1669 = vmatpush.msrb.mxu3 %v6657_v9  ;;  %v10144_v9 = vld [vmem:[#allocation6_spill] sm:$0xff]  ;;  %v965_v60 = vadd.f32 %v10153_v19, %v936_v11  ;;  %v10155_v2 = vld [vmem:[#allocation8_spill] sm:$0xff] }
 0x207   :  { %1684 = vmatpush.msra.mxu0 %v6680_v34  ;;  %1627 = vmatpush.msrb.mxu2 %v6691_v25  ;;  %v933_v34 = vadd.f32 %v6518_v46, %v904_v36  ;;  %v10154_v54 = vld [vmem:[#allocation22_spill] sm:$0xff] }
 0x208   :  { %v6920_v48 = vadd.f32 %v1277_v35, %v959_v61  ;;  %v1253_v49 = vpop.f32.mrf.mxu0  ;;  %v10156_v35 = vld [vmem:[#allocation16_spill] sm:$0xff] }
 0x209   :  { %1685 = vmatpush.msra.mxu0 %v6696_v63  ;;  %1628 = vmatpush.msrb.mxu2 %v6701_v7  ;;  %v962_v28 = vadd.f32 %v10143_v57, %v933_v34  ;;  %v859_v63 = vadd.f32 %v10144_v9, %v830_v40  ;;  %v10146_v7 = vld [vmem:[#allocation14_spill] sm:$0xff] }
 0x20a   :  { %1463 = vmatmul.f32.gmra.mxu1 %v6920_v48  ;;  %1521 = vmatmul.f32.gmra.mxu3 %v6920_v48 }
 0x20b   :  { %1686 = vmatpush.msra.mxu0 %v6706_v20  ;;  %1629 = vmatpush.msrb.mxu2 %v6715_v33  ;;  %v985_v25 = vadd.f32 %v10146_v7, %v859_v63  ;;  %v10147_v20 = vld [vmem:[#allocation26_spill] sm:$0xff]  ;;  %v833_v33 = vadd.f32 %v10150_v17, %v10149_v4  ;;  %v10170_v4 = vld [vmem:[#allocation23_spill] sm:$0xff] }
 0x20c   :  { %v1224_v45 = vpop.f32.mrf.mxu3 }
 0x20d   :  { %v1279_v14 = vpop.f32.mrf.mxu1  ;;  %1687 = vmatpush.msra.mxu0 %v6726_v50  ;;  %1630 = vmatpush.msrb.mxu2 %v10147_v20  ;;  %v1014_v50 = vadd.f32 %v10151_v29, %v985_v25  ;;  %v1254_v27 = vadd.f32 %v1253_v49, %v1224_v45  ;;  %v862_v31 = vadd.f32 %v10155_v2, %v833_v33  ;;  %v10157_v49 = vld [vmem:[#allocation5_spill] sm:$0xff]  ;;  %v10162_v45 = vld [vmem:[#allocation28_spill] sm:$0xff] }
 0x20e   :  { %v1280_v62 = vadd.f32 %v1279_v14, %v1251_v12  ;;  %v10160_v12 = vld [vmem:[#allocation30_spill] sm:$0xff]  ;;  %v10169_v25 = vld [vmem:[#allocation12_spill] sm:$0xff]  ;;  %v10171_v29 = vld [vmem:[#allocation29_spill] sm:$0xff] }
 0x20f   :  { %1688 = vmatpush.msra.mxu0 %v10148_v43  ;;  %1631 = vmatpush.msrb.mxu2 %v6753_v51  ;;  %v1043_v55 = vadd.f32 %v10154_v54, %v1014_v50  ;;  %v988_v36 = vadd.f32 %v10156_v35, %v862_v31 }
 0x210   :  { %v6943_v46 = vadd.f32 %v1280_v62, %v962_v28  ;;  %v1360_v21 = vpop.f32.mrf.mxu0 }
 0x211   :  { %1689 = vmatpush.msra.mxu0 %v6758_v44  ;;  %1632 = vmatpush.msrb.mxu2 %v6763_v58  ;;  %v1305_v44 = vpop.f32.mrf.mxu2 }
 0x212   :  { %1466 = vmatmul.f32.gmra.mxu1 %v6943_v46  ;;  %1524 = vmatmul.f32.gmra.mxu3 %v6943_v46 }
 0x213   :  { %1690 = vmatpush.msra.mxu0 %v6768_v59  ;;  %1633 = vmatpush.msrb.mxu2 %v6777_v56  ;;  %v10158_v56 = vld [vmem:[#allocation11_spill] sm:$0xff] }
 0x214   :  { %v1331_v30 = vpop.f32.mrf.mxu3  ;;  %v836_v40 = vadd.f32 %v10158_v56, %v10157_v49 }
 0x215   :  { %v1282_v32 = vpop.f32.mrf.mxu1  ;;  %v1332_v16 = vadd.f32 %v1331_v30, %v1302_v42  ;;  %1691 = vmatpush.msra.mxu0 %v6788_v0  ;;  %1634 = vmatpush.msrb.mxu2 %v6800_v23  ;;  %v10159_v0 = vld [vmem:[#allocation21_spill] sm:$0xff]  ;;  %v10161_v23 = vld [vmem:[#allocation31_spill] sm:$0xff] }
 0x216   :  { %v1283_v22 = vadd.f32 %v1282_v32, %v1254_v27  ;;  %v1017_v41 = vadd.f32 %v10159_v0, %v988_v36  ;;  %v865_v57 = vadd.f32 %v10163_v38, %v836_v40  ;;  %v10164_v42 = vld [vmem:[#allocation19_spill] sm:$0xff] }
 0x217   :  { %v1361_v51 = vadd.f32 %v1360_v21, %v1332_v16  ;;  %1692 = vmatpush.msra.mxu0 %v6805_v26  ;;  %1635 = vmatpush.msrb.mxu2 %v10160_v12 }
 0x218   :  { %v6963_v61 = vadd.f32 %v1283_v22, %v965_v60  ;;  %v1363_v59 = vpop.f32.mrf.mxu0  ;;  %v1046_v14 = vadd.f32 %v10162_v45, %v1017_v41  ;;  %v991_v62 = vadd.f32 %v10164_v42, %v865_v57 }
 0x219   :  { %v6966_v58 = vadd.f32 %v1361_v51, %v1043_v55  ;;  %1693 = vmatpush.msra.mxu0 %v10161_v23  ;;  %1636 = vmatpush.msrb.mxu2 %v6825_v8  ;;  %v1308_v63 = vpop.f32.mrf.mxu2  ;;  %v10165_v8 = vld [vmem:[#allocation7_spill] sm:$0xff] }
 0x21a   :  { %1469 = vmatmul.f32.gmra.mxu1 %v6963_v61  ;;  %1527 = vmatmul.f32.gmra.mxu3 %v6963_v61  ;;  %v1020_v21 = vadd.f32 %v10167_v39, %v991_v62 }
 0x21b   :  { %1489 = vmatmul.f32.vlgmr.msra.gmra.mxu2 %v6966_v58  ;;  %1547 = vmatmul.f32.vlgmr.msrb.gmra.mxu0 %v6966_v58 }
 0x21c   :  { %v1334_v34 = vpop.f32.mrf.mxu3  ;;  %1694 = vmatpush.msra.mxu0 %v6830_v13  ;;  %1637 = vmatpush.msrb.mxu2 %v6841_v53  ;;  %v10166_v13 = vld [vmem:[#allocation13_spill] sm:$0xff] }
 0x21d   :  { %v1335_v26 = vadd.f32 %v1334_v34, %v1305_v44  ;;  %v839_v1 = vadd.f32 %v10166_v13, %v10165_v8 }
 0x21e   :  { %1695 = vmatpush.msra.mxu0 %v6846_v3  ;;  %1638 = vmatpush.msrb.mxu2 %v6858_v5  ;;  %v10168_v5 = vld [vmem:[#allocation32_spill] sm:$0xff] }
 0x21f   :  { %v1364_v28 = vadd.f32 %v1363_v59, %v1335_v26  ;;  %v868_v20 = vadd.f32 %v10169_v25, %v839_v1 }
 0x220   :  { %1696 = vmatpush.msra.mxu0 %v6863_v15  ;;  %v1366_v53 = vpop.f32.mrf.mxu0  ;;  %1639 = vmatpush.msrb.mxu2 %v6881_v37  ;;  %v1049_v15 = vadd.f32 %v10168_v5, %v1020_v21 }
 0x221   :  { %v6986_v9 = vadd.f32 %v1364_v28, %v1046_v14  ;;  %v994_v17 = vadd.f32 %v10170_v4, %v868_v20  ;;  %v1311_v37 = vpop.f32.mrf.mxu2 }
 0x222   :  { %1697 = vmatpush.msra.mxu0 %v6886_v6  ;;  %1640 = vmatpush.msrb.mxu2 %v6895_v47 }
 0x223   :  { %1492 = vmatmul.f32.gmra.mxu2 %v6986_v9  ;;  %1550 = vmatmul.f32.gmra.mxu0 %v6986_v9  ;;  %v1023_v50 = vadd.f32 %v10171_v29, %v994_v17 }
 0x224   :  { %v1337_v3 = vpop.f32.mrf.mxu3  ;;  %1698 = vmatpush.msra.mxu0 %v6900_v18 }
 0x225   :  { %v1338_v7 = vadd.f32 %v1337_v3, %v1308_v63  ;;  %v1052_v18 = vadd.f32 %v6907_v24, %v1023_v50 }
 0x227   :  { %v1367_v43 = vadd.f32 %v1366_v53, %v1338_v7 }
 0x228   :  { %v1369_v10 = vpop.f32.mrf.mxu0 }
 0x229   :  { %v7002_v33 = vadd.f32 %v1367_v43, %v1049_v15 }
 0x22b   :  { %1495 = vmatmul.f32.gmra.mxu2 %v7002_v33  ;;  %1553 = vmatmul.f32.gmra.mxu0 %v7002_v33 }
 0x22c   :  { %v1340_v6 = vpop.f32.mrf.mxu3 }
 0x22d   :  { %v1341_v47 = vadd.f32 %v1340_v6, %v1311_v37 }
 0x22f   :  { %v1370_v11 = vadd.f32 %v1369_v10, %v1341_v47 }
 0x231   :  { %v7008_v27 = vadd.f32 %v1370_v11, %v1052_v18 }
 0x233   :  { %1498 = vmatmul.f32.gmra.mxu2 %v7008_v27  ;;  %1556 = vmatmul.f32.gmra.mxu0 %v7008_v27 }
 0x27f   :  { %v1461_v32 = vpop.f32.mrf.mxu1 }
 0x285   :  { %v1519_v30 = vpop.f32.mrf.mxu3 }
 0x287   :  { %v1464_v54 = vpop.f32.mrf.mxu1 }
 0x28d   :  { %v1522_v19 = vpop.f32.mrf.mxu3 }
 0x28f   :  { %v1467_v44 = vpop.f32.mrf.mxu1 }
 0x295   :  { %v1525_v55 = vpop.f32.mrf.mxu3 }
 0x297   :  { %v1470_v14 = vpop.f32.mrf.mxu1 }
 0x298   :  { %v1548_v16 = vpop.f32.mrf.mxu0 }
 0x299   :  { %v1549_v24 = vadd.f32 %v1548_v16, %v1519_v30 }
 0x29d   :  { %v1528_v49 = vpop.f32.mrf.mxu3 }
 0x29e   :  { %v1490_v60 = vpop.f32.mrf.mxu2 }
 0x29f   :  { %v1491_v34 = vadd.f32 %v1490_v60, %v1461_v32 }
 0x2a0   :  { %v1551_v22 = vpop.f32.mrf.mxu0 }
 0x2a1   :  { %v1552_v51 = vadd.f32 %v1551_v22, %v1522_v19 }
 0x2a3   :  { %v1569_v59 = vadd.f32 %v1552_v51, %v1549_v24 }
 0x2a6   :  { %v1493_v2 = vpop.f32.mrf.mxu2 }
 0x2a7   :  { %v1494_v40 = vadd.f32 %v1493_v2, %v1464_v54 }
 0x2a8   :  { %v1554_v31 = vpop.f32.mrf.mxu0 }
 0x2a9   :  { %v1555_v35 = vadd.f32 %v1554_v31, %v1525_v55  ;;  %v1560_v26 = vadd.f32 %v1494_v40, %v1491_v34 }
 0x2ab   :  { %v1570_v0 = vadd.f32 %v1569_v59, %v1555_v35 }
 0x2ae   :  { %v1496_v36 = vpop.f32.mrf.mxu2 }
 0x2af   :  { %v1497_v12 = vadd.f32 %v1496_v36, %v1467_v44 }
 0x2b0   :  { %v1557_v56 = vpop.f32.mrf.mxu0 }
 0x2b1   :  { %v1558_v41 = vadd.f32 %v1557_v56, %v1528_v49  ;;  %v1561_v57 = vadd.f32 %v1560_v26, %v1497_v12 }
 0x2b3   :  { %v1571_v23 = vadd.f32 %v1570_v0, %v1558_v41 }
 0x2b5   :  { %v1572_v45 = vrot.slane %v1571_v23, 4 }
 0x2b6   :  { %v1499_v38 = vpop.f32.mrf.mxu2 }
 0x2b7   :  { %v1573_v28 = vadd.f32 %v1572_v45, %v1571_v23  ;;  %v1500_v42 = vadd.f32 %v1499_v38, %v1470_v14 }
 0x2b9   :  { %v1574_v62 = vrot.slane %v1573_v28, 2  ;;  %v1562_v63 = vadd.f32 %v1561_v57, %v1500_v42 }
 0x2bb   :  { %v1575_v8 = vadd.f32 %v1574_v62, %v1573_v28  ;;  %v1563_v13 = vrot.slane %v1562_v63, 4 }
 0x2bd   :  { %v1576_v1 = vrot.slane %v1575_v8, 1  ;;  %v1564_v39 = vadd.f32 %v1563_v13, %v1562_v63 }
 0x2bf   :  { %v1577_v21 = vadd.f32 %v1576_v1, %v1575_v8  ;;  %v1565_v53 = vrot.slane %v1564_v39, 2 }
 0x2c1   :  { %v1579_v3 = vmul.f32 0.001953125, %v1577_v21  ;;  %v1566_v7 = vadd.f32 %v1565_v53, %v1564_v39 }
 0x2c3   :  { %v1567_v5 = vrot.slane %v1566_v7, 1  ;;  %v7013_v15 = vsub.f32 %v6966_v58, %v1579_v3  ;;  %v7021_v17 = vsub.f32 %v6986_v9, %v1579_v3  ;;  %v7031_v37 = vsub.f32 %v7002_v33, %v1579_v3 }
 0x2c4   :  { %v7041_v47 = vsub.f32 %v7008_v27, %v1579_v3 }
 0x2c5   :  { %v1568_v25 = vadd.f32 %v1567_v5, %v1566_v7  ;;  %v1589_v20 = vmul.f32 %v7013_v15, %v7013_v15  ;;  %v1591_v58 = vmul.f32 %v7021_v17, %v7021_v17  ;;  %v1593_v9 = vmul.f32 %v7031_v37, %v7031_v37 }
 0x2c6   :  { %v1595_v33 = vmul.f32 %v7041_v47, %v7041_v47 }
 0x2c7   :  { %v1578_v43 = vmul.f32 0.001953125, %v1568_v25  ;;  %1641 = vmatmul.f32.vlgmr.msrb.gmra.mxu2 %v1589_v20  ;;  %1699 = vmatmul.f32.vlgmr.msra.gmra.mxu0 %v1589_v20 }
 0x2c9   :  { %v7018_v4 = vsub.f32 %v6874_v52, %v1578_v43  ;;  %v7028_v50 = vsub.f32 %v6920_v48, %v1578_v43  ;;  %v7038_v6 = vsub.f32 %v6943_v46, %v1578_v43  ;;  %v7048_v10 = vsub.f32 %v6963_v61, %v1578_v43 }
 0x2cb   :  { %v1588_v29 = vmul.f32 %v7018_v4, %v7018_v4  ;;  %v1590_v52 = vmul.f32 %v7028_v50, %v7028_v50  ;;  %v1592_v48 = vmul.f32 %v7038_v6, %v7038_v6  ;;  %v1594_v46 = vmul.f32 %v7048_v10, %v7048_v10 }
 0x2cd   :  { %1612 = vmatmul.f32.vlgmr.msrb.gmra.mxu1 %v1588_v29  ;;  %1670 = vmatmul.f32.vlgmr.msrb.gmra.mxu3 %v1588_v29 }
 0x2cf   :  { %1644 = vmatmul.f32.gmra.mxu2 %v1591_v58  ;;  %1702 = vmatmul.f32.gmra.mxu0 %v1591_v58 }
 0x2d5   :  { %1615 = vmatmul.f32.gmra.mxu1 %v1590_v52  ;;  %1673 = vmatmul.f32.gmra.mxu3 %v1590_v52 }
 0x2d7   :  { %1647 = vmatmul.f32.gmra.mxu2 %v1593_v9  ;;  %1705 = vmatmul.f32.gmra.mxu0 %v1593_v9 }
 0x2dd   :  { %1618 = vmatmul.f32.gmra.mxu1 %v1592_v48  ;;  %1676 = vmatmul.f32.gmra.mxu3 %v1592_v48 }
 0x2df   :  { %1650 = vmatmul.f32.gmra.mxu2 %v1595_v33  ;;  %1708 = vmatmul.f32.gmra.mxu0 %v1595_v33 }
 0x2e5   :  { %1621 = vmatmul.f32.gmra.mxu1 %v1594_v46  ;;  %1679 = vmatmul.f32.gmra.mxu3 %v1594_v46 }
 0x344   :  { %v1700_v18 = vpop.f32.mrf.mxu0 }
 0x34a   :  { %v1613_v11 = vpop.f32.mrf.mxu1  ;;  %v1642_v27 = vpop.f32.mrf.mxu2 }
 0x34b   :  { %v1643_v31 = vadd.f32 %v1642_v27, %v1613_v11 }
 0x34c   :  { %v1703_v19 = vpop.f32.mrf.mxu0 }
 0x350   :  { %v1671_v30 = vpop.f32.mrf.mxu3 }
 0x351   :  { %v1701_v56 = vadd.f32 %v1700_v18, %v1671_v30 }
 0x352   :  { %v1616_v32 = vpop.f32.mrf.mxu1  ;;  %v1645_v16 = vpop.f32.mrf.mxu2 }
 0x353   :  { %v1646_v55 = vadd.f32 %v1645_v16, %v1616_v32  ;;  %v1732_v32 = vld [vmem:[%s10098_s8] ss:$4 sm:$0x3] }
 0x354   :  { %v1706_v2 = vpop.f32.mrf.mxu0 }
 0x355   :  { %v1712_v44 = vadd.f32 %v1646_v55, %v1643_v31 }
 0x358   :  { %v1674_v60 = vpop.f32.mrf.mxu3 }
 0x359   :  { %v1704_v36 = vadd.f32 %v1703_v19, %v1674_v60  ;;  %v1774_v60 = vld [vmem:[%s10099_s9] ss:$4 sm:$0x3] }
 0x35a   :  { %v1619_v22 = vpop.f32.mrf.mxu1  ;;  %v1648_v54 = vpop.f32.mrf.mxu2  ;;  %v1776_v55 = vperm.slane %v1774_v60, 0  ;;  %v1777_v31 = vperm.slane %v1774_v60, 1  ;;  %v4849_v60 = vld [vmem:[%s10100_s6 + $0x2b0] sm:$0xff] }
 0x35b   :  { %v1649_v61 = vadd.f32 %v1648_v54, %v1619_v22  ;;  %v1721_v41 = vadd.f32 %v1704_v36, %v1701_v56 }
 0x35c   :  { %v1709_v12 = vpop.f32.mrf.mxu0 }
 0x35d   :  { %v1713_v59 = vadd.f32 %v1712_v44, %v1649_v61 }
 0x360   :  { %v1677_v51 = vpop.f32.mrf.mxu3 }
 0x361   :  { %v1707_v40 = vadd.f32 %v1706_v2, %v1677_v51 }
 0x362   :  { %v1622_v24 = vpop.f32.mrf.mxu1  ;;  %v1651_v35 = vpop.f32.mrf.mxu2 }
 0x363   :  { %v1652_v49 = vadd.f32 %v1651_v35, %v1622_v24  ;;  %v1722_v26 = vadd.f32 %v1721_v41, %v1707_v40 }
 0x365   :  { %v1714_v0 = vadd.f32 %v1713_v59, %v1652_v49 }
 0x367   :  { %v1715_v34 = vrot.slane %v1714_v0, 4 }
 0x368   :  { %v1680_v23 = vpop.f32.mrf.mxu3 }
 0x369   :  { %v1716_v45 = vadd.f32 %v1715_v34, %v1714_v0  ;;  %v1710_v14 = vadd.f32 %v1709_v12, %v1680_v23 }
 0x36b   :  { %v1717_v38 = vrot.slane %v1716_v45, 2  ;;  %v1723_v57 = vadd.f32 %v1722_v26, %v1710_v14 }
 0x36d   :  { %v1718_v28 = vadd.f32 %v1717_v38, %v1716_v45  ;;  %v1724_v42 = vrot.slane %v1723_v57, 4 }
 0x36f   :  { %v1719_v62 = vrot.slane %v1718_v28, 1  ;;  %v1725_v63 = vadd.f32 %v1724_v42, %v1723_v57 }
 0x371   :  { %v1720_v8 = vadd.f32 %v1719_v62, %v1718_v28  ;;  %v1726_v13 = vrot.slane %v1725_v63, 2 }
 0x373   :  { %v1730_v1 = vmul.f32 0.001953125, %v1720_v8  ;;  %v1727_v39 = vadd.f32 %v1726_v13, %v1725_v63 }
 0x375   :  { %v1733_v21 = vadd.f32 0.0001, %v1730_v1  ;;  %v1728_v53 = vrot.slane %v1727_v39, 1 }
 0x377   :  { %5177 = vrsqrt.f32 %v1733_v21  ;;  %v1729_v3 = vadd.f32 %v1728_v53, %v1727_v39  ;;  %vm1741_vm13 = vweird.f32 %v1733_v21  ;;  %v4865_v53 = vld [vmem:[%s10100_s6 + $0x330] sm:$0xff] }
 0x378   :  { %2118 = vmatpush.msra.mxu1 %v4865_v53  ;;  %v4906_v53 = vld [vmem:[%s10100_s6 + $0x478] sm:$0xff] }
 0x379   :  { %v1731_v7 = vmul.f32 0.001953125, %v1729_v3  ;;  %v4866_v3 = vld [vmem:[%s10100_s6 + $0x338] sm:$0xff] }
 0x37a   :  { %2205 = vmatpush.msrb.mxu0 %v4866_v3  ;;  %v1927_v3 = vld [vmem:[%s10100_s6 + $0xf0] sm:$0xff] }
 0x37b   :  { %v1734_v5 = vadd.f32 0.0001, %v1731_v7  ;;  %v4863_v7 = vld [vmem:[%s10100_s6 + $0x320] sm:$0xff] }
 0x37c   :  { %2119 = vmatpush.msra.mxu1 %v4863_v7 }
 0x37d   :  { %v5178_v25 = vpop.eup %5177  ;;  %5179 = vrsqrt.f32 %v1734_v5  ;;  %vm1751_vm11 = vweird.f32 %v1734_v5 }
 0x37e   :  { %v1736_v20 = vmul.f32 %v5178_v25, %v1733_v21  ;;  %vm1742_vm10 = vweird.f32 %v5178_v25 }
 0x37f   :  { %vm1743_vm14 = vmor %vm1741_vm13, %vm1742_vm10  ;;  %vm1868_vm10 = vcmask 1047680  }
 0x380   :  { %v1737_v43 = vmul.f32 %v5178_v25, %v1736_v20  ;;  %v4862_v20 = vld [vmem:[%s10100_s6 + $0x318] sm:$0xff] }
 0x382   :  { %v1738_v58 = vmul.f32 0.5, %v1737_v43  ;;  %v4859_v43 = vld [vmem:[%s10100_s6 + $0x300] sm:$0xff] }
 0x383   :  { %v5180_v29 = vpop.eup %5179 }
 0x384   :  { %v1746_v52 = vmul.f32 %v5180_v29, %v1734_v5  ;;  %v1739_v48 = vsub.f32 1.5, %v1738_v58  ;;  %vm1752_vm9 = vweird.f32 %v5180_v29  ;;  %v4864_v5 = vld [vmem:[%s10100_s6 + $0x328] sm:$0xff]  ;;  %v4897_v58 = vld [vmem:[%s10100_s6 + $0x430] sm:$0xff] }
 0x385   :  { %vm1753_vm12 = vmor %vm1751_vm11, %vm1752_vm9  ;;  %2206 = vmatpush.msrb.mxu0 %v4864_v5  ;;  %2147 = vmatpush.msra.mxu2 %v4897_v58  ;;  %vm75_vm9 = vcmask 261248   ;;  %v1951_v5 = vld [vmem:[%s10100_s6 + $0x1b0] sm:$0xff]  ;;  %vm1864_vm11 = vcmask 1047681  }
 0x386   :  { %v1747_v9 = vmul.f32 %v5180_v29, %v1746_v52  ;;  %v1740_v18 = vmul.f32 %v5178_v25, %v1739_v48  ;;  %v4857_v52 = vld [vmem:[%s10100_s6 + $0x2f0] sm:$0xff]  ;;  %v4895_v48 = vld [vmem:[%s10100_s6 + $0x420] sm:$0xff] }
 0x387   :  { %2207 = vmatpush.msrb.mxu0 %v4862_v20  ;;  %2148 = vmatpush.msra.mxu2 %v4895_v48  ;;  %v1925_v20 = vld [vmem:[%s10100_s6 + $0xe0] sm:$0xff]  ;;  %v1923_v58 = vld [vmem:[%s10100_s6 + $0xd0] sm:$0xff] }
 0x388   :  { %v1748_v33 = vmul.f32 0.5, %v1747_v9  ;;  %v1744_v16 = vsel %vm1743_vm14, %v5178_v25, %v1740_v18  ;;  %v4861_v25 = vld [vmem:[%s10100_s6 + $0x310] sm:$0xff]  ;;  %v4858_v9 = vld [vmem:[%s10100_s6 + $0x2f8] sm:$0xff]  ;;  %v1921_v48 = vld [vmem:[%s10100_s6 + $0xc0] sm:$0xff] }
 0x389   :  { %2120 = vmatpush.msra.mxu1 %v4861_v25  ;;  %v4853_v18 = vld [vmem:[%s10100_s6 + $0x2d0] sm:$0xff]  ;;  %v4888_v25 = vld [vmem:[%s10100_s6 + $0x3e8] sm:$0xff] }
 0x38a   :  { %v1749_v46 = vsub.f32 1.5, %v1748_v33  ;;  %v4855_v33 = vld [vmem:[%s10100_s6 + $0x2e0] sm:$0xff] }
 0x38b   :  { %2121 = vmatpush.msra.mxu1 %v4859_v43  ;;  %v1949_v43 = vld [vmem:[%s10100_s6 + $0x1a0] sm:$0xff] }
 0x38c   :  { %v1750_v11 = vmul.f32 %v5180_v29, %v1749_v46  ;;  %v4856_v46 = vld [vmem:[%s10100_s6 + $0x2e8] sm:$0xff] }
 0x38d   :  { %2122 = vmatpush.msra.mxu1 %v4857_v52  ;;  %v1947_v52 = vld [vmem:[%s10100_s6 + $0x190] sm:$0xff] }
 0x38e   :  { %v1754_v27 = vsel %vm1753_vm12, %v5180_v29, %v1750_v11  ;;  %v4860_v29 = vld [vmem:[%s10100_s6 + $0x308] sm:$0xff]  ;;  %v4893_v11 = vld [vmem:[%s10100_s6 + $0x410] sm:$0xff] }
 0x38f   :  { %v1757_v30 = vrot.slane %v1754_v27, 7  ;;  %2208 = vmatpush.msrb.mxu0 %v4860_v29  ;;  %2123 = vmatpush.msra.mxu1 %v4855_v33  ;;  %v4854_v27 = vld [vmem:[%s10100_s6 + $0x2d8] sm:$0xff]  ;;  %v1945_v33 = vld [vmem:[%s10100_s6 + $0x180] sm:$0xff] }
 0x390   :  { %2149 = vmatpush.msra.mxu2 %v4893_v11  ;;  %v4886_v29 = vld [vmem:[%s10100_s6 + $0x3d8] sm:$0xff]  ;;  %v1919_v11 = vld [vmem:[%s10100_s6 + $0xb0] sm:$0xff] }
 0x391   :  { %v1758_v19 = vsel %vm404_vm4, %v1744_v16, %v1757_v30  ;;  %2209 = vmatpush.msrb.mxu0 %v4858_v9  ;;  %v4851_v30 = vld [vmem:[%s10100_s6 + $0x2c0] sm:$0xff]  ;;  %v4852_v16 = vld [vmem:[%s10100_s6 + $0x2c8] sm:$0xff]  ;;  %2124 = vmatpush.msra.mxu1 %v4853_v18 }
 0x392   :  { %v1760_v22 = vmul.f32 %v1758_v19, %v1732_v32  ;;  %v4891_v32 = vld [vmem:[%s10100_s6 + $0x400] sm:$0xff]  ;;  %v4889_v19 = vld [vmem:[%s10100_s6 + $0x3f0] sm:$0xff]  ;;  %v4884_v9 = vld [vmem:[%s10100_s6 + $0x3c8] sm:$0xff] }
 0x393   :  { %2210 = vmatpush.msrb.mxu0 %v4856_v46  ;;  %2150 = vmatpush.msra.mxu2 %v4891_v32  ;;  %v4882_v46 = vld [vmem:[%s10100_s6 + $0x3b8] sm:$0xff]  ;;  %v4904_v18 = vld [vmem:[%s10100_s6 + $0x468] sm:$0xff]  ;;  %v1943_v32 = vld [vmem:[%s10100_s6 + $0x170] sm:$0xff] }
 0x394   :  { %v1762_v54 = vperm.slane %v1760_v22, 0  ;;  %v1763_v2 = vperm.slane %v1760_v22, 1  ;;  %v4850_v22 = vld [vmem:[%s10100_s6 + $0x2b8] sm:$0xff]  ;;  %2125 = vmatpush.msra.mxu1 %v4851_v30 }
 0x395   :  { %2211 = vmatpush.msrb.mxu0 %v4854_v27  ;;  %2151 = vmatpush.msra.mxu2 %v4889_v19 }
 0x396   :  { %v1768_v61 = vmul.f32 %v1762_v54, %v7028_v50  ;;  %v1766_v51 = vmul.f32 %v1762_v54, %v7018_v4  ;;  %v1769_v44 = vmul.f32 %v1763_v2, %v7021_v17  ;;  %v1767_v24 = vmul.f32 %v1763_v2, %v7013_v15  ;;  %2126 = vmatpush.msra.mxu1 %v4849_v60  ;;  %v1917_v60 = vld [vmem:[%s10100_s6 + $0xa0] sm:$0xff] }
 0x397   :  { %v1770_v34 = vmul.f32 %v1762_v54, %v7038_v6  ;;  %v1772_v12 = vmul.f32 %v1762_v54, %v7048_v10  ;;  %v10172_v50 = vmov 0.0   ;;  %v1771_v23 = vmul.f32 %v1763_v2, %v7031_v37  ;;  %2212 = vmatpush.msrb.mxu0 %v4852_v16  ;;  %v4887_v54 = vld [vmem:[%s10100_s6 + $0x3e0] sm:$0xff]  ;;  %v4880_v16 = vld [vmem:[%s10100_s6 + $0x3a8] sm:$0xff] }
 0x398   :  { %v1782_v35 = vadd.f32 %v1776_v55, %v1768_v61  ;;  %v1780_v36 = vadd.f32 %v1776_v55, %v1766_v51  ;;  %v1783_v56 = vadd.f32 %v1777_v31, %v1769_v44  ;;  %v1781_v40 = vadd.f32 %v1777_v31, %v1767_v24  ;;  %69 = vst.msk [vmem:[#allocation3 + $0x30] sm:$0x1] %vm68_vm15, %v10172_v50  ;;  %v4885_v61 = vld [vmem:[%s10100_s6 + $0x3d0] sm:$0xff]  ;;  %v4846_v51 = vld [vmem:[%s10100_s6 + $0x298] sm:$0xff]  ;;  %v4843_v44 = vld [vmem:[%s10100_s6 + $0x280] sm:$0xff] }
 0x399   :  { %72 = vst.msk [vmem:[#allocation3 + $0x78] sm:$0x1] %vm68_vm15, %v10172_v50  ;;  %v1784_v6 = vadd.f32 %v1776_v55, %v1770_v34  ;;  %v1786_v10 = vadd.f32 %v1776_v55, %v1772_v12  ;;  %v1785_v57 = vadd.f32 %v1777_v31, %v1771_v23  ;;  %v1773_v28 = vmul.f32 %v1763_v2, %v7041_v47  ;;  %v4847_v55 = vld [vmem:[%s10100_s6 + $0x2a0] sm:$0xff]  ;;  %v4848_v2 = vld [vmem:[%s10100_s6 + $0x2a8] sm:$0xff]  ;;  %v4837_v34 = vld [vmem:[%s10100_s6 + $0x250] sm:$0xff] }
 0x39a   :  { %v1790_v59 = vmax.f32 %v1782_v35, 0.0  ;;  %v1788_v49 = vmax.f32 %v1780_v36, 0.0  ;;  %v1791_v15 = vmax.f32 %v1783_v56, 0.0  ;;  %v1789_v17 = vmax.f32 %v1781_v40, 0.0  ;;  %78 = vst.msk [vmem:[#allocation3 + $0x40] sm:$0x1] %vm77_vm1, %v10172_v50  ;;  %2213 = vmatpush.msrb.mxu0 %v4850_v22  ;;  %2152 = vmatpush.msra.mxu2 %v4887_v54 }
 0x39b   :  { %v1792_v14 = vmax.f32 %v1784_v6, 0.0  ;;  %v1794_v38 = vmax.f32 %v1786_v10, 0.0  ;;  %v1793_v8 = vmax.f32 %v1785_v57, 0.0  ;;  %v1787_v13 = vadd.f32 %v1777_v31, %v1773_v28  ;;  %81 = vst.msk [vmem:[#allocation3 + $0x88] sm:$0x1] %vm77_vm1, %v10172_v50  ;;  %2127 = vmatpush.msra.mxu1 %v4847_v55  ;;  %v4845_v31 = vld [vmem:[%s10100_s6 + $0x290] sm:$0xff] }
 0x39c   :  { %v1806_v0 = vrot.slane %v1790_v59, 7  ;;  %v1804_v41 = vrot.slane %v1788_v49, 7  ;;  %v1808_v26 = vrot.slane %v1791_v15, 7  ;;  %v1805_v45 = vrot.slane %v1789_v17, 7  ;;  %2214 = vmatpush.msrb.mxu0 %v4848_v2  ;;  %65 = vst.msk [vmem:[#allocation3] sm:$0xfe] %vm64_vm2, %v10172_v50  ;;  %2153 = vmatpush.msra.mxu2 %v4885_v61 }
 0x39d   :  { %v1810_v62 = vrot.slane %v1792_v14, 7  ;;  %v1812_v63 = vrot.slane %v1794_v38, 7  ;;  %v1811_v1 = vrot.slane %v1793_v8, 7  ;;  %v1795_v39 = vmax.f32 %v1787_v13, 0.0  ;;  %70 = vst.msk [vmem:[#allocation3 + $0x48] sm:$0xfe] %vm64_vm2, %v10172_v50  ;;  %2128 = vmatpush.msra.mxu1 %v4845_v31 }
 0x39e   :  { %1824 = vrot.lane.b32.xlu2 %v1806_v0, %s5190_s20  ;;  %1816 = vrot.lane.b32.xlu0 %v1804_v41, %s5190_s20  ;;  %v1807_v4 = vsel %vm404_vm4, %v1804_v41, %v1806_v0  ;;  %v1809_v42 = vsel %vm404_vm4, %v1805_v45, %v1808_v26  ;;  %v4883_v24 = vld [vmem:[%s10100_s6 + $0x3c0] sm:$0xff]  ;;  %v4844_v35 = vld [vmem:[%s10100_s6 + $0x288] sm:$0xff]  ;;  %74 = vst.msk [vmem:[#allocation3 + $0x10] sm:$0xfe] %vm73_vm3, %v10172_v50 }
 0x39f   :  { %1820 = vrot.lane.b32.xlu1 %v1807_v4, %s5190_s20  ;;  %v1813_v37 = vsel %vm404_vm4, %v1810_v62, %v1812_v63  ;;  %v1814_v47 = vrot.slane %v1795_v39, 7  ;;  %2215 = vmatpush.msrb.mxu0 %v4846_v51  ;;  %v4841_v36 = vld [vmem:[%s10100_s6 + $0x270] sm:$0xff]  ;;  %79 = vst.msk [vmem:[#allocation3 + $0x58] sm:$0xfe] %vm73_vm3, %v10172_v50  ;;  %v4842_v49 = vld [vmem:[%s10100_s6 + $0x278] sm:$0xff]  ;;  %v4839_v56 = vld [vmem:[%s10100_s6 + $0x260] sm:$0xff] }
 0x3a0   :  { %v4881_v59 = vld [vmem:[%s10100_s6 + $0x3b0] sm:$0xff]  ;;  %2129 = vmatpush.msra.mxu1 %v4843_v44  ;;  %2154 = vmatpush.msra.mxu2 %v4883_v24  ;;  %v4879_v40 = vld [vmem:[%s10100_s6 + $0x3a0] sm:$0xff]  ;;  %v4840_v41 = vld [vmem:[%s10100_s6 + $0x268] sm:$0xff]  ;;  %76 = vst.msk [vmem:[#allocation3 + $0x28] sm:$0xff] %vm75_vm9, %v10172_v50 }
 0x3a1   :  { %v1815_v21 = vsel %vm404_vm4, %v1811_v1, %v1814_v47  ;;  %2216 = vmatpush.msrb.mxu0 %v4844_v35  ;;  %v4877_v12 = vld [vmem:[%s10100_s6 + $0x390] sm:$0xff]  ;;  %v4838_v4 = vld [vmem:[%s10100_s6 + $0x258] sm:$0xff]  ;;  %80 = vst.msk [vmem:[#allocation3 + $0x70] sm:$0xff] %vm75_vm9, %v10172_v50  ;;  %v4835_v15 = vld [vmem:[%s10100_s6 + $0x240] sm:$0xff] }
 0x3a2   :  { %2130 = vmatpush.msra.mxu1 %v4841_v36  ;;  %2155 = vmatpush.msra.mxu2 %v4881_v59  ;;  %v4875_v17 = vld [vmem:[%s10100_s6 + $0x380] sm:$0xff]  ;;  %v4836_v6 = vld [vmem:[%s10100_s6 + $0x248] sm:$0xff]  ;;  %v4873_v50 = vld [vmem:[%s10100_s6 + $0x370] sm:$0xff] }
 0x3a3   :  { %2217 = vmatpush.msrb.mxu0 %v4842_v49  ;;  %v4905_v10 = vld [vmem:[%s10100_s6 + $0x470] sm:$0xff]  ;;  %v4898_v23 = vld [vmem:[%s10100_s6 + $0x438] sm:$0xff]  ;;  %v4903_v14 = vld [vmem:[%s10100_s6 + $0x460] sm:$0xff] }
 0x3a4   :  { %2131 = vmatpush.msra.mxu1 %v4839_v56  ;;  %2156 = vmatpush.msra.mxu2 %v4879_v40  ;;  %v4896_v57 = vld [vmem:[%s10100_s6 + $0x428] sm:$0xff]  ;;  %v1957_v28 = vld [vmem:[%s10100_s6 + $0x1e0] sm:$0xff]  ;;  %v4894_v8 = vld [vmem:[%s10100_s6 + $0x418] sm:$0xff] }
 0x3a5   :  { %2218 = vmatpush.msrb.mxu0 %v4840_v41  ;;  %2188 = vmatpush.msra.mxu3 %v4905_v10  ;;  %v1955_v13 = vld [vmem:[%s10100_s6 + $0x1d0] sm:$0xff]  ;;  %v4892_v39 = vld [vmem:[%s10100_s6 + $0x408] sm:$0xff]  ;;  %v1941_v22 = vld [vmem:[%s10100_s6 + $0x160] sm:$0xff] }
 0x3a6   :  { %1826 = vrot.lane.b32.xlu2 %v1808_v26, %s5190_s20  ;;  %1818 = vrot.lane.b32.xlu0 %v1805_v45, %s5190_s20  ;;  %v1959_v26 = vld [vmem:[%s10100_s6 + $0x1f0] sm:$0xff]  ;;  %v4871_v45 = vld [vmem:[%s10100_s6 + $0x360] sm:$0xff] }
 0x3a7   :  { %1822 = vrot.lane.b32.xlu1 %v1809_v42, %s5190_s20  ;;  %2132 = vmatpush.msra.mxu1 %v4837_v34  ;;  %v4878_v54 = vld [vmem:[%s10100_s6 + $0x398] sm:$0xff]  ;;  %v1915_v55 = vld [vmem:[%s10100_s6 + $0x90] sm:$0xff]  ;;  %v1913_v31 = vld [vmem:[%s10100_s6 + $0x80] sm:$0xff] }
 0x3a8   :  { %2157 = vmatpush.msra.mxu2 %v4877_v12  ;;  %2219 = vmatpush.msrb.mxu0 %v4838_v4  ;;  %v1939_v2 = vld [vmem:[%s10100_s6 + $0x150] sm:$0xff]  ;;  %v4876_v61 = vld [vmem:[%s10100_s6 + $0x388] sm:$0xff]  ;;  %v1937_v51 = vld [vmem:[%s10100_s6 + $0x140] sm:$0xff] }
 0x3a9   :  { %2133 = vmatpush.msra.mxu1 %v4835_v15  ;;  %2189 = vmatpush.msra.mxu3 %v4903_v14  ;;  %v4874_v44 = vld [vmem:[%s10100_s6 + $0x378] sm:$0xff]  ;;  %v1911_v35 = vld [vmem:[%s10100_s6 + $0x70] sm:$0xff]  ;;  %v4872_v49 = vld [vmem:[%s10100_s6 + $0x368] sm:$0xff] }
 0x3aa   :  { %2158 = vmatpush.msra.mxu2 %v4875_v17  ;;  %2220 = vmatpush.msrb.mxu0 %v4836_v6  ;;  %v4902_v24 = vld [vmem:[%s10100_s6 + $0x458] sm:$0xff]  ;;  %v1935_v59 = vld [vmem:[%s10100_s6 + $0x130] sm:$0xff]  ;;  %v1909_v56 = vld [vmem:[%s10100_s6 + $0x60] sm:$0xff] }
 0x3ab   :  { %2234 = vmatpush.msrb.mxu1 %v4898_v23  ;;  %v1933_v34 = vld [vmem:[%s10100_s6 + $0x120] sm:$0xff]  ;;  %v4870_v12 = vld [vmem:[%s10100_s6 + $0x358] sm:$0xff]  ;;  %v1907_v17 = vld [vmem:[%s10100_s6 + $0x50] sm:$0xff] }
 0x3ac   :  { %2159 = vmatpush.msra.mxu2 %v4873_v50  ;;  %2331 = vmatpush.msra.mxu0 %v1959_v26  ;;  %v1931_v6 = vld [vmem:[%s10100_s6 + $0x110] sm:$0xff]  ;;  %v4868_v10 = vld [vmem:[%s10100_s6 + $0x348] sm:$0xff]  ;;  %v1905_v23 = vld [vmem:[%s10100_s6 + $0x40] sm:$0xff] }
 0x3ad   :  { %2235 = vmatpush.msrb.mxu1 %v4896_v57  ;;  %v1903_v57 = vld [vmem:[%s10100_s6 + $0x30] sm:$0xff] }
 0x3ae   :  { %1832 = vrot.lane.b32.xlu2 %v1813_v37, %s5190_s20  ;;  %1828 = vrot.lane.b32.xlu0 %v1810_v62, %s5190_s20  ;;  %v4869_v62 = vld [vmem:[%s10100_s6 + $0x350] sm:$0xff]  ;;  %v4867_v37 = vld [vmem:[%s10100_s6 + $0x340] sm:$0xff] }
 0x3af   :  { %1830 = vrot.lane.b32.xlu1 %v1811_v1, %s5190_s20  ;;  %2160 = vmatpush.msra.mxu2 %v4871_v45  ;;  %v4899_v1 = vld [vmem:[%s10100_s6 + $0x440] sm:$0xff] }
 0x3b0   :  { %2332 = vmatpush.msra.mxu0 %v1957_v28  ;;  %2236 = vmatpush.msrb.mxu1 %v4894_v8  ;;  %v1929_v45 = vld [vmem:[%s10100_s6 + $0x100] sm:$0xff] }
 0x3b1   :  { %2161 = vmatpush.msra.mxu2 %v4869_v62 }
 0x3b2   :  { %2333 = vmatpush.msra.mxu0 %v1955_v13  ;;  %2237 = vmatpush.msrb.mxu1 %v4892_v39 }
 0x3b3   :  { %2162 = vmatpush.msra.mxu2 %v4867_v37 }
 0x3b5   :  { %2275 = vmatpush.msrb.mxu2 %v4906_v53  ;;  %v1899_v53 = vld [vmem:[%s10100_s6 + $0x10] sm:$0xff] }
 0x3b6   :  { %1838 = vrot.lane.b32.xlu2 %v1814_v47, %s5190_s20  ;;  %1834 = vrot.lane.b32.xlu0 %v1815_v21, %s5190_s20  ;;  %v1953_v47 = vld [vmem:[%s10100_s6 + $0x1c0] sm:$0xff]  ;;  %v4890_v21 = vld [vmem:[%s10100_s6 + $0x3f8] sm:$0xff] }
 0x3b7   :  { %1836 = vrot.lane.b32.xlu1 %v1812_v63, %s5190_s20  ;;  %v4901_v63 = vld [vmem:[%s10100_s6 + $0x450] sm:$0xff]  ;;  %2334 = vmatpush.msra.mxu0 %v1953_v47 }
 0x3b8   :  { %2190 = vmatpush.msra.mxu3 %v4901_v63  ;;  %2238 = vmatpush.msrb.mxu1 %v4890_v21  ;;  %v1901_v63 = vld [vmem:[%s10100_s6 + $0x20] sm:$0xff] }
 0x3b9   :  { %2335 = vmatpush.msra.mxu0 %v1951_v5  ;;  %2276 = vmatpush.msrb.mxu2 %v4904_v18 }
 0x3ba   :  { %2191 = vmatpush.msra.mxu3 %v4899_v1  ;;  %2239 = vmatpush.msrb.mxu1 %v4888_v25 }
 0x3bb   :  { %2336 = vmatpush.msra.mxu0 %v1949_v43  ;;  %2277 = vmatpush.msrb.mxu2 %v4902_v24 }
 0x3bc   :  { %2302 = vmatpush.msrb.mxu3 %v1927_v3  ;;  %2240 = vmatpush.msrb.mxu1 %v4886_v29 }
 0x3bd   :  { %2337 = vmatpush.msra.mxu0 %v1947_v52 }
 0x3be   :  { %2303 = vmatpush.msrb.mxu3 %v1925_v20  ;;  %2241 = vmatpush.msrb.mxu1 %v4884_v9  ;;  %v1897_v20 = vld [vmem:[%s10100_s6] sm:$0xff] }
 0x3bf   :  { %2338 = vmatpush.msra.mxu0 %v1945_v33  ;;  %v1960_v33 = vld [vmem:[%s10100_s6 + $0x1f8] sm:$0xff] }
 0x3c0   :  { %2304 = vmatpush.msrb.mxu3 %v1923_v58  ;;  %2242 = vmatpush.msrb.mxu1 %v4882_v46  ;;  %v1926_v46 = vld [vmem:[%s10100_s6 + $0xe8] sm:$0xff] }
 0x3c1   :  { %2339 = vmatpush.msra.mxu0 %v1943_v32  ;;  %v1967_v32 = vld [vmem:[%s10100_s6 + $0x230] sm:$0xff] }
 0x3c2   :  { %2305 = vmatpush.msrb.mxu3 %v1921_v48  ;;  %2243 = vmatpush.msrb.mxu1 %v4880_v16  ;;  %v1928_v48 = vld [vmem:[%s10100_s6 + $0xf8] sm:$0xff] }
 0x3c3   :  { %2340 = vmatpush.msra.mxu0 %v1941_v22  ;;  %v1924_v22 = vld [vmem:[%s10100_s6 + $0xd8] sm:$0xff] }
 0x3c4   :  { %2306 = vmatpush.msrb.mxu3 %v1919_v11  ;;  %2244 = vmatpush.msrb.mxu1 %v4878_v54  ;;  %v1956_v54 = vld [vmem:[%s10100_s6 + $0x1d8] sm:$0xff] }
 0x3c5   :  { %2341 = vmatpush.msra.mxu0 %v1939_v2 }
 0x3c6   :  { %2307 = vmatpush.msrb.mxu3 %v1917_v60  ;;  %2245 = vmatpush.msrb.mxu1 %v4876_v61 }
 0x3c7   :  { %2342 = vmatpush.msra.mxu0 %v1937_v51 }
 0x3c8   :  { %2308 = vmatpush.msrb.mxu3 %v1915_v55  ;;  %2246 = vmatpush.msrb.mxu1 %v4874_v44  ;;  %v1922_v44 = vld [vmem:[%s10100_s6 + $0xc8] sm:$0xff] }
 0x3c9   :  { %2343 = vmatpush.msra.mxu0 %v1935_v59 }
 0x3ca   :  { %2309 = vmatpush.msrb.mxu3 %v1913_v31  ;;  %2247 = vmatpush.msrb.mxu1 %v4872_v49  ;;  %v1952_v49 = vld [vmem:[%s10100_s6 + $0x1b8] sm:$0xff] }
 0x3cb   :  { %2344 = vmatpush.msra.mxu0 %v1933_v34  ;;  %v1965_v34 = vld [vmem:[%s10100_s6 + $0x220] sm:$0xff] }
 0x3cc   :  { %2310 = vmatpush.msrb.mxu3 %v1911_v35  ;;  %2248 = vmatpush.msrb.mxu1 %v4870_v12 }
 0x3cd   :  { %2345 = vmatpush.msra.mxu0 %v1931_v6  ;;  %v1950_v6 = vld [vmem:[%s10100_s6 + $0x1a8] sm:$0xff] }
 0x3ce   :  { %2311 = vmatpush.msrb.mxu3 %v1909_v56  ;;  %2249 = vmatpush.msrb.mxu1 %v4868_v10 }
 0x3cf   :  { %2346 = vmatpush.msra.mxu0 %v1929_v45  ;;  %v1916_v45 = vld [vmem:[%s10100_s6 + $0x98] sm:$0xff] }
 0x3d0   :  { %2312 = vmatpush.msrb.mxu3 %v1907_v17 }
 0x3d2   :  { %2313 = vmatpush.msrb.mxu3 %v1905_v23 }
 0x3d4   :  { %2314 = vmatpush.msrb.mxu3 %v1903_v57  ;;  %v1948_v57 = vld [vmem:[%s10100_s6 + $0x198] sm:$0xff] }
 0x3d6   :  { %2315 = vmatpush.msrb.mxu3 %v1901_v63 }
 0x3d8   :  { %2316 = vmatpush.msrb.mxu3 %v1899_v53  ;;  %v1961_v53 = vld [vmem:[%s10100_s6 + $0x200] sm:$0xff] }
 0x3da   :  { %2317 = vmatpush.msrb.mxu3 %v1897_v20  ;;  %v1910_v20 = vld [vmem:[%s10100_s6 + $0x68] sm:$0xff] }
 0x3f8   :  { %v1825_v0 = vpop.permute.xlu2 %1824 }
 0x3f9   :  { %1873 = vst.msk [vmem:[#allocation3 + $0x30] sm:$0x1] %vm1872_vm6, %v1825_v0 }
 0x400   :  { %v1827_v38 = vpop.permute.xlu2 %1826 }
 0x401   :  { %v1842_v42 = vsel %vm66_vm0, %v1825_v0, %v1827_v38  ;;  %1875 = vst.msk [vmem:[#allocation3 + $0x40] sm:$0x1] %vm68_vm15, %v1827_v38  ;;  %v4900_v38 = vld [vmem:[%s10100_s6 + $0x448] sm:$0xff] }
 0x402   :  { %1874 = vst [vmem:[#allocation3 + $0x38] sm:$0x1] %v1842_v42  ;;  %v1972_v42 = vld [vmem:[#allocation3 + $0x30] sm:$0x1]  ;;  %2278 = vmatpush.msrb.mxu2 %v4900_v38 }
 0x403   :  { %v2008_v3 = vrot.slane %v1972_v42, 1  ;;  %v1946_v42 = vld [vmem:[%s10100_s6 + $0x188] sm:$0xff] }
 0x408   :  { %v7289_v7 = vpop.permute.xlu2 %1832  ;;  %v1974_v52 = vld [vmem:[#allocation3 + $0x40] sm:$0x1] }
 0x409   :  { %1879 = vst.msk [vmem:[#allocation3 + $0x60] sm:$0xff] %vm1868_vm10, %v7289_v7  ;;  %v1973_v9 = vld [vmem:[#allocation3 + $0x38] sm:$0x1]  ;;  %v2012_v61 = vrot.slane %v1974_v52, 1 }
 0x40a   :  { %v2010_v2 = vrot.slane %v1973_v9, 1  ;;  %v1942_v52 = vld [vmem:[%s10100_s6 + $0x168] sm:$0xff] }
 0x40b   :  { %v1962_v9 = vld [vmem:[%s10100_s6 + $0x208] sm:$0xff] }
 0x410   :  { %v7332_v27 = vpop.permute.xlu2 %1838  ;;  %v1817_v30 = vpop.permute.xlu0 %1816  ;;  %v7449_v58 = vld [vmem:[#allocation3 + $0x60] sm:$0xff] }
 0x411   :  { %1884 = vst.msk [vmem:[#allocation3 + $0x88] sm:$0x1] %vm68_vm15, %v7332_v27  ;;  %v1821_v19 = vpop.permute.xlu1 %1820  ;;  %v2015_v60 = vrot.slane %v7449_v58, 1 }
 0x412   :  { %1865 = vst.msk [vmem:[#allocation3] sm:$0xfe] %vm1864_vm11, %v1817_v30 }
 0x413   :  { %1869 = vst.msk [vmem:[#allocation3 + $0x18] sm:$0xff] %vm1868_vm10, %v1821_v19 }
 0x418   :  { %v1819_v36 = vpop.permute.xlu0 %1818  ;;  %v1980_v63 = vld [vmem:[#allocation3 + $0x88] sm:$0x1] }
 0x419   :  { %v1840_v40 = vsel %vm66_vm0, %v1817_v30, %v1819_v36  ;;  %1867 = vst.msk [vmem:[#allocation3 + $0x10] sm:$0xfe] %vm64_vm2, %v1819_v36  ;;  %v1823_v0 = vpop.permute.xlu1 %1822  ;;  %v1969_v41 = vld [vmem:[#allocation3] sm:$0xfe]  ;;  %v1958_v30 = vld [vmem:[%s10100_s6 + $0x1e8] sm:$0xff] }
 0x41a   :  { %1866 = vst [vmem:[#allocation3 + $0x8] sm:$0xfe] %v1840_v40  ;;  %v7394_v4 = vld [vmem:[#allocation3 + $0x18] sm:$0xff]  ;;  %v1999_v15 = vrot.slane %v1969_v41, 1  ;;  %v7415_v14 = vsel %vm66_vm0, %v1821_v19, %v1823_v0 }
 0x41b   :  { %1871 = vst.msk [vmem:[#allocation3 + $0x28] sm:$0xff] %vm66_vm0, %v1823_v0  ;;  %v2000_v50 = vrot.slane %v7394_v4, 1  ;;  %v2003_v21 = vrot.slane %v7415_v14, 1  ;;  %v1954_v36 = vld [vmem:[%s10100_s6 + $0x1c8] sm:$0xff] }
 0x41c   :  { %v1918_v41 = vld [vmem:[%s10100_s6 + $0xa8] sm:$0xff] }
 0x41d   :  { %v2001_v26 = vsel %vm576_vm5, %v1999_v15, %v2000_v50  ;;  %v2009_v43 = vsel %vm576_vm5, %v2000_v50, %v2008_v3  ;;  %v7479_v51 = vsel %vm576_vm5, %v2003_v21, %v2010_v2  ;;  %v2027_v3 = vrot.slane %v1980_v63, 1  ;;  %v1902_v2 = vld [vmem:[%s10100_s6 + $0x28] sm:$0xff]  ;;  %v4973_v63 = vld [vmem:[%s10100_s6 + $0x610] sm:$0xff] }
 0x41e   :  { %2134 = vmatmul.f32.vlgmr.msra.gmra.mxu1 %v2001_v26  ;;  %2221 = vmatmul.f32.vlgmr.msrb.gmra.mxu0 %v2001_v26 }
 0x41f   :  { %2372 = vmatpush.msra.mxu1 %v1967_v32  ;;  %v4951_v32 = vld [vmem:[%s10100_s6 + $0x560] sm:$0xff] }
 0x420   :  { %v1829_v28 = vpop.permute.xlu0 %1828  ;;  %v1971_v62 = vld [vmem:[#allocation3 + $0x10] sm:$0xfe] }
 0x421   :  { %1876 = vst.msk [vmem:[#allocation3 + $0x48] sm:$0xfe] %vm1864_vm11, %v1829_v28  ;;  %v1831_v8 = vpop.permute.xlu1 %1830  ;;  %v2005_v13 = vrot.slane %v1971_v62, 1  ;;  %v1970_v37 = vld [vmem:[#allocation3 + $0x8] sm:$0xfe]  ;;  %2373 = vmatpush.msra.mxu1 %v1965_v34  ;;  %v4983_v34 = vld [vmem:[%s10100_s6 + $0x660] sm:$0xff] }
 0x422   :  { %v1843_v1 = vsel %vm66_vm0, %v1829_v28, %v1831_v8  ;;  %1878 = vst.msk [vmem:[#allocation3 + $0x58] sm:$0xfe] %vm64_vm2, %v1831_v8  ;;  %v7429_v39 = vld [vmem:[#allocation3 + $0x28] sm:$0xff]  ;;  %v2002_v47 = vrot.slane %v1970_v37, 1  ;;  %v1914_v28 = vld [vmem:[%s10100_s6 + $0x88] sm:$0xff] }
 0x423   :  { %1877 = vst [vmem:[#allocation3 + $0x50] sm:$0xfe] %v1843_v1  ;;  %v2006_v5 = vrot.slane %v7429_v39, 1  ;;  %v1968_v62 = vld [vmem:[%s10100_s6 + $0x238] sm:$0xff]  ;;  %v1966_v37 = vld [vmem:[%s10100_s6 + $0x228] sm:$0xff] }
 0x424   :  { %v7437_v25 = vsel %vm576_vm5, %v2002_v47, %v2003_v21  ;;  %2459 = vmatpush.msrb.mxu0 %v1968_v62  ;;  %v1944_v1 = vld [vmem:[%s10100_s6 + $0x178] sm:$0xff]  ;;  %v1963_v47 = vld [vmem:[%s10100_s6 + $0x210] sm:$0xff] }
 0x425   :  { %v7444_v29 = vsel %vm576_vm5, %v2005_v13, %v2006_v5  ;;  %2163 = vmatmul.f32.vlgmr.msra.gmra.mxu2 %v7437_v25  ;;  %v7489_v24 = vsel %vm576_vm5, %v2006_v5, %v2012_v61  ;;  %v1912_v13 = vld [vmem:[%s10100_s6 + $0x78] sm:$0xff]  ;;  %2374 = vmatpush.msra.mxu1 %v1963_v47  ;;  %v4948_v61 = vld [vmem:[%s10100_s6 + $0x548] sm:$0xff]  ;;  %v4929_v47 = vld [vmem:[%s10100_s6 + $0x4b0] sm:$0xff] }
 0x426   :  { %2137 = vmatmul.f32.gmra.mxu1 %v2009_v43  ;;  %4907 = vmatmul.msk.f32.vlgmr.msra.gmra.mxu3 %vm447_vm7, %v7444_v29  ;;  %v1964_v21 = vld [vmem:[%s10100_s6 + $0x218] sm:$0xff] }
 0x427   :  { %2224 = vmatmul.f32.gmra.mxu0 %v2009_v43  ;;  %2389 = vmatpush.msra.mxu2 %v1928_v48  ;;  %v7578_v48 = vld [vmem:[#allocation3 + $0x8] sm:$0xff] }
 0x428   :  { %v1835_v18 = vpop.permute.xlu0 %1834  ;;  %v1975_v11 = vld [vmem:[#allocation3 + $0x48] sm:$0xfe]  ;;  %2418 = vmatpush.msra.mxu3 %v1960_v33  ;;  %2460 = vmatpush.msrb.mxu0 %v1966_v37  ;;  %v4932_v37 = vld [vmem:[%s10100_s6 + $0x4c8] sm:$0xff] }
 0x429   :  { %1881 = vst.msk [vmem:[#allocation3 + $0x70] sm:$0xff] %vm66_vm0, %v1835_v18  ;;  %v1837_v16 = vpop.permute.xlu1 %1836  ;;  %v2014_v19 = vrot.slane %v1975_v11, 1  ;;  %2390 = vmatpush.msra.mxu2 %v1926_v46  ;;  %v1977_v59 = vld [vmem:[#allocation3 + $0x58] sm:$0xfe]  ;;  %2375 = vmatpush.msra.mxu1 %v1961_v53  ;;  %v1908_v33 = vld [vmem:[%s10100_s6 + $0x58] sm:$0xff]  ;;  %v4993_v53 = vld [vmem:[%s10100_s6 + $0x6b0] sm:$0xff] }
 0x42a   :  { %v1845_v55 = vsel %vm66_vm0, %v1837_v16, %v7332_v27  ;;  %1882 = vst.msk [vmem:[#allocation3 + $0x78] sm:$0x1] %vm1872_vm6, %v1837_v16  ;;  %2419 = vmatpush.msra.mxu3 %v1958_v30  ;;  %v7486_v27 = vsel %vm66_vm0, %v7289_v7, %v1835_v18  ;;  %v1976_v35 = vld [vmem:[#allocation3 + $0x50] sm:$0xfe]  ;;  %v1920_v7 = vld [vmem:[%s10100_s6 + $0xb8] sm:$0xff]  ;;  %v2020_v15 = vrot.slane %v1977_v59, 1  ;;  %2461 = vmatpush.msrb.mxu0 %v1964_v21 }
 0x42b   :  { %1883 = vst [vmem:[#allocation3 + $0x80] sm:$0x1] %v1845_v55  ;;  %v2016_v31 = vsel %vm576_vm5, %v2014_v19, %v2015_v60  ;;  %2391 = vmatpush.msra.mxu2 %v1924_v22  ;;  %v2017_v40 = vrot.slane %v1976_v35, 1  ;;  %v2018_v0 = vrot.slane %v7486_v27, 1  ;;  %v1940_v46 = vld [vmem:[%s10100_s6 + $0x158] sm:$0xff]  ;;  %v4953_v18 = vld [vmem:[%s10100_s6 + $0x570] sm:$0xff] }
 0x42c   :  { %2420 = vmatpush.msra.mxu3 %v1956_v54  ;;  %2462 = vmatpush.msrb.mxu0 %v1962_v9  ;;  %v4954_v11 = vld [vmem:[%s10100_s6 + $0x578] sm:$0xff]  ;;  %v1938_v30 = vld [vmem:[%s10100_s6 + $0x148] sm:$0xff]  ;;  %v4949_v19 = vld [vmem:[%s10100_s6 + $0x550] sm:$0xff] }
 0x42d   :  { %2166 = vmatmul.f32.gmra.mxu2 %v7479_v51  ;;  %v7521_v26 = vsel %vm576_vm5, %v2017_v40, %v2018_v0  ;;  %v4952_v16 = vld [vmem:[%s10100_s6 + $0x568] sm:$0xff]  ;;  %v7611_v22 = vld [vmem:[#allocation3] sm:$0xff]  ;;  %v1936_v54 = vld [vmem:[%s10100_s6 + $0x138] sm:$0xff] }
 0x42e   :  { %2140 = vmatmul.f32.gmra.mxu1 %v2016_v31  ;;  %4908 = vmatmul.msk.f32.gmra.mxu3 %vm447_vm7, %v7489_v24  ;;  %v4950_v55 = vld [vmem:[%s10100_s6 + $0x558] sm:$0xff]  ;;  %v4943_v59 = vld [vmem:[%s10100_s6 + $0x520] sm:$0xff]  ;;  %v4985_v40 = vld [vmem:[%s10100_s6 + $0x670] sm:$0xff] }
 0x42f   :  { %2227 = vmatmul.f32.gmra.mxu0 %v2016_v31  ;;  %2392 = vmatpush.msra.mxu2 %v1922_v44  ;;  %v1934_v31 = vld [vmem:[%s10100_s6 + $0x128] sm:$0xff]  ;;  %v4945_v44 = vld [vmem:[%s10100_s6 + $0x530] sm:$0xff]  ;;  %v1932_v35 = vld [vmem:[%s10100_s6 + $0x118] sm:$0xff] }
 0x430   :  { %v7503_v56 = vld [vmem:[#allocation3 + $0x70] sm:$0xff]  ;;  %2421 = vmatpush.msra.mxu3 %v1954_v36  ;;  %v4946_v36 = vld [vmem:[%s10100_s6 + $0x538] sm:$0xff] }
 0x431   :  { %v1978_v12 = vld [vmem:[#allocation3 + $0x78] sm:$0x1]  ;;  %v2021_v17 = vrot.slane %v7503_v56, 1  ;;  %2393 = vmatpush.msra.mxu2 %v1920_v7  ;;  %v4934_v62 = vld [vmem:[%s10100_s6 + $0x4d8] sm:$0xff]  ;;  %v4967_v9 = vld [vmem:[%s10100_s6 + $0x5e0] sm:$0xff] }
 0x432   :  { %v2023_v50 = vrot.slane %v1978_v12, 1  ;;  %2422 = vmatpush.msra.mxu3 %v1952_v49  ;;  %v1979_v38 = vld [vmem:[#allocation3 + $0x80] sm:$0x1]  ;;  %v1898_v7 = vld [vmem:[%s10100_s6 + $0x8] sm:$0xff]  ;;  %v4942_v12 = vld [vmem:[%s10100_s6 + $0x518] sm:$0xff] }
 0x433   :  { %v7517_v10 = vsel %vm576_vm5, %v2020_v15, %v2021_v17  ;;  %2394 = vmatpush.msra.mxu2 %v1918_v41  ;;  %v2025_v8 = vrot.slane %v1979_v38, 1  ;;  %v7566_v43 = vsel %vm576_vm5, %v2021_v17, %v2027_v3  ;;  %v1930_v49 = vld [vmem:[%s10100_s6 + $0x108] sm:$0xff]  ;;  %v4939_v15 = vld [vmem:[%s10100_s6 + $0x500] sm:$0xff]  ;;  %v4981_v17 = vld [vmem:[%s10100_s6 + $0x650] sm:$0xff] }
 0x434   :  { %v2024_v23 = vsel %vm576_vm5, %v2015_v60, %v2023_v50  ;;  %2423 = vmatpush.msra.mxu3 %v1950_v6  ;;  %v1904_v60 = vld [vmem:[%s10100_s6 + $0x38] sm:$0xff]  ;;  %v4944_v41 = vld [vmem:[%s10100_s6 + $0x528] sm:$0xff]  ;;  %v4979_v50 = vld [vmem:[%s10100_s6 + $0x640] sm:$0xff] }
 0x435   :  { %2169 = vmatmul.f32.gmra.mxu2 %v7521_v26  ;;  %v7560_v5 = vsel %vm576_vm5, %v2018_v0, %v2025_v8  ;;  %v7664_v0 = vld [vmem:[#allocation3 + $0x50] sm:$0xff]  ;;  %v4940_v6 = vld [vmem:[%s10100_s6 + $0x508] sm:$0xff]  ;;  %v4977_v38 = vld [vmem:[%s10100_s6 + $0x630] sm:$0xff] }
 0x436   :  { %2143 = vmatmul.f32.gmra.mxu1 %v2024_v23  ;;  %4909 = vmatmul.msk.f32.gmra.mxu3 %vm447_vm7, %v7517_v10  ;;  %v1887_v8 = vld [vmem:[#allocation3 + $0x10] sm:$0xff]  ;;  %v4930_v21 = vld [vmem:[%s10100_s6 + $0x4b8] sm:$0xff]  ;;  %v4969_v3 = vld [vmem:[%s10100_s6 + $0x5f0] sm:$0xff] }
 0x437   :  { %2230 = vmatmul.f32.gmra.mxu0 %v2024_v23  ;;  %2395 = vmatpush.msra.mxu2 %v1916_v45  ;;  %v7691_v23 = vld [vmem:[#allocation3 + $0x48] sm:$0xff] }
 0x438   :  { %2424 = vmatpush.msra.mxu3 %v1948_v57  ;;  %v4938_v45 = vld [vmem:[%s10100_s6 + $0x4f8] sm:$0xff]  ;;  %v4936_v57 = vld [vmem:[%s10100_s6 + $0x4e8] sm:$0xff] }
 0x439   :  { %2396 = vmatpush.msra.mxu2 %v1914_v28  ;;  %v4975_v28 = vld [vmem:[%s10100_s6 + $0x620] sm:$0xff] }
 0x43a   :  { %2425 = vmatpush.msra.mxu3 %v1946_v42  ;;  %v4933_v42 = vld [vmem:[%s10100_s6 + $0x4d0] sm:$0xff] }
 0x43b   :  { %2397 = vmatpush.msra.mxu2 %v1912_v13  ;;  %v4931_v13 = vld [vmem:[%s10100_s6 + $0x4c0] sm:$0xff] }
 0x43c   :  { %2426 = vmatpush.msra.mxu3 %v1944_v1  ;;  %v4971_v1 = vld [vmem:[%s10100_s6 + $0x600] sm:$0xff] }
 0x43d   :  { %2172 = vmatmul.f32.gmra.mxu2 %v7560_v5 }
 0x43e   :  { %4910 = vmatmul.msk.f32.gmra.mxu3 %vm447_vm7, %v7566_v43  ;;  %2250 = vmatmul.f32.vlgmr.msrb.gmra.mxu1 %v7437_v25  ;;  %v1906_v25 = vld [vmem:[%s10100_s6 + $0x48] sm:$0xff] }
 0x43f   :  { %2347 = vmatmul.f32.vlgmr.msra.gmra.mxu0 %v7578_v48  ;;  %2398 = vmatpush.msra.mxu2 %v1910_v20  ;;  %v4927_v20 = vld [vmem:[%s10100_s6 + $0x4a0] sm:$0xff] }
 0x440   :  { %2427 = vmatpush.msra.mxu3 %v1942_v52  ;;  %2619 = vmatpush.msrb.mxu1 %v4953_v18  ;;  %v4989_v52 = vld [vmem:[%s10100_s6 + $0x690] sm:$0xff] }
 0x441   :  { %2399 = vmatpush.msra.mxu2 %v1908_v33  ;;  %2706 = vmatpush.msra.mxu0 %v4954_v11  ;;  %v4925_v33 = vld [vmem:[%s10100_s6 + $0x490] sm:$0xff]  ;;  %v4923_v11 = vld [vmem:[%s10100_s6 + $0x480] sm:$0xff] }
 0x442   :  { %2428 = vmatpush.msra.mxu3 %v1940_v46  ;;  %2620 = vmatpush.msrb.mxu1 %v4951_v32  ;;  %v4926_v46 = vld [vmem:[%s10100_s6 + $0x498] sm:$0xff]  ;;  %v4965_v18 = vld [vmem:[%s10100_s6 + $0x5d0] sm:$0xff] }
 0x443   :  { %2400 = vmatpush.msra.mxu2 %v1906_v25  ;;  %2707 = vmatpush.msra.mxu0 %v4952_v16  ;;  %v4987_v25 = vld [vmem:[%s10100_s6 + $0x680] sm:$0xff]  ;;  %v4986_v32 = vld [vmem:[%s10100_s6 + $0x678] sm:$0xff]  ;;  %v4984_v16 = vld [vmem:[%s10100_s6 + $0x668] sm:$0xff] }
 0x444   :  { %2429 = vmatpush.msra.mxu3 %v1938_v30  ;;  %2621 = vmatpush.msrb.mxu1 %v4949_v19  ;;  %v4963_v30 = vld [vmem:[%s10100_s6 + $0x5c0] sm:$0xff]  ;;  %v4961_v19 = vld [vmem:[%s10100_s6 + $0x5b0] sm:$0xff] }
 0x445   :  { %4911 = vmatmul.msk.f32.vlgmr.msrb.gmra.mxu2 %vm447_vm7, %v7444_v29  ;;  %v4947_v29 = vld [vmem:[%s10100_s6 + $0x540] sm:$0xff]  ;;  %2708 = vmatpush.msra.mxu0 %v4950_v55  ;;  %v4980_v55 = vld [vmem:[%s10100_s6 + $0x648] sm:$0xff] }
 0x446   :  { %2253 = vmatmul.f32.gmra.mxu1 %v7479_v51  ;;  %2318 = vmatmul.f32.vlgmr.msrb.gmra.mxu3 %v7611_v22  ;;  %v1900_v51 = vld [vmem:[%s10100_s6 + $0x18] sm:$0xff] }
 0x447   :  { %2350 = vmatmul.f32.gmra.mxu0 %v7415_v14  ;;  %2401 = vmatpush.msra.mxu2 %v1904_v60  ;;  %v1893_v60 = vld [vmem:[#allocation3 + $0x58] sm:$0xff] }
 0x448   :  { %2430 = vmatpush.msra.mxu3 %v1936_v54  ;;  %2622 = vmatpush.msrb.mxu1 %v4947_v29  ;;  %v4959_v54 = vld [vmem:[%s10100_s6 + $0x5a0] sm:$0xff]  ;;  %v4978_v29 = vld [vmem:[%s10100_s6 + $0x638] sm:$0xff] }
 0x449   :  { %2402 = vmatpush.msra.mxu2 %v1902_v2  ;;  %2709 = vmatpush.msra.mxu0 %v4948_v61  ;;  %v4957_v2 = vld [vmem:[%s10100_s6 + $0x590] sm:$0xff]  ;;  %v4994_v61 = vld [vmem:[%s10100_s6 + $0x6b8] sm:$0xff] }
 0x44a   :  { %2431 = vmatpush.msra.mxu3 %v1934_v31  ;;  %2623 = vmatpush.msrb.mxu1 %v4945_v44  ;;  %v4955_v31 = vld [vmem:[%s10100_s6 + $0x580] sm:$0xff]  ;;  %v2476_v44 = vld [vmem:[#allocation3] sm:$0xfc] }
 0x44b   :  { %2403 = vmatpush.msra.mxu2 %v1900_v51  ;;  %2710 = vmatpush.msra.mxu0 %v4946_v36  ;;  %v4976_v51 = vld [vmem:[%s10100_s6 + $0x628] sm:$0xff] }
 0x44c   :  { %2432 = vmatpush.msra.mxu3 %v1932_v35  ;;  %2624 = vmatpush.msrb.mxu1 %v4943_v59  ;;  %v4974_v35 = vld [vmem:[%s10100_s6 + $0x618] sm:$0xff]  ;;  %v4992_v36 = vld [vmem:[%s10100_s6 + $0x6a8] sm:$0xff]  ;;  %v2500_v59 = vrot.slane %v2476_v44, 2 }
 0x44d   :  { %4912 = vmatmul.msk.f32.gmra.mxu2 %vm447_vm7, %v7489_v24  ;;  %v4941_v24 = vld [vmem:[%s10100_s6 + $0x510] sm:$0xff]  ;;  %2711 = vmatpush.msra.mxu0 %v4944_v41 }
 0x44e   :  { %2256 = vmatmul.f32.gmra.mxu1 %v7521_v26  ;;  %2321 = vmatmul.f32.gmra.mxu3 %v7394_v4  ;;  %v4937_v26 = vld [vmem:[%s10100_s6 + $0x4f0] sm:$0xff] }
 0x44f   :  { %2353 = vmatmul.f32.gmra.mxu0 %v7664_v0  ;;  %2404 = vmatpush.msra.mxu2 %v1898_v7  ;;  %v2501_v7 = vrot.slane %v7394_v4, 2 }
 0x450   :  { %2433 = vmatpush.msra.mxu3 %v1930_v49  ;;  %2625 = vmatpush.msrb.mxu1 %v4941_v24  ;;  %v4972_v49 = vld [vmem:[%s10100_s6 + $0x608] sm:$0xff]  ;;  %v2478_v24 = vld [vmem:[#allocation3 + $0x10] sm:$0xfc] }
 0x451   :  { %2648 = vmatpush.msrb.mxu2 %v4985_v40  ;;  %2712 = vmatpush.msra.mxu0 %v4942_v12  ;;  %v4990_v40 = vld [vmem:[%s10100_s6 + $0x698] sm:$0xff]  ;;  %v2502_v41 = vsel %vm1078_vm8, %v2500_v59, %v2501_v7  ;;  %v4988_v12 = vld [vmem:[%s10100_s6 + $0x688] sm:$0xff] }
 0x452   :  { %2626 = vmatpush.msrb.mxu1 %v4939_v15  ;;  %2689 = vmatpush.msrb.mxu3 %v4993_v53  ;;  %v2479_v15 = vld [vmem:[#allocation3 + $0x30] sm:$0x3] }
 0x453   :  { %2649 = vmatpush.msrb.mxu2 %v4983_v34  ;;  %2713 = vmatpush.msra.mxu0 %v4940_v6  ;;  %v4968_v34 = vld [vmem:[%s10100_s6 + $0x5e8] sm:$0xff]  ;;  %v4966_v6 = vld [vmem:[%s10100_s6 + $0x5d8] sm:$0xff] }
 0x454   :  { %2627 = vmatpush.msrb.mxu1 %v4937_v26  ;;  %v2504_v26 = vrot.slane %v7415_v14, 2 }
 0x455   :  { %2650 = vmatpush.msrb.mxu2 %v4981_v17  ;;  %2714 = vmatpush.msra.mxu0 %v4938_v45  ;;  %v4964_v45 = vld [vmem:[%s10100_s6 + $0x5c8] sm:$0xff] }
 0x456   :  { %4913 = vmatmul.msk.f32.gmra.mxu2 %vm447_vm7, %v7517_v10  ;;  %2259 = vmatmul.f32.gmra.mxu1 %v7560_v5  ;;  %v4935_v10 = vld [vmem:[%s10100_s6 + $0x4e0] sm:$0xff] }
 0x457   :  { %2324 = vmatmul.f32.gmra.mxu3 %v7691_v23  ;;  %2356 = vmatmul.f32.gmra.mxu0 %v7486_v27  ;;  %v4991_v5 = vld [vmem:[%s10100_s6 + $0x6a0] sm:$0xff] }
 0x458   :  { %2651 = vmatpush.msrb.mxu2 %v4979_v50  ;;  %2628 = vmatpush.msrb.mxu1 %v4935_v10  ;;  %v2506_v50 = vrot.slane %v2478_v24, 2 }
 0x459   :  { %2715 = vmatpush.msra.mxu0 %v4936_v57  ;;  %2690 = vmatpush.msrb.mxu3 %v4991_v5  ;;  %v4962_v57 = vld [vmem:[%s10100_s6 + $0x5b8] sm:$0xff] }
 0x45a   :  { %2652 = vmatpush.msrb.mxu2 %v4977_v38  ;;  %2629 = vmatpush.msrb.mxu1 %v4933_v42  ;;  %v2509_v38 = vrot.slane %v2479_v15, 2 }
 0x45b   :  { %2716 = vmatpush.msra.mxu0 %v4934_v62  ;;  %2691 = vmatpush.msrb.mxu3 %v4989_v52  ;;  %v2480_v62 = vld [vmem:[#allocation3 + $0x38] sm:$0x3]  ;;  %v2484_v52 = vld [vmem:[#allocation3 + $0x58] sm:$0xfc] }
 0x45c   :  { %2653 = vmatpush.msrb.mxu2 %v4975_v28  ;;  %2630 = vmatpush.msrb.mxu1 %v4931_v13  ;;  %v2510_v28 = vsel %vm1078_vm8, %v2501_v7, %v2509_v38  ;;  %v7978_v38 = vld [vmem:[%s10097_s10 + $0xd0] sm:$0xff] }
 0x45d   :  { %2717 = vmatpush.msra.mxu0 %v4932_v37  ;;  %2692 = vmatpush.msrb.mxu3 %v4987_v25  ;;  %v2511_v37 = vrot.slane %v2480_v62, 2 }
 0x45e   :  { %4914 = vmatmul.msk.f32.gmra.mxu2 %vm447_vm7, %v7566_v43  ;;  %4915 = vmatmul.msk.f32.vlgmr.msra.gmra.mxu1 %vm447_vm7, %v1887_v8  ;;  %v4928_v43 = vld [vmem:[%s10100_s6 + $0x4a8] sm:$0xff] }
 0x45f   :  { %2327 = vmatmul.f32.gmra.mxu3 %v7449_v58  ;;  %4919 = vmatmul.msk.f32.vlgmr.msrb.gmra.mxu0 %vm447_vm7, %v1887_v8  ;;  %v4958_v8 = vld [vmem:[%s10100_s6 + $0x598] sm:$0xff]  ;;  %v2512_v53 = vsel %vm1078_vm8, %v2504_v26, %v2511_v37  ;;  %v8029_v37 = vld [vmem:[%s10097_s10 + $0xa8] sm:$0xff] }
 0x460   :  { %2654 = vmatpush.msrb.mxu2 %v4973_v63  ;;  %2631 = vmatpush.msrb.mxu1 %v4929_v47  ;;  %v2481_v63 = vld [vmem:[#allocation3 + $0x40] sm:$0x3]  ;;  %v2516_v47 = vrot.slane %v7449_v58, 2 }
 0x461   :  { %2718 = vmatpush.msra.mxu0 %v4930_v21  ;;  %v2513_v21 = vrot.slane %v2481_v63, 2  ;;  %v8012_v63 = vld [vmem:[%s10097_s10 + $0xb0] sm:$0xff] }
 0x462   :  { %2655 = vmatpush.msrb.mxu2 %v4971_v1  ;;  %2632 = vmatpush.msrb.mxu1 %v4927_v20  ;;  %v4956_v1 = vld [vmem:[%s10100_s6 + $0x588] sm:$0xff]  ;;  %v2483_v20 = vld [vmem:[#allocation3 + $0x50] sm:$0xfc] }
 0x463   :  { %2719 = vmatpush.msra.mxu0 %v4928_v43  ;;  %v2485_v43 = vld [vmem:[#allocation3 + $0x78] sm:$0x3] }
 0x464   :  { %2656 = vmatpush.msrb.mxu2 %v4969_v3  ;;  %2633 = vmatpush.msrb.mxu1 %v4925_v33  ;;  %v2524_v33 = vrot.slane %v2485_v43, 2  ;;  %v8066_v43 = vld [vmem:[%s10097_s10 + $0x70] sm:$0xff] }
 0x465   :  { %2720 = vmatpush.msra.mxu0 %v4926_v46  ;;  %v2522_v46 = vrot.slane %v7503_v56, 2 }
 0x466   :  { %2405 = vmatmul.f32.vlgmr.msra.gmra.mxu2 %v7611_v22  ;;  %4916 = vmatmul.msk.f32.gmra.mxu1 %vm447_vm7, %v7429_v39  ;;  %v4982_v22 = vld [vmem:[%s10100_s6 + $0x658] sm:$0xff] }
 0x467   :  { %2434 = vmatmul.f32.vlgmr.msra.gmra.mxu3 %v7578_v48  ;;  %4920 = vmatmul.msk.f32.gmra.mxu0 %vm447_vm7, %v7429_v39  ;;  %v4924_v48 = vld [vmem:[%s10100_s6 + $0x488] sm:$0xff] }
 0x468   :  { %2657 = vmatpush.msrb.mxu2 %v4967_v9  ;;  %2634 = vmatpush.msrb.mxu1 %v4923_v11  ;;  %v2518_v9 = vrot.slane %v2483_v20, 2  ;;  %v2525_v11 = vsel %vm1078_vm8, %v2516_v47, %v2524_v33  ;;  %v8085_v33 = vld [vmem:[%s10097_s10 + $0x68] sm:$0xff] }
 0x469   :  { %2721 = vmatpush.msra.mxu0 %v4924_v48 }
 0x46a   :  { %2658 = vmatpush.msrb.mxu2 %v4965_v18  ;;  %2735 = vmatpush.msra.mxu1 %v4986_v32  ;;  %v2521_v18 = vrot.slane %v2484_v52, 2  ;;  %v2487_v32 = vld [vmem:[#allocation3 + $0x88] sm:$0x3] }
 0x46b   :  { %v8071_v52 = vld [vmem:[%s10097_s10 + $0x78] sm:$0xff] }
 0x46c   :  { %2659 = vmatpush.msrb.mxu2 %v4963_v30  ;;  %2736 = vmatpush.msra.mxu1 %v4984_v16  ;;  %v2523_v48 = vsel %vm1078_vm8, %v2521_v18, %v2522_v46  ;;  %v2486_v30 = vld [vmem:[#allocation3 + $0x80] sm:$0x3]  ;;  %v8095_v18 = vld [vmem:[%s10097_s10 + $0x58] sm:$0xff] }
 0x46d   :  { %v2526_v16 = vrot.slane %v2486_v30, 2 }
 0x46e   :  { %2408 = vmatmul.f32.gmra.mxu2 %v7394_v4  ;;  %4917 = vmatmul.msk.f32.gmra.mxu1 %vm447_vm7, %v1893_v60  ;;  %v2477_v4 = vld [vmem:[#allocation3 + $0x8] sm:$0xfc] }
 0x46f   :  { %2437 = vmatmul.f32.gmra.mxu3 %v7415_v14  ;;  %4921 = vmatmul.msk.f32.gmra.mxu0 %vm447_vm7, %v1893_v60  ;;  %v2503_v17 = vrot.slane %v2477_v4, 2  ;;  %v2482_v14 = vld [vmem:[#allocation3 + $0x48] sm:$0xfc] }
 0x470   :  { %2660 = vmatpush.msrb.mxu2 %v4961_v19  ;;  %2737 = vmatpush.msra.mxu1 %v4982_v22  ;;  %v2515_v13 = vrot.slane %v2482_v14, 2 }
 0x471   :  { %v2505_v10 = vsel %vm1078_vm8, %v2503_v17, %v2504_v26  ;;  %v7968_v26 = vld [vmem:[%s10097_s10 + $0xe0] sm:$0xff] }
 0x472   :  { %2661 = vmatpush.msrb.mxu2 %v4959_v54  ;;  %2738 = vmatpush.msra.mxu1 %v4980_v55  ;;  %v2517_v3 = vsel %vm1078_vm8, %v2515_v13, %v2516_v47  ;;  %v8024_v13 = vld [vmem:[%s10097_s10 + $0xa0] sm:$0xff]  ;;  %v8039_v47 = vld [vmem:[%s10097_s10 + $0x98] sm:$0xff] }
 0x474   :  { %2662 = vmatpush.msrb.mxu2 %v4957_v2  ;;  %2739 = vmatpush.msra.mxu1 %v4978_v29 }
 0x476   :  { %2411 = vmatmul.f32.gmra.mxu2 %v7691_v23  ;;  %4918 = vmatmul.msk.f32.gmra.mxu1 %vm447_vm7, %v7503_v56  ;;  %v2507_v23 = vrot.slane %v7429_v39, 2  ;;  %v4960_v39 = vld [vmem:[%s10100_s6 + $0x5a8] sm:$0xff] }
 0x477   :  { %2440 = vmatmul.f32.gmra.mxu3 %v7664_v0  ;;  %4922 = vmatmul.msk.f32.gmra.mxu0 %vm447_vm7, %v7503_v56  ;;  %v4970_v0 = vld [vmem:[%s10100_s6 + $0x5f8] sm:$0xff] }
 0x478   :  { %2663 = vmatpush.msrb.mxu2 %v4955_v31  ;;  %2740 = vmatpush.msra.mxu1 %v4976_v51  ;;  %v2508_v42 = vsel %vm1078_vm8, %v2506_v50, %v2507_v23  ;;  %v2514_v5 = vsel %vm1078_vm8, %v2507_v23, %v2513_v21  ;;  %v7956_v50 = vld [vmem:[%s10097_s10 + $0xf0] sm:$0xff]  ;;  %v7961_v23 = vld [vmem:[%s10097_s10 + $0xf8] sm:$0xff]  ;;  %v8046_v21 = vld [vmem:[%s10097_s10 + $0x80] sm:$0xff] }
 0x479   :  { %2865 = vmatpush.msra.mxu3 %v7956_v50 }
 0x47a   :  { %2776 = vmatpush.msra.mxu2 %v4994_v61  ;;  %2741 = vmatpush.msra.mxu1 %v4974_v35 }
 0x47b   :  { %2866 = vmatpush.msra.mxu3 %v7968_v26 }
 0x47c   :  { %2777 = vmatpush.msra.mxu2 %v4992_v36  ;;  %2742 = vmatpush.msra.mxu1 %v4972_v49 }
 0x47d   :  { %2867 = vmatpush.msra.mxu3 %v7978_v38 }
 0x47e   :  { %2778 = vmatpush.msra.mxu2 %v4990_v40  ;;  %2635 = vmatmul.f32.vlgmr.msrb.gmra.mxu1 %v2502_v41 }
 0x47f   :  { %2414 = vmatmul.f32.gmra.mxu2 %v7449_v58  ;;  %2443 = vmatmul.f32.gmra.mxu3 %v7486_v27  ;;  %v2519_v58 = vrot.slane %v7486_v27, 2  ;;  %v2528_v27 = vrot.slane %v2487_v32, 2 }
 0x480   :  { %2722 = vmatmul.f32.vlgmr.msra.gmra.mxu0 %v2502_v41  ;;  %2743 = vmatpush.msra.mxu1 %v4970_v0 }
 0x481   :  { %2779 = vmatpush.msra.mxu2 %v4988_v12  ;;  %v2520_v25 = vsel %vm1078_vm8, %v2518_v9, %v2519_v58  ;;  %v2527_v56 = vsel %vm1078_vm8, %v2519_v58, %v2526_v16  ;;  %v2529_v60 = vsel %vm1078_vm8, %v2522_v46, %v2528_v27  ;;  %v8080_v58 = vld [vmem:[%s10097_s10 + $0x60] sm:$0xff]  ;;  %v8090_v46 = vld [vmem:[%s10097_s10 + $0x50] sm:$0xff]  ;;  %v8127_v27 = vld [vmem:[%s10097_s10 + $0x38] sm:$0xff] }
 0x482   :  { %2744 = vmatpush.msra.mxu1 %v4968_v34  ;;  %v8122_v16 = vld [vmem:[%s10097_s10 + $0x30] sm:$0xff] }
 0x484   :  { %2745 = vmatpush.msra.mxu1 %v4966_v6 }
 0x486   :  { %2746 = vmatpush.msra.mxu1 %v4964_v45  ;;  %v7973_v45 = vld [vmem:[%s10097_s10 + $0xe8] sm:$0xff] }
 0x487   :  { %2664 = vmatmul.f32.vlgmr.msrb.gmra.mxu2 %v2505_v10  ;;  %2638 = vmatmul.f32.gmra.mxu1 %v2510_v28 }
 0x488   :  { %4995 = vmatmul.msk.f32.vlgmr.msrb.gmra.mxu3 %vm447_vm7, %v2508_v42  ;;  %2725 = vmatmul.f32.gmra.mxu0 %v2510_v28  ;;  %v7995_v28 = vld [vmem:[%s10097_s10 + $0xc8] sm:$0xff] }
 0x489   :  { %2747 = vmatpush.msra.mxu1 %v4962_v57  ;;  %v7990_v57 = vld [vmem:[%s10097_s10 + $0xc0] sm:$0xff] }
 0x48a   :  { %2868 = vmatpush.msra.mxu3 %v7990_v57 }
 0x48b   :  { %2748 = vmatpush.msra.mxu1 %v4960_v39 }
 0x48c   :  { %2869 = vmatpush.msra.mxu3 %v8012_v63 }
 0x48d   :  { %2749 = vmatpush.msra.mxu1 %v4958_v8  ;;  %v8017_v8 = vld [vmem:[%s10097_s10 + $0xb8] sm:$0xff] }
 0x48e   :  { %2870 = vmatpush.msra.mxu3 %v8024_v13 }
 0x48f   :  { %2667 = vmatmul.f32.gmra.mxu2 %v2512_v53  ;;  %2750 = vmatpush.msra.mxu1 %v4956_v1  ;;  %v8034_v1 = vld [vmem:[%s10097_s10 + $0x90] sm:$0xff] }
 0x490   :  { %2641 = vmatmul.f32.gmra.mxu1 %v2517_v3  ;;  %4996 = vmatmul.msk.f32.gmra.mxu3 %vm447_vm7, %v2514_v5 }
 0x491   :  { %2728 = vmatmul.f32.gmra.mxu0 %v2517_v3  ;;  %2923 = vmatpush.msrb.mxu1 %v7961_v23 }
 0x492   :  { %2871 = vmatpush.msra.mxu3 %v8034_v1 }
 0x493   :  { %2924 = vmatpush.msrb.mxu1 %v7973_v45 }
 0x494   :  { %2872 = vmatpush.msra.mxu3 %v8046_v21 }
 0x496   :  { %2873 = vmatpush.msra.mxu3 %v8066_v43 }
 0x497   :  { %2670 = vmatmul.f32.gmra.mxu2 %v2520_v25 }
 0x498   :  { %2644 = vmatmul.f32.gmra.mxu1 %v2525_v11  ;;  %4997 = vmatmul.msk.f32.gmra.mxu3 %vm447_vm7, %v2523_v48 }
 0x499   :  { %2731 = vmatmul.f32.gmra.mxu0 %v2525_v11  ;;  %2874 = vmatpush.msra.mxu3 %v8080_v58  ;;  %v8107_v11 = vld [vmem:[%s10097_s10 + $0x48] sm:$0xff] }
 0x49b   :  { %v7896_v19 = vpop.f32.mrf.mxu1  ;;  %v7904_v54 = vpop.f32.mrf.mxu0  ;;  %2875 = vmatpush.msra.mxu3 %v8090_v46 }
 0x49c   :  { %10173 = vst [vmem:[#allocation20_spill] sm:$0xff] %v7904_v54 }
 0x49f   :  { %2673 = vmatmul.f32.gmra.mxu2 %v2527_v56 }
 0x4a0   :  { %4998 = vmatmul.msk.f32.gmra.mxu3 %vm447_vm7, %v2529_v60  ;;  %2751 = vmatmul.f32.vlgmr.msra.gmra.mxu1 %v2505_v10  ;;  %v7983_v10 = vld [vmem:[%s10097_s10 + $0xd8] sm:$0xff] }
 0x4a1   :  { %2925 = vmatpush.msrb.mxu1 %v7983_v10 }
 0x4a3   :  { %v7901_v22 = vpop.f32.mrf.mxu1  ;;  %2926 = vmatpush.msrb.mxu1 %v7995_v28 }
 0x4a4   :  { %v7917_v51 = vpop.f32.mrf.mxu0 }
 0x4a5   :  { %10174 = vst [vmem:[#allocation6_spill] sm:$0xff] %v7917_v51  ;;  %2927 = vmatpush.msrb.mxu1 %v8017_v8  ;;  %v8194_v51 = vld [vmem:[%s10097_s10 + $0x1e0] sm:$0xff] }
 0x4a7   :  { %4999 = vmatmul.msk.f32.vlgmr.msra.gmra.mxu2 %vm447_vm7, %v2508_v42  ;;  %2928 = vmatpush.msrb.mxu1 %v8029_v37 }
 0x4a8   :  { %2754 = vmatmul.f32.gmra.mxu1 %v2512_v53  ;;  %v7906_v55 = vpop.f32.mrf.mxu2  ;;  %v8051_v53 = vld [vmem:[%s10097_s10 + $0x88] sm:$0xff] }
 0x4a9   :  { %v7908_v2 = vpop.f32.mrf.mxu3  ;;  %2929 = vmatpush.msrb.mxu1 %v8039_v47 }
 0x4ab   :  { %v7910_v29 = vpop.f32.mrf.mxu1  ;;  %2930 = vmatpush.msrb.mxu1 %v8051_v53 }
 0x4ac   :  { %v7928_v7 = vpop.f32.mrf.mxu0 }
 0x4ad   :  { %10176 = vst [vmem:[#allocation14_spill] sm:$0xff] %v7928_v7  ;;  %2931 = vmatpush.msrb.mxu1 %v8071_v52 }
 0x4af   :  { %5000 = vmatmul.msk.f32.gmra.mxu2 %vm447_vm7, %v2514_v5  ;;  %2932 = vmatpush.msrb.mxu1 %v8085_v33 }
 0x4b0   :  { %2757 = vmatmul.f32.gmra.mxu1 %v2520_v25  ;;  %v7913_v31 = vpop.f32.mrf.mxu2  ;;  %v8102_v25 = vld [vmem:[%s10097_s10 + $0x40] sm:$0xff] }
 0x4b1   :  { %v7915_v61 = vpop.f32.mrf.mxu3  ;;  %2933 = vmatpush.msrb.mxu1 %v8095_v18  ;;  %2876 = vmatpush.msra.mxu3 %v8102_v25 }
 0x4b3   :  { %v7919_v44 = vpop.f32.mrf.mxu1  ;;  %2934 = vmatpush.msrb.mxu1 %v8107_v11  ;;  %2877 = vmatpush.msra.mxu3 %v8122_v16 }
 0x4b4   :  { %v7937_v41 = vpop.f32.mrf.mxu0 }
 0x4b5   :  { %10178 = vst [vmem:[#allocation27_spill] sm:$0xff] %v7937_v41  ;;  %2935 = vmatpush.msrb.mxu1 %v8127_v27  ;;  %v8151_v41 = vld [vmem:[%s10097_s10 + $0x18] sm:$0xff] }
 0x4b7   :  { %5001 = vmatmul.msk.f32.gmra.mxu2 %vm447_vm7, %v2523_v48 }
 0x4b8   :  { %2760 = vmatmul.f32.gmra.mxu1 %v2527_v56  ;;  %v7922_v35 = vpop.f32.mrf.mxu2  ;;  %v8132_v56 = vld [vmem:[%s10097_s10 + $0x20] sm:$0xff] }
 0x4b9   :  { %v7924_v36 = vpop.f32.mrf.mxu3  ;;  %2878 = vmatpush.msra.mxu3 %v8132_v56 }
 0x4bb   :  { %v7926_v59 = vpop.f32.mrf.mxu1 }
 0x4bc   :  { %10175 = vst [vmem:[#allocation15_spill] sm:$0xff] %v7926_v59  ;;  %v7945_v12 = vpop.f32.mrf.mxu0 }
 0x4bf   :  { %5002 = vmatmul.msk.f32.gmra.mxu2 %vm447_vm7, %v2529_v60 }
 0x4c0   :  { %v7931_v49 = vpop.f32.mrf.mxu2 }
 0x4c1   :  { %v7933_v40 = vpop.f32.mrf.mxu3 }
 0x4c3   :  { %v7935_v0 = vpop.f32.mrf.mxu1 }
 0x4c4   :  { %10177 = vst [vmem:[#allocation26_spill] sm:$0xff] %v7935_v0  ;;  %v8003_v39 = vpop.f32.mrf.mxu0  ;;  %v8179_v0 = vld [vmem:[%s10097_s10 + $0x8] sm:$0xff] }
 0x4c8   :  { %v7939_v4 = vpop.f32.mrf.mxu2 }
 0x4c9   :  { %10179 = vst [vmem:[#allocation4_spill] sm:$0xff] %v7939_v4  ;;  %v7941_v24 = vpop.f32.mrf.mxu3  ;;  %v8218_v4 = vld [vmem:[%s10097_s10 + $0x1c0] sm:$0xff] }
 0x4cb   :  { %v7943_v34 = vpop.f32.mrf.mxu1 }
 0x4cc   :  { %10180 = vst [vmem:[#allocation9_spill] sm:$0xff] %v7943_v34  ;;  %v8073_v9 = vpop.f32.mrf.mxu0  ;;  %v8161_v34 = vld [vmem:[%s10097_s10 + $0x1f0] sm:$0xff] }
 0x4cd   :  { %2894 = vmatpush.msrb.mxu0 %v8161_v34 }
 0x4cf   :  { %2895 = vmatpush.msrb.mxu0 %v8194_v51 }
 0x4d0   :  { %v7947_v15 = vpop.f32.mrf.mxu2 }
 0x4d1   :  { %10181 = vst [vmem:[#allocation18_spill] sm:$0xff] %v7947_v15  ;;  %v7949_v17 = vpop.f32.mrf.mxu3 }
 0x4d3   :  { %v7951_v6 = vpop.f32.mrf.mxu1 }
 0x4d4   :  { %10182 = vst [vmem:[#allocation17_spill] sm:$0xff] %v7951_v6  ;;  %v8134_v60 = vpop.f32.mrf.mxu0  ;;  %v8146_v6 = vld [vmem:[%s10097_s10 + $0x10] sm:$0xff] }
 0x4d5   :  { %10189 = vst [vmem:[#allocation21_spill] sm:$0xff] %v8134_v60  ;;  %2879 = vmatpush.msra.mxu3 %v8146_v6  ;;  %v8201_v60 = vld [vmem:[%s10097_s10 + $0x1d8] sm:$0xff] }
 0x4d9   :  { %v7997_v42 = vpop.f32.mrf.mxu2 }
 0x4da   :  { %10183 = vst [vmem:[#allocation24_spill] sm:$0xff] %v7997_v42  ;;  %v8001_v14 = vpop.f32.mrf.mxu3  ;;  %v8156_v42 = vld [vmem:[%s10097_s10 + $0x1f8] sm:$0xff] }
 0x4db   :  { %v8007_v62 = vpop.f32.mrf.mxu1  ;;  %2952 = vmatpush.msrb.mxu2 %v8156_v42 }
 0x4dc   :  { %v8229_v59 = vpop.f32.mrf.mxu0 }
 0x4dd   :  { %10193 = vst [vmem:[#allocation10_spill] sm:$0xff] %v8229_v59  ;;  %v8285_v59 = vld [vmem:[%s10097_s10 + $0x178] sm:$0xff] }
 0x4e1   :  { %v8053_v3 = vpop.f32.mrf.mxu2 }
 0x4e2   :  { %10184 = vst [vmem:[#allocation22_spill] sm:$0xff] %v8053_v3  ;;  %v8057_v5 = vpop.f32.mrf.mxu3  ;;  %v8141_v3 = vld [vmem:[%s10097_s10 + $0x28] sm:$0xff] }
 0x4e3   :  { %10185 = vst [vmem:[#allocation8_spill] sm:$0xff] %v8057_v5  ;;  %v8061_v20 = vpop.f32.mrf.mxu1  ;;  %2936 = vmatpush.msrb.mxu1 %v8141_v3  ;;  %v8223_v5 = vld [vmem:[%s10097_s10 + $0x1b8] sm:$0xff] }
 0x4e5   :  { %2937 = vmatpush.msrb.mxu1 %v8151_v41 }
 0x4e7   :  { %2938 = vmatpush.msrb.mxu1 %v8179_v0 }
 0x4e9   :  { %v8109_v48 = vpop.f32.mrf.mxu2  ;;  %3075 = vmatpush.msra.mxu1 %v7961_v23  ;;  %v8247_v23 = vld [vmem:[%s10097_s10 + $0x1a8] sm:$0xff] }
 0x4ea   :  { %10186 = vst [vmem:[#allocation16_spill] sm:$0xff] %v8109_v48  ;;  %v8113_v30 = vpop.f32.mrf.mxu3  ;;  %v8211_v48 = vld [vmem:[%s10097_s10 + $0x1c8] sm:$0xff] }
 0x4eb   :  { %10187 = vst [vmem:[#allocation5_spill] sm:$0xff] %v8113_v30  ;;  %v8117_v32 = vpop.f32.mrf.mxu1  ;;  %v8173_v30 = vld [vmem:[%s10097_s10] sm:$0xff]  ;;  %3076 = vmatpush.msra.mxu1 %v7973_v45  ;;  %v8261_v45 = vld [vmem:[%s10097_s10 + $0x198] sm:$0xff] }
 0x4ec   :  { %10188 = vst [vmem:[#allocation11_spill] sm:$0xff] %v8117_v32  ;;  %2880 = vmatpush.msra.mxu3 %v8173_v30  ;;  %v8236_v32 = vld [vmem:[%s10097_s10 + $0x1b0] sm:$0xff] }
 0x4ed   :  { %3077 = vmatpush.msra.mxu1 %v7983_v10  ;;  %10196 = vst [vmem:[#allocation13_spill] sm:$0xff] %v8261_v45  ;;  %v8271_v10 = vld [vmem:[%s10097_s10 + $0x188] sm:$0xff] }
 0x4ee   :  { %3017 = vmatpush.msrb.mxu3 %v7956_v50 }
 0x4ef   :  { %3078 = vmatpush.msra.mxu1 %v7995_v28 }
 0x4f0   :  { %3018 = vmatpush.msrb.mxu3 %v7968_v26  ;;  %v8256_v26 = vld [vmem:[%s10097_s10 + $0x1a0] sm:$0xff] }
 0x4f1   :  { %v8163_v7 = vpop.f32.mrf.mxu2  ;;  %3079 = vmatpush.msra.mxu1 %v8017_v8 }
 0x4f2   :  { %10190 = vst [vmem:[#allocation30_spill] sm:$0xff] %v8163_v7  ;;  %v8167_v15 = vpop.f32.mrf.mxu3  ;;  %v8184_v7 = vld [vmem:[%s10097_s10 + $0x1e8] sm:$0xff]  ;;  %3019 = vmatpush.msrb.mxu3 %v7978_v38  ;;  %v8266_v38 = vld [vmem:[%s10097_s10 + $0x190] sm:$0xff] }
 0x4f3   :  { %10191 = vst [vmem:[#allocation31_spill] sm:$0xff] %v8167_v15  ;;  %v8188_v15 = vpop.f32.mrf.mxu1  ;;  %2953 = vmatpush.msrb.mxu2 %v8184_v7  ;;  %3080 = vmatpush.msra.mxu1 %v8029_v37  ;;  %v8321_v37 = vld [vmem:[%s10097_s10 + $0x160] sm:$0xff] }
 0x4f4   :  { %10192 = vst [vmem:[#allocation28_spill] sm:$0xff] %v8188_v15  ;;  %v8206_v15 = vld [vmem:[%s10097_s10 + $0x1d0] sm:$0xff]  ;;  %3020 = vmatpush.msrb.mxu3 %v7990_v57  ;;  %v2165_v57 = vadd.f32 %v7906_v55, %v7896_v19  ;;  %v8309_v19 = vld [vmem:[%s10097_s10 + $0x168] sm:$0xff]  ;;  %v8311_v55 = vpop.f32.mrf.mxu0 }
 0x4f5   :  { %2954 = vmatpush.msrb.mxu2 %v8201_v60  ;;  %2896 = vmatpush.msrb.mxu0 %v8206_v15  ;;  %10199 = vst [vmem:[#allocation12_spill] sm:$0xff] %v8311_v55 }
 0x4f6   :  { %3021 = vmatpush.msrb.mxu3 %v8012_v63  ;;  %3081 = vmatpush.msra.mxu1 %v8039_v47  ;;  %v2194_v8 = vadd.f32 %v7908_v2, %v2165_v57  ;;  %v8336_v2 = vld [vmem:[%s10097_s10 + $0x148] sm:$0xff]  ;;  %v8346_v57 = vld [vmem:[%s10097_s10 + $0x140] sm:$0xff] }
 0x4f7   :  { %2955 = vmatpush.msrb.mxu2 %v8211_v48  ;;  %2897 = vmatpush.msrb.mxu0 %v8218_v4  ;;  %10200 = vst [vmem:[#allocation23_spill] sm:$0xff] %v8336_v2 }
 0x4f8   :  { %3022 = vmatpush.msrb.mxu3 %v8024_v13  ;;  %3082 = vmatpush.msra.mxu1 %v8051_v53  ;;  %v2320_v47 = vadd.f32 %v7941_v24, %v2194_v8  ;;  %v2168_v24 = vadd.f32 %v7913_v31, %v7901_v22  ;;  %v8362_v53 = vld [vmem:[%s10097_s10 + $0x130] sm:$0xff]  ;;  %v8367_v8 = vld [vmem:[%s10097_s10 + $0x128] sm:$0xff] }
 0x4f9   :  { %v8231_v54 = vpop.f32.mrf.mxu2  ;;  %2956 = vmatpush.msrb.mxu2 %v8223_v5  ;;  %2898 = vmatpush.msrb.mxu0 %v8236_v32 }
 0x4fa   :  { %10194 = vst [vmem:[#allocation19_spill] sm:$0xff] %v8231_v54  ;;  %v8240_v50 = vpop.f32.mrf.mxu3  ;;  %3023 = vmatpush.msrb.mxu3 %v8034_v1  ;;  %v8331_v1 = vld [vmem:[%s10097_s10 + $0x150] sm:$0xff]  ;;  %3083 = vmatpush.msra.mxu1 %v8071_v52  ;;  %v2349_v22 = vadd.f32 %v7945_v12, %v2320_v47  ;;  %v2197_v52 = vadd.f32 %v7915_v61, %v2168_v24  ;;  %v10208_v24 = vld [vmem:[#allocation21_spill] sm:$0xff] }
 0x4fb   :  { %10195 = vst [vmem:[#allocation7_spill] sm:$0xff] %v8240_v50  ;;  %v2636_v54 = vpop.f32.mrf.mxu1  ;;  %2957 = vmatpush.msrb.mxu2 %v8247_v23  ;;  %2899 = vmatpush.msrb.mxu0 %v8256_v26  ;;  %v8280_v50 = vld [vmem:[%s10097_s10 + $0x180] sm:$0xff] }
 0x4fc   :  { %3024 = vmatpush.msrb.mxu3 %v8046_v21  ;;  %3084 = vmatpush.msra.mxu1 %v8085_v33  ;;  %v2378_v55 = vadd.f32 %v8007_v62, %v2349_v22  ;;  %v8385_v12 = vpop.f32.mrf.mxu0  ;;  %v8390_v33 = vld [vmem:[%s10097_s10 + $0x118] sm:$0xff]  ;;  %v2323_v61 = vadd.f32 %v7949_v17, %v2197_v52  ;;  %v2171_v17 = vadd.f32 %v7922_v35, %v7910_v29 }
 0x4fd   :  { %2958 = vmatpush.msrb.mxu2 %v8261_v45  ;;  %2900 = vmatpush.msrb.mxu0 %v8266_v38  ;;  %v8298_v45 = vld [vmem:[%s10097_s10 + $0x170] sm:$0xff] }
 0x4fe   :  { %3025 = vmatpush.msrb.mxu3 %v8066_v43  ;;  %3085 = vmatpush.msra.mxu1 %v8095_v18  ;;  %v8407_v18 = vld [vmem:[%s10097_s10 + $0x108] sm:$0xff]  ;;  %v2200_v29 = vadd.f32 %v7924_v36, %v2171_v17 }
 0x4ff   :  { %2959 = vmatpush.msrb.mxu2 %v8271_v10  ;;  %2901 = vmatpush.msrb.mxu0 %v8280_v50 }
 0x500   :  { %3026 = vmatpush.msrb.mxu3 %v8080_v58  ;;  %3086 = vmatpush.msra.mxu1 %v8107_v11 }
 0x501   :  { %2960 = vmatpush.msrb.mxu2 %v8285_v59  ;;  %2902 = vmatpush.msrb.mxu0 %v8298_v45 }
 0x502   :  { %v8293_v28 = vpop.f32.mrf.mxu2  ;;  %v8302_v63 = vpop.f32.mrf.mxu3  ;;  %3027 = vmatpush.msrb.mxu3 %v8090_v46  ;;  %v8402_v46 = vld [vmem:[%s10097_s10 + $0x110] sm:$0xff]  ;;  %3087 = vmatpush.msra.mxu1 %v8127_v27 }
 0x503   :  { %10197 = vst [vmem:[#allocation25_spill] sm:$0xff] %v8293_v28  ;;  %2961 = vmatpush.msrb.mxu2 %v8309_v19  ;;  %2903 = vmatpush.msrb.mxu0 %v8321_v37  ;;  %v8351_v28 = vld [vmem:[%s10097_s10 + $0x138] sm:$0xff] }
 0x504   :  { %10198 = vst [vmem:[#allocation32_spill] sm:$0xff] %v8302_v63  ;;  %v2639_v13 = vpop.f32.mrf.mxu1  ;;  %v8326_v63 = vld [vmem:[%s10097_s10 + $0x158] sm:$0xff]  ;;  %3028 = vmatpush.msrb.mxu3 %v8102_v25  ;;  %v8418_v25 = vld [vmem:[%s10097_s10 + $0x100] sm:$0xff]  ;;  %3088 = vmatpush.msra.mxu1 %v8141_v3  ;;  %v8438_v36 = vpop.f32.mrf.mxu0 }
 0x505   :  { %2962 = vmatpush.msrb.mxu2 %v8326_v63  ;;  %2904 = vmatpush.msrb.mxu0 %v8331_v1  ;;  %v10203_v3 = vld [vmem:[#allocation15_spill] sm:$0xff] }
 0x506   :  { %3029 = vmatpush.msrb.mxu3 %v8122_v16  ;;  %v2352_v16 = vadd.f32 %v8003_v39, %v2323_v61  ;;  %3089 = vmatpush.msra.mxu1 %v8151_v41  ;;  %v10212_v61 = vld [vmem:[#allocation5_spill] sm:$0xff] }
 0x507   :  { %2963 = vmatpush.msrb.mxu2 %v8336_v2  ;;  %2905 = vmatpush.msrb.mxu0 %v8346_v57 }
 0x508   :  { %3030 = vmatpush.msrb.mxu3 %v8132_v56  ;;  %v2381_v35 = vadd.f32 %v8061_v20, %v2352_v16  ;;  %3090 = vmatpush.msra.mxu1 %v8179_v0 }
 0x509   :  { %2964 = vmatpush.msrb.mxu2 %v8351_v28  ;;  %2906 = vmatpush.msrb.mxu0 %v8362_v53 }
 0x50a   :  { %v2665_v21 = vpop.f32.mrf.mxu2  ;;  %3031 = vmatpush.msrb.mxu3 %v8146_v6 }
 0x50b   :  { %v2694_v31 = vpop.f32.mrf.mxu3  ;;  %v2666_v43 = vadd.f32 %v2665_v21, %v2636_v54  ;;  %2965 = vmatpush.msrb.mxu2 %v8367_v8  ;;  %v8383_v54 = vld [vmem:[%s10097_s10 + $0x120] sm:$0xff] }
 0x50c   :  { %2907 = vmatpush.msrb.mxu0 %v8383_v54  ;;  %3032 = vmatpush.msrb.mxu3 %v8173_v30 }
 0x50d   :  { %v2695_v2 = vadd.f32 %v2694_v31, %v2666_v43  ;;  %v2642_v58 = vpop.f32.mrf.mxu1  ;;  %2966 = vmatpush.msrb.mxu2 %v8390_v33  ;;  %v10209_v31 = vld [vmem:[#allocation28_spill] sm:$0xff] }
 0x50e   :  { %2908 = vmatpush.msrb.mxu0 %v8402_v46 }
 0x50f   :  { %v8395_v62 = vadd.f32 %v2695_v2, %v2378_v55  ;;  %2967 = vmatpush.msrb.mxu2 %v8407_v18 }
 0x510   :  { %2909 = vmatpush.msrb.mxu0 %v8418_v25 }
 0x511   :  { %2881 = vmatmul.f32.vlgmr.msra.gmra.mxu3 %v8395_v62  ;;  %2939 = vmatmul.f32.vlgmr.msrb.gmra.mxu1 %v8395_v62 }
 0x512   :  { %v2668_v11 = vpop.f32.mrf.mxu2  ;;  %3104 = vmatpush.msra.mxu2 %v8156_v42  ;;  %3046 = vmatpush.msra.mxu0 %v8161_v34  ;;  %v2326_v42 = vadd.f32 %v8001_v14, %v2200_v29 }
 0x513   :  { %v2697_v27 = vpop.f32.mrf.mxu3  ;;  %v2669_v55 = vadd.f32 %v2668_v11, %v2639_v13  ;;  %v10207_v13 = vld [vmem:[#allocation16_spill] sm:$0xff] }
 0x514   :  { %3105 = vmatpush.msra.mxu2 %v8184_v7  ;;  %3047 = vmatpush.msra.mxu0 %v8194_v51  ;;  %v2174_v7 = vadd.f32 %v7931_v49, %v7919_v44  ;;  %v2355_v51 = vadd.f32 %v8073_v9, %v2326_v42  ;;  %v10201_v44 = vld [vmem:[#allocation11_spill] sm:$0xff]  ;;  %v10217_v42 = vld [vmem:[#allocation14_spill] sm:$0xff] }
 0x515   :  { %v2698_v2 = vadd.f32 %v2697_v27, %v2669_v55  ;;  %v2645_v39 = vpop.f32.mrf.mxu1  ;;  %v10214_v27 = vld [vmem:[#allocation23_spill] sm:$0xff]  ;;  %v10215_v55 = vld [vmem:[#allocation30_spill] sm:$0xff] }
 0x516   :  { %3106 = vmatpush.msra.mxu2 %v8201_v60  ;;  %3048 = vmatpush.msra.mxu0 %v8206_v15  ;;  %v2203_v0 = vadd.f32 %v7933_v40, %v2174_v7  ;;  %v2384_v49 = vadd.f32 %v10201_v44, %v2355_v51  ;;  %v10202_v15 = vld [vmem:[#allocation20_spill] sm:$0xff] }
 0x517   :  { %v8434_v56 = vadd.f32 %v2698_v2, %v2381_v35  ;;  %v2252_v20 = vadd.f32 %v10203_v3, %v10202_v15  ;;  %v10206_v40 = vld [vmem:[#allocation4_spill] sm:$0xff]  ;;  %v10216_v35 = vld [vmem:[#allocation10_spill] sm:$0xff]  ;;  %v10224_v3 = vld [vmem:[#allocation17_spill] sm:$0xff] }
 0x518   :  { %3107 = vmatpush.msra.mxu2 %v8211_v48  ;;  %3049 = vmatpush.msra.mxu0 %v8218_v4  ;;  %v10204_v48 = vld [vmem:[#allocation8_spill] sm:$0xff]  ;;  %v10205_v4 = vld [vmem:[#allocation13_spill] sm:$0xff] }
 0x519   :  { %2884 = vmatmul.f32.gmra.mxu3 %v8434_v56  ;;  %2942 = vmatmul.f32.gmra.mxu1 %v8434_v56  ;;  %v2329_v9 = vadd.f32 %v10204_v48, %v2203_v0  ;;  %v10222_v0 = vld [vmem:[#allocation12_spill] sm:$0xff]  ;;  %v10225_v48 = vld [vmem:[#allocation7_spill] sm:$0xff] }
 0x51a   :  { %v2671_v41 = vpop.f32.mrf.mxu2  ;;  %3108 = vmatpush.msra.mxu2 %v8223_v5  ;;  %3050 = vmatpush.msra.mxu0 %v8236_v32  ;;  %v2281_v5 = vadd.f32 %v10206_v40, %v2252_v20  ;;  %v2723_v32 = vpop.f32.mrf.mxu0  ;;  %v10227_v40 = vld [vmem:[#allocation25_spill] sm:$0xff] }
 0x51b   :  { %v2700_v34 = vpop.f32.mrf.mxu3  ;;  %v2672_v6 = vadd.f32 %v2671_v41, %v2642_v58  ;;  %v2358_v21 = vadd.f32 %v10208_v24, %v2329_v9  ;;  %v10211_v58 = vld [vmem:[#allocation26_spill] sm:$0xff]  ;;  %v10219_v41 = vld [vmem:[#allocation31_spill] sm:$0xff] }
 0x51c   :  { %3109 = vmatpush.msra.mxu2 %v8247_v23  ;;  %3051 = vmatpush.msra.mxu0 %v8256_v26  ;;  %v2407_v47 = vadd.f32 %v10207_v13, %v2281_v5 }
 0x51d   :  { %v2701_v14 = vadd.f32 %v2700_v34, %v2672_v6  ;;  %v2752_v60 = vpop.f32.mrf.mxu1  ;;  %v2387_v43 = vadd.f32 %v10209_v31, %v2358_v21 }
 0x51e   :  { %3110 = vmatpush.msra.mxu2 %v10205_v4  ;;  %3052 = vmatpush.msra.mxu0 %v8266_v38  ;;  %v10210_v38 = vld [vmem:[#allocation6_spill] sm:$0xff]  ;;  %v2436_v17 = vadd.f32 %v10212_v61, %v2407_v47  ;;  %v2753_v16 = vadd.f32 %v2752_v60, %v2723_v32  ;;  %v10228_v47 = vld [vmem:[#allocation32_spill] sm:$0xff] }
 0x51f   :  { %v8458_v30 = vadd.f32 %v2701_v14, %v2384_v49 }
 0x520   :  { %3111 = vmatpush.msra.mxu2 %v8271_v10  ;;  %3053 = vmatpush.msra.mxu0 %v8280_v50  ;;  %v2255_v10 = vadd.f32 %v10211_v58, %v10210_v38  ;;  %v10213_v50 = vld [vmem:[#allocation18_spill] sm:$0xff]  ;;  %v2465_v2 = vadd.f32 %v10216_v35, %v2436_v17 }
 0x521   :  { %2887 = vmatmul.f32.gmra.mxu3 %v8458_v30  ;;  %2945 = vmatmul.f32.gmra.mxu1 %v8458_v30 }
 0x522   :  { %v2674_v23 = vpop.f32.mrf.mxu2  ;;  %3112 = vmatpush.msra.mxu2 %v8285_v59  ;;  %3054 = vmatpush.msra.mxu0 %v8298_v45  ;;  %v2284_v59 = vadd.f32 %v10213_v50, %v2255_v10 }
 0x523   :  { %v2675_v22 = vadd.f32 %v2674_v23, %v2645_v39  ;;  %v2703_v26 = vpop.f32.mrf.mxu3  ;;  %v2726_v39 = vpop.f32.mrf.mxu0 }
 0x524   :  { %3113 = vmatpush.msra.mxu2 %v8309_v19  ;;  %3055 = vmatpush.msra.mxu0 %v8321_v37  ;;  %v2410_v29 = vadd.f32 %v10215_v55, %v2284_v59 }
 0x525   :  { %v2704_v52 = vadd.f32 %v2703_v26, %v2675_v22  ;;  %v2755_v45 = vpop.f32.mrf.mxu1 }
 0x526   :  { %3114 = vmatpush.msra.mxu2 %v8326_v63  ;;  %3056 = vmatpush.msra.mxu0 %v8331_v1  ;;  %v10218_v1 = vld [vmem:[#allocation9_spill] sm:$0xff]  ;;  %v2439_v51 = vadd.f32 %v10219_v41, %v2410_v29  ;;  %v2756_v34 = vadd.f32 %v2755_v45, %v2726_v39 }
 0x527   :  { %v8477_v11 = vadd.f32 %v2704_v52, %v2387_v43  ;;  %v2258_v7 = vadd.f32 %v10218_v1, %v10217_v42 }
 0x528   :  { %3115 = vmatpush.msra.mxu2 %v10214_v27  ;;  %3057 = vmatpush.msra.mxu0 %v8346_v57  ;;  %v2468_v44 = vadd.f32 %v10222_v0, %v2439_v51 }
 0x529   :  { %2890 = vmatmul.f32.gmra.mxu3 %v8477_v11  ;;  %2948 = vmatmul.f32.gmra.mxu1 %v8477_v11 }
 0x52a   :  { %v2781_v19 = vpop.f32.mrf.mxu2  ;;  %3116 = vmatpush.msra.mxu2 %v8351_v28  ;;  %3058 = vmatpush.msra.mxu0 %v8362_v53  ;;  %v10220_v28 = vld [vmem:[#allocation24_spill] sm:$0xff]  ;;  %v10221_v53 = vld [vmem:[#allocation19_spill] sm:$0xff] }
 0x52b   :  { %v2782_v37 = vadd.f32 %v2781_v19, %v2753_v16  ;;  %v2287_v57 = vadd.f32 %v10220_v28, %v2258_v7 }
 0x52c   :  { %3117 = vmatpush.msra.mxu2 %v8367_v8  ;;  %3059 = vmatpush.msra.mxu0 %v8383_v54  ;;  %v2729_v54 = vpop.f32.mrf.mxu0 }
 0x52d   :  { %v8490_v63 = vadd.f32 %v2782_v37, %v2465_v2  ;;  %v2413_v8 = vadd.f32 %v10221_v53, %v2287_v57  ;;  %v2758_v14 = vpop.f32.mrf.mxu1 }
 0x52e   :  { %3118 = vmatpush.msra.mxu2 %v8390_v33  ;;  %3060 = vmatpush.msra.mxu0 %v8402_v46  ;;  %v10223_v33 = vld [vmem:[#allocation27_spill] sm:$0xff]  ;;  %v10226_v46 = vld [vmem:[#allocation22_spill] sm:$0xff]  ;;  %v2759_v60 = vadd.f32 %v2758_v14, %v2729_v54 }
 0x52f   :  { %2910 = vmatmul.f32.vlgmr.msrb.gmra.mxu0 %v8490_v63  ;;  %2968 = vmatmul.f32.vlgmr.msrb.gmra.mxu2 %v8490_v63  ;;  %v2261_v20 = vadd.f32 %v10224_v3, %v10223_v33  ;;  %v2442_v9 = vadd.f32 %v10225_v48, %v2413_v8 }
 0x530   :  { %3119 = vmatpush.msra.mxu2 %v8407_v18  ;;  %3061 = vmatpush.msra.mxu0 %v8418_v25 }
 0x531   :  { %v2290_v18 = vadd.f32 %v10226_v46, %v2261_v20  ;;  %v2471_v25 = vadd.f32 %v8385_v12, %v2442_v9 }
 0x532   :  { %v2784_v6 = vpop.f32.mrf.mxu2 }
 0x533   :  { %v2785_v49 = vadd.f32 %v2784_v6, %v2756_v34  ;;  %v2416_v5 = vadd.f32 %v10227_v40, %v2290_v18 }
 0x534   :  { %v2732_v21 = vpop.f32.mrf.mxu0 }
 0x535   :  { %v8507_v15 = vadd.f32 %v2785_v49, %v2468_v44  ;;  %v2761_v13 = vpop.f32.mrf.mxu1  ;;  %v2445_v24 = vadd.f32 %v10228_v47, %v2416_v5 }
 0x536   :  { %v2762_v22 = vadd.f32 %v2761_v13, %v2732_v21 }
 0x537   :  { %2913 = vmatmul.f32.gmra.mxu0 %v8507_v15  ;;  %2971 = vmatmul.f32.gmra.mxu2 %v8507_v15  ;;  %v2474_v31 = vadd.f32 %v8438_v36, %v2445_v24 }
 0x53a   :  { %v2787_v4 = vpop.f32.mrf.mxu2 }
 0x53b   :  { %v2788_v32 = vadd.f32 %v2787_v4, %v2759_v60 }
 0x53d   :  { %v8517_v23 = vadd.f32 %v2788_v32, %v2471_v25 }
 0x53f   :  { %2916 = vmatmul.f32.gmra.mxu0 %v8517_v23  ;;  %2974 = vmatmul.f32.gmra.mxu2 %v8517_v23 }
 0x542   :  { %v2790_v26 = vpop.f32.mrf.mxu2 }
 0x543   :  { %v2791_v43 = vadd.f32 %v2790_v26, %v2762_v22 }
 0x545   :  { %v8523_v52 = vadd.f32 %v2791_v43, %v2474_v31 }
 0x547   :  { %2919 = vmatmul.f32.gmra.mxu0 %v8523_v52  ;;  %2977 = vmatmul.f32.gmra.mxu2 %v8523_v52 }
 0x58e   :  { %v2940_v38 = vpop.f32.mrf.mxu1 }
 0x594   :  { %v2882_v12 = vpop.f32.mrf.mxu3 }
 0x596   :  { %v2943_v50 = vpop.f32.mrf.mxu1 }
 0x59c   :  { %v2885_v10 = vpop.f32.mrf.mxu3 }
 0x59e   :  { %v2946_v27 = vpop.f32.mrf.mxu1 }
 0x5a4   :  { %v2888_v59 = vpop.f32.mrf.mxu3 }
 0x5a6   :  { %v2949_v34 = vpop.f32.mrf.mxu1 }
 0x5ac   :  { %v2911_v58 = vpop.f32.mrf.mxu0  ;;  %v2891_v2 = vpop.f32.mrf.mxu3 }
 0x5ad   :  { %v2912_v36 = vadd.f32 %v2911_v58, %v2882_v12 }
 0x5b2   :  { %v2969_v61 = vpop.f32.mrf.mxu2 }
 0x5b3   :  { %v2970_v7 = vadd.f32 %v2969_v61, %v2940_v38 }
 0x5b4   :  { %v2914_v17 = vpop.f32.mrf.mxu0 }
 0x5b5   :  { %v2915_v19 = vadd.f32 %v2914_v17, %v2885_v10 }
 0x5b7   :  { %v2981_v35 = vadd.f32 %v2915_v19, %v2912_v36 }
 0x5ba   :  { %v2972_v16 = vpop.f32.mrf.mxu2 }
 0x5bb   :  { %v2973_v39 = vadd.f32 %v2972_v16, %v2943_v50 }
 0x5bc   :  { %v2917_v45 = vpop.f32.mrf.mxu0 }
 0x5bd   :  { %v2918_v55 = vadd.f32 %v2917_v45, %v2888_v59  ;;  %v2990_v28 = vadd.f32 %v2973_v39, %v2970_v7 }
 0x5bf   :  { %v2982_v42 = vadd.f32 %v2981_v35, %v2918_v55 }
 0x5c2   :  { %v2975_v29 = vpop.f32.mrf.mxu2 }
 0x5c3   :  { %v2976_v41 = vadd.f32 %v2975_v29, %v2946_v27 }
 0x5c4   :  { %v2920_v37 = vpop.f32.mrf.mxu0 }
 0x5c5   :  { %v2921_v1 = vadd.f32 %v2920_v37, %v2891_v2  ;;  %v2991_v53 = vadd.f32 %v2990_v28, %v2976_v41 }
 0x5c7   :  { %v2983_v51 = vadd.f32 %v2982_v42, %v2921_v1 }
 0x5c9   :  { %v2984_v57 = vrot.slane %v2983_v51, 4 }
 0x5ca   :  { %v2978_v6 = vpop.f32.mrf.mxu2 }
 0x5cb   :  { %v2985_v8 = vadd.f32 %v2984_v57, %v2983_v51  ;;  %v2979_v0 = vadd.f32 %v2978_v6, %v2949_v34 }
 0x5cd   :  { %v2986_v44 = vrot.slane %v2985_v8, 2  ;;  %v2992_v49 = vadd.f32 %v2991_v53, %v2979_v0 }
 0x5cf   :  { %v2987_v14 = vadd.f32 %v2986_v44, %v2985_v8  ;;  %v2993_v54 = vrot.slane %v2992_v49, 4 }
 0x5d1   :  { %v2988_v33 = vrot.slane %v2987_v14, 1  ;;  %v2994_v3 = vadd.f32 %v2993_v54, %v2992_v49 }
 0x5d3   :  { %v2989_v20 = vadd.f32 %v2988_v33, %v2987_v14  ;;  %v2995_v48 = vrot.slane %v2994_v3, 2 }
 0x5d5   :  { %v2999_v9 = vmul.f32 0.001953125, %v2989_v20  ;;  %v2996_v46 = vadd.f32 %v2995_v48, %v2994_v3 }
 0x5d7   :  { %v2997_v18 = vrot.slane %v2996_v46, 1  ;;  %v8528_v60 = vsub.f32 %v8395_v62, %v2999_v9  ;;  %v8536_v32 = vsub.f32 %v8434_v56, %v2999_v9  ;;  %v8546_v24 = vsub.f32 %v8458_v30, %v2999_v9 }
 0x5d8   :  { %v8556_v22 = vsub.f32 %v8477_v11, %v2999_v9 }
 0x5d9   :  { %v2998_v4 = vadd.f32 %v2997_v18, %v2996_v46  ;;  %v3009_v40 = vmul.f32 %v8528_v60, %v8528_v60  ;;  %v3011_v62 = vmul.f32 %v8536_v32, %v8536_v32 }
 0x5db   :  { %v3000_v5 = vmul.f32 0.001953125, %v2998_v4  ;;  %3033 = vmatmul.f32.vlgmr.msrb.gmra.mxu3 %v3009_v40  ;;  %3091 = vmatmul.f32.vlgmr.msra.gmra.mxu1 %v3009_v40 }
 0x5dd   :  { %v8533_v25 = vsub.f32 %v8490_v63, %v3000_v5  ;;  %v8543_v47 = vsub.f32 %v8507_v15, %v3000_v5  ;;  %v3013_v63 = vmul.f32 %v8546_v24, %v8546_v24  ;;  %v8553_v21 = vsub.f32 %v8517_v23, %v3000_v5 }
 0x5de   :  { %v3015_v15 = vmul.f32 %v8556_v22, %v8556_v22  ;;  %v8563_v26 = vsub.f32 %v8523_v52, %v3000_v5 }
 0x5df   :  { %v3010_v13 = vmul.f32 %v8533_v25, %v8533_v25  ;;  %v3012_v56 = vmul.f32 %v8543_v47, %v8543_v47  ;;  %v3014_v30 = vmul.f32 %v8553_v21, %v8553_v21 }
 0x5e0   :  { %v3016_v23 = vmul.f32 %v8563_v26, %v8563_v26 }
 0x5e1   :  { %3062 = vmatmul.f32.vlgmr.msra.gmra.mxu0 %v3010_v13  ;;  %3120 = vmatmul.f32.vlgmr.msra.gmra.mxu2 %v3010_v13 }
 0x5e3   :  { %3036 = vmatmul.f32.gmra.mxu3 %v3011_v62  ;;  %3094 = vmatmul.f32.gmra.mxu1 %v3011_v62 }
 0x5e9   :  { %3065 = vmatmul.f32.gmra.mxu0 %v3012_v56  ;;  %3123 = vmatmul.f32.gmra.mxu2 %v3012_v56 }
 0x5eb   :  { %3039 = vmatmul.f32.gmra.mxu3 %v3013_v63  ;;  %3097 = vmatmul.f32.gmra.mxu1 %v3013_v63 }
 0x5f1   :  { %3068 = vmatmul.f32.gmra.mxu0 %v3014_v30  ;;  %3126 = vmatmul.f32.gmra.mxu2 %v3014_v30 }
 0x5f3   :  { %3042 = vmatmul.f32.gmra.mxu3 %v3015_v15  ;;  %3100 = vmatmul.f32.gmra.mxu1 %v3015_v15 }
 0x5f9   :  { %3071 = vmatmul.f32.gmra.mxu0 %v3016_v23  ;;  %3129 = vmatmul.f32.gmra.mxu2 %v3016_v23 }
 0x658   :  { %v3092_v11 = vpop.f32.mrf.mxu1 }
 0x65e   :  { %v3034_v31 = vpop.f32.mrf.mxu3  ;;  %v3063_v43 = vpop.f32.mrf.mxu0 }
 0x65f   :  { %v3064_v45 = vadd.f32 %v3063_v43, %v3034_v31 }
 0x660   :  { %v3095_v10 = vpop.f32.mrf.mxu1 }
 0x664   :  { %v3121_v12 = vpop.f32.mrf.mxu2 }
 0x665   :  { %v3122_v37 = vadd.f32 %v3121_v12, %v3092_v11 }
 0x666   :  { %v3037_v38 = vpop.f32.mrf.mxu3  ;;  %v3066_v58 = vpop.f32.mrf.mxu0 }
 0x667   :  { %v3067_v59 = vadd.f32 %v3066_v58, %v3037_v38  ;;  %v5003_v38 = vld [vmem:[%s10098_s8 + $0x1] ss:$4 sm:$0x3] }
 0x668   :  { %v3098_v16 = vpop.f32.mrf.mxu1 }
 0x669   :  { %v3133_v27 = vadd.f32 %v3067_v59, %v3064_v45 }
 0x66c   :  { %v3124_v61 = vpop.f32.mrf.mxu2 }
 0x66d   :  { %v3125_v29 = vadd.f32 %v3124_v61, %v3095_v10  ;;  %v5004_v61 = vld [vmem:[%s10099_s9 + $0x1] ss:$4 sm:$0x3] }
 0x66e   :  { %v3040_v17 = vpop.f32.mrf.mxu3  ;;  %v3069_v50 = vpop.f32.mrf.mxu0  ;;  %v3200_v59 = vperm.slane %v5004_v61, 1  ;;  %v3199_v45 = vperm.slane %v5004_v61, 0  ;;  %v5020_v61 = vld [vmem:[%s10101_s7 + $0x2b8] sm:$0xff] }
 0x66f   :  { %v3070_v52 = vadd.f32 %v3069_v50, %v3040_v17  ;;  %v3142_v1 = vadd.f32 %v3125_v29, %v3122_v37 }
 0x670   :  { %v3101_v41 = vpop.f32.mrf.mxu1 }
 0x671   :  { %v3134_v35 = vadd.f32 %v3133_v27, %v3070_v52 }
 0x674   :  { %v3127_v19 = vpop.f32.mrf.mxu2 }
 0x675   :  { %v3128_v39 = vadd.f32 %v3127_v19, %v3098_v16 }
 0x676   :  { %v3043_v36 = vpop.f32.mrf.mxu3  ;;  %v3072_v55 = vpop.f32.mrf.mxu0 }
 0x677   :  { %v3073_v2 = vadd.f32 %v3072_v55, %v3043_v36  ;;  %v3143_v28 = vadd.f32 %v3142_v1, %v3128_v39 }
 0x679   :  { %v3135_v42 = vadd.f32 %v3134_v35, %v3073_v2 }
 0x67b   :  { %v3136_v7 = vrot.slane %v3135_v42, 4 }
 0x67c   :  { %v3130_v51 = vpop.f32.mrf.mxu2 }
 0x67d   :  { %v3137_v57 = vadd.f32 %v3136_v7, %v3135_v42  ;;  %v3131_v34 = vadd.f32 %v3130_v51, %v3101_v41 }
 0x67f   :  { %v3138_v6 = vrot.slane %v3137_v57, 2  ;;  %v3144_v53 = vadd.f32 %v3143_v28, %v3131_v34 }
 0x681   :  { %v3139_v8 = vadd.f32 %v3138_v6, %v3137_v57  ;;  %v3145_v0 = vrot.slane %v3144_v53, 4 }
 0x683   :  { %v3140_v44 = vrot.slane %v3139_v8, 1  ;;  %v3146_v49 = vadd.f32 %v3145_v0, %v3144_v53 }
 0x685   :  { %v3141_v14 = vadd.f32 %v3140_v44, %v3139_v8  ;;  %v3147_v54 = vrot.slane %v3146_v49, 2 }
 0x687   :  { %v3151_v33 = vmul.f32 0.001953125, %v3141_v14  ;;  %v3148_v3 = vadd.f32 %v3147_v54, %v3146_v49 }
 0x689   :  { %v3155_v20 = vadd.f32 0.0001, %v3151_v33  ;;  %v3149_v48 = vrot.slane %v3148_v3, 1 }
 0x68b   :  { %5181 = vrsqrt.f32 %v3155_v20  ;;  %v3150_v9 = vadd.f32 %v3149_v48, %v3148_v3  ;;  %vm3163_vm3 = vweird.f32 %v3155_v20  ;;  %v5036_v48 = vld [vmem:[%s10101_s7 + $0x338] sm:$0xff] }
 0x68c   :  { %3625 = vmatpush.msrb.mxu2 %v5036_v48 }
 0x68d   :  { %v3152_v46 = vmul.f32 0.001953125, %v3150_v9  ;;  %v5033_v9 = vld [vmem:[%s10101_s7 + $0x320] sm:$0xff] }
 0x68f   :  { %v3156_v18 = vadd.f32 0.0001, %v3152_v46  ;;  %v5034_v46 = vld [vmem:[%s10101_s7 + $0x328] sm:$0xff] }
 0x690   :  { %3626 = vmatpush.msrb.mxu2 %v5034_v46  ;;  %v5058_v46 = vld [vmem:[%s10101_s7 + $0x3e8] sm:$0xff] }
 0x691   :  { %v5182_v4 = vpop.eup %5181  ;;  %5183 = vrsqrt.f32 %v3156_v18  ;;  %vm3173_vm14 = vweird.f32 %v3156_v18 }
 0x692   :  { %v3158_v40 = vmul.f32 %v5182_v4, %v3155_v20  ;;  %vm3164_vm13 = vweird.f32 %v5182_v4  ;;  %v5035_v20 = vld [vmem:[%s10101_s7 + $0x330] sm:$0xff] }
 0x693   :  { %vm3165_vm9 = vmor %vm3163_vm3, %vm3164_vm13  ;;  %3538 = vmatpush.msra.mxu3 %v5035_v20  ;;  %v3347_v20 = vld [vmem:[%s10101_s7 + $0xf0] sm:$0xff] }
 0x694   :  { %v3159_v5 = vmul.f32 %v5182_v4, %v3158_v40  ;;  %v5029_v40 = vld [vmem:[%s10101_s7 + $0x300] sm:$0xff] }
 0x695   :  { %3539 = vmatpush.msra.mxu3 %v5033_v9  ;;  %v3371_v9 = vld [vmem:[%s10101_s7 + $0x1b0] sm:$0xff] }
 0x696   :  { %v3160_v62 = vmul.f32 0.5, %v3159_v5  ;;  %v5030_v5 = vld [vmem:[%s10101_s7 + $0x308] sm:$0xff] }
 0x697   :  { %v5184_v13 = vpop.eup %5183 }
 0x698   :  { %v3168_v56 = vmul.f32 %v5184_v13, %v3156_v18  ;;  %v3161_v30 = vsub.f32 1.5, %v3160_v62  ;;  %vm3174_vm12 = vweird.f32 %v5184_v13  ;;  %v5031_v18 = vld [vmem:[%s10101_s7 + $0x310] sm:$0xff] }
 0x699   :  { %vm3175_vm1 = vmor %vm3173_vm14, %vm3174_vm12  ;;  %3540 = vmatpush.msra.mxu3 %v5031_v18  ;;  %v5027_v62 = vld [vmem:[%s10101_s7 + $0x2f0] sm:$0xff]  ;;  %v3345_v18 = vld [vmem:[%s10101_s7 + $0xe0] sm:$0xff] }
 0x69a   :  { %v3169_v63 = vmul.f32 %v5184_v13, %v3168_v56  ;;  %v3162_v11 = vmul.f32 %v5182_v4, %v3161_v30  ;;  %v5028_v56 = vld [vmem:[%s10101_s7 + $0x2f8] sm:$0xff]  ;;  %v5025_v30 = vld [vmem:[%s10101_s7 + $0x2e0] sm:$0xff] }
 0x69b   :  { %3541 = vmatpush.msra.mxu3 %v5029_v40  ;;  %v5056_v40 = vld [vmem:[%s10101_s7 + $0x3d8] sm:$0xff] }
 0x69c   :  { %v3170_v15 = vmul.f32 0.5, %v3169_v63  ;;  %v3166_v58 = vsel %vm3165_vm9, %v5182_v4, %v3162_v11  ;;  %v5032_v4 = vld [vmem:[%s10101_s7 + $0x318] sm:$0xff]  ;;  %v5065_v63 = vld [vmem:[%s10101_s7 + $0x420] sm:$0xff]  ;;  %v5063_v11 = vld [vmem:[%s10101_s7 + $0x410] sm:$0xff] }
 0x69d   :  { %3627 = vmatpush.msrb.mxu2 %v5032_v4  ;;  %3542 = vmatpush.msra.mxu3 %v5027_v62  ;;  %v3369_v4 = vld [vmem:[%s10101_s7 + $0x1a0] sm:$0xff]  ;;  %v5054_v62 = vld [vmem:[%s10101_s7 + $0x3c8] sm:$0xff] }
 0x69e   :  { %v3171_v23 = vsub.f32 1.5, %v3170_v15  ;;  %v5026_v15 = vld [vmem:[%s10101_s7 + $0x2e8] sm:$0xff] }
 0x69f   :  { %3628 = vmatpush.msrb.mxu2 %v5030_v5  ;;  %3543 = vmatpush.msra.mxu3 %v5025_v30  ;;  %v3343_v5 = vld [vmem:[%s10101_s7 + $0xd0] sm:$0xff]  ;;  %v5052_v30 = vld [vmem:[%s10101_s7 + $0x3b8] sm:$0xff] }
 0x6a0   :  { %v3172_v31 = vmul.f32 %v5184_v13, %v3171_v23  ;;  %v5023_v23 = vld [vmem:[%s10101_s7 + $0x2d0] sm:$0xff] }
 0x6a1   :  { %3629 = vmatpush.msrb.mxu2 %v5028_v56  ;;  %3544 = vmatpush.msra.mxu3 %v5023_v23  ;;  %v3341_v56 = vld [vmem:[%s10101_s7 + $0xc0] sm:$0xff]  ;;  %v3339_v23 = vld [vmem:[%s10101_s7 + $0xb0] sm:$0xff] }
 0x6a2   :  { %v3176_v43 = vsel %vm3175_vm1, %v5184_v13, %v3172_v31  ;;  %v5067_v13 = vld [vmem:[%s10101_s7 + $0x430] sm:$0xff]  ;;  %v5024_v31 = vld [vmem:[%s10101_s7 + $0x2d8] sm:$0xff] }
 0x6a3   :  { %v3179_v12 = vrot.slane %v3176_v43, 7  ;;  %3567 = vmatpush.msrb.mxu0 %v5067_v13  ;;  %3630 = vmatpush.msrb.mxu2 %v5026_v15  ;;  %v5021_v43 = vld [vmem:[%s10101_s7 + $0x2c0] sm:$0xff]  ;;  %v3367_v13 = vld [vmem:[%s10101_s7 + $0x190] sm:$0xff]  ;;  %v5074_v15 = vld [vmem:[%s10101_s7 + $0x468] sm:$0xff] }
 0x6a4   :  { %3545 = vmatpush.msra.mxu3 %v5021_v43  ;;  %v3363_v43 = vld [vmem:[%s10101_s7 + $0x170] sm:$0xff] }
 0x6a5   :  { %v3180_v10 = vsel %vm404_vm4, %v3166_v58, %v3179_v12  ;;  %3568 = vmatpush.msrb.mxu0 %v5065_v63  ;;  %v5061_v12 = vld [vmem:[%s10101_s7 + $0x400] sm:$0xff]  ;;  %3631 = vmatpush.msrb.mxu2 %v5024_v31  ;;  %v5019_v58 = vld [vmem:[%s10101_s7 + $0x2b0] sm:$0xff] }
 0x6a6   :  { %v3182_v17 = vmul.f32 %v5003_v38, %v3180_v10  ;;  %v5022_v38 = vld [vmem:[%s10101_s7 + $0x2c8] sm:$0xff]  ;;  %v5059_v10 = vld [vmem:[%s10101_s7 + $0x3f0] sm:$0xff]  ;;  %3546 = vmatpush.msra.mxu3 %v5019_v58  ;;  %v3365_v63 = vld [vmem:[%s10101_s7 + $0x180] sm:$0xff] }
 0x6a7   :  { %3569 = vmatpush.msrb.mxu0 %v5063_v11  ;;  %3632 = vmatpush.msrb.mxu2 %v5022_v38  ;;  %v3337_v38 = vld [vmem:[%s10101_s7 + $0xa0] sm:$0xff] }
 0x6a8   :  { %v3185_v50 = vperm.slane %v3182_v17, 1  ;;  %v3184_v16 = vperm.slane %v3182_v17, 0  ;;  %v5017_v17 = vld [vmem:[%s10101_s7 + $0x2a0] sm:$0xff] }
 0x6a9   :  { %3570 = vmatpush.msrb.mxu0 %v5061_v12  ;;  %3633 = vmatpush.msrb.mxu2 %v5020_v61  ;;  %v5050_v12 = vld [vmem:[%s10101_s7 + $0x3a8] sm:$0xff]  ;;  %v3361_v61 = vld [vmem:[%s10101_s7 + $0x160] sm:$0xff] }
 0x6aa   :  { %v3189_v52 = vmul.f32 %v3185_v50, %v8533_v25  ;;  %v3188_v19 = vmul.f32 %v3184_v16, %v8528_v60  ;;  %v3190_v27 = vmul.f32 %v3184_v16, %v8536_v32  ;;  %v3191_v36 = vmul.f32 %v3185_v50, %v8543_v47  ;;  %3547 = vmatpush.msra.mxu3 %v5017_v17  ;;  %v5048_v17 = vld [vmem:[%s10101_s7 + $0x398] sm:$0xff] }
 0x6ab   :  { %v3192_v25 = vmul.f32 %v3184_v16, %v8546_v24  ;;  %v3194_v32 = vmul.f32 %v3184_v16, %v8556_v22  ;;  %v3193_v47 = vmul.f32 %v3185_v50, %v8553_v21  ;;  %v3195_v8 = vmul.f32 %v3185_v50, %v8563_v26  ;;  %v5057_v50 = vld [vmem:[%s10101_s7 + $0x3e0] sm:$0xff]  ;;  %3571 = vmatpush.msrb.mxu0 %v5059_v10  ;;  %v5055_v16 = vld [vmem:[%s10101_s7 + $0x3d0] sm:$0xff] }
 0x6ac   :  { %v3204_v55 = vadd.f32 %v3200_v59, %v3189_v52  ;;  %v3203_v29 = vadd.f32 %v3199_v45, %v3188_v19  ;;  %v3205_v35 = vadd.f32 %v3199_v45, %v3190_v27  ;;  %v3206_v2 = vadd.f32 %v3200_v59, %v3191_v36  ;;  %v5016_v52 = vld [vmem:[%s10101_s7 + $0x298] sm:$0xff]  ;;  %v5013_v19 = vld [vmem:[%s10101_s7 + $0x280] sm:$0xff]  ;;  %v5014_v36 = vld [vmem:[%s10101_s7 + $0x288] sm:$0xff] }
 0x6ad   :  { %v3207_v57 = vadd.f32 %v3199_v45, %v3192_v25  ;;  %v3209_v34 = vadd.f32 %v3199_v45, %v3194_v32  ;;  %v3208_v6 = vadd.f32 %v3200_v59, %v3193_v47  ;;  %v3210_v44 = vadd.f32 %v3200_v59, %v3195_v8  ;;  %v5018_v59 = vld [vmem:[%s10101_s7 + $0x2a8] sm:$0xff]  ;;  %3572 = vmatpush.msrb.mxu0 %v5057_v50  ;;  %v5015_v45 = vld [vmem:[%s10101_s7 + $0x290] sm:$0xff]  ;;  %v5053_v27 = vld [vmem:[%s10101_s7 + $0x3c0] sm:$0xff] }
 0x6ae   :  { %v3212_v37 = vmax.f32 %v3204_v55, 0.0  ;;  %v3211_v39 = vmax.f32 %v3203_v29, 0.0  ;;  %v3213_v42 = vmax.f32 %v3205_v35, 0.0  ;;  %v3214_v51 = vmax.f32 %v3206_v2, 0.0  ;;  %3634 = vmatpush.msrb.mxu2 %v5018_v59  ;;  %3548 = vmatpush.msra.mxu3 %v5015_v45  ;;  %v5011_v55 = vld [vmem:[%s10101_s7 + $0x270] sm:$0xff]  ;;  %v5012_v35 = vld [vmem:[%s10101_s7 + $0x278] sm:$0xff] }
 0x6af   :  { %v3215_v0 = vmax.f32 %v3207_v57, 0.0  ;;  %v3217_v24 = vmax.f32 %v3209_v34, 0.0  ;;  %v3216_v22 = vmax.f32 %v3208_v6, 0.0  ;;  %v3218_v54 = vmax.f32 %v3210_v44, 0.0  ;;  %3573 = vmatpush.msrb.mxu0 %v5055_v16  ;;  %v5051_v29 = vld [vmem:[%s10101_s7 + $0x3b0] sm:$0xff]  ;;  %v5049_v2 = vld [vmem:[%s10101_s7 + $0x3a0] sm:$0xff] }
 0x6b0   :  { %v3228_v1 = vrot.slane %v3212_v37, 7  ;;  %v3227_v7 = vrot.slane %v3211_v39, 7  ;;  %v3229_v41 = vrot.slane %v3213_v42, 7  ;;  %v3231_v28 = vrot.slane %v3214_v51, 7  ;;  %3635 = vmatpush.msrb.mxu2 %v5016_v52  ;;  %3549 = vmatpush.msra.mxu3 %v5013_v19  ;;  %v5009_v37 = vld [vmem:[%s10101_s7 + $0x260] sm:$0xff]  ;;  %v5010_v42 = vld [vmem:[%s10101_s7 + $0x268] sm:$0xff] }
 0x6b1   :  { %v3233_v49 = vrot.slane %v3215_v0, 7  ;;  %v3235_v21 = vrot.slane %v3217_v24, 7  ;;  %v3234_v14 = vrot.slane %v3216_v22, 7  ;;  %v3237_v33 = vrot.slane %v3218_v54, 7  ;;  %3574 = vmatpush.msrb.mxu0 %v5053_v27  ;;  %v5005_v51 = vld [vmem:[%s10101_s7 + $0x240] sm:$0xff]  ;;  %v5006_v25 = vld [vmem:[%s10101_s7 + $0x248] sm:$0xff] }
 0x6b2   :  { %3241 = vrot.lane.b32.xlu2 %v3228_v1, %s5190_s20  ;;  %3239 = vrot.lane.b32.xlu0 %v3227_v7, %s5190_s20  ;;  %v3230_v60 = vsel %vm404_vm4, %v3227_v7, %v3229_v41  ;;  %v3232_v53 = vsel %vm404_vm4, %v3228_v1, %v3231_v28  ;;  %v5007_v1 = vld [vmem:[%s10101_s7 + $0x250] sm:$0xff]  ;;  %v5041_v6 = vld [vmem:[%s10101_s7 + $0x360] sm:$0xff] }
 0x6b3   :  { %3243 = vrot.lane.b32.xlu1 %v3230_v60, %s5190_s20  ;;  %v3236_v26 = vsel %vm404_vm4, %v3233_v49, %v3235_v21  ;;  %v3238_v3 = vsel %vm404_vm4, %v3234_v14, %v3237_v33  ;;  %3636 = vmatpush.msrb.mxu2 %v5014_v36  ;;  %v5047_v7 = vld [vmem:[%s10101_s7 + $0x390] sm:$0xff]  ;;  %v5045_v60 = vld [vmem:[%s10101_s7 + $0x380] sm:$0xff]  ;;  %v5066_v8 = vld [vmem:[%s10101_s7 + $0x428] sm:$0xff] }
 0x6b4   :  { %3575 = vmatpush.msrb.mxu0 %v5051_v29  ;;  %3550 = vmatpush.msra.mxu3 %v5011_v55  ;;  %v5043_v32 = vld [vmem:[%s10101_s7 + $0x370] sm:$0xff]  ;;  %v3377_v0 = vld [vmem:[%s10101_s7 + $0x1e0] sm:$0xff]  ;;  %v5064_v44 = vld [vmem:[%s10101_s7 + $0x418] sm:$0xff] }
 0x6b5   :  { %3637 = vmatpush.msrb.mxu2 %v5012_v35  ;;  %v5075_v47 = vld [vmem:[%s10101_s7 + $0x470] sm:$0xff]  ;;  %v5062_v54 = vld [vmem:[%s10101_s7 + $0x408] sm:$0xff]  ;;  %v3333_v45 = vld [vmem:[%s10101_s7 + $0x80] sm:$0xff] }
 0x6b6   :  { %3576 = vmatpush.msrb.mxu0 %v5049_v2  ;;  %3551 = vmatpush.msra.mxu3 %v5009_v37  ;;  %v3379_v57 = vld [vmem:[%s10101_s7 + $0x1f0] sm:$0xff]  ;;  %v5046_v16 = vld [vmem:[%s10101_s7 + $0x388] sm:$0xff]  ;;  %v3357_v52 = vld [vmem:[%s10101_s7 + $0x140] sm:$0xff] }
 0x6b7   :  { %3638 = vmatpush.msrb.mxu2 %v5010_v42  ;;  %3608 = vmatpush.msrb.mxu1 %v5075_v47  ;;  %v5039_v24 = vld [vmem:[%s10101_s7 + $0x350] sm:$0xff]  ;;  %v5044_v19 = vld [vmem:[%s10101_s7 + $0x378] sm:$0xff]  ;;  %v5042_v35 = vld [vmem:[%s10101_s7 + $0x368] sm:$0xff] }
 0x6b8   :  { %3577 = vmatpush.msrb.mxu0 %v5047_v7  ;;  %3552 = vmatpush.msra.mxu3 %v5007_v1  ;;  %v5071_v22 = vld [vmem:[%s10101_s7 + $0x450] sm:$0xff]  ;;  %v5072_v27 = vld [vmem:[%s10101_s7 + $0x458] sm:$0xff]  ;;  %v3329_v2 = vld [vmem:[%s10101_s7 + $0x60] sm:$0xff] }
 0x6b9   :  { %v3335_v50 = vld [vmem:[%s10101_s7 + $0x90] sm:$0xff]  ;;  %v3353_v1 = vld [vmem:[%s10101_s7 + $0x120] sm:$0xff]  ;;  %v5040_v7 = vld [vmem:[%s10101_s7 + $0x358] sm:$0xff] }
 0x6ba   :  { %3249 = vrot.lane.b32.xlu2 %v3231_v28, %s5190_s20  ;;  %3245 = vrot.lane.b32.xlu0 %v3232_v53, %s5190_s20  ;;  %v5068_v28 = vld [vmem:[%s10101_s7 + $0x438] sm:$0xff]  ;;  %v5073_v53 = vld [vmem:[%s10101_s7 + $0x460] sm:$0xff] }
 0x6bb   :  { %3247 = vrot.lane.b32.xlu1 %v3229_v41, %s5190_s20  ;;  %v5008_v41 = vld [vmem:[%s10101_s7 + $0x258] sm:$0xff]  ;;  %3578 = vmatpush.msrb.mxu0 %v5045_v60  ;;  %v3359_v59 = vld [vmem:[%s10101_s7 + $0x150] sm:$0xff] }
 0x6bc   :  { %3639 = vmatpush.msrb.mxu2 %v5008_v41  ;;  %3553 = vmatpush.msra.mxu3 %v5005_v51  ;;  %v3331_v36 = vld [vmem:[%s10101_s7 + $0x70] sm:$0xff] }
 0x6bd   :  { %3579 = vmatpush.msrb.mxu0 %v5043_v32  ;;  %3609 = vmatpush.msrb.mxu1 %v5073_v53  ;;  %v3355_v29 = vld [vmem:[%s10101_s7 + $0x130] sm:$0xff] }
 0x6be   :  { %3640 = vmatpush.msrb.mxu2 %v5006_v25  ;;  %3654 = vmatpush.msrb.mxu3 %v5068_v28  ;;  %v3327_v32 = vld [vmem:[%s10101_s7 + $0x50] sm:$0xff] }
 0x6bf   :  { %3580 = vmatpush.msrb.mxu0 %v5041_v6  ;;  %3610 = vmatpush.msrb.mxu1 %v5071_v22 }
 0x6c0   :  { %3751 = vmatpush.msra.mxu2 %v3379_v57  ;;  %3655 = vmatpush.msrb.mxu3 %v5066_v8  ;;  %v3351_v57 = vld [vmem:[%s10101_s7 + $0x110] sm:$0xff]  ;;  %v3325_v8 = vld [vmem:[%s10101_s7 + $0x40] sm:$0xff] }
 0x6c1   :  { %3581 = vmatpush.msrb.mxu0 %v5039_v24 }
 0x6c2   :  { %3253 = vrot.lane.b32.xlu2 %v3234_v14, %s5190_s20  ;;  %3251 = vrot.lane.b32.xlu0 %v3233_v49, %s5190_s20  ;;  %v3375_v49 = vld [vmem:[%s10101_s7 + $0x1d0] sm:$0xff]  ;;  %v5069_v14 = vld [vmem:[%s10101_s7 + $0x440] sm:$0xff] }
 0x6c3   :  { %3255 = vrot.lane.b32.xlu1 %v3236_v26, %s5190_s20  ;;  %3752 = vmatpush.msra.mxu2 %v3377_v0  ;;  %v3373_v26 = vld [vmem:[%s10101_s7 + $0x1c0] sm:$0xff] }
 0x6c4   :  { %3656 = vmatpush.msrb.mxu3 %v5064_v44  ;;  %3611 = vmatpush.msrb.mxu1 %v5069_v14  ;;  %v3349_v0 = vld [vmem:[%s10101_s7 + $0x100] sm:$0xff]  ;;  %v5070_v44 = vld [vmem:[%s10101_s7 + $0x448] sm:$0xff] }
 0x6c5   :  { %3753 = vmatpush.msra.mxu2 %v3375_v49  ;;  %v3323_v49 = vld [vmem:[%s10101_s7 + $0x30] sm:$0xff] }
 0x6c6   :  { %3657 = vmatpush.msrb.mxu3 %v5062_v54  ;;  %3722 = vmatpush.msra.mxu1 %v3347_v20 }
 0x6c7   :  { %3754 = vmatpush.msra.mxu2 %v3373_v26 }
 0x6c8   :  { %3723 = vmatpush.msra.mxu1 %v3345_v18 }
 0x6c9   :  { %3755 = vmatpush.msra.mxu2 %v3371_v9 }
 0x6ca   :  { %3261 = vrot.lane.b32.xlu2 %v3237_v33, %s5190_s20  ;;  %3257 = vrot.lane.b32.xlu0 %v3238_v3, %s5190_s20  ;;  %v5060_v33 = vld [vmem:[%s10101_s7 + $0x3f8] sm:$0xff] }
 0x6cb   :  { %3259 = vrot.lane.b32.xlu1 %v3235_v21, %s5190_s20  ;;  %v5037_v21 = vld [vmem:[%s10101_s7 + $0x340] sm:$0xff]  ;;  %v5076_v3 = vld [vmem:[%s10101_s7 + $0x478] sm:$0xff]  ;;  %3658 = vmatpush.msrb.mxu3 %v5060_v33 }
 0x6cc   :  { %3582 = vmatpush.msrb.mxu0 %v5037_v21  ;;  %3756 = vmatpush.msra.mxu2 %v3369_v4  ;;  %v3387_v21 = vld [vmem:[%s10101_s7 + $0x230] sm:$0xff] }
 0x6cd   :  { %3659 = vmatpush.msrb.mxu3 %v5058_v46  ;;  %3724 = vmatpush.msra.mxu1 %v3343_v5  ;;  %v3321_v46 = vld [vmem:[%s10101_s7 + $0x20] sm:$0xff] }
 0x6ce   :  { %3695 = vmatpush.msra.mxu0 %v5076_v3  ;;  %3757 = vmatpush.msra.mxu2 %v3367_v13  ;;  %v3319_v13 = vld [vmem:[%s10101_s7 + $0x10] sm:$0xff] }
 0x6cf   :  { %3660 = vmatpush.msrb.mxu3 %v5056_v40  ;;  %3725 = vmatpush.msra.mxu1 %v3341_v56 }
 0x6d0   :  { %3758 = vmatpush.msra.mxu2 %v3365_v63  ;;  %3696 = vmatpush.msra.mxu0 %v5074_v15  ;;  %v3317_v63 = vld [vmem:[%s10101_s7] sm:$0xff]  ;;  %v3348_v15 = vld [vmem:[%s10101_s7 + $0xf8] sm:$0xff] }
 0x6d1   :  { %3661 = vmatpush.msrb.mxu3 %v5054_v62  ;;  %3726 = vmatpush.msra.mxu1 %v3339_v23 }
 0x6d2   :  { %3759 = vmatpush.msra.mxu2 %v3363_v43  ;;  %3697 = vmatpush.msra.mxu0 %v5072_v27  ;;  %v3380_v43 = vld [vmem:[%s10101_s7 + $0x1f8] sm:$0xff] }
 0x6d3   :  { %3662 = vmatpush.msrb.mxu3 %v5052_v30  ;;  %3727 = vmatpush.msra.mxu1 %v3337_v38  ;;  %v3385_v30 = vld [vmem:[%s10101_s7 + $0x220] sm:$0xff] }
 0x6d4   :  { %3760 = vmatpush.msra.mxu2 %v3361_v61  ;;  %3698 = vmatpush.msra.mxu0 %v5070_v44  ;;  %v3336_v44 = vld [vmem:[%s10101_s7 + $0x98] sm:$0xff] }
 0x6d5   :  { %3663 = vmatpush.msrb.mxu3 %v5050_v12  ;;  %3728 = vmatpush.msra.mxu1 %v3335_v50  ;;  %v3346_v12 = vld [vmem:[%s10101_s7 + $0xe8] sm:$0xff] }
 0x6d6   :  { %3761 = vmatpush.msra.mxu2 %v3359_v59 }
 0x6d7   :  { %3664 = vmatpush.msrb.mxu3 %v5048_v17  ;;  %3729 = vmatpush.msra.mxu1 %v3333_v45 }
 0x6d8   :  { %3762 = vmatpush.msra.mxu2 %v3357_v52  ;;  %v3378_v52 = vld [vmem:[%s10101_s7 + $0x1e8] sm:$0xff] }
 0x6d9   :  { %3665 = vmatpush.msrb.mxu3 %v5046_v16  ;;  %3730 = vmatpush.msra.mxu1 %v3331_v36 }
 0x6da   :  { %3763 = vmatpush.msra.mxu2 %v3355_v29  ;;  %v3376_v29 = vld [vmem:[%s10101_s7 + $0x1d8] sm:$0xff] }
 0x6db   :  { %3666 = vmatpush.msrb.mxu3 %v5044_v19  ;;  %3731 = vmatpush.msra.mxu1 %v3329_v2  ;;  %v3344_v19 = vld [vmem:[%s10101_s7 + $0xd8] sm:$0xff]  ;;  %v3342_v2 = vld [vmem:[%s10101_s7 + $0xc8] sm:$0xff] }
 0x6dc   :  { %3764 = vmatpush.msra.mxu2 %v3353_v1 }
 0x6dd   :  { %3667 = vmatpush.msrb.mxu3 %v5042_v35  ;;  %3732 = vmatpush.msra.mxu1 %v3327_v32  ;;  %v3338_v32 = vld [vmem:[%s10101_s7 + $0xa8] sm:$0xff] }
 0x6de   :  { %3765 = vmatpush.msra.mxu2 %v3351_v57 }
 0x6df   :  { %3668 = vmatpush.msrb.mxu3 %v5040_v7  ;;  %3733 = vmatpush.msra.mxu1 %v3325_v8  ;;  %v3340_v7 = vld [vmem:[%s10101_s7 + $0xb8] sm:$0xff] }
 0x6e0   :  { %3766 = vmatpush.msra.mxu2 %v3349_v0  ;;  %v3370_v0 = vld [vmem:[%s10101_s7 + $0x1a8] sm:$0xff] }
 0x6e1   :  { %3734 = vmatpush.msra.mxu1 %v3323_v49  ;;  %v3368_v49 = vld [vmem:[%s10101_s7 + $0x198] sm:$0xff] }
 0x6e3   :  { %3735 = vmatpush.msra.mxu1 %v3321_v46 }
 0x6e5   :  { %3736 = vmatpush.msra.mxu1 %v3319_v13  ;;  %v3382_v13 = vld [vmem:[%s10101_s7 + $0x208] sm:$0xff] }
 0x6e7   :  { %3737 = vmatpush.msra.mxu1 %v3317_v63  ;;  %v5123_v63 = vld [vmem:[%s10101_s7 + $0x570] sm:$0xff] }
 0x70c   :  { %v8709_v39 = vpop.permute.xlu2 %3241 }
 0x70d   :  { %3289 = vst.msk [vmem:[#allocation3 + $0x10] sm:$0xfe] %vm64_vm2, %v8709_v39 }
 0x714   :  { %v8746_v34 = vpop.permute.xlu2 %3249  ;;  %v3391_v22 = vld [vmem:[#allocation3 + $0x10] sm:$0xfe] }
 0x715   :  { %3295 = vst.msk [vmem:[#allocation3 + $0x40] sm:$0x1] %vm68_vm15, %v8746_v34  ;;  %v3425_v3 = vrot.slane %v3391_v22, 1 }
 0x71c   :  { %v8795_v48 = vpop.permute.xlu2 %3253  ;;  %v3394_v62 = vld [vmem:[#allocation3 + $0x40] sm:$0x1] }
 0x71d   :  { %3298 = vst.msk [vmem:[#allocation3 + $0x58] sm:$0xfe] %vm64_vm2, %v8795_v48 }
 0x724   :  { %v8838_v11 = vpop.permute.xlu2 %3261  ;;  %v3240_v31 = vpop.permute.xlu0 %3239  ;;  %v3397_v35 = vld [vmem:[#allocation3 + $0x58] sm:$0xfe] }
 0x725   :  { %3304 = vst.msk [vmem:[#allocation3 + $0x88] sm:$0x1] %vm68_vm15, %v8838_v11  ;;  %v3263_v58 = vsel %vm66_vm0, %v3240_v31, %v8709_v39  ;;  %v3244_v10 = vpop.permute.xlu1 %3243 }
 0x726   :  { %3287 = vst.msk [vmem:[#allocation3] sm:$0xfe] %vm1864_vm11, %v3240_v31 }
 0x727   :  { %3288 = vst [vmem:[#allocation3 + $0x8] sm:$0xfe] %v3263_v58 }
 0x728   :  { %3290 = vst.msk [vmem:[#allocation3 + $0x18] sm:$0xff] %vm1868_vm10, %v3244_v10 }
 0x72c   :  { %v3246_v55 = vpop.permute.xlu0 %3245 }
 0x72d   :  { %v8895_v37 = vsel %vm66_vm0, %v3244_v10, %v3246_v55  ;;  %3292 = vst.msk [vmem:[#allocation3 + $0x28] sm:$0xff] %vm66_vm0, %v3246_v55  ;;  %v3248_v39 = vpop.permute.xlu1 %3247  ;;  %v3389_v42 = vld [vmem:[#allocation3] sm:$0xfe]  ;;  %v3432_v10 = vrot.slane %v3394_v62, 1  ;;  %v3362_v62 = vld [vmem:[%s10101_s7 + $0x168] sm:$0xff] }
 0x72e   :  { %v3265_v41 = vsel %vm66_vm0, %v3248_v39, %v8746_v34  ;;  %v3419_v51 = vrot.slane %v3389_v42, 1  ;;  %v3390_v60 = vld [vmem:[#allocation3 + $0x8] sm:$0xfe]  ;;  %v3423_v25 = vrot.slane %v8895_v37, 1  ;;  %3293 = vst.msk [vmem:[#allocation3 + $0x30] sm:$0x1] %vm1872_vm6, %v3248_v39 }
 0x72f   :  { %v8911_v47 = vld [vmem:[#allocation3 + $0x18] sm:$0xff]  ;;  %v3422_v28 = vrot.slane %v3390_v60, 1  ;;  %3294 = vst [vmem:[#allocation3 + $0x38] sm:$0x1] %v3265_v41  ;;  %v3383_v42 = vld [vmem:[%s10101_s7 + $0x210] sm:$0xff]  ;;  %v3440_v41 = vrot.slane %v3397_v35, 1 }
 0x730   :  { %v5038_v34 = vld [vmem:[%s10101_s7 + $0x348] sm:$0xff]  ;;  %v3420_v6 = vrot.slane %v8911_v47, 1 }
 0x731   :  { %v8921_v53 = vsel %vm576_vm5, %v3422_v28, %v3423_v25  ;;  %3669 = vmatpush.msrb.mxu3 %v5038_v34  ;;  %v3374_v39 = vld [vmem:[%s10101_s7 + $0x1c8] sm:$0xff] }
 0x732   :  { %v3421_v24 = vsel %vm576_vm5, %v3419_v51, %v3420_v6  ;;  %3583 = vmatmul.f32.vlgmr.msrb.gmra.mxu0 %v8921_v53  ;;  %v3318_v35 = vld [vmem:[%s10101_s7 + $0x8] sm:$0xff] }
 0x733   :  { %3554 = vmatmul.f32.vlgmr.msra.gmra.mxu3 %v3421_v24  ;;  %3641 = vmatmul.f32.vlgmr.msrb.gmra.mxu2 %v3421_v24  ;;  %v3400_v24 = vld [vmem:[#allocation3 + $0x88] sm:$0x1] }
 0x734   :  { %v3252_v14 = vpop.permute.xlu0 %3251  ;;  %v8940_v54 = vld [vmem:[#allocation3 + $0x28] sm:$0xff]  ;;  %3792 = vmatpush.msra.mxu3 %v3387_v21  ;;  %3809 = vmatpush.msrb.mxu0 %v3348_v15  ;;  %v3381_v21 = vld [vmem:[%s10101_s7 + $0x200] sm:$0xff] }
 0x735   :  { %v3266_v26 = vsel %vm66_vm0, %v3252_v14, %v8795_v48  ;;  %3296 = vst.msk [vmem:[#allocation3 + $0x48] sm:$0xfe] %vm1864_vm11, %v3252_v14  ;;  %v3256_v33 = vpop.permute.xlu1 %3255  ;;  %v3426_v20 = vrot.slane %v8940_v54, 1  ;;  %v3392_v9 = vld [vmem:[#allocation3 + $0x30] sm:$0x1]  ;;  %v3334_v14 = vld [vmem:[%s10101_s7 + $0x88] sm:$0xff] }
 0x736   :  { %3297 = vst [vmem:[#allocation3 + $0x50] sm:$0xfe] %v3266_v26  ;;  %v3428_v48 = vrot.slane %v3392_v9, 1  ;;  %v3393_v4 = vld [vmem:[#allocation3 + $0x38] sm:$0x1]  ;;  %3793 = vmatpush.msra.mxu3 %v3385_v30  ;;  %3810 = vmatpush.msrb.mxu0 %v3346_v12  ;;  %v3388_v26 = vld [vmem:[%s10101_s7 + $0x238] sm:$0xff] }
 0x737   :  { %3299 = vst.msk [vmem:[#allocation3 + $0x60] sm:$0xff] %vm1868_vm10, %v3256_v33  ;;  %v8951_v18 = vsel %vm576_vm5, %v3425_v3, %v3426_v20  ;;  %v3430_v40 = vrot.slane %v3393_v4, 1  ;;  %v8995_v27 = vsel %vm576_vm5, %v3426_v20, %v3432_v10  ;;  %v3386_v3 = vld [vmem:[%s10101_s7 + $0x228] sm:$0xff]  ;;  %v3332_v9 = vld [vmem:[%s10101_s7 + $0x78] sm:$0xff]  ;;  %3879 = vmatpush.msrb.mxu2 %v3388_v26  ;;  %v5121_v15 = vld [vmem:[%s10101_s7 + $0x560] sm:$0xff] }
 0x738   :  { %5077 = vmatmul.msk.f32.vlgmr.msrb.gmra.mxu1 %vm447_vm7, %v8951_v18  ;;  %v3429_v5 = vsel %vm576_vm5, %v3420_v6, %v3428_v48  ;;  %3811 = vmatpush.msrb.mxu0 %v3344_v19  ;;  %v3366_v20 = vld [vmem:[%s10101_s7 + $0x188] sm:$0xff]  ;;  %v3384_v48 = vld [vmem:[%s10101_s7 + $0x218] sm:$0xff]  ;;  %v5119_v12 = vld [vmem:[%s10101_s7 + $0x550] sm:$0xff] }
 0x739   :  { %v8960_v56 = vsel %vm576_vm5, %v3423_v25, %v3430_v40  ;;  %3838 = vmatpush.msrb.mxu1 %v3380_v43  ;;  %3794 = vmatpush.msra.mxu3 %v3383_v42  ;;  %v3372_v25 = vld [vmem:[%s10101_s7 + $0x1b8] sm:$0xff]  ;;  %v5122_v43 = vld [vmem:[%s10101_s7 + $0x568] sm:$0xff]  ;;  %v5155_v42 = vld [vmem:[%s10101_s7 + $0x670] sm:$0xff] }
 0x73a   :  { %3586 = vmatmul.f32.gmra.mxu0 %v8960_v56  ;;  %3880 = vmatpush.msrb.mxu2 %v3386_v3  ;;  %v3364_v4 = vld [vmem:[%s10101_s7 + $0x178] sm:$0xff]  ;;  %v5143_v26 = vld [vmem:[%s10101_s7 + $0x610] sm:$0xff] }
 0x73b   :  { %3557 = vmatmul.f32.gmra.mxu3 %v3429_v5  ;;  %3644 = vmatmul.f32.gmra.mxu2 %v3429_v5  ;;  %v9077_v40 = vld [vmem:[#allocation3 + $0x8] sm:$0xff]  ;;  %v3330_v5 = vld [vmem:[%s10101_s7 + $0x68] sm:$0xff] }
 0x73c   :  { %v3258_v23 = vpop.permute.xlu0 %3257  ;;  %v3395_v31 = vld [vmem:[#allocation3 + $0x48] sm:$0xfe]  ;;  %3839 = vmatpush.msrb.mxu1 %v3378_v52  ;;  %3812 = vmatpush.msrb.mxu0 %v3342_v2  ;;  %v3354_v52 = vld [vmem:[%s10101_s7 + $0x128] sm:$0xff] }
 0x73d   :  { %v8979_v38 = vsel %vm66_vm0, %v3256_v33, %v3258_v23  ;;  %3301 = vst.msk [vmem:[#allocation3 + $0x70] sm:$0xff] %vm66_vm0, %v3258_v23  ;;  %v3260_v58 = vpop.permute.xlu1 %3259  ;;  %v3434_v61 = vrot.slane %v3395_v31, 1  ;;  %v3396_v17 = vld [vmem:[#allocation3 + $0x50] sm:$0xfe]  ;;  %v3447_v33 = vrot.slane %v3400_v24, 1  ;;  %3795 = vmatpush.msra.mxu3 %v3381_v21  ;;  %3881 = vmatpush.msrb.mxu2 %v3384_v48  ;;  %v3328_v30 = vld [vmem:[%s10101_s7 + $0x58] sm:$0xff] }
 0x73e   :  { %v3268_v50 = vsel %vm66_vm0, %v3260_v58, %v8838_v11  ;;  %v8984_v59 = vld [vmem:[#allocation3 + $0x60] sm:$0xff]  ;;  %v3437_v16 = vrot.slane %v3396_v17, 1  ;;  %v3438_v45 = vrot.slane %v8979_v38, 1  ;;  %3302 = vst.msk [vmem:[#allocation3 + $0x78] sm:$0x1] %vm1872_vm6, %v3260_v58  ;;  %3840 = vmatpush.msrb.mxu1 %v3376_v29  ;;  %3813 = vmatpush.msrb.mxu0 %v3340_v7  ;;  %v3326_v23 = vld [vmem:[%s10101_s7 + $0x48] sm:$0xff] }
 0x73f   :  { %v3435_v11 = vrot.slane %v8984_v59, 1  ;;  %3303 = vst [vmem:[#allocation3 + $0x80] sm:$0x1] %v3268_v50  ;;  %3882 = vmatpush.msrb.mxu2 %v3382_v13  ;;  %v9110_v31 = vld [vmem:[#allocation3] sm:$0xff]  ;;  %v3358_v58 = vld [vmem:[%s10101_s7 + $0x148] sm:$0xff]  ;;  %v3324_v10 = vld [vmem:[%s10101_s7 + $0x38] sm:$0xff] }
 0x740   :  { %5078 = vmatmul.msk.f32.gmra.mxu1 %vm447_vm7, %v8995_v27  ;;  %v9002_v55 = vsel %vm576_vm5, %v3437_v16, %v3438_v45  ;;  %3814 = vmatpush.msrb.mxu0 %v3338_v32  ;;  %v3356_v17 = vld [vmem:[%s10101_s7 + $0x138] sm:$0xff]  ;;  %v5117_v50 = vld [vmem:[%s10101_s7 + $0x540] sm:$0xff]  ;;  %v3322_v16 = vld [vmem:[%s10101_s7 + $0x28] sm:$0xff] }
 0x741   :  { %v3436_v36 = vsel %vm576_vm5, %v3434_v61, %v3435_v11  ;;  %3841 = vmatpush.msrb.mxu1 %v3374_v39  ;;  %v5120_v61 = vld [vmem:[%s10101_s7 + $0x558] sm:$0xff]  ;;  %v9163_v29 = vld [vmem:[#allocation3 + $0x50] sm:$0xff]  ;;  %v5114_v2 = vld [vmem:[%s10101_s7 + $0x528] sm:$0xff] }
 0x742   :  { %3589 = vmatmul.f32.gmra.mxu0 %v9002_v55  ;;  %v3320_v19 = vld [vmem:[%s10101_s7 + $0x18] sm:$0xff]  ;;  %v3350_v39 = vld [vmem:[%s10101_s7 + $0x108] sm:$0xff]  ;;  %v5111_v7 = vld [vmem:[%s10101_s7 + $0x510] sm:$0xff] }
 0x743   :  { %3560 = vmatmul.f32.gmra.mxu3 %v3436_v36  ;;  %3647 = vmatmul.f32.gmra.mxu2 %v3436_v36  ;;  %v3352_v36 = vld [vmem:[%s10101_s7 + $0x118] sm:$0xff]  ;;  %v5151_v32 = vld [vmem:[%s10101_s7 + $0x650] sm:$0xff]  ;;  %v5102_v21 = vld [vmem:[%s10101_s7 + $0x4c8] sm:$0xff] }
 0x744   :  { %v9016_v1 = vld [vmem:[#allocation3 + $0x70] sm:$0xff]  ;;  %3842 = vmatpush.msrb.mxu1 %v3372_v25  ;;  %3815 = vmatpush.msrb.mxu0 %v3336_v44  ;;  %v9196_v25 = vld [vmem:[#allocation3 + $0x48] sm:$0xff]  ;;  %v5103_v24 = vld [vmem:[%s10101_s7 + $0x4d0] sm:$0xff] }
 0x745   :  { %v3441_v51 = vrot.slane %v9016_v1, 1  ;;  %v3398_v60 = vld [vmem:[#allocation3 + $0x78] sm:$0x1]  ;;  %v5104_v44 = vld [vmem:[%s10101_s7 + $0x4d8] sm:$0xff] }
 0x746   :  { %v3443_v57 = vrot.slane %v3398_v60, 1  ;;  %v3399_v34 = vld [vmem:[#allocation3 + $0x80] sm:$0x1]  ;;  %3843 = vmatpush.msrb.mxu1 %v3370_v0  ;;  %3816 = vmatpush.msrb.mxu0 %v3334_v14  ;;  %v5110_v60 = vld [vmem:[%s10101_s7 + $0x508] sm:$0xff]  ;;  %v3307_v14 = vld [vmem:[#allocation3 + $0x10] sm:$0xff] }
 0x747   :  { %v9030_v28 = vsel %vm576_vm5, %v3440_v41, %v3441_v51  ;;  %v3445_v6 = vrot.slane %v3399_v34, 1  ;;  %v9067_v46 = vsel %vm576_vm5, %v3441_v51, %v3447_v33  ;;  %v5153_v41 = vld [vmem:[%s10101_s7 + $0x660] sm:$0xff]  ;;  %v5108_v34 = vld [vmem:[%s10101_s7 + $0x4f8] sm:$0xff]  ;;  %v5106_v0 = vld [vmem:[%s10101_s7 + $0x4e8] sm:$0xff] }
 0x748   :  { %5079 = vmatmul.msk.f32.gmra.mxu1 %vm447_vm7, %v9030_v28  ;;  %v3444_v8 = vsel %vm576_vm5, %v3435_v11, %v3443_v57  ;;  %3817 = vmatpush.msrb.mxu0 %v3332_v9  ;;  %v5113_v11 = vld [vmem:[%s10101_s7 + $0x520] sm:$0xff]  ;;  %v5099_v33 = vld [vmem:[%s10101_s7 + $0x4b0] sm:$0xff]  ;;  %v5100_v3 = vld [vmem:[%s10101_s7 + $0x4b8] sm:$0xff] }
 0x749   :  { %v9039_v22 = vsel %vm576_vm5, %v3438_v45, %v3445_v6  ;;  %3844 = vmatpush.msrb.mxu1 %v3368_v49  ;;  %v5115_v45 = vld [vmem:[%s10101_s7 + $0x530] sm:$0xff]  ;;  %v5109_v51 = vld [vmem:[%s10101_s7 + $0x500] sm:$0xff]  ;;  %v5098_v48 = vld [vmem:[%s10101_s7 + $0x4a8] sm:$0xff] }
 0x74a   :  { %3592 = vmatmul.f32.gmra.mxu0 %v9039_v22  ;;  %v5149_v57 = vld [vmem:[%s10101_s7 + $0x640] sm:$0xff]  ;;  %v5096_v13 = vld [vmem:[%s10101_s7 + $0x498] sm:$0xff] }
 0x74b   :  { %3563 = vmatmul.f32.gmra.mxu3 %v3444_v8  ;;  %3650 = vmatmul.f32.gmra.mxu2 %v3444_v8  ;;  %v5105_v6 = vld [vmem:[%s10101_s7 + $0x4e0] sm:$0xff]  ;;  %v5147_v8 = vld [vmem:[%s10101_s7 + $0x630] sm:$0xff] }
 0x74c   :  { %3845 = vmatpush.msrb.mxu1 %v3366_v20  ;;  %3818 = vmatpush.msrb.mxu0 %v3330_v5  ;;  %v5101_v49 = vld [vmem:[%s10101_s7 + $0x4c0] sm:$0xff]  ;;  %v5163_v20 = vld [vmem:[%s10101_s7 + $0x6b0] sm:$0xff] }
 0x74d   :  { %v5141_v9 = vld [vmem:[%s10101_s7 + $0x600] sm:$0xff]  ;;  %v5095_v5 = vld [vmem:[%s10101_s7 + $0x490] sm:$0xff] }
 0x74e   :  { %3846 = vmatpush.msrb.mxu1 %v3364_v4  ;;  %3819 = vmatpush.msrb.mxu0 %v3328_v30  ;;  %v5139_v4 = vld [vmem:[%s10101_s7 + $0x5f0] sm:$0xff]  ;;  %v5137_v30 = vld [vmem:[%s10101_s7 + $0x5e0] sm:$0xff] }
 0x750   :  { %5080 = vmatmul.msk.f32.gmra.mxu1 %vm447_vm7, %v9067_v46  ;;  %3820 = vmatpush.msrb.mxu0 %v3326_v23  ;;  %v5154_v23 = vld [vmem:[%s10101_s7 + $0x668] sm:$0xff] }
 0x751   :  { %3847 = vmatpush.msrb.mxu1 %v3362_v62  ;;  %v5161_v62 = vld [vmem:[%s10101_s7 + $0x6a0] sm:$0xff] }
 0x752   :  { %5081 = vmatmul.msk.f32.vlgmr.msra.gmra.mxu0 %vm447_vm7, %v8951_v18  ;;  %v3360_v18 = vld [vmem:[%s10101_s7 + $0x158] sm:$0xff] }
 0x753   :  { %3670 = vmatmul.f32.vlgmr.msrb.gmra.mxu3 %v8921_v53  ;;  %3767 = vmatmul.f32.vlgmr.msra.gmra.mxu2 %v9077_v40  ;;  %v5124_v53 = vld [vmem:[%s10101_s7 + $0x578] sm:$0xff] }
 0x754   :  { %4039 = vmatpush.msrb.mxu3 %v5123_v63  ;;  %4126 = vmatpush.msra.mxu2 %v5124_v53  ;;  %v5093_v63 = vld [vmem:[%s10101_s7 + $0x480] sm:$0xff]  ;;  %v5094_v53 = vld [vmem:[%s10101_s7 + $0x488] sm:$0xff] }
 0x755   :  { %3848 = vmatpush.msrb.mxu1 %v3360_v18  ;;  %3821 = vmatpush.msrb.mxu0 %v3324_v10  ;;  %v5135_v18 = vld [vmem:[%s10101_s7 + $0x5d0] sm:$0xff]  ;;  %v3313_v10 = vld [vmem:[#allocation3 + $0x58] sm:$0xff] }
 0x756   :  { %4040 = vmatpush.msrb.mxu3 %v5121_v15  ;;  %4127 = vmatpush.msra.mxu2 %v5122_v43  ;;  %v5159_v15 = vld [vmem:[%s10101_s7 + $0x690] sm:$0xff]  ;;  %v5157_v43 = vld [vmem:[%s10101_s7 + $0x680] sm:$0xff] }
 0x757   :  { %3849 = vmatpush.msrb.mxu1 %v3358_v58  ;;  %3822 = vmatpush.msrb.mxu0 %v3322_v16  ;;  %v5150_v58 = vld [vmem:[%s10101_s7 + $0x648] sm:$0xff] }
 0x758   :  { %3738 = vmatmul.f32.vlgmr.msra.gmra.mxu1 %v9110_v31  ;;  %4041 = vmatpush.msrb.mxu3 %v5119_v12  ;;  %v5152_v12 = vld [vmem:[%s10101_s7 + $0x658] sm:$0xff]  ;;  %v5146_v16 = vld [vmem:[%s10101_s7 + $0x628] sm:$0xff] }
 0x759   :  { %4128 = vmatpush.msra.mxu2 %v5120_v61  ;;  %3850 = vmatpush.msrb.mxu1 %v3356_v17  ;;  %v5131_v61 = vld [vmem:[%s10101_s7 + $0x5b0] sm:$0xff]  ;;  %v5148_v17 = vld [vmem:[%s10101_s7 + $0x638] sm:$0xff] }
 0x75a   :  { %5082 = vmatmul.msk.f32.gmra.mxu0 %vm447_vm7, %v8995_v27  ;;  %4042 = vmatpush.msrb.mxu3 %v5117_v50  ;;  %v5116_v27 = vld [vmem:[%s10101_s7 + $0x538] sm:$0xff]  ;;  %v5129_v50 = vld [vmem:[%s10101_s7 + $0x5a0] sm:$0xff] }
 0x75b   :  { %3673 = vmatmul.f32.gmra.mxu3 %v8960_v56  ;;  %3770 = vmatmul.f32.gmra.mxu2 %v8895_v37  ;;  %v5118_v56 = vld [vmem:[%s10101_s7 + $0x548] sm:$0xff] }
 0x75c   :  { %4129 = vmatpush.msra.mxu2 %v5118_v56  ;;  %4043 = vmatpush.msrb.mxu3 %v5115_v45  ;;  %v5127_v56 = vld [vmem:[%s10101_s7 + $0x590] sm:$0xff]  ;;  %v5144_v45 = vld [vmem:[%s10101_s7 + $0x618] sm:$0xff] }
 0x75d   :  { %3851 = vmatpush.msrb.mxu1 %v3354_v52  ;;  %3823 = vmatpush.msrb.mxu0 %v3320_v19  ;;  %v5142_v52 = vld [vmem:[%s10101_s7 + $0x608] sm:$0xff]  ;;  %v5125_v19 = vld [vmem:[%s10101_s7 + $0x580] sm:$0xff] }
 0x75e   :  { %4130 = vmatpush.msra.mxu2 %v5116_v27  ;;  %4044 = vmatpush.msrb.mxu3 %v5113_v11  ;;  %v3896_v27 = vld [vmem:[#allocation3] sm:$0xfc]  ;;  %v5164_v11 = vld [vmem:[%s10101_s7 + $0x6b8] sm:$0xff] }
 0x75f   :  { %3852 = vmatpush.msrb.mxu1 %v3352_v36  ;;  %3824 = vmatpush.msrb.mxu0 %v3318_v35  ;;  %v5140_v36 = vld [vmem:[%s10101_s7 + $0x5f8] sm:$0xff]  ;;  %v5162_v35 = vld [vmem:[%s10101_s7 + $0x6a8] sm:$0xff] }
 0x760   :  { %3741 = vmatmul.f32.gmra.mxu1 %v8911_v47  ;;  %4131 = vmatpush.msra.mxu2 %v5114_v2  ;;  %v3920_v2 = vrot.slane %v3896_v27, 2 }
 0x761   :  { %3853 = vmatpush.msrb.mxu1 %v3350_v39  ;;  %4068 = vmatpush.msra.mxu0 %v5155_v42  ;;  %v3921_v39 = vrot.slane %v8911_v47, 2  ;;  %v5138_v42 = vld [vmem:[%s10101_s7 + $0x5e8] sm:$0xff] }
 0x762   :  { %5083 = vmatmul.msk.f32.gmra.mxu0 %vm447_vm7, %v9030_v28  ;;  %4045 = vmatpush.msrb.mxu3 %v5111_v7  ;;  %v5107_v28 = vld [vmem:[%s10101_s7 + $0x4f0] sm:$0xff] }
 0x763   :  { %3676 = vmatmul.f32.gmra.mxu3 %v9002_v55  ;;  %3773 = vmatmul.f32.gmra.mxu2 %v9163_v29  ;;  %v5112_v55 = vld [vmem:[%s10101_s7 + $0x518] sm:$0xff] }
 0x764   :  { %4132 = vmatpush.msra.mxu2 %v5112_v55  ;;  %4069 = vmatpush.msra.mxu0 %v5153_v41  ;;  %v3924_v55 = vrot.slane %v8895_v37, 2  ;;  %v5160_v41 = vld [vmem:[%s10101_s7 + $0x698] sm:$0xff] }
 0x765   :  { %4046 = vmatpush.msrb.mxu3 %v5109_v51  ;;  %4109 = vmatpush.msra.mxu1 %v5163_v20  ;;  %v3922_v51 = vsel %vm1078_vm8, %v3920_v2, %v3921_v39 }
 0x766   :  { %4133 = vmatpush.msra.mxu2 %v5110_v60  ;;  %4070 = vmatpush.msra.mxu0 %v5151_v32  ;;  %v3898_v60 = vld [vmem:[#allocation3 + $0x10] sm:$0xfc] }
 0x767   :  { %4047 = vmatpush.msrb.mxu3 %v5107_v28  ;;  %4110 = vmatpush.msra.mxu1 %v5161_v62  ;;  %v5134_v28 = vld [vmem:[%s10101_s7 + $0x5c8] sm:$0xff] }
 0x768   :  { %3744 = vmatmul.f32.gmra.mxu1 %v9196_v25  ;;  %4071 = vmatpush.msra.mxu0 %v5149_v57  ;;  %v5158_v57 = vld [vmem:[%s10101_s7 + $0x688] sm:$0xff] }
 0x769   :  { %4134 = vmatpush.msra.mxu2 %v5108_v34  ;;  %4048 = vmatpush.msrb.mxu3 %v5105_v6  ;;  %v3900_v34 = vld [vmem:[#allocation3 + $0x38] sm:$0x3]  ;;  %v3926_v6 = vrot.slane %v3898_v60, 2  ;;  %v3904_v62 = vld [vmem:[#allocation3 + $0x58] sm:$0xfc] }
 0x76a   :  { %5084 = vmatmul.msk.f32.gmra.mxu0 %vm447_vm7, %v9067_v46  ;;  %v5097_v46 = vld [vmem:[%s10101_s7 + $0x4a0] sm:$0xff]  ;;  %4111 = vmatpush.msra.mxu1 %v5159_v15 }
 0x76b   :  { %3679 = vmatmul.f32.gmra.mxu3 %v9039_v22  ;;  %3776 = vmatmul.f32.gmra.mxu2 %v8979_v38  ;;  %v5145_v22 = vld [vmem:[%s10101_s7 + $0x620] sm:$0xff] }
 0x76c   :  { %4072 = vmatpush.msra.mxu0 %v5147_v8  ;;  %4135 = vmatpush.msra.mxu2 %v5106_v0  ;;  %v5132_v8 = vld [vmem:[%s10101_s7 + $0x5b8] sm:$0xff] }
 0x76d   :  { %4049 = vmatpush.msrb.mxu3 %v5103_v24  ;;  %4112 = vmatpush.msra.mxu1 %v5157_v43  ;;  %v3931_v24 = vrot.slane %v3900_v34, 2  ;;  %v9464_v34 = vld [vmem:[%s10097_s10 + $0xe8] sm:$0xff] }
 0x76e   :  { %4073 = vmatpush.msra.mxu0 %v5145_v22  ;;  %4136 = vmatpush.msra.mxu2 %v5104_v44  ;;  %v5130_v22 = vld [vmem:[%s10101_s7 + $0x5a8] sm:$0xff]  ;;  %v5128_v44 = vld [vmem:[%s10101_s7 + $0x598] sm:$0xff] }
 0x76f   :  { %4050 = vmatpush.msrb.mxu3 %v5101_v49 }
 0x770   :  { %3747 = vmatmul.f32.gmra.mxu1 %v8984_v59  ;;  %4137 = vmatpush.msra.mxu2 %v5102_v21  ;;  %v3901_v21 = vld [vmem:[#allocation3 + $0x40] sm:$0x3] }
 0x771   :  { %4074 = vmatpush.msra.mxu0 %v5143_v26  ;;  %4051 = vmatpush.msrb.mxu3 %v5099_v33  ;;  %v3932_v26 = vsel %vm1078_vm8, %v3924_v55, %v3931_v24  ;;  %v5126_v33 = vld [vmem:[%s10101_s7 + $0x588] sm:$0xff]  ;;  %v3933_v20 = vrot.slane %v3901_v21, 2 }
 0x772   :  { %3825 = vmatmul.f32.vlgmr.msrb.gmra.mxu0 %v9110_v31  ;;  %4138 = vmatpush.msra.mxu2 %v5100_v3  ;;  %v5133_v31 = vld [vmem:[%s10101_s7 + $0x5c0] sm:$0xff]  ;;  %v9492_v21 = vld [vmem:[%s10097_s10 + $0xc8] sm:$0xff] }
 0x773   :  { %5085 = vmatmul.msk.f32.vlgmr.msra.gmra.mxu3 %vm447_vm7, %v3307_v14  ;;  %5089 = vmatmul.msk.f32.vlgmr.msrb.gmra.mxu2 %vm447_vm7, %v3307_v14  ;;  %v3902_v14 = vld [vmem:[#allocation3 + $0x48] sm:$0xfc]  ;;  %v3903_v3 = vld [vmem:[#allocation3 + $0x50] sm:$0xfc] }
 0x774   :  { %4075 = vmatpush.msra.mxu0 %v5141_v9  ;;  %4052 = vmatpush.msrb.mxu3 %v5097_v46  ;;  %v3935_v9 = vrot.slane %v3902_v14, 2  ;;  %v3936_v46 = vrot.slane %v8984_v59, 2  ;;  %v9497_v14 = vld [vmem:[%s10097_s10 + $0xb0] sm:$0xff] }
 0x775   :  { %4139 = vmatpush.msra.mxu2 %v5098_v48 }
 0x776   :  { %4076 = vmatpush.msra.mxu0 %v5139_v4  ;;  %4053 = vmatpush.msrb.mxu3 %v5095_v5  ;;  %v3938_v4 = vrot.slane %v3903_v3, 2  ;;  %v3939_v5 = vrot.slane %v8979_v38, 2 }
 0x777   :  { %4140 = vmatpush.msra.mxu2 %v5096_v13  ;;  %v3937_v13 = vsel %vm1078_vm8, %v3935_v9, %v3936_v46  ;;  %v9516_v9 = vld [vmem:[%s10097_s10 + $0xa8] sm:$0xff] }
 0x778   :  { %3854 = vmatmul.f32.vlgmr.msrb.gmra.mxu1 %v9077_v40  ;;  %v5156_v40 = vld [vmem:[%s10101_s7 + $0x678] sm:$0xff]  ;;  %4054 = vmatpush.msrb.mxu3 %v5093_v63  ;;  %v3942_v63 = vrot.slane %v9016_v1, 2 }
 0x779   :  { %4077 = vmatpush.msra.mxu0 %v5137_v30  ;;  %4141 = vmatpush.msra.mxu2 %v5094_v53  ;;  %v3905_v30 = vld [vmem:[#allocation3 + $0x78] sm:$0x3]  ;;  %v3940_v53 = vsel %vm1078_vm8, %v3938_v4, %v3939_v5  ;;  %v9530_v4 = vld [vmem:[%s10097_s10 + $0x98] sm:$0xff] }
 0x77a   :  { %3828 = vmatmul.f32.gmra.mxu0 %v8911_v47  ;;  %4155 = vmatpush.msra.mxu3 %v5156_v40  ;;  %v5136_v47 = vld [vmem:[%s10101_s7 + $0x5d8] sm:$0xff]  ;;  %v3941_v40 = vrot.slane %v3904_v62, 2  ;;  %v3944_v15 = vrot.slane %v3905_v30, 2  ;;  %v9546_v30 = vld [vmem:[%s10097_s10 + $0x88] sm:$0xff] }
 0x77b   :  { %5086 = vmatmul.msk.f32.gmra.mxu3 %vm447_vm7, %v8940_v54  ;;  %5090 = vmatmul.msk.f32.gmra.mxu2 %vm447_vm7, %v8940_v54 }
 0x77c   :  { %4078 = vmatpush.msra.mxu0 %v5135_v18  ;;  %4156 = vmatpush.msra.mxu3 %v5154_v23  ;;  %v3943_v18 = vsel %vm1078_vm8, %v3941_v40, %v3942_v63 }
 0x77e   :  { %4079 = vmatpush.msra.mxu0 %v5133_v31  ;;  %4157 = vmatpush.msra.mxu3 %v5152_v12  ;;  %v3907_v31 = vld [vmem:[#allocation3 + $0x88] sm:$0x3] }
 0x780   :  { %3857 = vmatmul.f32.gmra.mxu1 %v8895_v37  ;;  %4158 = vmatpush.msra.mxu3 %v5150_v58  ;;  %v3927_v37 = vrot.slane %v8940_v54, 2 }
 0x781   :  { %4080 = vmatpush.msra.mxu0 %v5131_v61 }
 0x782   :  { %3831 = vmatmul.f32.gmra.mxu0 %v9196_v25  ;;  %4159 = vmatpush.msra.mxu3 %v5148_v17  ;;  %v3899_v25 = vld [vmem:[#allocation3 + $0x30] sm:$0x3]  ;;  %v3928_v0 = vsel %vm1078_vm8, %v3926_v6, %v3927_v37  ;;  %v3934_v48 = vsel %vm1078_vm8, %v3927_v37, %v3933_v20 }
 0x783   :  { %5087 = vmatmul.msk.f32.gmra.mxu3 %vm447_vm7, %v3313_v10  ;;  %5091 = vmatmul.msk.f32.gmra.mxu2 %vm447_vm7, %v3313_v10  ;;  %v3929_v54 = vrot.slane %v3899_v25, 2  ;;  %v9445_v25 = vld [vmem:[%s10097_s10 + $0xf0] sm:$0xff]  ;;  %v9511_v20 = vld [vmem:[%s10097_s10 + $0xa0] sm:$0xff] }
 0x784   :  { %4081 = vmatpush.msra.mxu0 %v5129_v50  ;;  %4160 = vmatpush.msra.mxu3 %v5146_v16 }
 0x785   :  { %v3930_v49 = vsel %vm1078_vm8, %v3921_v39, %v3929_v54  ;;  %4285 = vmatpush.msrb.mxu1 %v9445_v25  ;;  %v9471_v54 = vld [vmem:[%s10097_s10 + $0xd0] sm:$0xff] }
 0x786   :  { %4082 = vmatpush.msra.mxu0 %v5127_v56  ;;  %4161 = vmatpush.msra.mxu3 %v5144_v45 }
 0x788   :  { %3860 = vmatmul.f32.gmra.mxu1 %v9163_v29  ;;  %v3897_v29 = vld [vmem:[#allocation3 + $0x8] sm:$0xfc]  ;;  %4162 = vmatpush.msra.mxu3 %v5142_v52 }
 0x789   :  { %4083 = vmatpush.msra.mxu0 %v5125_v19  ;;  %v3923_v7 = vrot.slane %v3897_v29, 2 }
 0x78a   :  { %3834 = vmatmul.f32.gmra.mxu0 %v8984_v59  ;;  %4163 = vmatpush.msra.mxu3 %v5140_v36  ;;  %v3906_v59 = vld [vmem:[#allocation3 + $0x80] sm:$0x3] }
 0x78b   :  { %5088 = vmatmul.msk.f32.gmra.mxu3 %vm447_vm7, %v9016_v1  ;;  %5092 = vmatmul.msk.f32.gmra.mxu2 %vm447_vm7, %v9016_v1  ;;  %v3925_v32 = vsel %vm1078_vm8, %v3923_v7, %v3924_v55  ;;  %v3946_v23 = vrot.slane %v3906_v59, 2  ;;  %v3948_v1 = vrot.slane %v3907_v31, 2  ;;  %v9558_v59 = vld [vmem:[%s10097_s10 + $0x78] sm:$0xff] }
 0x78c   :  { %4196 = vmatpush.msrb.mxu0 %v5164_v11  ;;  %4164 = vmatpush.msra.mxu3 %v5138_v42  ;;  %v9584_v31 = vld [vmem:[%s10097_s10 + $0x58] sm:$0xff] }
 0x78d   :  { %v3947_v43 = vsel %vm1078_vm8, %v3939_v5, %v3946_v23  ;;  %v3949_v12 = vsel %vm1078_vm8, %v3942_v63, %v3948_v1  ;;  %v9541_v63 = vld [vmem:[%s10097_s10 + $0x80] sm:$0xff]  ;;  %v9572_v23 = vld [vmem:[%s10097_s10 + $0x68] sm:$0xff] }
 0x78e   :  { %4197 = vmatpush.msrb.mxu0 %v5162_v35  ;;  %4165 = vmatpush.msra.mxu3 %v5136_v47 }
 0x790   :  { %3863 = vmatmul.f32.gmra.mxu1 %v8979_v38  ;;  %4198 = vmatpush.msrb.mxu0 %v5160_v41  ;;  %v3945_v38 = vsel %vm1078_vm8, %v3936_v46, %v3944_v15 }
 0x791   :  { %4166 = vmatpush.msra.mxu3 %v5134_v28  ;;  %v9455_v28 = vld [vmem:[%s10097_s10 + $0xe0] sm:$0xff] }
 0x792   :  { %4084 = vmatmul.f32.vlgmr.msra.gmra.mxu0 %v3925_v32  ;;  %4286 = vmatpush.msrb.mxu1 %v9455_v28 }
 0x793   :  { %4055 = vmatmul.f32.vlgmr.msrb.gmra.mxu3 %v3922_v51  ;;  %4142 = vmatmul.f32.vlgmr.msra.gmra.mxu2 %v3922_v51 }
 0x794   :  { %4199 = vmatpush.msrb.mxu0 %v5158_v57  ;;  %4167 = vmatpush.msra.mxu3 %v5132_v8 }
 0x795   :  { %4287 = vmatpush.msrb.mxu1 %v9471_v54 }
 0x796   :  { %4168 = vmatpush.msra.mxu3 %v5130_v22 }
 0x798   :  { %5165 = vmatmul.msk.f32.vlgmr.msra.gmra.mxu1 %vm447_vm7, %v3928_v0  ;;  %4169 = vmatpush.msra.mxu3 %v5128_v44 }
 0x79a   :  { %4087 = vmatmul.f32.gmra.mxu0 %v3932_v26  ;;  %4170 = vmatpush.msra.mxu3 %v5126_v33 }
 0x79b   :  { %4058 = vmatmul.f32.gmra.mxu3 %v3930_v49  ;;  %4145 = vmatmul.f32.gmra.mxu2 %v3930_v49  ;;  %v9487_v49 = vld [vmem:[%s10097_s10 + $0xc0] sm:$0xff] }
 0x79c   :  { %4288 = vmatpush.msrb.mxu1 %v9487_v49 }
 0x79e   :  { %4289 = vmatpush.msrb.mxu1 %v9497_v14 }
 0x7a0   :  { %5166 = vmatmul.msk.f32.gmra.mxu1 %vm447_vm7, %v3934_v48 }
 0x7a1   :  { %4290 = vmatpush.msrb.mxu1 %v9511_v20 }
 0x7a2   :  { %4090 = vmatmul.f32.gmra.mxu0 %v3940_v53 }
 0x7a3   :  { %4061 = vmatmul.f32.gmra.mxu3 %v3937_v13  ;;  %4148 = vmatmul.f32.gmra.mxu2 %v3937_v13 }
 0x7a8   :  { %5167 = vmatmul.msk.f32.gmra.mxu1 %vm447_vm7, %v3943_v18 }
 0x7aa   :  { %4093 = vmatmul.f32.gmra.mxu0 %v3947_v43 }
 0x7ab   :  { %4064 = vmatmul.f32.gmra.mxu3 %v3945_v38  ;;  %4151 = vmatmul.f32.gmra.mxu2 %v3945_v38  ;;  %v9579_v38 = vld [vmem:[%s10097_s10 + $0x50] sm:$0xff] }
 0x7af   :  { %v9407_v58 = vpop.f32.mrf.mxu0 }
 0x7b0   :  { %5168 = vmatmul.msk.f32.gmra.mxu1 %vm447_vm7, %v3949_v12 }
 0x7b2   :  { %5169 = vmatmul.msk.f32.vlgmr.msrb.gmra.mxu0 %vm447_vm7, %v3928_v0  ;;  %v9476_v0 = vld [vmem:[%s10097_s10 + $0xd8] sm:$0xff] }
 0x7b3   :  { %4171 = vmatmul.f32.vlgmr.msra.gmra.mxu3 %v3925_v32  ;;  %v9450_v32 = vld [vmem:[%s10097_s10 + $0xf8] sm:$0xff] }
 0x7b4   :  { %4343 = vmatpush.msrb.mxu3 %v9450_v32 }
 0x7b5   :  { %v9411_v10 = vpop.f32.mrf.mxu1 }
 0x7b6   :  { %v9413_v61 = vpop.f32.mrf.mxu3  ;;  %v3642_v17 = vpop.f32.mrf.mxu2  ;;  %4344 = vmatpush.msrb.mxu3 %v9464_v34 }
 0x7b7   :  { %v9415_v50 = vpop.f32.mrf.mxu0 }
 0x7b8   :  { %4345 = vmatpush.msrb.mxu3 %v9476_v0 }
 0x7ba   :  { %5170 = vmatmul.msk.f32.gmra.mxu0 %vm447_vm7, %v3934_v48  ;;  %4346 = vmatpush.msrb.mxu3 %v9492_v21  ;;  %v9525_v48 = vld [vmem:[%s10097_s10 + $0x90] sm:$0xff] }
 0x7bb   :  { %4174 = vmatmul.f32.gmra.mxu3 %v3932_v26  ;;  %v9504_v26 = vld [vmem:[%s10097_s10 + $0xb8] sm:$0xff]  ;;  %4291 = vmatpush.msrb.mxu1 %v9525_v48 }
 0x7bc   :  { %4347 = vmatpush.msrb.mxu3 %v9504_v26 }
 0x7bd   :  { %v9418_v16 = vpop.f32.mrf.mxu1  ;;  %4292 = vmatpush.msrb.mxu1 %v9541_v63 }
 0x7be   :  { %v9420_v56 = vpop.f32.mrf.mxu3  ;;  %v3645_v52 = vpop.f32.mrf.mxu2  ;;  %4348 = vmatpush.msrb.mxu3 %v9516_v9 }
 0x7bf   :  { %v9422_v45 = vpop.f32.mrf.mxu0 }
 0x7c0   :  { %4349 = vmatpush.msrb.mxu3 %v9530_v4 }
 0x7c2   :  { %5171 = vmatmul.msk.f32.gmra.mxu0 %vm447_vm7, %v3943_v18  ;;  %4350 = vmatpush.msrb.mxu3 %v9546_v30  ;;  %v9567_v18 = vld [vmem:[%s10097_s10 + $0x60] sm:$0xff] }
 0x7c3   :  { %4177 = vmatmul.f32.gmra.mxu3 %v3940_v53  ;;  %v9551_v53 = vld [vmem:[%s10097_s10 + $0x70] sm:$0xff] }
 0x7c4   :  { %4293 = vmatpush.msrb.mxu1 %v9551_v53  ;;  %4351 = vmatpush.msrb.mxu3 %v9558_v59 }
 0x7c5   :  { %v9425_v19 = vpop.f32.mrf.mxu1 }
 0x7c6   :  { %v9427_v27 = vpop.f32.mrf.mxu3  ;;  %v3648_v36 = vpop.f32.mrf.mxu2  ;;  %4294 = vmatpush.msrb.mxu1 %v9567_v18  ;;  %4352 = vmatpush.msrb.mxu3 %v9572_v23 }
 0x7c7   :  { %v9429_v11 = vpop.f32.mrf.mxu0 }
 0x7c8   :  { %4295 = vmatpush.msrb.mxu1 %v9579_v38  ;;  %4353 = vmatpush.msrb.mxu3 %v9584_v31 }
 0x7ca   :  { %5172 = vmatmul.msk.f32.gmra.mxu0 %vm447_vm7, %v3949_v12 }
 0x7cb   :  { %4180 = vmatmul.f32.gmra.mxu3 %v3947_v43 }
 0x7cd   :  { %v9432_v29 = vpop.f32.mrf.mxu1 }
 0x7ce   :  { %10229 = vst [vmem:[#allocation29_spill] sm:$0xff] %v9432_v29  ;;  %v9434_v35 = vpop.f32.mrf.mxu3  ;;  %v3651_v42 = vpop.f32.mrf.mxu2  ;;  %v9732_v29 = vld [vmem:[%s10097_s10 + $0x1a0] sm:$0xff] }
 0x7cf   :  { %v3700_v2 = vpop.f32.mrf.mxu0 }
 0x7d5   :  { %v9436_v39 = vpop.f32.mrf.mxu1 }
 0x7d6   :  { %v3671_v7 = vpop.f32.mrf.mxu3  ;;  %v9457_v57 = vpop.f32.mrf.mxu2 }
 0x7d7   :  { %v3672_v55 = vadd.f32 %v3671_v7, %v3642_v17  ;;  %v3703_v47 = vpop.f32.mrf.mxu0  ;;  %v9599_v17 = vld [vmem:[%s10097_s10 + $0x40] sm:$0xff] }
 0x7d8   :  { %4296 = vmatpush.msrb.mxu1 %v9599_v17  ;;  %v9623_v7 = vld [vmem:[%s10097_s10 + $0x20] sm:$0xff] }
 0x7d9   :  { %v9438_v41 = vadd.f32 %v3700_v2, %v3672_v55  ;;  %v9613_v2 = vld [vmem:[%s10097_s10 + $0x30] sm:$0xff]  ;;  %v9630_v55 = vld [vmem:[%s10097_s10 + $0x28] sm:$0xff] }
 0x7da   :  { %4297 = vmatpush.msrb.mxu1 %v9613_v2 }
 0x7db   :  { %10230 = vst [vmem:[#allocation11_spill] sm:$0xff] %v9438_v41 }
 0x7dc   :  { %4298 = vmatpush.msrb.mxu1 %v9623_v7 }
 0x7dd   :  { %v9440_v51 = vpop.f32.mrf.mxu1 }
 0x7de   :  { %v3674_v60 = vpop.f32.mrf.mxu3  ;;  %v9518_v46 = vpop.f32.mrf.mxu2 }
 0x7df   :  { %v3675_v37 = vadd.f32 %v3674_v60, %v3645_v52  ;;  %v3706_v8 = vpop.f32.mrf.mxu0  ;;  %v9604_v52 = vld [vmem:[%s10097_s10 + $0x48] sm:$0xff]  ;;  %v9637_v60 = vld [vmem:[%s10097_s10 + $0x10] sm:$0xff] }
 0x7e0   :  { %4354 = vmatpush.msrb.mxu3 %v9604_v52  ;;  %4299 = vmatpush.msrb.mxu1 %v9637_v60 }
 0x7e1   :  { %v9466_v6 = vadd.f32 %v3703_v47, %v3675_v37  ;;  %v9642_v37 = vld [vmem:[%s10097_s10 + $0x18] sm:$0xff] }
 0x7e3   :  { %10231 = vst [vmem:[#allocation20_spill] sm:$0xff] %v9466_v6  ;;  %v9702_v6 = vld [vmem:[%s10097_s10 + $0x1c0] sm:$0xff] }
 0x7e5   :  { %v9482_v24 = vpop.f32.mrf.mxu1 }
 0x7e6   :  { %v3677_v22 = vpop.f32.mrf.mxu3  ;;  %v9586_v43 = vpop.f32.mrf.mxu2 }
 0x7e7   :  { %v3678_v44 = vadd.f32 %v3677_v22, %v3648_v36  ;;  %v3709_v3 = vpop.f32.mrf.mxu0 }
 0x7e9   :  { %v9506_v33 = vadd.f32 %v3706_v8, %v3678_v44  ;;  %v9647_v8 = vld [vmem:[%s10097_s10 + $0x1f0] sm:$0xff] }
 0x7ea   :  { %4314 = vmatpush.msrb.mxu2 %v9647_v8 }
 0x7eb   :  { %10232 = vst [vmem:[#allocation15_spill] sm:$0xff] %v9506_v33 }
 0x7ed   :  { %v9534_v5 = vpop.f32.mrf.mxu1 }
 0x7ee   :  { %10233 = vst [vmem:[#allocation8_spill] sm:$0xff] %v9534_v5  ;;  %v3680_v13 = vpop.f32.mrf.mxu3  ;;  %v9649_v22 = vpop.f32.mrf.mxu2  ;;  %v9727_v5 = vld [vmem:[%s10097_s10 + $0x1b8] sm:$0xff] }
 0x7ef   :  { %v3681_v62 = vadd.f32 %v3680_v13, %v3651_v42  ;;  %v9562_v15 = vpop.f32.mrf.mxu0  ;;  %v9618_v42 = vld [vmem:[%s10097_s10 + $0x38] sm:$0xff]  ;;  %10239 = vst [vmem:[#allocation6_spill] sm:$0xff] %v9649_v22  ;;  %v9664_v13 = vld [vmem:[%s10097_s10] sm:$0xff] }
 0x7f0   :  { %10235 = vst [vmem:[#allocation4_spill] sm:$0xff] %v9562_v15  ;;  %4355 = vmatpush.msrb.mxu3 %v9618_v42  ;;  %4300 = vmatpush.msrb.mxu1 %v9664_v13  ;;  %v9714_v15 = vld [vmem:[%s10097_s10 + $0x1b0] sm:$0xff] }
 0x7f1   :  { %v9560_v40 = vadd.f32 %v3709_v3, %v3681_v62  ;;  %v9658_v3 = vld [vmem:[%s10097_s10 + $0x1f8] sm:$0xff]  ;;  %v9669_v62 = vld [vmem:[%s10097_s10 + $0x8] sm:$0xff] }
 0x7f2   :  { %4356 = vmatpush.msrb.mxu3 %v9630_v55  ;;  %4372 = vmatpush.msra.mxu0 %v9658_v3 }
 0x7f3   :  { %10234 = vst [vmem:[#allocation13_spill] sm:$0xff] %v9560_v40  ;;  %v9675_v40 = vld [vmem:[%s10097_s10 + $0x1e0] sm:$0xff]  ;;  %4437 = vmatpush.msra.mxu1 %v9445_v25 }
 0x7f4   :  { %4357 = vmatpush.msrb.mxu3 %v9642_v37  ;;  %4315 = vmatpush.msrb.mxu2 %v9675_v40 }
 0x7f5   :  { %v9590_v1 = vpop.f32.mrf.mxu1  ;;  %4438 = vmatpush.msra.mxu1 %v9455_v28  ;;  %v9749_v28 = vld [vmem:[%s10097_s10 + $0x1a8] sm:$0xff] }
 0x7f6   :  { %10236 = vst [vmem:[#allocation16_spill] sm:$0xff] %v9590_v1  ;;  %v9592_v12 = vpop.f32.mrf.mxu3  ;;  %4358 = vmatpush.msrb.mxu3 %v9669_v62  ;;  %v9709_v1 = vld [vmem:[%s10097_s10 + $0x1c8] sm:$0xff]  ;;  %v9738_v25 = vpop.f32.mrf.mxu2 }
 0x7f7   :  { %v9608_v36 = vpop.f32.mrf.mxu0  ;;  %10242 = vst [vmem:[#allocation18_spill] sm:$0xff] %v9738_v25  ;;  %4439 = vmatpush.msra.mxu1 %v9471_v54  ;;  %v9759_v54 = vld [vmem:[%s10097_s10 + $0x198] sm:$0xff] }
 0x7f8   :  { %10237 = vst [vmem:[#allocation21_spill] sm:$0xff] %v9608_v36  ;;  %v9690_v36 = vld [vmem:[%s10097_s10 + $0x1d0] sm:$0xff]  ;;  %4495 = vmatpush.msra.mxu3 %v9450_v32 }
 0x7f9   :  { %4316 = vmatpush.msrb.mxu2 %v9690_v36  ;;  %4440 = vmatpush.msra.mxu1 %v9487_v49  ;;  %v3585_v49 = vadd.f32 %v9407_v58, %v9413_v61 }
 0x7fa   :  { %4496 = vmatpush.msra.mxu3 %v9464_v34  ;;  %v9754_v34 = vld [vmem:[%s10097_s10 + $0x190] sm:$0xff] }
 0x7fb   :  { %4317 = vmatpush.msrb.mxu2 %v9702_v6  ;;  %10244 = vst [vmem:[#allocation30_spill] sm:$0xff] %v9754_v34  ;;  %4441 = vmatpush.msra.mxu1 %v9497_v14  ;;  %v9798_v14 = vld [vmem:[%s10097_s10 + $0x160] sm:$0xff]  ;;  %v3614_v58 = vadd.f32 %v9411_v10, %v3585_v49  ;;  %v9824_v10 = vld [vmem:[%s10097_s10 + $0x158] sm:$0xff]  ;;  %v9839_v49 = vld [vmem:[%s10097_s10 + $0x148] sm:$0xff] }
 0x7fc   :  { %4497 = vmatpush.msra.mxu3 %v9476_v0  ;;  %v9764_v0 = vld [vmem:[%s10097_s10 + $0x180] sm:$0xff] }
 0x7fd   :  { %v9632_v47 = vpop.f32.mrf.mxu1  ;;  %4318 = vmatpush.msrb.mxu2 %v9714_v15  ;;  %4442 = vmatpush.msra.mxu1 %v9511_v20  ;;  %v9817_v20 = vld [vmem:[%s10097_s10 + $0x150] sm:$0xff] }
 0x7fe   :  { %10238 = vst [vmem:[#allocation28_spill] sm:$0xff] %v9632_v47  ;;  %v9651_v44 = vpop.f32.mrf.mxu3  ;;  %v9685_v47 = vld [vmem:[%s10097_s10 + $0x1e8] sm:$0xff]  ;;  %4498 = vmatpush.msra.mxu3 %v9492_v21 }
 0x7ff   :  { %v9679_v33 = vpop.f32.mrf.mxu0  ;;  %4373 = vmatpush.msra.mxu0 %v9685_v47  ;;  %4319 = vmatpush.msrb.mxu2 %v9732_v29 }
 0x800   :  { %10240 = vst [vmem:[#allocation26_spill] sm:$0xff] %v9679_v33  ;;  %v9697_v33 = vld [vmem:[%s10097_s10 + $0x1d8] sm:$0xff]  ;;  %4499 = vmatpush.msra.mxu3 %v9504_v26  ;;  %4443 = vmatpush.msra.mxu1 %v9525_v48  ;;  %v9812_v26 = vld [vmem:[%s10097_s10 + $0x168] sm:$0xff]  ;;  %v9829_v48 = vld [vmem:[%s10097_s10 + $0x140] sm:$0xff] }
 0x801   :  { %4374 = vmatpush.msra.mxu0 %v9697_v33  ;;  %4320 = vmatpush.msrb.mxu2 %v9754_v34  ;;  %v9793_v34 = vld [vmem:[%s10097_s10 + $0x178] sm:$0xff] }
 0x802   :  { %4500 = vmatpush.msra.mxu3 %v9516_v9  ;;  %v9819_v9 = vpop.f32.mrf.mxu2  ;;  %4444 = vmatpush.msra.mxu1 %v9541_v63 }
 0x803   :  { %4375 = vmatpush.msra.mxu0 %v9709_v1  ;;  %4321 = vmatpush.msrb.mxu2 %v9764_v0  ;;  %10246 = vst [vmem:[#allocation14_spill] sm:$0xff] %v9819_v9 }
 0x804   :  { %4501 = vmatpush.msra.mxu3 %v9530_v4  ;;  %v3740_v4 = vadd.f32 %v9436_v39, %v3614_v58  ;;  %4445 = vmatpush.msra.mxu1 %v9551_v53  ;;  %v3588_v39 = vadd.f32 %v9415_v50, %v9420_v56  ;;  %v9860_v50 = vld [vmem:[%s10097_s10 + $0x138] sm:$0xff]  ;;  %v9865_v56 = vld [vmem:[%s10097_s10 + $0x120] sm:$0xff] }
 0x805   :  { %v9718_v41 = vpop.f32.mrf.mxu1  ;;  %4376 = vmatpush.msra.mxu0 %v9727_v5 }
 0x806   :  { %10241 = vst [vmem:[#allocation5_spill] sm:$0xff] %v9718_v41  ;;  %v9722_v22 = vpop.f32.mrf.mxu3  ;;  %v9778_v41 = vld [vmem:[%s10097_s10 + $0x170] sm:$0xff]  ;;  %4502 = vmatpush.msra.mxu3 %v9546_v30  ;;  %4446 = vmatpush.msra.mxu1 %v9567_v18  ;;  %v3769_v58 = vadd.f32 %v9457_v57, %v3740_v4  ;;  %v3617_v57 = vadd.f32 %v9418_v16, %v3588_v39  ;;  %v9881_v16 = vld [vmem:[%s10097_s10 + $0x128] sm:$0xff] }
 0x807   :  { %v9742_v32 = vpop.f32.mrf.mxu0  ;;  %4377 = vmatpush.msra.mxu0 %v9749_v28  ;;  %4322 = vmatpush.msrb.mxu2 %v9778_v41 }
 0x808   :  { %10243 = vst [vmem:[#allocation23_spill] sm:$0xff] %v9742_v32  ;;  %v9773_v32 = vld [vmem:[%s10097_s10 + $0x188] sm:$0xff]  ;;  %4503 = vmatpush.msra.mxu3 %v9558_v59  ;;  %4447 = vmatpush.msra.mxu1 %v9579_v38  ;;  %v3798_v53 = vadd.f32 %v9592_v12, %v3769_v58  ;;  %v9886_v38 = vld [vmem:[%s10097_s10 + $0x110] sm:$0xff] }
 0x809   :  { %4378 = vmatpush.msra.mxu0 %v9759_v54  ;;  %4323 = vmatpush.msrb.mxu2 %v9798_v14 }
 0x80a   :  { %4504 = vmatpush.msra.mxu3 %v9572_v23  ;;  %4448 = vmatpush.msra.mxu1 %v9599_v17  ;;  %v3743_v23 = vadd.f32 %v9440_v51, %v3617_v57  ;;  %v9893_v12 = vpop.f32.mrf.mxu2  ;;  %v9900_v51 = vld [vmem:[%s10097_s10 + $0x100] sm:$0xff]  ;;  %v3591_v17 = vadd.f32 %v9422_v45, %v9427_v27 }
 0x80b   :  { %4379 = vmatpush.msra.mxu0 %v9773_v32  ;;  %4324 = vmatpush.msrb.mxu2 %v9817_v20 }
 0x80c   :  { %4505 = vmatpush.msra.mxu3 %v9584_v31  ;;  %v9891_v31 = vld [vmem:[%s10097_s10 + $0x118] sm:$0xff]  ;;  %v3772_v39 = vadd.f32 %v9518_v46, %v3743_v23  ;;  %4449 = vmatpush.msra.mxu1 %v9613_v2  ;;  %v3620_v45 = vadd.f32 %v9425_v19, %v3591_v17  ;;  %v3594_v19 = vadd.f32 %v9429_v11, %v9434_v35  ;;  %v10247_v11 = vld [vmem:[#allocation29_spill] sm:$0xff] }
 0x80d   :  { %v9784_v21 = vpop.f32.mrf.mxu1  ;;  %4380 = vmatpush.msra.mxu0 %v9793_v34  ;;  %4325 = vmatpush.msrb.mxu2 %v9829_v48 }
 0x80e   :  { %10245 = vst [vmem:[#allocation10_spill] sm:$0xff] %v9784_v21  ;;  %v9788_v25 = vpop.f32.mrf.mxu3  ;;  %v9844_v21 = vld [vmem:[%s10097_s10 + $0x130] sm:$0xff]  ;;  %4506 = vmatpush.msra.mxu3 %v9604_v52  ;;  %v3801_v27 = vadd.f32 %v9651_v44, %v3772_v39  ;;  %4450 = vmatpush.msra.mxu1 %v9623_v7  ;;  %v3746_v46 = vadd.f32 %v9482_v24, %v3620_v45  ;;  %v10261_v45 = vld [vmem:[#allocation5_spill] sm:$0xff] }
 0x80f   :  { %v4085_v61 = vpop.f32.mrf.mxu0  ;;  %4381 = vmatpush.msra.mxu0 %v9812_v26  ;;  %4326 = vmatpush.msrb.mxu2 %v9844_v21  ;;  %v3623_v35 = vadd.f32 %v10247_v11, %v3594_v19  ;;  %v10263_v19 = vld [vmem:[#allocation23_spill] sm:$0xff] }
 0x810   :  { %4507 = vmatpush.msra.mxu3 %v9618_v42  ;;  %4451 = vmatpush.msra.mxu1 %v9637_v60 }
 0x811   :  { %4382 = vmatpush.msra.mxu0 %v9824_v10  ;;  %4327 = vmatpush.msrb.mxu2 %v9865_v56 }
 0x812   :  { %4508 = vmatpush.msra.mxu3 %v9630_v55  ;;  %v9935_v2 = vpop.f32.mrf.mxu2  ;;  %4452 = vmatpush.msra.mxu1 %v9664_v13 }
 0x813   :  { %4383 = vmatpush.msra.mxu0 %v9839_v49  ;;  %4328 = vmatpush.msrb.mxu2 %v9886_v38 }
 0x814   :  { %4509 = vmatpush.msra.mxu3 %v9642_v37  ;;  %v10249_v37 = vld [vmem:[#allocation30_spill] sm:$0xff] }
 0x815   :  { %v4114_v63 = vpop.f32.mrf.mxu1  ;;  %4384 = vmatpush.msra.mxu0 %v9860_v50  ;;  %4329 = vmatpush.msrb.mxu2 %v9900_v51 }
 0x816   :  { %v4056_v30 = vpop.f32.mrf.mxu3  ;;  %4510 = vmatpush.msra.mxu3 %v9669_v62  ;;  %v10251_v62 = vld [vmem:[#allocation11_spill] sm:$0xff] }
 0x817   :  { %v4086_v9 = vadd.f32 %v4085_v61, %v4056_v30  ;;  %v4088_v18 = vpop.f32.mrf.mxu0  ;;  %4385 = vmatpush.msra.mxu0 %v9881_v16  ;;  %4466 = vmatpush.msra.mxu2 %v9647_v8 }
 0x819   :  { %v4115_v59 = vadd.f32 %v4114_v63, %v4086_v9  ;;  %v9909_v9 = vld [vmem:[%s10097_s10 + $0x108] sm:$0xff]  ;;  %4386 = vmatpush.msra.mxu0 %v9891_v31  ;;  %4467 = vmatpush.msra.mxu2 %v9675_v40 }
 0x81b   :  { %v9876_v61 = vadd.f32 %v4115_v59, %v3798_v53  ;;  %4387 = vmatpush.msra.mxu0 %v9909_v9  ;;  %4468 = vmatpush.msra.mxu2 %v9690_v36  ;;  %v3775_v36 = vadd.f32 %v9586_v43, %v3746_v46  ;;  %v10255_v53 = vld [vmem:[#allocation20_spill] sm:$0xff]  ;;  %v10256_v59 = vld [vmem:[#allocation21_spill] sm:$0xff] }
 0x81c   :  { %v10262_v46 = vld [vmem:[#allocation13_spill] sm:$0xff] }
 0x81d   :  { %v4117_v52 = vpop.f32.mrf.mxu1  ;;  %4301 = vmatmul.f32.vlgmr.msrb.gmra.mxu1 %v9876_v61  ;;  %4359 = vmatmul.f32.vlgmr.msrb.gmra.mxu3 %v9876_v61  ;;  %v3804_v55 = vadd.f32 %v9722_v22, %v3775_v36  ;;  %v4143_v22 = vpop.f32.mrf.mxu2  ;;  %v10264_v36 = vld [vmem:[#allocation10_spill] sm:$0xff] }
 0x81e   :  { %v4059_v4 = vpop.f32.mrf.mxu3  ;;  %4524 = vmatpush.msrb.mxu0 %v9658_v3  ;;  %4469 = vmatpush.msra.mxu2 %v9702_v6  ;;  %v10248_v6 = vld [vmem:[#allocation8_spill] sm:$0xff] }
 0x81f   :  { %v4089_v63 = vadd.f32 %v4088_v18, %v4059_v4  ;;  %v4091_v58 = vpop.f32.mrf.mxu0  ;;  %v3830_v18 = vadd.f32 %v10256_v59, %v10255_v53  ;;  %v10260_v4 = vld [vmem:[#allocation26_spill] sm:$0xff] }
 0x820   :  { %4525 = vmatpush.msrb.mxu0 %v9685_v47  ;;  %4470 = vmatpush.msra.mxu2 %v9714_v15 }
 0x821   :  { %v4118_v30 = vadd.f32 %v4117_v52, %v4089_v63 }
 0x822   :  { %4526 = vmatpush.msrb.mxu0 %v9697_v33  ;;  %4471 = vmatpush.msra.mxu2 %v9732_v29  ;;  %v3749_v33 = vadd.f32 %v10248_v6, %v3623_v35 }
 0x823   :  { %v9925_v42 = vadd.f32 %v4118_v30, %v3801_v27 }
 0x824   :  { %4527 = vmatpush.msrb.mxu0 %v9709_v1  ;;  %4472 = vmatpush.msra.mxu2 %v10249_v37 }
 0x825   :  { %v4120_v40 = vpop.f32.mrf.mxu1  ;;  %4304 = vmatmul.f32.gmra.mxu1 %v9925_v42  ;;  %4362 = vmatmul.f32.gmra.mxu3 %v9925_v42 }
 0x826   :  { %v4062_v24 = vpop.f32.mrf.mxu3  ;;  %4528 = vmatpush.msrb.mxu0 %v9727_v5  ;;  %4473 = vmatpush.msra.mxu2 %v9764_v0  ;;  %v10250_v5 = vld [vmem:[#allocation6_spill] sm:$0xff] }
 0x827   :  { %v4092_v7 = vadd.f32 %v4091_v58, %v4062_v24  ;;  %v4094_v60 = vpop.f32.mrf.mxu0  ;;  %v3778_v29 = vadd.f32 %v10250_v5, %v3749_v33 }
 0x828   :  { %4529 = vmatpush.msrb.mxu0 %v9749_v28  ;;  %4474 = vmatpush.msra.mxu2 %v9778_v41  ;;  %v10252_v28 = vld [vmem:[#allocation4_spill] sm:$0xff] }
 0x829   :  { %v4121_v47 = vadd.f32 %v4120_v40, %v4092_v7  ;;  %v3807_v44 = vadd.f32 %v9788_v25, %v3778_v29  ;;  %v3836_v40 = vadd.f32 %v10263_v19, %v10262_v46 }
 0x82a   :  { %4530 = vmatpush.msrb.mxu0 %v9759_v54  ;;  %4475 = vmatpush.msra.mxu2 %v9798_v14  ;;  %v3827_v54 = vadd.f32 %v10252_v28, %v10251_v62 }
 0x82b   :  { %v9949_v43 = vadd.f32 %v4121_v47, %v3804_v55  ;;  %v3865_v7 = vadd.f32 %v10264_v36, %v3836_v40 }
 0x82c   :  { %4531 = vmatpush.msrb.mxu0 %v9773_v32  ;;  %4476 = vmatpush.msra.mxu2 %v9817_v20  ;;  %v10253_v32 = vld [vmem:[#allocation16_spill] sm:$0xff]  ;;  %v4146_v20 = vpop.f32.mrf.mxu2 }
 0x82d   :  { %4307 = vmatmul.f32.gmra.mxu1 %v9949_v43  ;;  %4365 = vmatmul.f32.gmra.mxu3 %v9949_v43  ;;  %v4123_v1 = vpop.f32.mrf.mxu1  ;;  %v3856_v57 = vadd.f32 %v10253_v32, %v3827_v54 }
 0x82e   :  { %v4065_v15 = vpop.f32.mrf.mxu3  ;;  %4532 = vmatpush.msrb.mxu0 %v9793_v34  ;;  %4477 = vmatpush.msra.mxu2 %v9829_v48  ;;  %v10254_v34 = vld [vmem:[#allocation18_spill] sm:$0xff]  ;;  %v10257_v48 = vld [vmem:[#allocation28_spill] sm:$0xff] }
 0x82f   :  { %v4095_v8 = vadd.f32 %v4094_v60, %v4065_v15  ;;  %v4201_v13 = vpop.f32.mrf.mxu0  ;;  %v3885_v14 = vadd.f32 %v10254_v34, %v3856_v57  ;;  %v3894_v60 = vadd.f32 %v9935_v2, %v3865_v7 }
 0x830   :  { %4533 = vmatpush.msrb.mxu0 %v9812_v26  ;;  %4478 = vmatpush.msra.mxu2 %v9844_v21  ;;  %v3859_v21 = vadd.f32 %v10257_v48, %v3830_v18 }
 0x831   :  { %v4124_v3 = vadd.f32 %v4123_v1, %v4095_v8 }
 0x832   :  { %4534 = vmatpush.msrb.mxu0 %v9824_v10  ;;  %4479 = vmatpush.msra.mxu2 %v9865_v56  ;;  %v10258_v56 = vld [vmem:[#allocation14_spill] sm:$0xff] }
 0x833   :  { %v9965_v0 = vadd.f32 %v4124_v3, %v3807_v44  ;;  %v3888_v17 = vadd.f32 %v10258_v56, %v3859_v21 }
 0x834   :  { %4535 = vmatpush.msrb.mxu0 %v9839_v49  ;;  %4480 = vmatpush.msra.mxu2 %v9886_v38  ;;  %v4149_v63 = vpop.f32.mrf.mxu2 }
 0x835   :  { %4310 = vmatmul.f32.gmra.mxu1 %v9965_v0  ;;  %4368 = vmatmul.f32.gmra.mxu3 %v9965_v0 }
 0x836   :  { %v4172_v41 = vpop.f32.mrf.mxu3  ;;  %4536 = vmatpush.msrb.mxu0 %v9860_v50  ;;  %4481 = vmatpush.msra.mxu2 %v9900_v51 }
 0x837   :  { %v4173_v25 = vadd.f32 %v4172_v41, %v4143_v22  ;;  %v4204_v10 = vpop.f32.mrf.mxu0 }
 0x838   :  { %4537 = vmatpush.msrb.mxu0 %v9881_v16  ;;  %v10259_v16 = vld [vmem:[#allocation15_spill] sm:$0xff] }
 0x839   :  { %v4202_v26 = vadd.f32 %v4201_v13, %v4173_v25  ;;  %v3833_v38 = vadd.f32 %v10260_v4, %v10259_v16 }
 0x83a   :  { %4538 = vmatpush.msrb.mxu0 %v9891_v31 }
 0x83b   :  { %v9981_v23 = vadd.f32 %v4202_v26, %v3885_v14  ;;  %v3862_v27 = vadd.f32 %v10261_v45, %v3833_v38 }
 0x83c   :  { %4539 = vmatpush.msrb.mxu0 %v9909_v9  ;;  %v4152_v11 = vpop.f32.mrf.mxu2 }
 0x83d   :  { %4330 = vmatmul.f32.vlgmr.msrb.gmra.mxu2 %v9981_v23  ;;  %4388 = vmatmul.f32.vlgmr.msra.gmra.mxu0 %v9981_v23  ;;  %v3891_v9 = vadd.f32 %v9893_v12, %v3862_v27 }
 0x83e   :  { %v4175_v49 = vpop.f32.mrf.mxu3 }
 0x83f   :  { %v4176_v50 = vadd.f32 %v4175_v49, %v4146_v20  ;;  %v4207_v51 = vpop.f32.mrf.mxu0 }
 0x841   :  { %v4205_v52 = vadd.f32 %v4204_v10, %v4176_v50 }
 0x843   :  { %v9994_v39 = vadd.f32 %v4205_v52, %v3888_v17 }
 0x845   :  { %4333 = vmatmul.f32.gmra.mxu2 %v9994_v39  ;;  %4391 = vmatmul.f32.gmra.mxu0 %v9994_v39 }
 0x846   :  { %v4178_v31 = vpop.f32.mrf.mxu3 }
 0x847   :  { %v4179_v30 = vadd.f32 %v4178_v31, %v4149_v63  ;;  %v4210_v47 = vpop.f32.mrf.mxu0 }
 0x849   :  { %v4208_v58 = vadd.f32 %v4207_v51, %v4179_v30 }
 0x84b   :  { %v10002_v24 = vadd.f32 %v4208_v58, %v3891_v9 }
 0x84d   :  { %4336 = vmatmul.f32.gmra.mxu2 %v10002_v24  ;;  %4394 = vmatmul.f32.gmra.mxu0 %v10002_v24 }
 0x84e   :  { %v4181_v35 = vpop.f32.mrf.mxu3 }
 0x84f   :  { %v4182_v55 = vadd.f32 %v4181_v35, %v4152_v11 }
 0x851   :  { %v4211_v6 = vadd.f32 %v4210_v47, %v4182_v55 }
 0x853   :  { %v10008_v12 = vadd.f32 %v4211_v6, %v3894_v60 }
 0x855   :  { %4339 = vmatmul.f32.gmra.mxu2 %v10008_v12  ;;  %4397 = vmatmul.f32.gmra.mxu0 %v10008_v12 }
 0x89a   :  { %v4302_v37 = vpop.f32.mrf.mxu1 }
 0x8a0   :  { %v4360_v33 = vpop.f32.mrf.mxu3 }
 0x8a2   :  { %v4305_v8 = vpop.f32.mrf.mxu1 }
 0x8a8   :  { %v4363_v1 = vpop.f32.mrf.mxu3 }
 0x8aa   :  { %v4308_v62 = vpop.f32.mrf.mxu1 }
 0x8b0   :  { %v4366_v22 = vpop.f32.mrf.mxu3 }
 0x8b2   :  { %v4311_v10 = vpop.f32.mrf.mxu1 }
 0x8b8   :  { %v4369_v57 = vpop.f32.mrf.mxu3 }
 0x8ba   :  { %v4389_v15 = vpop.f32.mrf.mxu0 }
 0x8bb   :  { %v4390_v2 = vadd.f32 %v4389_v15, %v4360_v33 }
 0x8c0   :  { %v4331_v5 = vpop.f32.mrf.mxu2 }
 0x8c1   :  { %v4332_v26 = vadd.f32 %v4331_v5, %v4302_v37 }
 0x8c2   :  { %v4392_v29 = vpop.f32.mrf.mxu0 }
 0x8c3   :  { %v4393_v13 = vadd.f32 %v4392_v29, %v4363_v1 }
 0x8c5   :  { %v4410_v32 = vadd.f32 %v4393_v13, %v4390_v2 }
 0x8c8   :  { %v4334_v44 = vpop.f32.mrf.mxu2 }
 0x8c9   :  { %v4335_v25 = vadd.f32 %v4334_v44, %v4305_v8 }
 0x8ca   :  { %v4395_v3 = vpop.f32.mrf.mxu0 }
 0x8cb   :  { %v4396_v28 = vadd.f32 %v4395_v3, %v4366_v22  ;;  %v4401_v59 = vadd.f32 %v4335_v25, %v4332_v26 }
 0x8cd   :  { %v4411_v34 = vadd.f32 %v4410_v32, %v4396_v28 }
 0x8d0   :  { %v4337_v54 = vpop.f32.mrf.mxu2 }
 0x8d1   :  { %v4338_v20 = vadd.f32 %v4337_v54, %v4308_v62 }
 0x8d2   :  { %v4398_v41 = vpop.f32.mrf.mxu0 }
 0x8d3   :  { %v4399_v14 = vadd.f32 %v4398_v41, %v4369_v57  ;;  %v4402_v21 = vadd.f32 %v4401_v59, %v4338_v20 }
 0x8d5   :  { %v4412_v53 = vadd.f32 %v4411_v34, %v4399_v14 }
 0x8d7   :  { %v4413_v18 = vrot.slane %v4412_v53, 4 }
 0x8d8   :  { %v4340_v48 = vpop.f32.mrf.mxu2 }
 0x8d9   :  { %v4414_v49 = vadd.f32 %v4413_v18, %v4412_v53  ;;  %v4341_v50 = vadd.f32 %v4340_v48, %v4311_v10 }
 0x8db   :  { %v4415_v56 = vrot.slane %v4414_v49, 2  ;;  %v4403_v17 = vadd.f32 %v4402_v21, %v4341_v50 }
 0x8dd   :  { %v4416_v52 = vadd.f32 %v4415_v56, %v4414_v49  ;;  %v4404_v16 = vrot.slane %v4403_v17, 4 }
 0x8df   :  { %v4417_v4 = vrot.slane %v4416_v52, 1  ;;  %v4405_v38 = vadd.f32 %v4404_v16, %v4403_v17 }
 0x8e1   :  { %v4418_v63 = vadd.f32 %v4417_v4, %v4416_v52  ;;  %v4406_v45 = vrot.slane %v4405_v38, 2 }
 0x8e3   :  { %v4420_v27 = vmul.f32 0.001953125, %v4418_v63  ;;  %v4407_v31 = vadd.f32 %v4406_v45, %v4405_v38 }
 0x8e5   :  { %v4408_v51 = vrot.slane %v4407_v31, 1  ;;  %v10013_v30 = vsub.f32 %v9981_v23, %v4420_v27  ;;  %v10021_v40 = vsub.f32 %v9994_v39, %v4420_v27  ;;  %v10031_v11 = vsub.f32 %v10002_v24, %v4420_v27 }
 0x8e6   :  { %v10041_v55 = vsub.f32 %v10008_v12, %v4420_v27 }
 0x8e7   :  { %v4409_v9 = vadd.f32 %v4408_v51, %v4407_v31  ;;  %v4430_v58 = vmul.f32 %v10013_v30, %v10013_v30  ;;  %v4432_v23 = vmul.f32 %v10021_v40, %v10021_v40  ;;  %v4434_v39 = vmul.f32 %v10031_v11, %v10031_v11 }
 0x8e8   :  { %v4436_v24 = vmul.f32 %v10041_v55, %v10041_v55 }
 0x8e9   :  { %v4419_v46 = vmul.f32 0.001953125, %v4409_v9  ;;  %4482 = vmatmul.f32.vlgmr.msra.gmra.mxu2 %v4430_v58  ;;  %4540 = vmatmul.f32.vlgmr.msrb.gmra.mxu0 %v4430_v58 }
 0x8eb   :  { %v10018_v19 = vsub.f32 %v9876_v61, %v4419_v46  ;;  %v10028_v7 = vsub.f32 %v9925_v42, %v4419_v46  ;;  %v10038_v35 = vsub.f32 %v9949_v43, %v4419_v46  ;;  %v10048_v47 = vsub.f32 %v9965_v0, %v4419_v46 }
 0x8ed   :  { %v4429_v36 = vmul.f32 %v10018_v19, %v10018_v19  ;;  %v4431_v61 = vmul.f32 %v10028_v7, %v10028_v7  ;;  %v4433_v42 = vmul.f32 %v10038_v35, %v10038_v35  ;;  %v4435_v43 = vmul.f32 %v10048_v47, %v10048_v47 }
 0x8ef   :  { %4453 = vmatmul.f32.vlgmr.msra.gmra.mxu1 %v4429_v36  ;;  %4511 = vmatmul.f32.vlgmr.msra.gmra.mxu3 %v4429_v36 }
 0x8f1   :  { %4485 = vmatmul.f32.gmra.mxu2 %v4432_v23  ;;  %4543 = vmatmul.f32.gmra.mxu0 %v4432_v23 }
 0x8f7   :  { %4456 = vmatmul.f32.gmra.mxu1 %v4431_v61  ;;  %4514 = vmatmul.f32.gmra.mxu3 %v4431_v61 }
 0x8f9   :  { %4488 = vmatmul.f32.gmra.mxu2 %v4434_v39  ;;  %4546 = vmatmul.f32.gmra.mxu0 %v4434_v39 }
 0x8ff   :  { %4459 = vmatmul.f32.gmra.mxu1 %v4433_v42  ;;  %4517 = vmatmul.f32.gmra.mxu3 %v4433_v42 }
 0x901   :  { %4491 = vmatmul.f32.gmra.mxu2 %v4436_v24  ;;  %4549 = vmatmul.f32.gmra.mxu0 %v4436_v24 }
 0x907   :  { %4462 = vmatmul.f32.gmra.mxu1 %v4435_v43  ;;  %4520 = vmatmul.f32.gmra.mxu3 %v4435_v43 }
 0x966   :  { %v4541_v60 = vpop.f32.mrf.mxu0 }
 0x96c   :  { %v4454_v6 = vpop.f32.mrf.mxu1  ;;  %v4483_v12 = vpop.f32.mrf.mxu2 }
 0x96d   :  { %v4484_v3 = vadd.f32 %v4483_v12, %v4454_v6 }
 0x96e   :  { %v4544_v1 = vpop.f32.mrf.mxu0 }
 0x972   :  { %v4512_v33 = vpop.f32.mrf.mxu3 }
 0x973   :  { %v4542_v41 = vadd.f32 %v4541_v60, %v4512_v33  ;;  %v5173_v33 = vld [vmem:[%s10098_s8 + $0x2] ss:$4 sm:$0x3] }
 0x974   :  { %v4457_v37 = vpop.f32.mrf.mxu1  ;;  %v4486_v15 = vpop.f32.mrf.mxu2 }
 0x975   :  { %v4487_v22 = vadd.f32 %v4486_v15, %v4457_v37 }
 0x976   :  { %v4547_v44 = vpop.f32.mrf.mxu0 }
 0x977   :  { %v4553_v62 = vadd.f32 %v4487_v22, %v4484_v3 }
 0x97a   :  { %v4515_v5 = vpop.f32.mrf.mxu3 }
 0x97b   :  { %v4545_v54 = vadd.f32 %v4544_v1, %v4515_v5  ;;  %v5174_v1 = vld [vmem:[%s10099_s9 + $0x2] ss:$4 sm:$0x3] }
 0x97c   :  { %v4460_v29 = vpop.f32.mrf.mxu1  ;;  %v4489_v8 = vpop.f32.mrf.mxu2  ;;  %v4620_v22 = vperm.slane %v5174_v1, 1 }
 0x97d   :  { %v4490_v0 = vadd.f32 %v4489_v8, %v4460_v29  ;;  %v4562_v14 = vadd.f32 %v4545_v54, %v4542_v41  ;;  %v4619_v8 = vperm.slane %v5174_v1, 0 }
 0x97e   :  { %v4550_v20 = vpop.f32.mrf.mxu0 }
 0x97f   :  { %v4554_v32 = vadd.f32 %v4553_v62, %v4490_v0 }
 0x982   :  { %v4518_v13 = vpop.f32.mrf.mxu3 }
 0x983   :  { %v4548_v25 = vadd.f32 %v4547_v44, %v4518_v13 }
 0x984   :  { %v4463_v2 = vpop.f32.mrf.mxu1  ;;  %v4492_v28 = vpop.f32.mrf.mxu2 }
 0x985   :  { %v4493_v57 = vadd.f32 %v4492_v28, %v4463_v2  ;;  %v4563_v59 = vadd.f32 %v4562_v14, %v4548_v25 }
 0x987   :  { %v4555_v34 = vadd.f32 %v4554_v32, %v4493_v57 }
 0x989   :  { %v4556_v26 = vrot.slane %v4555_v34, 4 }
 0x98a   :  { %v4521_v53 = vpop.f32.mrf.mxu3 }
 0x98b   :  { %v4557_v18 = vadd.f32 %v4556_v26, %v4555_v34  ;;  %v4551_v10 = vadd.f32 %v4550_v20, %v4521_v53 }
 0x98d   :  { %v4558_v48 = vrot.slane %v4557_v18, 2  ;;  %v4564_v21 = vadd.f32 %v4563_v59, %v4551_v10 }
 0x98f   :  { %v4559_v49 = vadd.f32 %v4558_v48, %v4557_v18  ;;  %v4565_v50 = vrot.slane %v4564_v21, 4 }
 0x991   :  { %v4560_v56 = vrot.slane %v4559_v49, 1  ;;  %v4566_v17 = vadd.f32 %v4565_v50, %v4564_v21 }
 0x993   :  { %v4561_v52 = vadd.f32 %v4560_v56, %v4559_v49  ;;  %v4567_v16 = vrot.slane %v4566_v17, 2 }
 0x995   :  { %v4571_v4 = vmul.f32 0.001953125, %v4561_v52  ;;  %v4568_v38 = vadd.f32 %v4567_v16, %v4566_v17 }
 0x997   :  { %v4575_v63 = vadd.f32 0.0001, %v4571_v4  ;;  %v4569_v45 = vrot.slane %v4568_v38, 1 }
 0x999   :  { %5185 = vrsqrt.f32 %v4575_v63  ;;  %v4570_v27 = vadd.f32 %v4569_v45, %v4568_v38  ;;  %vm4583_vm15 = vweird.f32 %v4575_v63 }
 0x99b   :  { %v4572_v31 = vmul.f32 0.001953125, %v4570_v27 }
 0x99d   :  { %v4576_v51 = vadd.f32 0.0001, %v4572_v31 }
 0x99f   :  { %v5186_v9 = vpop.eup %5185  ;;  %5187 = vrsqrt.f32 %v4576_v51  ;;  %vm4593_vm7 = vweird.f32 %v4576_v51 }
 0x9a0   :  { %v4578_v58 = vmul.f32 %v5186_v9, %v4575_v63  ;;  %vm4584_vm5 = vweird.f32 %v5186_v9 }
 0x9a1   :  { %vm4585_vm2 = vmor %vm4583_vm15, %vm4584_vm5 }
 0x9a2   :  { %v4579_v46 = vmul.f32 %v5186_v9, %v4578_v58 }
 0x9a4   :  { %v4580_v23 = vmul.f32 0.5, %v4579_v46 }
 0x9a5   :  { %v5188_v36 = vpop.eup %5187 }
 0x9a6   :  { %v4588_v61 = vmul.f32 %v5188_v36, %v4576_v51  ;;  %v4581_v42 = vsub.f32 1.5, %v4580_v23  ;;  %vm4594_vm0 = vweird.f32 %v5188_v36 }
 0x9a7   :  { %vm4595_vm8 = vmor %vm4593_vm7, %vm4594_vm0 }
 0x9a8   :  { %v4589_v39 = vmul.f32 %v5188_v36, %v4588_v61  ;;  %v4582_v60 = vmul.f32 %v5186_v9, %v4581_v42 }
 0x9aa   :  { %v4590_v24 = vmul.f32 0.5, %v4589_v39  ;;  %v4586_v15 = vsel %vm4585_vm2, %v5186_v9, %v4582_v60 }
 0x9ac   :  { %v4591_v43 = vsub.f32 1.5, %v4590_v24 }
 0x9ae   :  { %v4592_v6 = vmul.f32 %v5188_v36, %v4591_v43 }
 0x9b0   :  { %v4596_v12 = vsel %vm4595_vm8, %v5188_v36, %v4592_v6 }
 0x9b1   :  { %v4599_v37 = vrot.slane %v4596_v12, 7 }
 0x9b3   :  { %v4600_v5 = vsel %vm404_vm4, %v4586_v15, %v4599_v37 }
 0x9b4   :  { %v4602_v29 = vmul.f32 %v5173_v33, %v4600_v5 }
 0x9b6   :  { %v4604_v44 = vperm.slane %v4602_v29, 0  ;;  %v4605_v3 = vperm.slane %v4602_v29, 1 }
 0x9b8   :  { %v4608_v0 = vmul.f32 %v4604_v44, %v10018_v19  ;;  %v4609_v13 = vmul.f32 %v4605_v3, %v10013_v30  ;;  %v4610_v62 = vmul.f32 %v4604_v44, %v10028_v7  ;;  %v4611_v2 = vmul.f32 %v4605_v3, %v10021_v40 }
 0x9b9   :  { %v4612_v28 = vmul.f32 %v4604_v44, %v10038_v35  ;;  %v4613_v54 = vmul.f32 %v4605_v3, %v10031_v11  ;;  %v4614_v32 = vmul.f32 %v4604_v44, %v10048_v47  ;;  %v4615_v57 = vmul.f32 %v4605_v3, %v10041_v55 }
 0x9ba   :  { %v4623_v41 = vadd.f32 %v4619_v8, %v4608_v0  ;;  %v4624_v25 = vadd.f32 %v4620_v22, %v4609_v13  ;;  %v4625_v34 = vadd.f32 %v4619_v8, %v4610_v62  ;;  %v4626_v14 = vadd.f32 %v4620_v22, %v4611_v2 }
 0x9bb   :  { %v4627_v26 = vadd.f32 %v4619_v8, %v4612_v28  ;;  %v4628_v19 = vadd.f32 %v4620_v22, %v4613_v54  ;;  %v4629_v20 = vadd.f32 %v4619_v8, %v4614_v32  ;;  %v4630_v59 = vadd.f32 %v4620_v22, %v4615_v57 }
 0x9bc   :  { %v4631_v30 = vmax.f32 %v4623_v41, 0.0  ;;  %v4632_v53 = vmax.f32 %v4624_v25, 0.0  ;;  %v4633_v7 = vmax.f32 %v4625_v34, 0.0  ;;  %v4634_v40 = vmax.f32 %v4626_v14, 0.0 }
 0x9bd   :  { %v4635_v18 = vmax.f32 %v4627_v26, 0.0  ;;  %v4636_v11 = vmax.f32 %v4628_v19, 0.0  ;;  %v4637_v35 = vmax.f32 %v4629_v20, 0.0  ;;  %v4638_v55 = vmax.f32 %v4630_v59, 0.0 }
 0x9be   :  { %4639 = vst [vmem:[%s10102_s11] sm:$0xff] %v4631_v30 }
 0x9bf   :  { %4640 = vst [vmem:[%s10102_s11 + $0x8] sm:$0xff] %v4632_v53 }
 0x9c0   :  { %4641 = vst [vmem:[%s10102_s11 + $0x10] sm:$0xff] %v4633_v7 }
 0x9c1   :  { %4642 = vst [vmem:[%s10102_s11 + $0x18] sm:$0xff] %v4634_v40 }
 0x9c2   :  { %4643 = vst [vmem:[%s10102_s11 + $0x20] sm:$0xff] %v4635_v18 }
 0x9c3   :  { %4644 = vst [vmem:[%s10102_s11 + $0x28] sm:$0xff] %v4636_v11 }
 0x9c4   :  { %4645 = vst [vmem:[%s10102_s11 + $0x30] sm:$0xff] %v4637_v35 }
 0x9c5   :  { %4646 = vst [vmem:[%s10102_s11 + $0x38] sm:$0xff] %v4638_v55 }

</bundles_post_ra>
